<compile_context>
chip_gen: v7x
topology: tpu7x:2x2x1
jax: 0.10.0
libtpu: 0.0.40
codegen_flags: <defaults>
</compile_context>

<pallas_src>
import jax
import jax.numpy as jnp
from jax import lax
from jax.experimental import pallas as pl
from jax.experimental.pallas import tpu as pltpu

BN_EPS = 1e-5


def _padded_bytes(shape, dtype):
    """Approximate VMEM footprint of one buffer after (sublane, lane) padding."""
    itemsize = jnp.dtype(dtype).itemsize
    dims = list(shape)
    if dims:
        dims[-1] = -(-dims[-1] // 128) * 128
    if len(dims) >= 2:
        sub = {4: 8, 2: 16, 1: 32}.get(itemsize, 8)
        dims[-2] = -(-dims[-2] // sub) * sub
    n = itemsize
    for d in dims:
        n *= d
    return n


# ----------------------------------------------------------------------------
# Kernel B: fused  (bn1 shift) -> conv1(3x3, single K=9*Cin matmul, bn1 scale
#           folded into weights) -> +bias -> ReLU, with per-image per-channel
#           sum / sumsq (partial bn2 stats) emitted from the epilogue.
# ----------------------------------------------------------------------------
def _conv1_bn_relu_stats_kernel(x_ref, shift_ref, w_ref, b_ref,
                                y_ref, sum_ref, sq_ref,
                                xpad_ref, patch_ref):
    _, H, W, Cin = x_ref.shape
    Cout = y_ref.shape[3]

    # Zero only the thin halo strips; the interior is fully overwritten below.
    xpad_ref[0:1, :, :] = jnp.zeros((1, W + 2, Cin), xpad_ref.dtype)
    xpad_ref[H + 1:H + 2, :, :] = jnp.zeros((1, W + 2, Cin), xpad_ref.dtype)
    xpad_ref[:, 0:1, :] = jnp.zeros((H + 2, 1, Cin), xpad_ref.dtype)
    xpad_ref[:, W + 1:W + 2, :] = jnp.zeros((H + 2, 1, Cin), xpad_ref.dtype)

    # bn1: scale folded into w outside; only the (shift/scale) add stays here
    # so the zero halo keeps contributing exactly zero to the conv.
    xn = x_ref[0] + shift_ref[...].reshape(1, 1, Cin)            # f32
    xpad_ref[1:H + 1, 1:W + 1, :] = xn.astype(xpad_ref.dtype)    # bf16

    # im2col: 9 direct bf16 stores into the (H*W, 9*Cin) patch scratch.
    for k in range(9):
        dy, dx = divmod(k, 3)
        patch_ref[:, k * Cin:(k + 1) * Cin] = (
            xpad_ref[dy:dy + H, dx:dx + W, :].reshape(H * W, Cin))

    # single bf16 MXU matmul, f32 accumulation.
    acc = jnp.dot(patch_ref[...], w_ref[...],
                  preferred_element_type=jnp.float32)
    y = jnp.maximum(acc + b_ref[...], 0.0)                       # (H*W, Cout) f32

    # epilogue: partial batch statistics for bn2 (f32).
    sum_ref[...] = jnp.sum(y, axis=0).reshape(1, 1, Cout)
    sq_ref[...] = jnp.sum(y * y, axis=0).reshape(1, 1, Cout)

    y_ref[0] = y.reshape(H, W, Cout).astype(y_ref.dtype)


def conv1_bn_relu_stats(x_nhwc, shift, w_flat_bf16, b):
    N, H, W, Cin = x_nhwc.shape
    Cout = w_flat_bf16.shape[1]

    blocks = [((1, H, W, Cin), jnp.float32), ((1, Cin), jnp.float32),
              ((9 * Cin, Cout), jnp.bfloat16), ((1, Cout), jnp.float32),
              ((1, H, W, Cout), jnp.bfloat16),
              ((1, 1, Cout), jnp.float32), ((1, 1, Cout), jnp.float32)]
    scratch = [((H + 2, W + 2, Cin), jnp.bfloat16),
               ((H * W, 9 * Cin), jnp.bfloat16)]
    vmem_limit = int(2 * sum(_padded_bytes(s, d) for s, d in blocks)
                     + sum(_padded_bytes(s, d) for s, d in scratch)
                     + (4 << 20))
    cost = pl.CostEstimate(
        flops=2 * N * H * W * 9 * Cin * Cout + 4 * N * H * W * Cout,
        transcendentals=0,
        bytes_accessed=int(N * H * W * Cin * 4 + N * H * W * Cout * 2
                           + 9 * Cin * Cout * 2 + 2 * N * Cout * 4))

    return pl.pallas_call(
        _conv1_bn_relu_stats_kernel,
        out_shape=(jax.ShapeDtypeStruct((N, H, W, Cout), jnp.bfloat16),
                   jax.ShapeDtypeStruct((N, 1, Cout), jnp.float32),
                   jax.ShapeDtypeStruct((N, 1, Cout), jnp.float32)),
        grid=(N,),
        in_specs=[
            pl.BlockSpec((1, H, W, Cin), lambda n: (n, 0, 0, 0)),
            pl.BlockSpec((1, Cin), lambda n: (0, 0)),
            pl.BlockSpec((9 * Cin, Cout), lambda n: (0, 0)),
            pl.BlockSpec((1, Cout), lambda n: (0, 0)),
        ],
        out_specs=(
            pl.BlockSpec((1, H, W, Cout), lambda n: (n, 0, 0, 0)),
            pl.BlockSpec((1, 1, Cout), lambda n: (n, 0, 0)),
            pl.BlockSpec((1, 1, Cout), lambda n: (n, 0, 0)),
        ),
        scratch_shapes=[pltpu.VMEM((H + 2, W + 2, Cin), jnp.bfloat16),
                        pltpu.VMEM((H * W, 9 * Cin), jnp.bfloat16)],
        compiler_params=pltpu.CompilerParams(
            dimension_semantics=("parallel",),
            vmem_limit_bytes=vmem_limit),
        cost_estimate=cost,
    )(x_nhwc, shift, w_flat_bf16, b)


# ----------------------------------------------------------------------------
# Kernel C: fused  (bn2 shift) -> conv2(3x3, bn2 scale folded into weights)
#           -> +bias -> ReLU -> conv3(1x1, transposed => lane-dense output).
#           The conv2 activation never leaves VMEM.
# ----------------------------------------------------------------------------
def _conv2_relu_conv3_kernel(y_ref, shift_ref, w2_ref, b2_ref, w3_ref, b3_ref,
                             o_ref, ypad_ref, patch_ref):
    _, H, W, Cin = y_ref.shape

    ypad_ref[0:1, :, :] = jnp.zeros((1, W + 2, Cin), ypad_ref.dtype)
    ypad_ref[H + 1:H + 2, :, :] = jnp.zeros((1, W + 2, Cin), ypad_ref.dtype)
    ypad_ref[:, 0:1, :] = jnp.zeros((H + 2, 1, Cin), ypad_ref.dtype)
    ypad_ref[:, W + 1:W + 2, :] = jnp.zeros((H + 2, 1, Cin), ypad_ref.dtype)

    yn = y_ref[0].astype(jnp.float32) + shift_ref[...].reshape(1, 1, Cin)
    ypad_ref[1:H + 1, 1:W + 1, :] = yn.astype(ypad_ref.dtype)    # bf16

    for k in range(9):
        dy, dx = divmod(k, 3)
        patch_ref[:, k * Cin:(k + 1) * Cin] = (
            ypad_ref[dy:dy + H, dx:dx + W, :].reshape(H * W, Cin))

    h = jnp.dot(patch_ref[...], w2_ref[...],
                preferred_element_type=jnp.float32)
    h = jnp.maximum(h + b2_ref[...], 0.0)                        # (H*W, Cmid) f32

    # conv3 (1x1) computed transposed: (1, Cmid) x (H*W, Cmid)^T -> (1, H*W),
    # so the output store is lane-dense instead of a 1-lane masked store.
    out = lax.dot_general(w3_ref[...], h.astype(jnp.bfloat16),
                          dimension_numbers=(((1,), (1,)), ((), ())),
                          preferred_element_type=jnp.float32)
    o_ref[0] = out + b3_ref[...]                                 # (1, H*W) f32


def conv2_relu_conv3(y_bf16, shift, w2_flat_bf16, b2, w3t_bf16, b3):
    N, H, W, Cin = y_bf16.shape
    Cmid = w2_flat_bf16.shape[1]

    blocks = [((1, H, W, Cin), jnp.bfloat16), ((1, Cin), jnp.float32),
              ((9 * Cin, Cmid), jnp.bfloat16), ((1, Cmid), jnp.float32),
              ((1, Cmid), jnp.bfloat16), ((1, 1), jnp.float32),
              ((1, 1, H * W), jnp.float32)]
    scratch = [((H + 2, W + 2, Cin), jnp.bfloat16),
               ((H * W, 9 * Cin), jnp.bfloat16)]
    vmem_limit = int(2 * sum(_padded_bytes(s, d) for s, d in blocks)
                     + sum(_padded_bytes(s, d) for s, d in scratch)
                     + (4 << 20))
    cost = pl.CostEstimate(
        flops=2 * N * H * W * 9 * Cin * Cmid + 2 * N * H * W * Cmid,
        transcendentals=0,
        bytes_accessed=int(N * H * W * Cin * 2 + N * H * W * 4
                           + 9 * Cin * Cmid * 2 + Cmid * 2))

    return pl.pallas_call(
        _conv2_relu_conv3_kernel,
        out_shape=jax.ShapeDtypeStruct((N, 1, H * W), jnp.float32),
        grid=(N,),
        in_specs=[
            pl.BlockSpec((1, H, W, Cin), lambda n: (n, 0, 0, 0)),
            pl.BlockSpec((1, Cin), lambda n: (0, 0)),
            pl.BlockSpec((9 * Cin, Cmid), lambda n: (0, 0)),
            pl.BlockSpec((1, Cmid), lambda n: (0, 0)),
            pl.BlockSpec((1, Cmid), lambda n: (0, 0)),
            pl.BlockSpec((1, 1), lambda n: (0, 0)),
        ],
        out_specs=pl.BlockSpec((1, 1, H * W), lambda n: (n, 0, 0)),
        scratch_shapes=[pltpu.VMEM((H + 2, W + 2, Cin), jnp.bfloat16),
                        pltpu.VMEM((H * W, 9 * Cin), jnp.bfloat16)],
        compiler_params=pltpu.CompilerParams(
            dimension_semantics=("parallel",),
            vmem_limit_bytes=vmem_limit),
        cost_estimate=cost,
    )(y_bf16, shift, w2_flat_bf16, b2, w3t_bf16, b3)


# ----------------------------------------------------------------------------
# Parameters and forward pass (matches KAN.forward)
# ----------------------------------------------------------------------------
def init_kan_params(key):
    ks = jax.random.split(key, 10)
    return {
        "bn1_gamma": 1.0 + 0.1 * jax.random.normal(ks[0], (3,), jnp.float32),
        "bn1_beta": 0.1 * jax.random.normal(ks[1], (3,), jnp.float32),
        "w1": 0.1 * jax.random.normal(ks[2], (3, 3, 3, 64), jnp.float32),
        "b1": 0.1 * jax.random.normal(ks[3], (64,), jnp.float32),
        "bn2_gamma": 1.0 + 0.1 * jax.random.normal(ks[4], (64,), jnp.float32),
        "bn2_beta": 0.1 * jax.random.normal(ks[5], (64,), jnp.float32),
        "w2": 0.1 * jax.random.normal(ks[6], (3, 3, 64, 32), jnp.float32),
        "b2": 0.1 * jax.random.normal(ks[7], (32,), jnp.float32),
        "w3": 0.1 * jax.random.normal(ks[8], (32, 1), jnp.float32),   # 1x1 conv
        "b3": 0.1 * jax.random.normal(ks[9], (1,), jnp.float32),
    }


@jax.jit
def kan_forward(x_nchw, params):
    """bn1 -> relu(conv1) -> bn2 -> relu(conv2) -> conv3.  NCHW in/out."""
    x = jnp.transpose(x_nchw, (0, 2, 3, 1)).astype(jnp.float32)   # NCHW -> NHWC
    N, H, W, C0 = x.shape
    C1 = params["w1"].shape[-1]
    C2 = params["w2"].shape[-1]
    cnt = float(N * H * W)

    # bn1 batch statistics with plain XLA (input is tiny; no kernel needed).
    mean0 = jnp.mean(x, axis=(0, 1, 2))
    var0 = jnp.maximum(jnp.var(x, axis=(0, 1, 2)), 0.0)
    scale0 = params["bn1_gamma"] * lax.rsqrt(var0 + BN_EPS)
    shift0 = params["bn1_beta"] - mean0 * scale0

    # Fold the per-input-channel BN scale into the conv1 weights; the in-kernel
    # additive term becomes shift/scale:  (w*scale) . (x + shift/scale)
    #                                        == w . (x*scale + shift).
    w1f = (params["w1"] * scale0[None, None, :, None]
           ).reshape(9 * C0, C1).astype(jnp.bfloat16)
    y1, s1, q1 = conv1_bn_relu_stats(
        x, (shift0 / scale0).reshape(1, C0), w1f, params["b1"].reshape(1, C1))

    # bn2 batch statistics from kernel-B epilogue partial sums (clamped var).
    mean1 = jnp.sum(s1, axis=(0, 1)) / cnt
    var1 = jnp.maximum(jnp.sum(q1, axis=(0, 1)) / cnt - mean1 * mean1, 0.0)
    scale1 = params["bn2_gamma"] * lax.rsqrt(var1 + BN_EPS)
    shift1 = params["bn2_beta"] - mean1 * scale1

    w2f = (params["w2"] * scale1[None, None, :, None]
           ).reshape(9 * C1, C2).astype(jnp.bfloat16)
    w3t = params["w3"].T.astype(jnp.bfloat16)                     # (1, C2)

    out = conv2_relu_conv3(
        y1, (shift1 / scale1).reshape(1, C1), w2f,
        params["b2"].reshape(1, C2), w3t, params["b3"].reshape(1, 1))

    # (N, 1, H*W) -> (N, 1, H, W): already NCHW order, no transpose needed.
    return out.reshape(N, 1, H, W)


# ----------------------------------------------------------------------------
# Pure-JAX f32 reference (for a sanity check)
# ----------------------------------------------------------------------------
def _ref_kan(x_nchw, params):
    def bn(y, g, b):
        m = jnp.mean(y, axis=(0, 1, 2), keepdims=True)
        v = jnp.mean((y - m) ** 2, axis=(0, 1, 2), keepdims=True)
        return (y - m) * lax.rsqrt(v + BN_EPS) * g + b

    def conv3(y, w, b):
        return lax.conv_general_dilated(
            y, w, (1, 1), "SAME",
            dimension_numbers=("NHWC", "HWIO", "NHWC")) + b

    x = jnp.transpose(x_nchw, (0, 2, 3, 1)).astype(jnp.float32)
    h = bn(x, params["bn1_gamma"], params["bn1_beta"])
    h = jnp.maximum(conv3(h, params["w1"], params["b1"]), 0.0)
    h = bn(h, params["bn2_gamma"], params["bn2_beta"])
    h = jnp.maximum(conv3(h, params["w2"], params["b2"]), 0.0)
    h = jnp.einsum("nhwc,co->nhwo", h, params["w3"]) + params["b3"]
    return jnp.transpose(h, (0, 3, 1, 2))


if __name__ == "__main__":
    key = jax.random.PRNGKey(0)
    k_x, k_p = jax.random.split(key)

    N, C, H, W = 2, 3, 16, 16
    x = jax.random.normal(k_x, (N, C, H, W), jnp.float32)   # NCHW, like PyTorch
    params = init_kan_params(k_p)

    out = jax.block_until_ready(kan_forward(x, params))
    assert out.shape == (N, 1, H, W), out.shape

    ref = _ref_kan(x, params)
    max_err = float(jnp.max(jnp.abs(out - ref)))
    # bf16 MXU dots / bf16 intermediate storage vs pure-f32 reference.
    assert jnp.allclose(out, ref, atol=5e-2, rtol=5e-2), max_err

    print("KERNEL_OK")
</pallas_src>

<mosaic_0001>
module attributes {stable_mosaic.version = 11 : i64} {
  func.func @_conv1_bn_relu_stats_kernel(%arg0: i32, %arg1: memref<1x16x16x3xf32, #tpu.memory_space<vmem>>, %arg2: memref<1x3xf32, #tpu.memory_space<vmem>>, %arg3: memref<27x64xbf16, #tpu.memory_space<vmem>>, %arg4: memref<1x64xf32, #tpu.memory_space<vmem>>, %arg5: memref<1x16x16x64xbf16, #tpu.memory_space<vmem>>, %arg6: memref<1x1x64xf32, #tpu.memory_space<vmem>>, %arg7: memref<1x1x64xf32, #tpu.memory_space<vmem>>, %arg8: memref<18x18x3xbf16, #tpu.memory_space<vmem>>, %arg9: memref<256x27xbf16, #tpu.memory_space<vmem>>) attributes {dimension_semantics = [#tpu.dimension_semantics<parallel>], iteration_bounds = array<i64: 2>, scalar_prefetch = 0 : i64, scratch_operands = 2 : i64, tpu.core_type = #tpu.core_type<tc>, window_params = [{transform_indices = @transform_0, window_bounds = array<i64: 1, 16, 16, 3>}, {pipeline_mode = #tpu.pipeline_mode<synchronous>, transform_indices = @transform_1, window_bounds = array<i64: 1, 3>}, {pipeline_mode = #tpu.pipeline_mode<synchronous>, transform_indices = @transform_2, window_bounds = array<i64: 27, 64>}, {pipeline_mode = #tpu.pipeline_mode<synchronous>, transform_indices = @transform_3, window_bounds = array<i64: 1, 64>}, {transform_indices = @transform_4, window_bounds = array<i64: 1, 16, 16, 64>}, {transform_indices = @transform_5, window_bounds = array<i64: 1, 1, 64>}, {transform_indices = @transform_6, window_bounds = array<i64: 1, 1, 64>}]} {
    %cst = arith.constant 0.000000e+00 : bf16
    %0 = vector.broadcast %cst : bf16 to vector<1x18x3xbf16>
    %c0 = arith.constant 0 : index
    %c0_0 = arith.constant 0 : index
    %c0_1 = arith.constant 0 : index
    %1 = vector.load %arg8[%c0, %c0_0, %c0_1] : memref<18x18x3xbf16, #tpu.memory_space<vmem>>, vector<1x18x3xbf16>
    tpu.vector_store %arg8[%c0, %c0_0, %c0_1], %0 {strides = array<i32>} : memref<18x18x3xbf16, #tpu.memory_space<vmem>>, vector<1x18x3xbf16>,
    %cst_2 = arith.constant 0.000000e+00 : bf16
    %2 = vector.broadcast %cst_2 : bf16 to vector<1x18x3xbf16>
    %c17 = arith.constant 17 : index
    %c0_3 = arith.constant 0 : index
    %c0_4 = arith.constant 0 : index
    %3 = vector.load %arg8[%c17, %c0_3, %c0_4] : memref<18x18x3xbf16, #tpu.memory_space<vmem>>, vector<1x18x3xbf16>
    tpu.vector_store %arg8[%c17, %c0_3, %c0_4], %2 {strides = array<i32>} : memref<18x18x3xbf16, #tpu.memory_space<vmem>>, vector<1x18x3xbf16>,
    %cst_5 = arith.constant 0.000000e+00 : bf16
    %4 = vector.broadcast %cst_5 : bf16 to vector<18x1x3xbf16>
    %c0_6 = arith.constant 0 : index
    %c0_7 = arith.constant 0 : index
    %c0_8 = arith.constant 0 : index
    %5 = vector.load %arg8[%c0_6, %c0_7, %c0_8] : memref<18x18x3xbf16, #tpu.memory_space<vmem>>, vector<18x1x3xbf16>
    tpu.vector_store %arg8[%c0_6, %c0_7, %c0_8], %4 {strides = array<i32>} : memref<18x18x3xbf16, #tpu.memory_space<vmem>>, vector<18x1x3xbf16>,
    %cst_9 = arith.constant 0.000000e+00 : bf16
    %6 = vector.broadcast %cst_9 : bf16 to vector<18x1x3xbf16>
    %c0_10 = arith.constant 0 : index
    %c17_11 = arith.constant 17 : index
    %c0_12 = arith.constant 0 : index
    %7 = vector.load %arg8[%c0_10, %c17_11, %c0_12] : memref<18x18x3xbf16, #tpu.memory_space<vmem>>, vector<18x1x3xbf16>
    tpu.vector_store %arg8[%c0_10, %c17_11, %c0_12], %6 {strides = array<i32>} : memref<18x18x3xbf16, #tpu.memory_space<vmem>>, vector<18x1x3xbf16>,
    %c0_13 = arith.constant 0 : index
    %c0_14 = arith.constant 0 : index
    %c0_15 = arith.constant 0 : index
    %c0_16 = arith.constant 0 : index
    %8 = vector.load %arg1[%c0_13, %c0_14, %c0_15, %c0_16] : memref<1x16x16x3xf32, #tpu.memory_space<vmem>>, vector<1x16x16x3xf32>
    %9 = vector.shape_cast %8 : vector<1x16x16x3xf32> to vector<16x16x3xf32>
    %c0_17 = arith.constant 0 : index
    %c0_18 = arith.constant 0 : index
    %10 = vector.load %arg2[%c0_17, %c0_18] : memref<1x3xf32, #tpu.memory_space<vmem>>, vector<1x3xf32>
    %11 = vector.shape_cast %10 : vector<1x3xf32> to vector<1x1x3xf32>
    %12 = vector.broadcast %11 : vector<1x1x3xf32> to vector<16x16x3xf32>
    %13 = arith.addf %9, %12 : vector<16x16x3xf32>
    %14 = arith.truncf %13 : vector<16x16x3xf32> to vector<16x16x3xbf16>
    %c1 = arith.constant 1 : index
    %c1_19 = arith.constant 1 : index
    %c0_20 = arith.constant 0 : index
    %15 = vector.load %arg8[%c1, %c1_19, %c0_20] : memref<18x18x3xbf16, #tpu.memory_space<vmem>>, vector<16x16x3xbf16>
    tpu.vector_store %arg8[%c1, %c1_19, %c0_20], %14 {strides = array<i32>} : memref<18x18x3xbf16, #tpu.memory_space<vmem>>, vector<16x16x3xbf16>,
    %c0_21 = arith.constant 0 : index
    %c0_22 = arith.constant 0 : index
    %c0_23 = arith.constant 0 : index
    %16 = vector.load %arg8[%c0_21, %c0_22, %c0_23] : memref<18x18x3xbf16, #tpu.memory_space<vmem>>, vector<16x16x3xbf16>
    %17 = vector.shape_cast %16 : vector<16x16x3xbf16> to vector<256x3xbf16>
    %c0_24 = arith.constant 0 : index
    %c0_25 = arith.constant 0 : index
    %18 = vector.load %arg9[%c0_24, %c0_25] : memref<256x27xbf16, #tpu.memory_space<vmem>>, vector<256x3xbf16>
    tpu.vector_store %arg9[%c0_24, %c0_25], %17 {strides = array<i32>} : memref<256x27xbf16, #tpu.memory_space<vmem>>, vector<256x3xbf16>,
    %c0_26 = arith.constant 0 : index
    %c1_27 = arith.constant 1 : index
    %c0_28 = arith.constant 0 : index
    %19 = vector.load %arg8[%c0_26, %c1_27, %c0_28] : memref<18x18x3xbf16, #tpu.memory_space<vmem>>, vector<16x16x3xbf16>
    %20 = vector.shape_cast %19 : vector<16x16x3xbf16> to vector<256x3xbf16>
    %c0_29 = arith.constant 0 : index
    %c3 = arith.constant 3 : index
    %21 = vector.load %arg9[%c0_29, %c3] : memref<256x27xbf16, #tpu.memory_space<vmem>>, vector<256x3xbf16>
    tpu.vector_store %arg9[%c0_29, %c3], %20 {strides = array<i32>} : memref<256x27xbf16, #tpu.memory_space<vmem>>, vector<256x3xbf16>,
    %c0_30 = arith.constant 0 : index
    %c2 = arith.constant 2 : index
    %c0_31 = arith.constant 0 : index
    %22 = vector.load %arg8[%c0_30, %c2, %c0_31] : memref<18x18x3xbf16, #tpu.memory_space<vmem>>, vector<16x16x3xbf16>
    %23 = vector.shape_cast %22 : vector<16x16x3xbf16> to vector<256x3xbf16>
    %c0_32 = arith.constant 0 : index
    %c6 = arith.constant 6 : index
    %24 = vector.load %arg9[%c0_32, %c6] : memref<256x27xbf16, #tpu.memory_space<vmem>>, vector<256x3xbf16>
    tpu.vector_store %arg9[%c0_32, %c6], %23 {strides = array<i32>} : memref<256x27xbf16, #tpu.memory_space<vmem>>, vector<256x3xbf16>,
    %c1_33 = arith.constant 1 : index
    %c0_34 = arith.constant 0 : index
    %c0_35 = arith.constant 0 : index
    %25 = vector.load %arg8[%c1_33, %c0_34, %c0_35] : memref<18x18x3xbf16, #tpu.memory_space<vmem>>, vector<16x16x3xbf16>
    %26 = vector.shape_cast %25 : vector<16x16x3xbf16> to vector<256x3xbf16>
    %c0_36 = arith.constant 0 : index
    %c9 = arith.constant 9 : index
    %27 = vector.load %arg9[%c0_36, %c9] : memref<256x27xbf16, #tpu.memory_space<vmem>>, vector<256x3xbf16>
    tpu.vector_store %arg9[%c0_36, %c9], %26 {strides = array<i32>} : memref<256x27xbf16, #tpu.memory_space<vmem>>, vector<256x3xbf16>,
    %c1_37 = arith.constant 1 : index
    %c1_38 = arith.constant 1 : index
    %c0_39 = arith.constant 0 : index
    %28 = vector.load %arg8[%c1_37, %c1_38, %c0_39] : memref<18x18x3xbf16, #tpu.memory_space<vmem>>, vector<16x16x3xbf16>
    %29 = vector.shape_cast %28 : vector<16x16x3xbf16> to vector<256x3xbf16>
    %c0_40 = arith.constant 0 : index
    %c12 = arith.constant 12 : index
    %30 = vector.load %arg9[%c0_40, %c12] : memref<256x27xbf16, #tpu.memory_space<vmem>>, vector<256x3xbf16>
    tpu.vector_store %arg9[%c0_40, %c12], %29 {strides = array<i32>} : memref<256x27xbf16, #tpu.memory_space<vmem>>, vector<256x3xbf16>,
    %c1_41 = arith.constant 1 : index
    %c2_42 = arith.constant 2 : index
    %c0_43 = arith.constant 0 : index
    %31 = vector.load %arg8[%c1_41, %c2_42, %c0_43] : memref<18x18x3xbf16, #tpu.memory_space<vmem>>, vector<16x16x3xbf16>
    %32 = vector.shape_cast %31 : vector<16x16x3xbf16> to vector<256x3xbf16>
    %c0_44 = arith.constant 0 : index
    %c15 = arith.constant 15 : index
    %33 = vector.load %arg9[%c0_44, %c15] : memref<256x27xbf16, #tpu.memory_space<vmem>>, vector<256x3xbf16>
    tpu.vector_store %arg9[%c0_44, %c15], %32 {strides = array<i32>} : memref<256x27xbf16, #tpu.memory_space<vmem>>, vector<256x3xbf16>,
    %c2_45 = arith.constant 2 : index
    %c0_46 = arith.constant 0 : index
    %c0_47 = arith.constant 0 : index
    %34 = vector.load %arg8[%c2_45, %c0_46, %c0_47] : memref<18x18x3xbf16, #tpu.memory_space<vmem>>, vector<16x16x3xbf16>
    %35 = vector.shape_cast %34 : vector<16x16x3xbf16> to vector<256x3xbf16>
    %c0_48 = arith.constant 0 : index
    %c18 = arith.constant 18 : index
    %36 = vector.load %arg9[%c0_48, %c18] : memref<256x27xbf16, #tpu.memory_space<vmem>>, vector<256x3xbf16>
    tpu.vector_store %arg9[%c0_48, %c18], %35 {strides = array<i32>} : memref<256x27xbf16, #tpu.memory_space<vmem>>, vector<256x3xbf16>,
    %c2_49 = arith.constant 2 : index
    %c1_50 = arith.constant 1 : index
    %c0_51 = arith.constant 0 : index
    %37 = vector.load %arg8[%c2_49, %c1_50, %c0_51] : memref<18x18x3xbf16, #tpu.memory_space<vmem>>, vector<16x16x3xbf16>
    %38 = vector.shape_cast %37 : vector<16x16x3xbf16> to vector<256x3xbf16>
    %c0_52 = arith.constant 0 : index
    %c21 = arith.constant 21 : index
    %39 = vector.load %arg9[%c0_52, %c21] : memref<256x27xbf16, #tpu.memory_space<vmem>>, vector<256x3xbf16>
    tpu.vector_store %arg9[%c0_52, %c21], %38 {strides = array<i32>} : memref<256x27xbf16, #tpu.memory_space<vmem>>, vector<256x3xbf16>,
    %c2_53 = arith.constant 2 : index
    %c2_54 = arith.constant 2 : index
    %c0_55 = arith.constant 0 : index
    %40 = vector.load %arg8[%c2_53, %c2_54, %c0_55] : memref<18x18x3xbf16, #tpu.memory_space<vmem>>, vector<16x16x3xbf16>
    %41 = vector.shape_cast %40 : vector<16x16x3xbf16> to vector<256x3xbf16>
    %c0_56 = arith.constant 0 : index
    %c24 = arith.constant 24 : index
    %42 = vector.load %arg9[%c0_56, %c24] : memref<256x27xbf16, #tpu.memory_space<vmem>>, vector<256x3xbf16>
    tpu.vector_store %arg9[%c0_56, %c24], %41 {strides = array<i32>} : memref<256x27xbf16, #tpu.memory_space<vmem>>, vector<256x3xbf16>,
    %c0_57 = arith.constant 0 : index
    %c0_58 = arith.constant 0 : index
    %43 = vector.load %arg9[%c0_57, %c0_58] : memref<256x27xbf16, #tpu.memory_space<vmem>>, vector<256x27xbf16>
    %c0_59 = arith.constant 0 : index
    %c0_60 = arith.constant 0 : index
    %44 = vector.load %arg3[%c0_59, %c0_60] : memref<27x64xbf16, #tpu.memory_space<vmem>>, vector<27x64xbf16>
    %cst_61 = arith.constant dense<0.000000e+00> : vector<256x64xf32>
    %45 = tpu.matmul %43, %44, %cst_61 {dimension_numbers = #tpu.dot_dimension_numbers<[1], [0], [0], [1], [0, 0, 1, 1], [], []>} : vector<256x27xbf16>, vector<27x64xbf16>, vector<256x64xf32> -> vector<256x64xf32>
    %c0_62 = arith.constant 0 : index
    %c0_63 = arith.constant 0 : index
    %46 = vector.load %arg4[%c0_62, %c0_63] : memref<1x64xf32, #tpu.memory_space<vmem>>, vector<1x64xf32>
    %47 = vector.broadcast %46 : vector<1x64xf32> to vector<256x64xf32>
    %48 = arith.addf %45, %47 : vector<256x64xf32>
    %cst_64 = arith.constant 0.000000e+00 : f32
    %49 = vector.broadcast %cst_64 : f32 to vector<256x64xf32>
    %50 = arith.maximumf %48, %49 : vector<256x64xf32>
    %cst_65 = arith.constant dense<0.000000e+00> : vector<64xf32>
    %51 = vector.multi_reduction <add>, %50, %cst_65 [0] : vector<256x64xf32> to vector<64xf32>
    %52 = vector.shape_cast %51 : vector<64xf32> to vector<1x1x64xf32>
    %c0_66 = arith.constant 0 : index
    %c0_67 = arith.constant 0 : index
    %c0_68 = arith.constant 0 : index
    %53 = vector.load %arg6[%c0_66, %c0_67, %c0_68] : memref<1x1x64xf32, #tpu.memory_space<vmem>>, vector<1x1x64xf32>
    tpu.vector_store %arg6[%c0_66, %c0_67, %c0_68], %52 {strides = array<i32>} : memref<1x1x64xf32, #tpu.memory_space<vmem>>, vector<1x1x64xf32>,
    %54 = arith.mulf %50, %50 : vector<256x64xf32>
    %cst_69 = arith.constant dense<0.000000e+00> : vector<64xf32>
    %55 = vector.multi_reduction <add>, %54, %cst_69 [0] : vector<256x64xf32> to vector<64xf32>
    %56 = vector.shape_cast %55 : vector<64xf32> to vector<1x1x64xf32>
    %c0_70 = arith.constant 0 : index
    %c0_71 = arith.constant 0 : index
    %c0_72 = arith.constant 0 : index
    %57 = vector.load %arg7[%c0_70, %c0_71, %c0_72] : memref<1x1x64xf32, #tpu.memory_space<vmem>>, vector<1x1x64xf32>
    tpu.vector_store %arg7[%c0_70, %c0_71, %c0_72], %56 {strides = array<i32>} : memref<1x1x64xf32, #tpu.memory_space<vmem>>, vector<1x1x64xf32>,
    %58 = vector.shape_cast %50 : vector<256x64xf32> to vector<16x16x64xf32>
    %59 = arith.truncf %58 : vector<16x16x64xf32> to vector<16x16x64xbf16>
    %c0_73 = arith.constant 0 : index
    %c0_74 = arith.constant 0 : index
    %c0_75 = arith.constant 0 : index
    %c0_76 = arith.constant 0 : index
    %60 = vector.load %arg5[%c0_73, %c0_74, %c0_75, %c0_76] : memref<1x16x16x64xbf16, #tpu.memory_space<vmem>>, vector<1x16x16x64xbf16>
    %61 = vector.shape_cast %60 : vector<1x16x16x64xbf16> to vector<16x16x64xbf16>
    %62 = vector.shape_cast %59 : vector<16x16x64xbf16> to vector<1x16x16x64xbf16>
    tpu.vector_store %arg5[%c0_73, %c0_74, %c0_75, %c0_76], %62 {strides = array<i32>} : memref<1x16x16x64xbf16, #tpu.memory_space<vmem>>, vector<1x16x16x64xbf16>,
    return
  }
  func.func @transform_0(%arg0: i32) -> (i32, i32, i32, i32) {
    %c0_i32 = arith.constant 0 : i32
    %c0_i32_0 = arith.constant 0 : i32
    %c0_i32_1 = arith.constant 0 : i32
    %c0_i32_2 = arith.constant 0 : i32
    return %arg0, %c0_i32, %c0_i32_0, %c0_i32_1 : i32, i32, i32, i32
  }
  func.func @transform_1(%arg0: i32) -> (i32, i32) {
    %c0_i32 = arith.constant 0 : i32
    %c0_i32_0 = arith.constant 0 : i32
    %c0_i32_1 = arith.constant 0 : i32
    return %c0_i32, %c0_i32_0 : i32, i32
  }
  func.func @transform_2(%arg0: i32) -> (i32, i32) {
    %c0_i32 = arith.constant 0 : i32
    %c0_i32_0 = arith.constant 0 : i32
    %c0_i32_1 = arith.constant 0 : i32
    return %c0_i32, %c0_i32_0 : i32, i32
  }
  func.func @transform_3(%arg0: i32) -> (i32, i32) {
    %c0_i32 = arith.constant 0 : i32
    %c0_i32_0 = arith.constant 0 : i32
    %c0_i32_1 = arith.constant 0 : i32
    return %c0_i32, %c0_i32_0 : i32, i32
  }
  func.func @transform_4(%arg0: i32) -> (i32, i32, i32, i32) {
    %c0_i32 = arith.constant 0 : i32
    %c0_i32_0 = arith.constant 0 : i32
    %c0_i32_1 = arith.constant 0 : i32
    %c0_i32_2 = arith.constant 0 : i32
    return %arg0, %c0_i32, %c0_i32_0, %c0_i32_1 : i32, i32, i32, i32
  }
  func.func @transform_5(%arg0: i32) -> (i32, i32, i32) {
    %c0_i32 = arith.constant 0 : i32
    %c0_i32_0 = arith.constant 0 : i32
    %c0_i32_1 = arith.constant 0 : i32
    return %arg0, %c0_i32, %c0_i32_0 : i32, i32, i32
  }
  func.func @transform_6(%arg0: i32) -> (i32, i32, i32) {
    %c0_i32 = arith.constant 0 : i32
    %c0_i32_0 = arith.constant 0 : i32
    %c0_i32_1 = arith.constant 0 : i32
    return %arg0, %c0_i32, %c0_i32_0 : i32, i32, i32
  }
}

module attributes {stable_mosaic.version = 11 : i64} {
  func.func @_conv2_relu_conv3_kernel(%arg0: i32, %arg1: memref<1x16x16x64xbf16, #tpu.memory_space<vmem>>, %arg2: memref<1x64xf32, #tpu.memory_space<vmem>>, %arg3: memref<576x32xbf16, #tpu.memory_space<vmem>>, %arg4: memref<1x32xf32, #tpu.memory_space<vmem>>, %arg5: memref<1x32xbf16, #tpu.memory_space<vmem>>, %arg6: memref<1x1xf32, #tpu.memory_space<vmem>>, %arg7: memref<1x1x256xf32, #tpu.memory_space<vmem>>, %arg8: memref<18x18x64xbf16, #tpu.memory_space<vmem>>, %arg9: memref<256x576xbf16, #tpu.memory_space<vmem>>) attributes {dimension_semantics = [#tpu.dimension_semantics<parallel>], iteration_bounds = array<i64: 2>, scalar_prefetch = 0 : i64, scratch_operands = 2 : i64, tpu.core_type = #tpu.core_type<tc>, window_params = [{transform_indices = @transform_0, window_bounds = array<i64: 1, 16, 16, 64>}, {pipeline_mode = #tpu.pipeline_mode<synchronous>, transform_indices = @transform_1, window_bounds = array<i64: 1, 64>}, {pipeline_mode = #tpu.pipeline_mode<synchronous>, transform_indices = @transform_2, window_bounds = array<i64: 576, 32>}, {pipeline_mode = #tpu.pipeline_mode<synchronous>, transform_indices = @transform_3, window_bounds = array<i64: 1, 32>}, {pipeline_mode = #tpu.pipeline_mode<synchronous>, transform_indices = @transform_4, window_bounds = array<i64: 1, 32>}, {pipeline_mode = #tpu.pipeline_mode<synchronous>, transform_indices = @transform_5, window_bounds = array<i64: 1, 1>}, {transform_indices = @transform_6, window_bounds = array<i64: 1, 1, 256>}]} {
    %cst = arith.constant 0.000000e+00 : bf16
    %0 = vector.broadcast %cst : bf16 to vector<1x18x64xbf16>
    %c0 = arith.constant 0 : index
    %c0_0 = arith.constant 0 : index
    %c0_1 = arith.constant 0 : index
    %1 = vector.load %arg8[%c0, %c0_0, %c0_1] : memref<18x18x64xbf16, #tpu.memory_space<vmem>>, vector<1x18x64xbf16>
    tpu.vector_store %arg8[%c0, %c0_0, %c0_1], %0 {strides = array<i32>} : memref<18x18x64xbf16, #tpu.memory_space<vmem>>, vector<1x18x64xbf16>,
    %cst_2 = arith.constant 0.000000e+00 : bf16
    %2 = vector.broadcast %cst_2 : bf16 to vector<1x18x64xbf16>
    %c17 = arith.constant 17 : index
    %c0_3 = arith.constant 0 : index
    %c0_4 = arith.constant 0 : index
    %3 = vector.load %arg8[%c17, %c0_3, %c0_4] : memref<18x18x64xbf16, #tpu.memory_space<vmem>>, vector<1x18x64xbf16>
    tpu.vector_store %arg8[%c17, %c0_3, %c0_4], %2 {strides = array<i32>} : memref<18x18x64xbf16, #tpu.memory_space<vmem>>, vector<1x18x64xbf16>,
    %cst_5 = arith.constant 0.000000e+00 : bf16
    %4 = vector.broadcast %cst_5 : bf16 to vector<18x1x64xbf16>
    %c0_6 = arith.constant 0 : index
    %c0_7 = arith.constant 0 : index
    %c0_8 = arith.constant 0 : index
    %5 = vector.load %arg8[%c0_6, %c0_7, %c0_8] : memref<18x18x64xbf16, #tpu.memory_space<vmem>>, vector<18x1x64xbf16>
    tpu.vector_store %arg8[%c0_6, %c0_7, %c0_8], %4 {strides = array<i32>} : memref<18x18x64xbf16, #tpu.memory_space<vmem>>, vector<18x1x64xbf16>,
    %cst_9 = arith.constant 0.000000e+00 : bf16
    %6 = vector.broadcast %cst_9 : bf16 to vector<18x1x64xbf16>
    %c0_10 = arith.constant 0 : index
    %c17_11 = arith.constant 17 : index
    %c0_12 = arith.constant 0 : index
    %7 = vector.load %arg8[%c0_10, %c17_11, %c0_12] : memref<18x18x64xbf16, #tpu.memory_space<vmem>>, vector<18x1x64xbf16>
    tpu.vector_store %arg8[%c0_10, %c17_11, %c0_12], %6 {strides = array<i32>} : memref<18x18x64xbf16, #tpu.memory_space<vmem>>, vector<18x1x64xbf16>,
    %c0_13 = arith.constant 0 : index
    %c0_14 = arith.constant 0 : index
    %c0_15 = arith.constant 0 : index
    %c0_16 = arith.constant 0 : index
    %8 = vector.load %arg1[%c0_13, %c0_14, %c0_15, %c0_16] : memref<1x16x16x64xbf16, #tpu.memory_space<vmem>>, vector<1x16x16x64xbf16>
    %9 = vector.shape_cast %8 : vector<1x16x16x64xbf16> to vector<16x16x64xbf16>
    %10 = arith.extf %9 : vector<16x16x64xbf16> to vector<16x16x64xf32>
    %c0_17 = arith.constant 0 : index
    %c0_18 = arith.constant 0 : index
    %11 = vector.load %arg2[%c0_17, %c0_18] : memref<1x64xf32, #tpu.memory_space<vmem>>, vector<1x64xf32>
    %12 = vector.shape_cast %11 : vector<1x64xf32> to vector<1x1x64xf32>
    %13 = vector.broadcast %12 : vector<1x1x64xf32> to vector<16x16x64xf32>
    %14 = arith.addf %10, %13 : vector<16x16x64xf32>
    %15 = arith.truncf %14 : vector<16x16x64xf32> to vector<16x16x64xbf16>
    %c1 = arith.constant 1 : index
    %c1_19 = arith.constant 1 : index
    %c0_20 = arith.constant 0 : index
    %16 = vector.load %arg8[%c1, %c1_19, %c0_20] : memref<18x18x64xbf16, #tpu.memory_space<vmem>>, vector<16x16x64xbf16>
    tpu.vector_store %arg8[%c1, %c1_19, %c0_20], %15 {strides = array<i32>} : memref<18x18x64xbf16, #tpu.memory_space<vmem>>, vector<16x16x64xbf16>,
    %c0_21 = arith.constant 0 : index
    %c0_22 = arith.constant 0 : index
    %c0_23 = arith.constant 0 : index
    %17 = vector.load %arg8[%c0_21, %c0_22, %c0_23] : memref<18x18x64xbf16, #tpu.memory_space<vmem>>, vector<16x16x64xbf16>
    %18 = vector.shape_cast %17 : vector<16x16x64xbf16> to vector<256x64xbf16>
    %c0_24 = arith.constant 0 : index
    %c0_25 = arith.constant 0 : index
    %19 = vector.load %arg9[%c0_24, %c0_25] : memref<256x576xbf16, #tpu.memory_space<vmem>>, vector<256x64xbf16>
    tpu.vector_store %arg9[%c0_24, %c0_25], %18 {strides = array<i32>} : memref<256x576xbf16, #tpu.memory_space<vmem>>, vector<256x64xbf16>,
    %c0_26 = arith.constant 0 : index
    %c1_27 = arith.constant 1 : index
    %c0_28 = arith.constant 0 : index
    %20 = vector.load %arg8[%c0_26, %c1_27, %c0_28] : memref<18x18x64xbf16, #tpu.memory_space<vmem>>, vector<16x16x64xbf16>
    %21 = vector.shape_cast %20 : vector<16x16x64xbf16> to vector<256x64xbf16>
    %c0_29 = arith.constant 0 : index
    %c64 = arith.constant 64 : index
    %22 = vector.load %arg9[%c0_29, %c64] : memref<256x576xbf16, #tpu.memory_space<vmem>>, vector<256x64xbf16>
    tpu.vector_store %arg9[%c0_29, %c64], %21 {strides = array<i32>} : memref<256x576xbf16, #tpu.memory_space<vmem>>, vector<256x64xbf16>,
    %c0_30 = arith.constant 0 : index
    %c2 = arith.constant 2 : index
    %c0_31 = arith.constant 0 : index
    %23 = vector.load %arg8[%c0_30, %c2, %c0_31] : memref<18x18x64xbf16, #tpu.memory_space<vmem>>, vector<16x16x64xbf16>
    %24 = vector.shape_cast %23 : vector<16x16x64xbf16> to vector<256x64xbf16>
    %c0_32 = arith.constant 0 : index
    %c128 = arith.constant 128 : index
    %25 = vector.load %arg9[%c0_32, %c128] : memref<256x576xbf16, #tpu.memory_space<vmem>>, vector<256x64xbf16>
    tpu.vector_store %arg9[%c0_32, %c128], %24 {strides = array<i32>} : memref<256x576xbf16, #tpu.memory_space<vmem>>, vector<256x64xbf16>,
    %c1_33 = arith.constant 1 : index
    %c0_34 = arith.constant 0 : index
    %c0_35 = arith.constant 0 : index
    %26 = vector.load %arg8[%c1_33, %c0_34, %c0_35] : memref<18x18x64xbf16, #tpu.memory_space<vmem>>, vector<16x16x64xbf16>
    %27 = vector.shape_cast %26 : vector<16x16x64xbf16> to vector<256x64xbf16>
    %c0_36 = arith.constant 0 : index
    %c192 = arith.constant 192 : index
    %28 = vector.load %arg9[%c0_36, %c192] : memref<256x576xbf16, #tpu.memory_space<vmem>>, vector<256x64xbf16>
    tpu.vector_store %arg9[%c0_36, %c192], %27 {strides = array<i32>} : memref<256x576xbf16, #tpu.memory_space<vmem>>, vector<256x64xbf16>,
    %c1_37 = arith.constant 1 : index
    %c1_38 = arith.constant 1 : index
    %c0_39 = arith.constant 0 : index
    %29 = vector.load %arg8[%c1_37, %c1_38, %c0_39] : memref<18x18x64xbf16, #tpu.memory_space<vmem>>, vector<16x16x64xbf16>
    %30 = vector.shape_cast %29 : vector<16x16x64xbf16> to vector<256x64xbf16>
    %c0_40 = arith.constant 0 : index
    %c256 = arith.constant 256 : index
    %31 = vector.load %arg9[%c0_40, %c256] : memref<256x576xbf16, #tpu.memory_space<vmem>>, vector<256x64xbf16>
    tpu.vector_store %arg9[%c0_40, %c256], %30 {strides = array<i32>} : memref<256x576xbf16, #tpu.memory_space<vmem>>, vector<256x64xbf16>,
    %c1_41 = arith.constant 1 : index
    %c2_42 = arith.constant 2 : index
    %c0_43 = arith.constant 0 : index
    %32 = vector.load %arg8[%c1_41, %c2_42, %c0_43] : memref<18x18x64xbf16, #tpu.memory_space<vmem>>, vector<16x16x64xbf16>
    %33 = vector.shape_cast %32 : vector<16x16x64xbf16> to vector<256x64xbf16>
    %c0_44 = arith.constant 0 : index
    %c320 = arith.constant 320 : index
    %34 = vector.load %arg9[%c0_44, %c320] : memref<256x576xbf16, #tpu.memory_space<vmem>>, vector<256x64xbf16>
    tpu.vector_store %arg9[%c0_44, %c320], %33 {strides = array<i32>} : memref<256x576xbf16, #tpu.memory_space<vmem>>, vector<256x64xbf16>,
    %c2_45 = arith.constant 2 : index
    %c0_46 = arith.constant 0 : index
    %c0_47 = arith.constant 0 : index
    %35 = vector.load %arg8[%c2_45, %c0_46, %c0_47] : memref<18x18x64xbf16, #tpu.memory_space<vmem>>, vector<16x16x64xbf16>
    %36 = vector.shape_cast %35 : vector<16x16x64xbf16> to vector<256x64xbf16>
    %c0_48 = arith.constant 0 : index
    %c384 = arith.constant 384 : index
    %37 = vector.load %arg9[%c0_48, %c384] : memref<256x576xbf16, #tpu.memory_space<vmem>>, vector<256x64xbf16>
    tpu.vector_store %arg9[%c0_48, %c384], %36 {strides = array<i32>} : memref<256x576xbf16, #tpu.memory_space<vmem>>, vector<256x64xbf16>,
    %c2_49 = arith.constant 2 : index
    %c1_50 = arith.constant 1 : index
    %c0_51 = arith.constant 0 : index
    %38 = vector.load %arg8[%c2_49, %c1_50, %c0_51] : memref<18x18x64xbf16, #tpu.memory_space<vmem>>, vector<16x16x64xbf16>
    %39 = vector.shape_cast %38 : vector<16x16x64xbf16> to vector<256x64xbf16>
    %c0_52 = arith.constant 0 : index
    %c448 = arith.constant 448 : index
    %40 = vector.load %arg9[%c0_52, %c448] : memref<256x576xbf16, #tpu.memory_space<vmem>>, vector<256x64xbf16>
    tpu.vector_store %arg9[%c0_52, %c448], %39 {strides = array<i32>} : memref<256x576xbf16, #tpu.memory_space<vmem>>, vector<256x64xbf16>,
    %c2_53 = arith.constant 2 : index
    %c2_54 = arith.constant 2 : index
    %c0_55 = arith.constant 0 : index
    %41 = vector.load %arg8[%c2_53, %c2_54, %c0_55] : memref<18x18x64xbf16, #tpu.memory_space<vmem>>, vector<16x16x64xbf16>
    %42 = vector.shape_cast %41 : vector<16x16x64xbf16> to vector<256x64xbf16>
    %c0_56 = arith.constant 0 : index
    %c512 = arith.constant 512 : index
    %43 = vector.load %arg9[%c0_56, %c512] : memref<256x576xbf16, #tpu.memory_space<vmem>>, vector<256x64xbf16>
    tpu.vector_store %arg9[%c0_56, %c512], %42 {strides = array<i32>} : memref<256x576xbf16, #tpu.memory_space<vmem>>, vector<256x64xbf16>,
    %c0_57 = arith.constant 0 : index
    %c0_58 = arith.constant 0 : index
    %44 = vector.load %arg9[%c0_57, %c0_58] : memref<256x576xbf16, #tpu.memory_space<vmem>>, vector<256x576xbf16>
    %c0_59 = arith.constant 0 : index
    %c0_60 = arith.constant 0 : index
    %45 = vector.load %arg3[%c0_59, %c0_60] : memref<576x32xbf16, #tpu.memory_space<vmem>>, vector<576x32xbf16>
    %cst_61 = arith.constant dense<0.000000e+00> : vector<256x32xf32>
    %46 = tpu.matmul %44, %45, %cst_61 {dimension_numbers = #tpu.dot_dimension_numbers<[1], [0], [0], [1], [0, 0, 1, 1], [], []>} : vector<256x576xbf16>, vector<576x32xbf16>, vector<256x32xf32> -> vector<256x32xf32>
    %c0_62 = arith.constant 0 : index
    %c0_63 = arith.constant 0 : index
    %47 = vector.load %arg4[%c0_62, %c0_63] : memref<1x32xf32, #tpu.memory_space<vmem>>, vector<1x32xf32>
    %48 = vector.broadcast %47 : vector<1x32xf32> to vector<256x32xf32>
    %49 = arith.addf %46, %48 : vector<256x32xf32>
    %cst_64 = arith.constant 0.000000e+00 : f32
    %50 = vector.broadcast %cst_64 : f32 to vector<256x32xf32>
    %51 = arith.maximumf %49, %50 : vector<256x32xf32>
    %c0_65 = arith.constant 0 : index
    %c0_66 = arith.constant 0 : index
    %52 = vector.load %arg5[%c0_65, %c0_66] : memref<1x32xbf16, #tpu.memory_space<vmem>>, vector<1x32xbf16>
    %53 = arith.truncf %51 : vector<256x32xf32> to vector<256x32xbf16>
    %cst_67 = arith.constant dense<0.000000e+00> : vector<1x256xf32>
    %54 = tpu.matmul %52, %53, %cst_67 {dimension_numbers = #tpu.dot_dimension_numbers<[1], [1], [0], [0], [0, 0, 1, 0], [], []>} : vector<1x32xbf16>, vector<256x32xbf16>, vector<1x256xf32> -> vector<1x256xf32>
    %c0_68 = arith.constant 0 : index
    %c0_69 = arith.constant 0 : index
    %55 = vector.load %arg6[%c0_68, %c0_69] : memref<1x1xf32, #tpu.memory_space<vmem>>, vector<1x1xf32>
    %56 = vector.broadcast %55 : vector<1x1xf32> to vector<1x256xf32>
    %57 = arith.addf %54, %56 : vector<1x256xf32>
    %c0_70 = arith.constant 0 : index
    %c0_71 = arith.constant 0 : index
    %c0_72 = arith.constant 0 : index
    %58 = vector.load %arg7[%c0_70, %c0_71, %c0_72] : memref<1x1x256xf32, #tpu.memory_space<vmem>>, vector<1x1x256xf32>
    %59 = vector.shape_cast %58 : vector<1x1x256xf32> to vector<1x256xf32>
    %60 = vector.shape_cast %57 : vector<1x256xf32> to vector<1x1x256xf32>
    tpu.vector_store %arg7[%c0_70, %c0_71, %c0_72], %60 {strides = array<i32>} : memref<1x1x256xf32, #tpu.memory_space<vmem>>, vector<1x1x256xf32>,
    return
  }
  func.func @transform_0(%arg0: i32) -> (i32, i32, i32, i32) {
    %c0_i32 = arith.constant 0 : i32
    %c0_i32_0 = arith.constant 0 : i32
    %c0_i32_1 = arith.constant 0 : i32
    %c0_i32_2 = arith.constant 0 : i32
    return %arg0, %c0_i32, %c0_i32_0, %c0_i32_1 : i32, i32, i32, i32
  }
  func.func @transform_1(%arg0: i32) -> (i32, i32) {
    %c0_i32 = arith.constant 0 : i32
    %c0_i32_0 = arith.constant 0 : i32
    %c0_i32_1 = arith.constant 0 : i32
    return %c0_i32, %c0_i32_0 : i32, i32
  }
  func.func @transform_2(%arg0: i32) -> (i32, i32) {
    %c0_i32 = arith.constant 0 : i32
    %c0_i32_0 = arith.constant 0 : i32
    %c0_i32_1 = arith.constant 0 : i32
    return %c0_i32, %c0_i32_0 : i32, i32
  }
  func.func @transform_3(%arg0: i32) -> (i32, i32) {
    %c0_i32 = arith.constant 0 : i32
    %c0_i32_0 = arith.constant 0 : i32
    %c0_i32_1 = arith.constant 0 : i32
    return %c0_i32, %c0_i32_0 : i32, i32
  }
  func.func @transform_4(%arg0: i32) -> (i32, i32) {
    %c0_i32 = arith.constant 0 : i32
    %c0_i32_0 = arith.constant 0 : i32
    %c0_i32_1 = arith.constant 0 : i32
    return %c0_i32, %c0_i32_0 : i32, i32
  }
  func.func @transform_5(%arg0: i32) -> (i32, i32) {
    %c0_i32 = arith.constant 0 : i32
    %c0_i32_0 = arith.constant 0 : i32
    %c0_i32_1 = arith.constant 0 : i32
    return %c0_i32, %c0_i32_0 : i32, i32
  }
  func.func @transform_6(%arg0: i32) -> (i32, i32, i32) {
    %c0_i32 = arith.constant 0 : i32
    %c0_i32_0 = arith.constant 0 : i32
    %c0_i32_1 = arith.constant 0 : i32
    return %arg0, %c0_i32, %c0_i32_0 : i32, i32, i32
  }
}

</mosaic_0001>

<bundles_post_ra>
// kernel: kan_forward.2
= control target key start
LH: loop header
LB: loop body
LE: loop exit
PB: predicated region body
PF: predicated region fallthrough
CT: control target
= control target key end

     0   :  { %s5362_s21 = smov 0   ;;  %s6955_s0 = inlined_call_operand.vmem [shape: f32[2,16,16,3], index: 0, kind: input, shape index: {}]   ;;  %s6956_s1 = inlined_call_operand.vmem [shape: f32[1,3], index: 1, kind: input, shape index: {}]   ;;  %s6957_s2 = inlined_call_operand.vmem [shape: bf16[27,64], index: 2, kind: input, shape index: {}]   ;;  %s6958_s3 = inlined_call_operand.vmem [shape: f32[1,64], index: 3, kind: input, shape index: {}]   ;;  %s6959_s4 = inlined_call_operand.vmem [shape: bf16[2,16,16,64], index: 4, kind: output, shape index: {0}]   ;;  %s6960_s5 = inlined_call_operand.vmem [shape: f32[2,1,64], index: 5, kind: output, shape index: {1}]   ;;  %s6961_s6 = inlined_call_operand.vmem [shape: f32[2,1,64], index: 6, kind: output, shape index: {2}]  }
   0x1 LB: > { %s4827_s22 = sadd.s32 4294967295, %s5315_s21   ;;  %p4831_p0 = scmp.ge.s32.totalorder %s5315_s21, 1  ;;  %s5315_s21 = sphi %s5362_s21, %s17_s21  }
   0x2   : > { %p217_p1 = scmp.lt.s32.totalorder %s5315_s21, 3 }
   0x4   : > { %p218_p2 = pnand %p4831_p0, %p217_p1 }
   0x5   : > { %vm270_vm0 = vcmask (!%p218_p2), 19456   ;;  %vm273_vm1 = vcmask (!%p218_p2), 16384   ;;  %vm280_vm2 = vsmask.f32 (!%p218_p2), 256  ;;  %v5317_v0 = vmov (!%p218_p2), 0   ;;  %p253_p3 = scmp.lt.s32.totalorder (!%p218_p2), %s4827_s22, 1 }
   0x6   : > { %221 = sbr.rel (%p218_p2) target bundleno = 780 (0x30c), region = 36  ;;  %271 = vst.msk [vmem:[#allocation2] sm:$0xf] (!%p218_p2), %vm270_vm0, %v5317_v0  ;;  %272 = vst.msk [vmem:[#allocation2 + $0x4] sm:$0xf] (!%p218_p2), %vm270_vm0, %v5317_v0  ;;  %vm1785_vm5 = vcmask (!%p218_p2), 1042432  }
   0x7   : > { %274 = vst.msk [vmem:[#allocation2 + $0x8] sm:$0x1] (!%p218_p2), %vm273_vm1, %v5317_v0  ;;  %vm5375_vm3 = vmand (!%p218_p2), %vm273_vm1, %vm280_vm2  ;;  %vm336_vm4 = vsmask.f32 (!%p218_p2), 7938  ;;  %vm1786_vm6 = vcmask (!%p218_p2), 1046532   ;;  %s5318_s29 = smov (!%p218_p2), 6  }
   0x8   : > { %276 = vst.msk [vmem:[#allocation2 + $0xcc] sm:$0xf] (!%p218_p2), %vm270_vm0, %v5317_v0  ;;  %277 = vst.msk [vmem:[#allocation2 + $0xd0] sm:$0xf] (!%p218_p2), %vm270_vm0, %v5317_v0  ;;  %v288_v2 = vld [vmem:[#allocation2 + $0x18] sm:$0x1] (!%p218_p2) }
   0x9   : > { %278 = vst.msk [vmem:[#allocation2 + $0xd4] sm:$0x1] (!%p218_p2), %vm273_vm1, %v5317_v0  ;;  %v289_v3 = vsel (!%p218_p2), %vm5375_vm3, 0, %v288_v2  ;;  %v285_v4 = vld [vmem:[#allocation2 + $0xc] sm:$0x1] (!%p218_p2)  ;;  %vm5397_vm7 = vmand (!%p218_p2), %vm273_vm1, %vm336_vm4  ;;  %s5319_s30 = smov (!%p218_p2), 9  }
   0xa   : > { %v291_v5 = vld [vmem:[#allocation2 + $0x24] sm:$0x1] (!%p218_p2)  ;;  %290 = vst [vmem:[#allocation2 + $0x18] sm:$0x1] (!%p218_p2), %v289_v3  ;;  %v5389_v6 = vld [vmem:[%s6956_s1] ss:$0 sm:$0xff] (!%p218_p2)  ;;  %vm5404_vm9 = vmor (!%p218_p2), %vm1785_vm5, %vm1786_vm6 }
   0xb   : > { %v286_v7 = vsel (!%p218_p2), %vm5375_vm3, 0, %v285_v4  ;;  %v292_v8 = vsel (!%p218_p2), %vm5375_vm3, 0, %v291_v5  ;;  %vm559_vm8 = vsmask.f32 (!%p218_p2), 4368  ;;  %v341_v10 = vld [vmem:[#allocation2 + $0x14] sm:$0x1] (!%p218_p2)  ;;  %vm5439_vm10 = vmand (!%p218_p2), %vm270_vm0, %vm336_vm4 }
   0xc   : > { %287 = vst [vmem:[#allocation2 + $0xc] sm:$0x1] (!%p218_p2), %v286_v7  ;;  %293 = vst [vmem:[#allocation2 + $0x24] sm:$0x1] (!%p218_p2), %v292_v8  ;;  %v342_v12 = vsel (!%p218_p2), %vm5397_vm7, 0, %v341_v10  ;;  %s5320_s7 = smov (!%p218_p2), 18  }
   0xd   : > { %s7003_s22 = smov (!%p253_p3, %s4827_s22), 1  ;;  %v344_v13 = vld [vmem:[#allocation2 + $0x20] sm:$0x1]  ;;  %v347_v14 = vld [vmem:[#allocation2 + $0x2c] sm:$0x1]  ;;  %vm5449_vm11 = vmor %vm280_vm2, %vm559_vm8  ;;  %s5321_s8 = smov 3  }
   0xe   : > { %s5114_s25 = sshll.u32 %s7003_s22, 8  ;;  %343 = vst [vmem:[#allocation2 + $0x14] sm:$0x1] %v342_v12  ;;  %v345_v18 = vsel %vm5397_vm7, 0, %v344_v13  ;;  %v348_v19 = vsel %vm5397_vm7, 0, %v347_v14  ;;  %s5322_s9 = smov 15  }
   0xf   : > { %s5411_s28 = scalar_lea.vmem %s6955_s0, %s5114_s25  ;;  %v338_v20 = vld [vmem:[#allocation2 + $0x8] sm:$0x1]  ;;  %v1689_v21 = vld [vmem:[#allocation2] sm:$0xe]  ;;  %v1690_v22 = vld [vmem:[#allocation2 + $0x4] sm:$0xf] }
  0x10   : > { %v394_v15 = vld [vmem:[%s5411_s28 + $0x10] sm:$0xff]  ;;  %v395_v16 = vld [vmem:[%s5411_s28 + $0x18] sm:$0xff]  ;;  %v392_v17 = vld [vmem:[%s5411_s28] sm:$0xff]  ;;  %346 = vst [vmem:[#allocation2 + $0x20] sm:$0x1] %v345_v18  ;;  %v339_v26 = vsel %vm5397_vm7, 0, %v338_v20 }
  0x11   : > { %v433_v23 = vadd.f32 %v5389_v6, %v394_v15  ;;  %v434_v24 = vadd.f32 %v5389_v6, %v395_v16  ;;  %v431_v25 = vadd.f32 %v5389_v6, %v392_v17  ;;  %349 = vst [vmem:[#allocation2 + $0x2c] sm:$0x1] %v348_v19  ;;  %v4901_v27 = vrot.slane %v1689_v21, 9  ;;  %v393_v29 = vld [vmem:[%s5411_s28 + $0x8] sm:$0xff]  ;;  %v396_v30 = vld [vmem:[%s5411_s28 + $0x20] sm:$0xff]  ;;  %s5323_s10 = smov 24  }
  0x12   : > { %v1790_v28 = vrot.slane %v1690_v22, 5  ;;  %v397_v31 = vld [vmem:[%s5411_s28 + $0x28] sm:$0xff]  ;;  %340 = vst [vmem:[#allocation2 + $0x8] sm:$0x1] %v339_v26  ;;  %v432_v34 = vadd.f32 %v5389_v6, %v393_v29  ;;  %v435_v38 = vadd.f32 %v5389_v6, %v396_v30  ;;  %v282_v40 = vld [vmem:[#allocation2] sm:$0x1] }
  0x13   : > { %v5118_v32 = vpack.c.bf16 %v433_v23, %v433_v23  ;;  %v5119_v33 = vpack.c.bf16 %v434_v24, %v434_v24  ;;  %v5116_v35 = vpack.c.bf16 %v431_v25, %v431_v25  ;;  %v436_v39 = vadd.f32 %v5389_v6, %v397_v31  ;;  %v891_v55 = vld [vmem:[#allocation2 + $0x18] sm:$0xf]  ;;  %v884_v0 = vld [vmem:[#allocation2 + $0xc] sm:$0xf]  ;;  %v898_v14 = vld [vmem:[#allocation2 + $0x24] sm:$0xf] }
  0x14   : > { %v5433_v36 = vsel %vm5404_vm9, %v4901_v27, %v1790_v28  ;;  %v1792_v37 = vrot.slane %v1790_v28, 4  ;;  %v5117_v45 = vpack.c.bf16 %v432_v34, %v432_v34  ;;  %v5120_v48 = vpack.c.bf16 %v435_v38, %v435_v38  ;;  %v1142_v15 = vld [vmem:[#allocation2 + $0x4] sm:$0xf]  ;;  %v294_v26 = vld [vmem:[#allocation2 + $0x30] sm:$0x1]  ;;  %s5324_s11 = smov 12  }
  0x15   : > { %v579_v41 = vshrl.u32 %v5118_v32, 16  ;;  %v582_v42 = vshll.u32 %v5118_v32, 16  ;;  %v587_v43 = vshrl.u32 %v5119_v33, 16  ;;  %v590_v44 = vshll.u32 %v5119_v33, 16  ;;  %v888_v21 = vld [vmem:[#allocation2 + $0x14] sm:$0x1] }
  0x16   : > { %v562_v46 = vshrl.u32 %v5116_v35, 16  ;;  %v565_v47 = vshll.u32 %v5116_v35, 16  ;;  %v5121_v52 = vpack.c.bf16 %v436_v39, %v436_v39  ;;  %v283_v53 = vsel %vm5375_vm3, 0, %v282_v40  ;;  %v398_v33 = vld [vmem:[%s5411_s28 + $0x30] sm:$0xff]  ;;  %s5325_s12 = smov 21   ;;  %s5115_s27 = sshll.u32 %s7003_s22, 7 }
  0x17   : > { %v581_v50 = vrot.slane %v579_v41, 7  ;;  %v5443_v51 = vrot.slane %v587_v43, 7  ;;  %v570_v57 = vshrl.u32 %v5117_v45, 16  ;;  %v573_v58 = vshll.u32 %v5117_v45, 16  ;;  %284 = vst [vmem:[#allocation2] sm:$0x1] %v283_v53 }
  0x18   : > { %v564_v56 = vrot.slane %v562_v46, 7  ;;  %v596_v59 = vshrl.u32 %v5120_v48, 16  ;;  %vm1189_vm12 = vsmask.f32 3328  ;;  %v599_v13 = vshll.u32 %v5120_v48, 16  ;;  %v399_v46 = vld [vmem:[%s5411_s28 + $0x38] sm:$0xff] }
  0x19   : > { %v584_v60 = vor.u32 %v582_v42, %v581_v50  ;;  %v585_v61 = vrot.slane %v581_v50, 4  ;;  %v592_v62 = vor.u32 %v590_v44, %v5443_v51  ;;  %v594_v63 = vrot.slane %v5443_v51, 4  ;;  %v1691_v2 = vld [vmem:[#allocation2 + $0x8] sm:$0x1]  ;;  %v895_v31 = vld [vmem:[#allocation2 + $0x20] sm:$0x1] }
  0x1a   : > { %v567_v3 = vor.u32 %v565_v47, %v564_v56  ;;  %v568_v4 = vrot.slane %v564_v56, 4  ;;  %v572_v5 = vrot.slane %v570_v57, 7  ;;  %v598_v7 = vrot.slane %v596_v59, 7  ;;  %v1143_v20 = vld [vmem:[#allocation2 + $0x8] sm:$0x1] }
  0x1b   : > { %v1793_v8 = vrot.slane %v1691_v2, 5  ;;  %v593_v10 = vsel %vm5449_vm11, %v585_v61, %v592_v62  ;;  %v892_v12 = vsel %vm5439_vm10, %v584_v60, %v891_v55  ;;  %v604_v24 = vshrl.u32 %v5121_v52, 16  ;;  %v902_v32 = vld [vmem:[#allocation2 + $0x2c] sm:$0x1] }
  0x1c   : > { %893 = vst [vmem:[#allocation2 + $0x18] sm:$0xf] %v892_v12  ;;  %894 = vst.msk [vmem:[#allocation2 + $0x1c] sm:$0xf] %vm270_vm0, %v593_v10  ;;  %v575_v16 = vor.u32 %v573_v58, %v572_v5  ;;  %v577_v17 = vrot.slane %v572_v5, 4  ;;  %v885_v18 = vsel %vm5439_vm10, %v567_v3, %v884_v0  ;;  %v602_v19 = vrot.slane %v598_v7, 4 }
  0x1d   : > { %v1794_v22 = vsel %vm5404_vm9, %v1792_v37, %v1793_v8  ;;  %886 = vst [vmem:[#allocation2 + $0xc] sm:$0xf] %v885_v18  ;;  %v601_v23 = vor.u32 %v599_v13, %v598_v7  ;;  %v607_v25 = vshll.u32 %v5121_v52, 16  ;;  %v1202_v29 = vshll.u32 %v1142_v15, 16  ;;  %v400_v52 = vld [vmem:[%s5411_s28 + $0x40] sm:$0xff]  ;;  %v401_v53 = vld [vmem:[%s5411_s28 + $0x48] sm:$0xff] }
  0x1e   : > { %v4917_v27 = vcombine.low %v5433_v36, %v1794_v22  ;;  %v576_v28 = vsel %vm5449_vm11, %v568_v4, %v575_v16  ;;  %v1206_v30 = vshrl.u32 %v1142_v15, 16  ;;  %v606_v34 = vrot.slane %v604_v24, 7  ;;  %v1141_v37 = vld [vmem:[#allocation2] sm:$0xf] }
  0x1f   : > { %887 = vst.msk [vmem:[#allocation2 + $0x10] sm:$0xf] %vm270_vm0, %v576_v28  ;;  %v899_v35 = vsel %vm5439_vm10, %v601_v23, %v898_v14  ;;  %v1212_v38 = vshll.u32 %v1143_v20, 16  ;;  %v889_v36 = vsel %vm5375_vm3, %v577_v17, %v888_v21  ;;  %v1193_v39 = vshrl.u32 %v1141_v37, 16 }
  0x20   : > { %1948 = vrot.lane.b32.xlu1 %v4917_v27, %s5318_s29  ;;  %900 = vst [vmem:[#allocation2 + $0x24] sm:$0xf] %v899_v35  ;;  %v1196_v40 = vshll.u32 %v1141_v37, 16  ;;  %v5474_v41 = vrot.slane %v1202_v29, 5  ;;  %v1208_v42 = vrot.slane %v1206_v30, 4  ;;  %v609_v43 = vor.u32 %v607_v25, %v606_v34 }
  0x21   : > { %890 = vst [vmem:[#allocation2 + $0x14] sm:$0x1] %v889_v36  ;;  %v611_v44 = vrot.slane %v606_v34, 4  ;;  %vm1190_vm13 = vsmask.f32 7440  ;;  %v896_v45 = vsel %vm5375_vm3, %v594_v63, %v895_v31  ;;  %v1195_v47 = vrot.slane %v1193_v39, 4 }
  0x22   : > { %v1198_v48 = vrot.slane %v1196_v40, 5  ;;  %v1209_v50 = vor.u32 %v1208_v42, %v5474_v41  ;;  %897 = vst [vmem:[#allocation2 + $0x20] sm:$0x1] %v896_v45  ;;  %v295_v51 = vsel %vm5375_vm3, 0, %v294_v26  ;;  %v610_v56 = vsel %vm5449_vm11, %v602_v19, %v609_v43  ;;  %vm5494_vm14 = vmor %vm1189_vm12, %vm1190_vm13 }
  0x23   : > { %v5256_v55 = vld [vmem:[#allocation2 + $0x18] sm:$0xff]   ;;  %v1214_v57 = vrot.slane %v1212_v38, 5  ;;  %v903_v58 = vsel %vm5375_vm3, %v611_v44, %v902_v32  ;;  %296 = vst [vmem:[#allocation2 + $0x30] sm:$0x1] %v295_v51  ;;  %v437_v59 = vadd.f32 %v5389_v6, %v398_v33  ;;  %901 = vst.msk [vmem:[#allocation2 + $0x28] sm:$0xf] %vm270_vm0, %v610_v56  ;;  %v438_v61 = vadd.f32 %v5389_v6, %v399_v46 }
  0x24   : > { %v1199_v60 = vor.u32 %v1198_v48, %v1195_v47  ;;  %904 = vst [vmem:[#allocation2 + $0x2c] sm:$0x1] %v903_v58  ;;  %2127 = vrot.lane.b32.xlu1 %v5256_v55, %s5319_s30  ;;  %v1210_v63 = vrot.slane %v1209_v50, 4  ;;  %v1692_v0 = vld [vmem:[#allocation2 + $0xc] sm:$0xe]  ;;  %v5259_v4 = vld [vmem:[#allocation2 + $0x18] sm:$0xff]   ;;  %v5501_v14 = vadd.f32 %v5389_v6, %v400_v52  ;;  %v5504_v15 = vadd.f32 %v5389_v6, %v401_v53 }
  0x25   : > { %v2735_v2 = vld [vmem:[#allocation2 + $0xc] sm:$0xe]  ;;  %v5498_v8 = vpack.c.bf16 %v437_v59, %v437_v59  ;;  %v4902_v12 = vrot.slane %v1692_v0, 9  ;;  %v5509_v21 = vpack.c.bf16 %v438_v61, %v438_v61  ;;  %v2738_v26 = vld [vmem:[#allocation2 + $0x18] sm:$0xe]  ;;  %vm6962_vm15 = vcmask 23552  }
  0x26   : > { %v5257_v3 = vld [vmem:[#allocation2 + $0xc] sm:$0xff]   ;;  %v1200_v5 = vrot.slane %v1199_v60, 4  ;;  %v1215_v16 = vsel %vm5494_vm14, %v1210_v63, %v1214_v57  ;;  %v4965_v20 = vrot.slane %v2735_v2, 9  ;;  %v2739_v27 = vld [vmem:[#allocation2 + $0x1c] sm:$0xf]  ;;  %v4966_v30 = vrot.slane %v2738_v26, 9 }
  0x27   : > { %v1693_v7 = vld [vmem:[#allocation2 + $0x10] sm:$0xf]  ;;  %2125 = vrot.lane.b32.xlu0 %v5257_v3, %s5319_s30  ;;  %v2840_v31 = vrot.slane %v2739_v27, 5  ;;  %v613_v32 = vshrl.u32 %v5498_v8, 16  ;;  %v3780_v42 = vld [vmem:[#allocation2 + $0x1c] sm:$0xf] }
  0x28   : > { %v1694_v10 = vld [vmem:[#allocation2 + $0x14] sm:$0x1]  ;;  %v1797_v13 = vrot.slane %v1693_v7, 5  ;;  %v2736_v18 = vld [vmem:[#allocation2 + $0x10] sm:$0xf]  ;;  %v1205_v22 = vsel %vm5494_vm14, %v1200_v5, %v5474_v41  ;;  %v3877_v48 = vrot.slane %v3780_v42, 5 }
  0x29   : > { %v1800_v17 = vrot.slane %v1694_v10, 5  ;;  %v2737_v19 = vld [vmem:[#allocation2 + $0x14] sm:$0x1]  ;;  %v2833_v25 = vrot.slane %v2736_v18, 5  ;;  %v2740_v29 = vld [vmem:[#allocation2 + $0x20] sm:$0x1]  ;;  %v4885_v36 = vcombine.low %v1205_v22, %v1215_v16  ;;  %v2841_v39 = vsel %vm5404_vm9, %v4966_v30, %v2840_v31 }
  0x2a   : > { %v1798_v23 = vsel %vm5404_vm9, %v4902_v12, %v1797_v13  ;;  %v1799_v24 = vrot.slane %v1797_v13, 4  ;;  %v2836_v28 = vrot.slane %v2737_v19, 5  ;;  %v5258_v33 = vld [vmem:[#allocation2 + $0x24] sm:$0xff]   ;;  %v2843_v38 = vrot.slane %v2740_v29, 5  ;;  %v3779_v41 = vld [vmem:[#allocation2 + $0x18] sm:$0xe] }
  0x2b   : > { %v2834_v35 = vsel %vm5404_vm9, %v4965_v20, %v2833_v25  ;;  %v2835_v37 = vrot.slane %v2833_v25, 4  ;;  %3169 = vrot.lane.b32.xlu0 %v5259_v4, %s5320_s7  ;;  %v2842_v40 = vrot.slane %v2840_v31, 4  ;;  %v5524_v43 = vrot.slane %v613_v32, 7  ;;  %3171 = vrot.lane.b32.xlu1 %v5258_v33, %s5320_s7  ;;  %v3781_v46 = vld [vmem:[#allocation2 + $0x20] sm:$0x1] }
  0x2c   : > { %v1801_v34 = vsel %vm5404_vm9, %v1799_v24, %v1800_v17  ;;  %v5029_v47 = vrot.slane %v3779_v41, 9  ;;  %v1698_v50 = vld [vmem:[#allocation2 + $0x24] sm:$0xe]  ;;  %v3880_v53 = vrot.slane %v3781_v46, 5  ;;  %v1699_v55 = vld [vmem:[#allocation2 + $0x28] sm:$0xf] }
  0x2d   : > { %v4918_v44 = vcombine.low %v1798_v23, %v1801_v34  ;;  %v2837_v45 = vsel %vm5404_vm9, %v2835_v37, %v2836_v28  ;;  %v2844_v52 = vsel %vm5404_vm9, %v2842_v40, %v2843_v38  ;;  %v1700_v56 = vld [vmem:[#allocation2 + $0x2c] sm:$0x1]  ;;  %v4904_v57 = vrot.slane %v1698_v50, 9  ;;  %v3782_v63 = vld [vmem:[#allocation2 + $0x24] sm:$0xe] }
  0x2e   : > { %v4981_v51 = vcombine.low %v2834_v35, %v2837_v45  ;;  %v4982_v58 = vcombine.low %v2841_v39, %v2844_v52  ;;  %v3878_v59 = vsel %vm5404_vm9, %v5029_v47, %v3877_v48  ;;  %v3879_v60 = vrot.slane %v3877_v48, 4  ;;  %v3783_v0 = vld [vmem:[#allocation2 + $0x28] sm:$0xf]  ;;  %v3784_v3 = vld [vmem:[#allocation2 + $0x2c] sm:$0x1] }
  0x2f   : > { %v1811_v61 = vrot.slane %v1699_v55, 5  ;;  %1624 = vrot.lane.b32.xlu0 %v4885_v36, %s5321_s8  ;;  %v1814_v2 = vrot.slane %v1700_v56, 5  ;;  %v5030_v4 = vrot.slane %v3782_v63, 9  ;;  %v3884_v5 = vrot.slane %v3783_v0, 5  ;;  %1950 = vrot.lane.b32.xlu1 %v4918_v44, %s5318_s29  ;;  %v2193_v17 = vld [vmem:[#allocation2 + $0x18] sm:$0xf] }
  0x30   : > { %v616_v7 = vshll.u32 %v5498_v8, 16  ;;  %v3881_v10 = vsel %vm5404_vm9, %v3879_v60, %v3880_v53  ;;  %v3887_v16 = vrot.slane %v3784_v3, 5  ;;  %v2194_v18 = vld [vmem:[#allocation2 + $0x1c] sm:$0xf]  ;;  %v2195_v23 = vld [vmem:[#allocation2 + $0x20] sm:$0x1] }
  0x31   : > { %v1812_v12 = vsel %vm5404_vm9, %v4904_v57, %v1811_v61  ;;  %v1813_v13 = vrot.slane %v1811_v61, 4  ;;  %v5045_v19 = vcombine.low %v3878_v59, %v3881_v10  ;;  %v3885_v20 = vsel %vm5404_vm9, %v5030_v4, %v3884_v5  ;;  %v1695_v25 = vld [vmem:[#allocation2 + $0x18] sm:$0xe]  ;;  %v1696_v30 = vld [vmem:[#allocation2 + $0x1c] sm:$0xf] }
  0x32   : > { %v3886_v22 = vrot.slane %v3884_v5, 4  ;;  %v2263_v24 = vshrl.u32 %v2193_v17, 16  ;;  %v2266_v27 = vshll.u32 %v2193_v17, 16  ;;  %v2272_v28 = vshll.u32 %v2194_v18, 16  ;;  %v1697_v35 = vld [vmem:[#allocation2 + $0x20] sm:$0x1] }
  0x33   : > { %v1815_v26 = vsel %vm5404_vm9, %v1813_v13, %v1814_v2  ;;  %v2276_v29 = vshrl.u32 %v2194_v18, 16  ;;  %2991 = vrot.lane.b32.xlu0 %v4981_v51, %s5322_s9  ;;  %v2282_v34 = vshll.u32 %v2195_v23, 16  ;;  %v3237_v37 = vld [vmem:[#allocation2 + $0x24] sm:$0xf]  ;;  %2993 = vrot.lane.b32.xlu1 %v4982_v58, %s5322_s9  ;;  %v3238_v41 = vld [vmem:[#allocation2 + $0x28] sm:$0xf] }
  0x34   : > { %v4920_v31 = vcombine.low %v1812_v12, %v1815_v26  ;;  %v3888_v32 = vsel %vm5404_vm9, %v3886_v22, %v3887_v16  ;;  %v2265_v33 = vrot.slane %v2263_v24, 4  ;;  %v2268_v36 = vrot.slane %v2266_v27, 5  ;;  %v3239_v50 = vld [vmem:[#allocation2 + $0x2c] sm:$0x1]  ;;  %v1147_v63 = vld [vmem:[#allocation2 + $0x18] sm:$0xf] }
  0x35   : > { %v5046_v38 = vcombine.low %v3885_v20, %v3888_v32  ;;  %v2274_v39 = vrot.slane %v2272_v28, 5  ;;  %v2278_v40 = vrot.slane %v2276_v29, 4  ;;  %v2284_v42 = vrot.slane %v2282_v34, 5  ;;  %v1148_v5 = vld [vmem:[#allocation2 + $0x1c] sm:$0xf] }
  0x36   : > { %v4903_v44 = vrot.slane %v1695_v25, 9  ;;  %v1804_v45 = vrot.slane %v1696_v30, 5  ;;  %v1807_v46 = vrot.slane %v1697_v35, 5  ;;  %v2269_v47 = vor.u32 %v2268_v36, %v2265_v33  ;;  %v1149_v17 = vld [vmem:[#allocation2 + $0x20] sm:$0x1] }
  0x37   : > { %v2279_v48 = vor.u32 %v2278_v40, %v2274_v39  ;;  %v3307_v51 = vshrl.u32 %v3237_v37, 16  ;;  %v3310_v52 = vshll.u32 %v3237_v37, 16  ;;  %4035 = vrot.lane.b32.xlu0 %v5045_v19, %s5323_s10  ;;  %v3316_v56 = vshll.u32 %v3238_v41, 16  ;;  %1954 = vrot.lane.b32.xlu1 %v4920_v31, %s5318_s29  ;;  %v1144_v18 = vld [vmem:[#allocation2 + $0xc] sm:$0xf] }
  0x38   : > { %v1805_v53 = vsel %vm5404_vm9, %v4903_v44, %v1804_v45  ;;  %v1806_v55 = vrot.slane %v1804_v45, 4  ;;  %v3320_v57 = vshrl.u32 %v3238_v41, 16  ;;  %v2270_v58 = vrot.slane %v2269_v47, 4  ;;  %v1145_v28 = vld [vmem:[#allocation2 + $0x10] sm:$0xf] }
  0x39   : > { %v2280_v59 = vrot.slane %v2279_v48, 4  ;;  %v3309_v60 = vrot.slane %v3307_v51, 4  ;;  %v3312_v61 = vrot.slane %v3310_v52, 5  ;;  %v3318_v2 = vrot.slane %v3316_v56, 5  ;;  %v1146_v32 = vld [vmem:[#allocation2 + $0x14] sm:$0x1] }
  0x3a   : > { %v1808_v0 = vsel %vm5404_vm9, %v1806_v55, %v1807_v46  ;;  %v3322_v3 = vrot.slane %v3320_v57, 4  ;;  %v3326_v4 = vshll.u32 %v3239_v50, 16  ;;  %v2275_v10 = vsel %vm5494_vm14, %v2270_v58, %v2274_v39  ;;  %v1150_v36 = vld [vmem:[#allocation2 + $0x24] sm:$0xf]  ;;  %v1151_v48 = vld [vmem:[#allocation2 + $0x28] sm:$0xf] }
  0x3b   : > { %v2285_v12 = vsel %vm5494_vm14, %v2280_v59, %v2284_v42  ;;  %v4919_v13 = vcombine.low %v1805_v53, %v1808_v0  ;;  %v3313_v16 = vor.u32 %v3312_v61, %v3309_v60  ;;  %4037 = vrot.lane.b32.xlu0 %v5046_v38, %s5323_s10  ;;  %v1241_v23 = vshrl.u32 %v1147_v63, 16  ;;  %v1152_v58 = vld [vmem:[#allocation2 + $0x2c] sm:$0x1] }
  0x3c   : > { %v4950_v19 = vcombine.low %v2275_v10, %v2285_v12  ;;  %v3323_v20 = vor.u32 %v3322_v3, %v3318_v2  ;;  %v3328_v22 = vrot.slane %v3326_v4, 5  ;;  %v1244_v25 = vshll.u32 %v1147_v63, 16 }
  0x3d   : > { %v3314_v24 = vrot.slane %v3313_v16, 4  ;;  %v1250_v26 = vshll.u32 %v1148_v5, 16  ;;  %v1254_v27 = vshrl.u32 %v1148_v5, 16  ;;  %v1243_v30 = vrot.slane %v1241_v23, 4 }
  0x3e   : > { %2672 = vrot.lane.b32.xlu1 %v4950_v19, %s5324_s11  ;;  %v3324_v29 = vrot.slane %v3323_v20, 4  ;;  %v1260_v31 = vshll.u32 %v1149_v17, 16  ;;  %v1217_v33 = vshrl.u32 %v1144_v18, 16  ;;  %v1246_v35 = vrot.slane %v1244_v25, 5 }
  0x3f   : > { %v3319_v34 = vsel %vm5494_vm14, %v3314_v24, %v3318_v2  ;;  %v1252_v37 = vrot.slane %v1250_v26, 5  ;;  %v1256_v38 = vrot.slane %v1254_v27, 4  ;;  %1952 = vrot.lane.b32.xlu0 %v4919_v13, %s5318_s29  ;;  %v1220_v42 = vshll.u32 %v1144_v18, 16  ;;  %v2190_v2 = vld [vmem:[#allocation2 + $0xc] sm:$0xf] }
  0x40   : > { %v3329_v39 = vsel %vm5494_vm14, %v3324_v29, %v3328_v22  ;;  %v1262_v40 = vrot.slane %v1260_v31, 5  ;;  %v1219_v41 = vrot.slane %v1217_v33, 4  ;;  %v1247_v45 = vor.u32 %v1246_v35, %v1243_v30  ;;  %v2191_v18 = vld [vmem:[#allocation2 + $0x10] sm:$0xf]  ;;  %v2192_v27 = vld [vmem:[#allocation2 + $0x14] sm:$0x1] }
  0x41   : > { %v5014_v44 = vcombine.low %v3319_v34, %v3329_v39  ;;  %v1257_v46 = vor.u32 %v1256_v38, %v1252_v37  ;;  %v1226_v47 = vshll.u32 %v1145_v28, 16  ;;  %v1222_v50 = vrot.slane %v1220_v42, 5  ;;  %v3234_v33 = vld [vmem:[#allocation2 + $0x18] sm:$0xf] }
  0x42   : > { %v1230_v51 = vshrl.u32 %v1145_v28, 16  ;;  %v1236_v52 = vshll.u32 %v1146_v32, 16  ;;  %v1265_v53 = vshrl.u32 %v1150_v36, 16  ;;  %v1248_v55 = vrot.slane %v1247_v45, 4 }
  0x43   : > { %3716 = vrot.lane.b32.xlu1 %v5014_v44, %s5325_s12  ;;  %v1258_v56 = vrot.slane %v1257_v46, 4  ;;  %v1228_v57 = vrot.slane %v1226_v47, 5  ;;  %v1268_v59 = vshll.u32 %v1150_v36, 16  ;;  %v1223_v60 = vor.u32 %v1222_v50, %v1219_v41  ;;  %v3235_v36 = vld [vmem:[#allocation2 + $0x1c] sm:$0xf] }
  0x44   : > { %v1232_v61 = vrot.slane %v1230_v51, 4  ;;  %v1238_v63 = vrot.slane %v1236_v52, 5  ;;  %v1267_v0 = vrot.slane %v1265_v53, 4  ;;  %v1253_v3 = vsel %vm5494_vm14, %v1248_v55, %v1252_v37  ;;  %v3236_v44 = vld [vmem:[#allocation2 + $0x20] sm:$0x1] }
  0x45   : > { %v1263_v4 = vsel %vm5494_vm14, %v1258_v56, %v1262_v40  ;;  %v1270_v5 = vrot.slane %v1268_v59, 5  ;;  %v1274_v10 = vshll.u32 %v1151_v48, 16  ;;  %v1224_v13 = vrot.slane %v1223_v60, 4  ;;  %v905_v55 = vld [vmem:[#allocation2 + $0x30] sm:$0xf] }
  0x46   : > { %v4887_v12 = vcombine.low %v1253_v3, %v1263_v4  ;;  %v1233_v16 = vor.u32 %v1232_v61, %v1228_v57  ;;  %v1278_v17 = vshrl.u32 %v1151_v48, 16  ;;  %v1284_v22 = vshll.u32 %v1152_v58, 16 }
  0x47   : > { %v1271_v19 = vor.u32 %v1270_v5, %v1267_v0  ;;  %v1276_v20 = vrot.slane %v1274_v10, 5  ;;  %v2239_v23 = vshrl.u32 %v2190_v2, 16  ;;  %v1229_v24 = vsel %vm5494_vm14, %v1224_v13, %v1228_v57 }
  0x48   : > { %1628 = vrot.lane.b32.xlu1 %v4887_v12, %s5321_s8  ;;  %v1234_v25 = vrot.slane %v1233_v16, 4  ;;  %v1280_v26 = vrot.slane %v1278_v17, 4  ;;  %v2242_v28 = vshll.u32 %v2190_v2, 16  ;;  %v1286_v30 = vrot.slane %v1284_v22, 5  ;;  %v2196_v17 = vld [vmem:[#allocation2 + $0x24] sm:$0xf] }
  0x49   : > { %v1272_v29 = vrot.slane %v1271_v19, 4  ;;  %v2241_v31 = vrot.slane %v2239_v23, 4  ;;  %v2248_v32 = vshll.u32 %v2191_v18, 16  ;;  %v2252_v38 = vshrl.u32 %v2191_v18, 16  ;;  %v2197_v18 = vld [vmem:[#allocation2 + $0x28] sm:$0xf] }
  0x4a   : > { %v1239_v34 = vsel %vm5494_vm14, %v1234_v25, %v1238_v63  ;;  %v1281_v35 = vor.u32 %v1280_v26, %v1276_v20  ;;  %v2244_v37 = vrot.slane %v2242_v28, 5  ;;  %v2258_v42 = vshll.u32 %v2192_v27, 16  ;;  %v2198_v26 = vld [vmem:[#allocation2 + $0x2c] sm:$0x1] }
  0x4b   : > { %v4886_v39 = vcombine.low %v1229_v24, %v1239_v34  ;;  %v1277_v40 = vsel %vm5494_vm14, %v1272_v29, %v1276_v20  ;;  %v2250_v41 = vrot.slane %v2248_v32, 5  ;;  %v2254_v47 = vrot.slane %v2252_v38, 4  ;;  %v2742_v34 = vld [vmem:[#allocation2 + $0x28] sm:$0xf] }
  0x4c   : > { %v1282_v45 = vrot.slane %v1281_v35, 4  ;;  %v2245_v46 = vor.u32 %v2244_v37, %v2241_v31  ;;  %v3283_v48 = vshrl.u32 %v3234_v33, 16  ;;  %v2260_v50 = vrot.slane %v2258_v42, 5  ;;  %v2743_v35 = vld [vmem:[#allocation2 + $0x2c] sm:$0x1] }
  0x4d   : > { %1626 = vrot.lane.b32.xlu0 %v4886_v39, %s5321_s8  ;;  %v3286_v51 = vshll.u32 %v3234_v33, 16  ;;  %v3292_v52 = vshll.u32 %v3235_v36, 16  ;;  %v3296_v53 = vshrl.u32 %v3235_v36, 16  ;;  %v2255_v58 = vor.u32 %v2254_v47, %v2250_v41  ;;  %v2741_v33 = vld [vmem:[#allocation2 + $0x24] sm:$0xe] }
  0x4e   : > { %v1287_v56 = vsel %vm5494_vm14, %v1282_v45, %v1286_v30  ;;  %v2246_v57 = vrot.slane %v2245_v46, 4  ;;  %v3285_v59 = vrot.slane %v3283_v48, 4  ;;  %v3302_v4 = vshll.u32 %v3236_v44, 16 }
  0x4f   : > { %v4888_v60 = vcombine.low %v1277_v40, %v1287_v56  ;;  %v3288_v61 = vrot.slane %v3286_v51, 5  ;;  %v3294_v63 = vrot.slane %v3292_v52, 5  ;;  %v3298_v0 = vrot.slane %v3296_v53, 4  ;;  %v5260_v51 = vld [vmem:[#allocation2 + $0x24] sm:$0xff]  }
  0x50   : > { %v2251_v2 = vsel %vm5494_vm14, %v2246_v57, %v2250_v41  ;;  %v2256_v3 = vrot.slane %v2255_v58, 4  ;;  %v618_v5 = vor.u32 %v616_v7, %v5524_v43  ;;  %v619_v13 = vrot.slane %v5524_v43, 4  ;;  %v350_v43 = vld [vmem:[#allocation2 + $0x38] sm:$0x1]  ;;  %v297_v41 = vld [vmem:[#allocation2 + $0x3c] sm:$0x1] }
  0x51   : > { %1630 = vrot.lane.b32.xlu1 %v4888_v60, %s5321_s8  ;;  %v3289_v10 = vor.u32 %v3288_v61, %v3285_v59  ;;  %v3299_v12 = vor.u32 %v3298_v0, %v3294_v63  ;;  %v621_v16 = vshrl.u32 %v5509_v21, 16  ;;  %v3304_v20 = vrot.slane %v3302_v4, 5 }
  0x52   : > { %v2261_v19 = vsel %vm5494_vm14, %v2256_v3, %v2260_v50  ;;  %v624_v22 = vshll.u32 %v5509_v21, 16  ;;  %v906_v8 = vsel %vm5439_vm10, %v618_v5, %v905_v55  ;;  %v2287_v27 = vshrl.u32 %v2196_v17, 16  ;;  %v402_v3 = vld [vmem:[%s5411_s28 + $0x50] sm:$0xff] }
  0x53   : > { %v4949_v7 = vcombine.low %v2251_v2, %v2261_v19  ;;  %v3290_v23 = vrot.slane %v3289_v10, 4  ;;  %v3300_v24 = vrot.slane %v3299_v12, 4  ;;  %v5593_v25 = vrot.slane %v621_v16, 7  ;;  %907 = vst [vmem:[#allocation2 + $0x30] sm:$0xf] %v906_v8  ;;  %v403_v8 = vld [vmem:[%s5411_s28 + $0x58] sm:$0xff] }
  0x54   : > { %v2290_v28 = vshll.u32 %v2196_v17, 16  ;;  %v2296_v29 = vshll.u32 %v2197_v18, 16  ;;  %v2300_v30 = vshrl.u32 %v2197_v18, 16  ;;  %v5124_v37 = vpack.c.bf16 %v5501_v14, %v5501_v14 }
  0x55   : > { %2670 = vrot.lane.b32.xlu0 %v4949_v7, %s5324_s11  ;;  %v3295_v21 = vsel %vm5494_vm14, %v3290_v23, %v3294_v63  ;;  %v3305_v31 = vsel %vm5494_vm14, %v3300_v24, %v3304_v20  ;;  %v626_v32 = vor.u32 %v624_v22, %v5593_v25  ;;  %v2289_v36 = vrot.slane %v2287_v27, 4 }
  0x56   : > { %v5013_v38 = vcombine.low %v3295_v21, %v3305_v31  ;;  %v2292_v39 = vrot.slane %v2290_v28, 5  ;;  %v2298_v40 = vrot.slane %v2296_v29, 5  ;;  %v2302_v44 = vrot.slane %v2300_v30, 4 }
  0x57   : > { %v627_v42 = vsel %vm5449_vm11, %v619_v13, %v626_v32  ;;  %v2306_v45 = vshll.u32 %v2198_v26, 16  ;;  %v351_v46 = vsel %vm5397_vm7, 0, %v350_v43  ;;  %v4967_v48 = vrot.slane %v2741_v33, 9 }
  0x58   : > { %908 = vst.msk [vmem:[#allocation2 + $0x34] sm:$0xf] %vm270_vm0, %v627_v42  ;;  %v2293_v47 = vor.u32 %v2292_v39, %v2289_v36  ;;  %352 = vst [vmem:[#allocation2 + $0x38] sm:$0x1] %v351_v46  ;;  %v2847_v50 = vrot.slane %v2742_v34, 5  ;;  %v2850_v14 = vrot.slane %v2743_v35, 5  ;;  %v2303_v52 = vor.u32 %v2302_v44, %v2298_v40 }
  0x59   : > { %3714 = vrot.lane.b32.xlu0 %v5013_v38, %s5325_s12  ;;  %v2308_v53 = vrot.slane %v2306_v45, 5  ;;  %v298_v55 = vsel %vm5375_vm3, 0, %v297_v41  ;;  %v630_v56 = vshrl.u32 %v5124_v37, 16  ;;  %v5125_v60 = vpack.c.bf16 %v5504_v15, %v5504_v15  ;;  %v353_v34 = vld [vmem:[#allocation2 + $0x44] sm:$0x1] }
  0x5a   : > { %v2294_v57 = vrot.slane %v2293_v47, 4  ;;  %v2199_v58 = vld [vmem:[#allocation2 + $0x30] sm:$0xf]  ;;  %v2849_v59 = vrot.slane %v2847_v50, 4  ;;  %299 = vst [vmem:[#allocation2 + $0x3c] sm:$0x1] %v298_v55  ;;  %v2848_v5 = vsel %vm5404_vm9, %v4967_v48, %v2847_v50  ;;  %v441_v7 = vadd.f32 %v5389_v6, %v402_v3 }
  0x5b   : > { %v628_v61 = vrot.slane %v5593_v25, 4  ;;  %v2304_v63 = vrot.slane %v2303_v52, 4  ;;  %v2311_v0 = vshrl.u32 %v2199_v58, 16  ;;  %v2314_v2 = vshll.u32 %v2199_v58, 16  ;;  %v2744_v19 = vld [vmem:[#allocation2 + $0x30] sm:$0xe] }
  0x5c   : > { %v2299_v4 = vsel %vm5494_vm14, %v2294_v57, %v2298_v40  ;;  %v632_v10 = vrot.slane %v630_v56, 7  ;;  %v633_v12 = vshll.u32 %v5124_v37, 16  ;;  %v2851_v17 = vsel %vm5404_vm9, %v2849_v59, %v2850_v14  ;;  %v3240_v22 = vld [vmem:[#allocation2 + $0x30] sm:$0xf]  ;;  %v404_v52 = vld [vmem:[%s5411_s28 + $0x60] sm:$0xff] }
  0x5d   : > { %2129 = vrot.lane.b32.xlu0 %v5260_v51, %s5319_s30  ;;  %v2309_v15 = vsel %vm5494_vm14, %v2304_v63, %v2308_v53  ;;  %v2313_v13 = vrot.slane %v2311_v0, 4  ;;  %v2316_v16 = vrot.slane %v2314_v2, 5  ;;  %v638_v20 = vshrl.u32 %v5125_v60, 16  ;;  %v3785_v46 = vld [vmem:[#allocation2 + $0x30] sm:$0xe] }
  0x5e   : > { %v4951_v18 = vcombine.low %v2299_v4, %v2309_v15  ;;  %v641_v43 = vshll.u32 %v5125_v60, 16  ;;  %v4983_v28 = vcombine.low %v2848_v5, %v2851_v17  ;;  %v635_v30 = vor.u32 %v633_v12, %v632_v10  ;;  %v5652_v5 = vld [vmem:[#allocation2 + $0x30] sm:$0xf]  ;;  %v5663_v17 = vld [vmem:[%s6956_s1] ss:$0 sm:$0xff] }
  0x5f   : > { %v5261_v23 = vld [vmem:[#allocation2 + $0x30] sm:$0xff]   ;;  %v909_v24 = vld [vmem:[#allocation2 + $0x38] sm:$0x1]  ;;  %v2317_v25 = vor.u32 %v2316_v16, %v2313_v13  ;;  %v636_v33 = vrot.slane %v632_v10, 4  ;;  %v5630_v35 = vrot.slane %v638_v20, 7  ;;  %v3331_v36 = vshrl.u32 %v3240_v22, 16 }
  0x60   : > { %v910_v26 = vsel %vm5375_vm3, %v628_v61, %v909_v24  ;;  %v2200_v27 = vld [vmem:[#allocation2 + $0x34] sm:$0xf]  ;;  %2131 = vrot.lane.b32.xlu1 %v5261_v23, %s5319_s30  ;;  %v442_v39 = vadd.f32 %v5389_v6, %v403_v8  ;;  %v5633_v40 = vpack.c.bf16 %v441_v7, %v441_v7  ;;  %v4968_v45 = vrot.slane %v2744_v19, 9  ;;  %v405_v6 = vld [vmem:[%s5411_s28 + $0x68] sm:$0xff] }
  0x61   : > { %v2745_v29 = vld [vmem:[#allocation2 + $0x34] sm:$0xf]  ;;  %2674 = vrot.lane.b32.xlu0 %v4951_v18, %s5324_s11  ;;  %911 = vst [vmem:[#allocation2 + $0x38] sm:$0x1] %v910_v26  ;;  %v2320_v21 = vshll.u32 %v2200_v27, 16  ;;  %v2324_v31 = vshrl.u32 %v2200_v27, 16  ;;  %v643_v48 = vor.u32 %v641_v43, %v5630_v35  ;;  %v443_v18 = vadd.f32 %v5663_v17, %v404_v52 }
  0x62   : > { %v2854_v32 = vrot.slane %v2745_v29, 5  ;;  %v912_v37 = vld [vmem:[#allocation2 + $0x3c] sm:$0xf]  ;;  %v3241_v38 = vld [vmem:[#allocation2 + $0x34] sm:$0xf]  ;;  %v5635_v41 = vrot.slane %v2317_v25, 4  ;;  %v5658_v16 = vpack.c.bf16 %v442_v39, %v442_v39  ;;  %v5667_v19 = vadd.f32 %v5663_v17, %v405_v6 }
  0x63   : > { %v5637_v42 = vrot.slane %v2320_v21, 5  ;;  %v2326_v44 = vrot.slane %v2324_v31, 4  ;;  %v645_v50 = vrot.slane %v5630_v35, 4  ;;  %v913_v14 = vsel %vm5439_vm10, %v635_v30, %v912_v37  ;;  %v3786_v51 = vld [vmem:[#allocation2 + $0x34] sm:$0xf] }
  0x64   : > { %v2856_v47 = vrot.slane %v2854_v32, 4  ;;  %v5262_v55 = vld [vmem:[#allocation2 + $0x30] sm:$0xff]   ;;  %914 = vst [vmem:[#allocation2 + $0x3c] sm:$0xf] %v913_v14  ;;  %v3333_v56 = vrot.slane %v3331_v36, 4  ;;  %v3334_v57 = vshll.u32 %v3240_v22, 16  ;;  %v644_v59 = vsel %vm5449_vm11, %v636_v33, %v643_v48 }
  0x65   : > { %v2327_v53 = vor.u32 %v2326_v44, %v5637_v42  ;;  %2995 = vrot.lane.b32.xlu0 %v4983_v28, %s5322_s9  ;;  %v3340_v58 = vshll.u32 %v3241_v38, 16  ;;  %v3344_v60 = vshrl.u32 %v3241_v38, 16  ;;  %v354_v61 = vsel %vm5397_vm7, 0, %v353_v34  ;;  %915 = vst.msk [vmem:[#allocation2 + $0x40] sm:$0xf] %vm270_vm0, %v644_v59 }
  0x66   : > { %v5031_v63 = vrot.slane %v3785_v46, 9  ;;  %v3336_v2 = vrot.slane %v3334_v57, 5  ;;  %355 = vst [vmem:[#allocation2 + $0x44] sm:$0x1] %v354_v61  ;;  %v3891_v4 = vrot.slane %v3786_v51, 5  ;;  %v5656_v15 = vsel %vm5404_vm9, %v4968_v45, %v2854_v32 }
  0x67   : > { %v2328_v0 = vrot.slane %v2327_v53, 4  ;;  %v3342_v3 = vrot.slane %v3340_v58, 5  ;;  %v3346_v7 = vrot.slane %v3344_v60, 4  ;;  %v2323_v24 = vsel %vm5494_vm14, %v5635_v41, %v5637_v42  ;;  %v1154_v41 = vld [vmem:[#allocation2 + $0x34] sm:$0xf] }
  0x68   : > { %v2201_v10 = vld [vmem:[#allocation2 + $0x38] sm:$0x1]  ;;  %v3337_v8 = vor.u32 %v3336_v2, %v3333_v56  ;;  %v3893_v43 = vrot.slane %v3891_v4, 4  ;;  %v3892_v32 = vsel %vm5404_vm9, %v5031_v63, %v3891_v4  ;;  %v1289_v34 = vshrl.u32 %v5652_v5, 16 }
  0x69   : > { %v2746_v12 = vld [vmem:[#allocation2 + $0x38] sm:$0x1]  ;;  %v2330_v20 = vshll.u32 %v2201_v10, 16  ;;  %3173 = vrot.lane.b32.xlu0 %v5262_v55, %s5320_s7  ;;  %v3347_v30 = vor.u32 %v3346_v7, %v3342_v3  ;;  %v5686_v48 = vpack.c.bf16 %v443_v18, %v443_v18  ;;  %v1292_v63 = vshll.u32 %v5652_v5, 16 }
  0x6a   : > { %v3242_v13 = vld [vmem:[#allocation2 + $0x38] sm:$0x1]  ;;  %v2857_v22 = vrot.slane %v2746_v12, 5  ;;  %v3338_v29 = vrot.slane %v3337_v8, 4  ;;  %v1291_v61 = vrot.slane %v1289_v34, 4  ;;  %v1298_v35 = vshll.u32 %v1154_v41, 16 }
  0x6b   : > { %v3787_v23 = vld [vmem:[#allocation2 + $0x38] sm:$0x1]  ;;  %v3350_v25 = vshll.u32 %v3242_v13, 16  ;;  %v2332_v27 = vrot.slane %v2330_v20, 5  ;;  %v3243_v31 = vld [vmem:[#allocation2 + $0x3c] sm:$0xf] }
  0x6c   : > { %v3894_v26 = vrot.slane %v3787_v23, 5  ;;  %v2858_v28 = vsel %vm5404_vm9, %v2856_v47, %v2857_v22  ;;  %v3343_v38 = vsel %vm5494_vm14, %v3338_v29, %v3342_v3  ;;  %v3348_v36 = vrot.slane %v3347_v30, 4  ;;  %v1155_v42 = vld [vmem:[#allocation2 + $0x38] sm:$0x1]  ;;  %v3244_v52 = vld [vmem:[#allocation2 + $0x40] sm:$0xf] }
  0x6d   : > { %v3352_v21 = vrot.slane %v3350_v25, 5  ;;  %v2333_v37 = vsel %vm5494_vm14, %v2328_v0, %v2332_v27  ;;  %v3355_v39 = vshrl.u32 %v3243_v31, 16  ;;  %v4984_v45 = vcombine.low %v5656_v15, %v2858_v28  ;;  %v916_v46 = vld [vmem:[#allocation2 + $0x44] sm:$0x1]  ;;  %v3788_v55 = vld [vmem:[#allocation2 + $0x3c] sm:$0xe] }
  0x6e   : > { %v3895_v33 = vsel %vm5404_vm9, %v3893_v43, %v3894_v26  ;;  %v4952_v44 = vcombine.low %v2323_v24, %v2333_v37  ;;  %v3358_v47 = vshll.u32 %v3243_v31, 16  ;;  %v917_v51 = vsel %vm5375_vm3, %v645_v50, %v916_v46  ;;  %v1156_v60 = vld [vmem:[#allocation2 + $0x3c] sm:$0xf]  ;;  %v3789_v2 = vld [vmem:[#allocation2 + $0x40] sm:$0xf]  ;;  %v406_v15 = vld [vmem:[%s5411_s28 + $0x70] sm:$0xff] }
  0x6f   : > { %v3353_v14 = vsel %vm5494_vm14, %v3348_v36, %v3352_v21  ;;  %v3357_v6 = vrot.slane %v3355_v39, 4  ;;  %v5047_v53 = vcombine.low %v3892_v32, %v3895_v33  ;;  %918 = vst [vmem:[#allocation2 + $0x44] sm:$0x1] %v917_v51  ;;  %v3364_v58 = vshll.u32 %v3244_v52, 16  ;;  %v1157_v12 = vld [vmem:[#allocation2 + $0x40] sm:$0xf] }
  0x70   : > { %2676 = vrot.lane.b32.xlu1 %v4952_v44, %s5324_s11  ;;  %v5015_v56 = vcombine.low %v3343_v38, %v3353_v14  ;;  %v3360_v57 = vrot.slane %v3358_v47, 5  ;;  %v3368_v59 = vshrl.u32 %v3244_v52, 16  ;;  %v1302_v0 = vshrl.u32 %v1154_v41, 16  ;;  %v5263_v8 = vld [vmem:[#allocation2 + $0x3c] sm:$0xff]   ;;  %v1701_v21 = vld [vmem:[#allocation2 + $0x30] sm:$0xe] }
  0x71   : > { %v3366_v3 = vrot.slane %v3364_v58, 5  ;;  %v1308_v10 = vshll.u32 %v1155_v42, 16  ;;  %v1294_v13 = vrot.slane %v1292_v63, 5  ;;  %v1300_v18 = vrot.slane %v1298_v35, 5  ;;  %v1702_v51 = vld [vmem:[#allocation2 + $0x34] sm:$0xf] }
  0x72   : > { %3718 = vrot.lane.b32.xlu0 %v5015_v56, %s5325_s12  ;;  %v3361_v50 = vor.u32 %v3360_v57, %v3357_v6  ;;  %v3370_v4 = vrot.slane %v3368_v59, 4  ;;  %v1304_v20 = vrot.slane %v1302_v0, 4  ;;  %v5032_v22 = vrot.slane %v3788_v55, 9  ;;  %v1703_v52 = vld [vmem:[#allocation2 + $0x38] sm:$0x1] }
  0x73   : > { %v3898_v23 = vrot.slane %v3789_v2, 5  ;;  %v1313_v24 = vshrl.u32 %v1156_v60, 16  ;;  %v1295_v25 = vor.u32 %v1294_v13, %v1291_v61  ;;  %v1316_v26 = vshll.u32 %v1156_v60, 16  ;;  %v1704_v57 = vld [vmem:[#allocation2 + $0x3c] sm:$0xe] }
  0x74   : > { %2997 = vrot.lane.b32.xlu1 %v4984_v45, %s5322_s9  ;;  %v3362_v7 = vrot.slane %v3361_v50, 4  ;;  %v3371_v5 = vor.u32 %v3370_v4, %v3366_v3  ;;  %v1305_v43 = vor.u32 %v1304_v20, %v1300_v18  ;;  %v1322_v27 = vshll.u32 %v1157_v12, 16  ;;  %v1705_v58 = vld [vmem:[#allocation2 + $0x40] sm:$0xf]  ;;  %v300_v59 = vld [vmem:[#allocation2 + $0x48] sm:$0x1] }
  0x75   : > { %v1310_v29 = vrot.slane %v1308_v10, 5  ;;  %v3900_v30 = vrot.slane %v3898_v23, 4  ;;  %v5702_v31 = vpack.c.bf16 %v5667_v19, %v5667_v19  ;;  %v1296_v33 = vrot.slane %v1295_v25, 4  ;;  %v2202_v25 = vld [vmem:[#allocation2 + $0x3c] sm:$0xf] }
  0x76   : > { %v3372_v28 = vrot.slane %v3371_v5, 4  ;;  %4039 = vrot.lane.b32.xlu0 %v5047_v53, %s5323_s10  ;;  %v3245_v32 = vld [vmem:[#allocation2 + $0x44] sm:$0x1]  ;;  %v1306_v34 = vrot.slane %v1305_v43, 4  ;;  %v3899_v38 = vsel %vm5404_vm9, %v5032_v22, %v3898_v23  ;;  %v5707_v36 = vadd.f32 %v5663_v17, %v406_v15 }
  0x77   : > { %v3790_v37 = vld [vmem:[#allocation2 + $0x44] sm:$0x1]  ;;  %v3374_v39 = vshll.u32 %v3245_v32, 16  ;;  %v1315_v44 = vrot.slane %v1313_v24, 4  ;;  %v1318_v45 = vrot.slane %v1316_v26, 5  ;;  %v3367_v19 = vsel %vm5494_vm14, %v3362_v7, %v3366_v3 }
  0x78   : > { %3175 = vrot.lane.b32.xlu1 %v5263_v8, %s5320_s7  ;;  %v3901_v41 = vrot.slane %v3790_v37, 5  ;;  %v1158_v42 = vld [vmem:[#allocation2 + $0x44] sm:$0x1]  ;;  %v1301_v46 = vsel %vm5494_vm14, %v1296_v33, %v1300_v18  ;;  %v1324_v47 = vrot.slane %v1322_v27, 5  ;;  %v1326_v14 = vshrl.u32 %v1157_v12, 16 }
  0x79   : > { %v3376_v6 = vrot.slane %v3374_v39, 5  ;;  %v1311_v53 = vsel %vm5494_vm14, %v1306_v34, %v1310_v29  ;;  %v1319_v56 = vor.u32 %v1318_v45, %v1315_v44  ;;  %v1332_v63 = vshll.u32 %v1158_v42, 16  ;;  %v1706_v0 = vld [vmem:[#allocation2 + $0x44] sm:$0x1]  ;;  %v2203_v33 = vld [vmem:[#allocation2 + $0x40] sm:$0xf] }
  0x7a   : > { %v3902_v55 = vsel %vm5404_vm9, %v3900_v30, %v3901_v41  ;;  %v1328_v61 = vrot.slane %v1326_v14, 4  ;;  %v4905_v35 = vrot.slane %v1701_v21, 9  ;;  %v1818_v3 = vrot.slane %v1702_v51, 5  ;;  %v356_v34 = vld [vmem:[#allocation2 + $0x50] sm:$0x1]  ;;  %v5264_v39 = vld [vmem:[#allocation2 + $0x3c] sm:$0xff]  }
  0x7b   : > { %v5048_v60 = vcombine.low %v3899_v38, %v3902_v55  ;;  %v3377_v2 = vsel %vm5494_vm14, %v3372_v28, %v3376_v6  ;;  %v1320_v50 = vrot.slane %v1319_v56, 4  ;;  %v1821_v4 = vrot.slane %v1703_v52, 5  ;;  %v2204_v42 = vld [vmem:[#allocation2 + $0x44] sm:$0x1]  ;;  %v2748_v14 = vld [vmem:[#allocation2 + $0x40] sm:$0xf] }
  0x7c   : > { %v5016_v10 = vcombine.low %v3367_v19, %v3377_v2  ;;  %v4889_v12 = vcombine.low %v1301_v46, %v1311_v53  ;;  %v1329_v15 = vor.u32 %v1328_v61, %v1324_v47  ;;  %v1334_v13 = vrot.slane %v1332_v63, 5  ;;  %v2749_v55 = vld [vmem:[#allocation2 + $0x44] sm:$0x1] }
  0x7d   : > { %4041 = vrot.lane.b32.xlu0 %v5048_v60, %s5323_s10  ;;  %v1819_v18 = vsel %vm5404_vm9, %v4905_v35, %v1818_v3  ;;  %v1820_v20 = vrot.slane %v1818_v3, 4  ;;  %v4906_v22 = vrot.slane %v1704_v57, 9  ;;  %v1825_v8 = vrot.slane %v1705_v58, 5 }
  0x7e   : > { %3720 = vrot.lane.b32.xlu1 %v5016_v10, %s5325_s12  ;;  %v1330_v7 = vrot.slane %v1329_v15, 4  ;;  %v1828_v5 = vrot.slane %v1706_v0, 5  ;;  %v301_v23 = vsel %vm5375_vm3, 0, %v300_v59  ;;  %v647_v24 = vshrl.u32 %v5633_v40, 16  ;;  %v303_v59 = vld [vmem:[#allocation2 + $0x54] sm:$0x1] }
  0x7f   : > { %v1325_v43 = vsel %vm5494_vm14, %v1320_v50, %v1324_v47  ;;  %v1822_v26 = vsel %vm5404_vm9, %v1820_v20, %v1821_v4  ;;  %v1827_v27 = vrot.slane %v1825_v8, 4  ;;  %302 = vst [vmem:[#allocation2 + $0x48] sm:$0x1] %v301_v23  ;;  %v650_v28 = vshll.u32 %v5633_v40, 16  ;;  %v2747_v47 = vld [vmem:[#allocation2 + $0x3c] sm:$0xe] }
  0x80   : > { %v1335_v29 = vsel %vm5494_vm14, %v1330_v7, %v1334_v13  ;;  %v4921_v30 = vcombine.low %v1819_v18, %v1822_v26  ;;  %v649_v21 = vrot.slane %v647_v24, 7  ;;  %v655_v32 = vshrl.u32 %v5658_v16, 16  ;;  %v5280_v10 = vld [vmem:[%s6957_s2] sm:$0xff]   ;;  %v359_v20 = vld [vmem:[#allocation2 + $0x5c] sm:$0x1] }
  0x81   : > { %v1826_v37 = vsel %vm5404_vm9, %v4906_v22, %v1825_v8  ;;  %v1829_v38 = vsel %vm5404_vm9, %v1827_v27, %v1828_v5  ;;  %v658_v41 = vshll.u32 %v5658_v16, 16  ;;  %v2335_v40 = vshrl.u32 %v2202_v25, 16  ;;  %v306_v22 = vld [vmem:[#allocation2 + $0x60] sm:$0x1]  ;;  %5198 = vmatprep.subr.bf16.mxu0 %v5280_v10  ;;  %5234 = vmatprep.subr.bf16.mxu1 %v5280_v10 }
  0x82   : > { %1632 = vrot.lane.b32.xlu1 %v4889_v12, %s5321_s8  ;;  %v4890_v44 = vcombine.low %v1325_v43, %v1335_v29  ;;  %1956 = vrot.lane.b32.xlu0 %v4921_v30, %s5318_s29  ;;  %v652_v45 = vor.u32 %v650_v28, %v649_v21  ;;  %v653_v19 = vrot.slane %v649_v21, 4  ;;  %v5742_v46 = vrot.slane %v655_v32, 7 }
  0x83   : > { %v2337_v51 = vrot.slane %v2335_v40, 4  ;;  %v2338_v52 = vshll.u32 %v2202_v25, 16  ;;  %v2344_v6 = vshll.u32 %v2203_v33, 16  ;;  %v2348_v53 = vshrl.u32 %v2203_v33, 16  ;;  %5199 = vmatpush3.bf16.msra.mxu0 %v5280_v10  ;;  %5236 = vmatpush3.bf16.msra.mxu1 %v5280_v10 }
  0x84   : > { %v4922_v56 = vcombine.low %v1826_v37, %v1829_v38  ;;  %v660_v16 = vor.u32 %v658_v41, %v5742_v46  ;;  %v2354_v57 = vshll.u32 %v2204_v42, 16  ;;  %v357_v58 = vsel %vm5397_vm7, 0, %v356_v34  ;;  %v407_v41 = vld [vmem:[%s5411_s28 + $0x78] sm:$0xff] }
  0x85   : > { %v2340_v60 = vrot.slane %v2338_v52, 5  ;;  %v2346_v61 = vrot.slane %v2344_v6, 5  ;;  %v2350_v63 = vrot.slane %v2348_v53, 4  ;;  %358 = vst [vmem:[#allocation2 + $0x50] sm:$0x1] %v357_v58  ;;  %v4969_v35 = vrot.slane %v2747_v47, 9 }
  0x86   : > { %1634 = vrot.lane.b32.xlu1 %v4890_v44, %s5321_s8  ;;  %2133 = vrot.lane.b32.xlu0 %v5264_v39, %s5319_s30  ;;  %v661_v0 = vsel %vm5449_vm11, %v653_v19, %v660_v16  ;;  %v919_v2 = vld [vmem:[#allocation2 + $0x48] sm:$0xf]  ;;  %v2356_v50 = vrot.slane %v2354_v57, 5  ;;  %v2861_v3 = vrot.slane %v2748_v14, 5  ;;  %v2864_v4 = vrot.slane %v2749_v55, 5  ;;  %v408_v16 = vld [vmem:[%s5411_s28 + $0x80] sm:$0xff] }
  0x87   : > { %v920_v12 = vsel %vm5439_vm10, %v652_v45, %v919_v2  ;;  %922 = vst.msk [vmem:[#allocation2 + $0x4c] sm:$0xf] %vm270_vm0, %v661_v0  ;;  %v2341_v15 = vor.u32 %v2340_v60, %v2337_v51  ;;  %v2351_v13 = vor.u32 %v2350_v63, %v2346_v61  ;;  %v304_v18 = vsel %vm5375_vm3, 0, %v303_v59  ;;  %v409_v2 = vld [vmem:[%s5411_s28 + $0x88] sm:$0xff] }
  0x88   : > { %v662_v8 = vrot.slane %v5742_v46, 4  ;;  %921 = vst [vmem:[#allocation2 + $0x48] sm:$0xf] %v920_v12  ;;  %v2862_v7 = vsel %vm5404_vm9, %v4969_v35, %v2861_v3  ;;  %v2863_v5 = vrot.slane %v2861_v3, 4  ;;  %305 = vst [vmem:[#allocation2 + $0x54] sm:$0x1] %v304_v18  ;;  %v5783_v45 = vpack.c.bf16 %v5707_v36, %v5707_v36 }
  0x89   : > { %v664_v23 = vshrl.u32 %v5686_v48, 16  ;;  %v2342_v24 = vrot.slane %v2341_v15, 4  ;;  %v2352_v25 = vrot.slane %v2351_v13, 4  ;;  %v672_v43 = vshrl.u32 %v5702_v31, 16 }
  0x8a   : > { %v675_v26 = vshll.u32 %v5702_v31, 16  ;;  %1958 = vrot.lane.b32.xlu1 %v4922_v56, %s5318_s29  ;;  %v667_v28 = vshll.u32 %v5686_v48, 16  ;;  %v360_v29 = vsel %vm5397_vm7, 0, %v359_v20  ;;  %v307_v30 = vsel %vm5375_vm3, 0, %v306_v22 }
  0x8b   : > { %v666_v27 = vrot.slane %v664_v23, 7  ;;  %v2347_v21 = vsel %vm5494_vm14, %v2342_v24, %v2346_v61  ;;  %v2357_v31 = vsel %vm5494_vm14, %v2352_v25, %v2356_v50  ;;  %v2865_v32 = vsel %vm5404_vm9, %v2863_v5, %v2864_v4  ;;  %361 = vst [vmem:[#allocation2 + $0x5c] sm:$0x1] %v360_v29  ;;  %308 = vst [vmem:[#allocation2 + $0x60] sm:$0x1] %v307_v30 }
  0x8c   : > { %v674_v33 = vrot.slane %v672_v43, 7  ;;  %v4953_v34 = vcombine.low %v2347_v21, %v2357_v31  ;;  %v923_v48 = vld [vmem:[#allocation2 + $0x50] sm:$0x1]  ;;  %v4985_v40 = vcombine.low %v2862_v7, %v2865_v32  ;;  %v446_v58 = vadd.f32 %v5663_v17, %v407_v41 }
  0x8d   : > { %v670_v37 = vrot.slane %v666_v27, 4  ;;  %v924_v38 = vsel %vm5375_vm3, %v662_v8, %v923_v48  ;;  %v669_v14 = vor.u32 %v667_v28, %v666_v27  ;;  %v681_v35 = vshrl.u32 %v5783_v45, 16 }
  0x8e   : > { %v677_v39 = vor.u32 %v675_v26, %v674_v33  ;;  %2678 = vrot.lane.b32.xlu0 %v4953_v34, %s5324_s11  ;;  %925 = vst [vmem:[#allocation2 + $0x50] sm:$0x1] %v924_v38  ;;  %v2206_v42 = vld [vmem:[#allocation2 + $0x4c] sm:$0xf]  ;;  %v679_v57 = vrot.slane %v674_v33, 4  ;;  %v5800_v24 = vpack.c.bf16 %v446_v58, %v446_v58  ;;  %v447_v25 = vadd.f32 %v5663_v17, %v408_v16 }
  0x8f   : > { %v2751_v44 = vld [vmem:[#allocation2 + $0x4c] sm:$0xf]  ;;  %v2205_v46 = vld [vmem:[#allocation2 + $0x48] sm:$0xf]  ;;  %v2368_v47 = vshll.u32 %v2206_v42, 16  ;;  %v2372_v53 = vshrl.u32 %v2206_v42, 16  ;;  %v5804_v43 = vadd.f32 %v5663_v17, %v409_v2 }
  0x90   : > { %v5265_v19 = vld [vmem:[#allocation2 + $0x48] sm:$0xff]   ;;  %v678_v51 = vsel %vm5449_vm11, %v670_v37, %v677_v39  ;;  %v2359_v52 = vshrl.u32 %v2205_v46, 16  ;;  %v2362_v6 = vshll.u32 %v2205_v46, 16  ;;  %v2868_v56 = vrot.slane %v2751_v44, 5  ;;  %v926_v4 = vld [vmem:[#allocation2 + $0x54] sm:$0xf] }
  0x91   : > { %v2750_v55 = vld [vmem:[#allocation2 + $0x48] sm:$0xe]  ;;  %929 = vst.msk [vmem:[#allocation2 + $0x58] sm:$0xf] %vm270_vm0, %v678_v51  ;;  %2135 = vrot.lane.b32.xlu1 %v5265_v19, %s5319_s30  ;;  %v2370_v36 = vrot.slane %v2368_v47, 5  ;;  %v2374_v61 = vrot.slane %v2372_v53, 4  ;;  %v927_v13 = vsel %vm5439_vm10, %v669_v14, %v926_v4 }
  0x92   : > { %v2361_v59 = vrot.slane %v2359_v52, 4  ;;  %v2364_v60 = vrot.slane %v2362_v6, 5  ;;  %2999 = vrot.lane.b32.xlu0 %v4985_v40, %s5322_s9  ;;  %v5266_v63 = vld [vmem:[#allocation2 + $0x48] sm:$0xff]   ;;  %v5793_v0 = vpop.permute.xlu1 %1948  ;;  %v4970_v50 = vrot.slane %v2750_v55, 9  ;;  %v2870_v3 = vrot.slane %v2868_v56, 4 }
  0x93   : > { %v3246_v10 = vld [vmem:[#allocation2 + $0x48] sm:$0xf]  ;;  %v2375_v15 = vor.u32 %v2374_v61, %v2370_v36  ;;  %v3247_v18 = vld [vmem:[#allocation2 + $0x4c] sm:$0xf]  ;;  %v930_v22 = vld [vmem:[#allocation2 + $0x5c] sm:$0x1]  ;;  %v5820_v61 = vpack.c.bf16 %v447_v25, %v447_v25 }
  0x94   : > { %v2365_v12 = vor.u32 %v2364_v60, %v2361_v59  ;;  %v3379_v20 = vshrl.u32 %v3246_v10, 16  ;;  %928 = vst [vmem:[#allocation2 + $0x54] sm:$0xf] %v927_v13  ;;  %v931_v23 = vsel %vm5375_vm3, %v679_v57, %v930_v22  ;;  %v3382_v21 = vshll.u32 %v3246_v10, 16  ;;  %v3791_v19 = vld [vmem:[#allocation2 + $0x48] sm:$0xe] }
  0x95   : > { %v2207_v8 = vld [vmem:[#allocation2 + $0x50] sm:$0x1]  ;;  %v2376_v27 = vrot.slane %v2375_v15, 4  ;;  %932 = vst [vmem:[#allocation2 + $0x5c] sm:$0x1] %v931_v23  ;;  %v3388_v31 = vshll.u32 %v3247_v18, 16  ;;  %v2869_v48 = vsel %vm5404_vm9, %v4970_v50, %v2868_v56 }
  0x96   : > { %v2752_v7 = vld [vmem:[#allocation2 + $0x50] sm:$0x1]  ;;  %v2366_v26 = vrot.slane %v2365_v12, 4  ;;  %v2378_v28 = vshll.u32 %v2207_v8, 16  ;;  %3177 = vrot.lane.b32.xlu0 %v5266_v63, %s5320_s7  ;;  %v3381_v30 = vrot.slane %v3379_v20, 4  ;;  %v3392_v32 = vshrl.u32 %v3247_v18, 16  ;;  %v5811_v39 = vpop.permute.xlu1 %2127 }
  0x97   : > { %v3248_v5 = vld [vmem:[#allocation2 + $0x50] sm:$0x1]  ;;  %v2871_v29 = vrot.slane %v2752_v7, 5  ;;  %v3384_v42 = vrot.slane %v3382_v21, 5  ;;  %v3390_v40 = vrot.slane %v3388_v31, 5  ;;  %v684_v52 = vshll.u32 %v5783_v45, 16 }
  0x98   : > { %v2371_v33 = vsel %vm5494_vm14, %v2366_v26, %v2370_v36  ;;  %v2380_v34 = vrot.slane %v2378_v28, 5  ;;  %v3398_v37 = vshll.u32 %v3248_v5, 16  ;;  %v3250_v38 = vld [vmem:[#allocation2 + $0x58] sm:$0xf]  ;;  %v3394_v44 = vrot.slane %v3392_v32, 4 }
  0x99   : > { %v2872_v41 = vsel %vm5404_vm9, %v2870_v3, %v2871_v29  ;;  %v5815_v46 = vpop.permute.xlu0 %2125  ;;  %v3412_v14 = vshll.u32 %v3250_v38, 16  ;;  %v3416_v51 = vshrl.u32 %v3250_v38, 16  ;;  %v3385_v53 = vor.u32 %v3384_v42, %v3381_v30  ;;  %v3792_v16 = vld [vmem:[#allocation2 + $0x4c] sm:$0xf]  ;;  %v3793_v36 = vld [vmem:[#allocation2 + $0x50] sm:$0x1] }
  0x9a   : > { %v2381_v47 = vsel %vm5494_vm14, %v2376_v27, %v2380_v34  ;;  %v3395_v55 = vor.u32 %v3394_v44, %v3390_v40  ;;  %v3400_v56 = vrot.slane %v3398_v37, 5  ;;  %v4986_v57 = vcombine.low %v2869_v48, %v2872_v41  ;;  %v1159_v20 = vld [vmem:[#allocation2 + $0x48] sm:$0xf]  ;;  %v1160_v25 = vld [vmem:[#allocation2 + $0x4c] sm:$0xf] }
  0x9b   : > { %v4954_v6 = vcombine.low %v2371_v33, %v2381_v47  ;;  %v3249_v58 = vld [vmem:[#allocation2 + $0x54] sm:$0xf]  ;;  %v3414_v59 = vrot.slane %v3412_v14, 5  ;;  %v5033_v60 = vrot.slane %v3791_v19, 9  ;;  %v3386_v63 = vrot.slane %v3385_v53, 4 }
  0x9c   : > { %v3396_v2 = vrot.slane %v3395_v55, 4  ;;  %v3251_v50 = vld [vmem:[#allocation2 + $0x5c] sm:$0x1]  ;;  %v3403_v3 = vshrl.u32 %v3249_v58, 16  ;;  %v3406_v4 = vshll.u32 %v3249_v58, 16  ;;  %v3418_v12 = vrot.slane %v3416_v51, 4 }
  0x9d   : > { %2680 = vrot.lane.b32.xlu1 %v4954_v6, %s5324_s11  ;;  %v5823_v10 = vpop.permute.xlu0 %3169  ;;  %v3422_v15 = vshll.u32 %v3251_v50, 16  ;;  %v3905_v13 = vrot.slane %v3792_v16, 5  ;;  %v3908_v18 = vrot.slane %v3793_v36, 5  ;;  %v5825_v22 = vpop.permute.xlu1 %3171  ;;  %v3391_v8 = vsel %vm5494_vm14, %v3386_v63, %v3390_v40  ;;  %v1161_v26 = vld [vmem:[#allocation2 + $0x50] sm:$0x1]  ;;  %v5267_v21 = vld [vmem:[#allocation2 + $0x54] sm:$0xff]  }
  0x9e   : > { %v3401_v7 = vsel %vm5494_vm14, %v3396_v2, %v3400_v56  ;;  %v3405_v5 = vrot.slane %v3403_v3, 4  ;;  %v3408_v23 = vrot.slane %v3406_v4, 5  ;;  %v3419_v28 = vor.u32 %v3418_v12, %v3414_v59  ;;  %v3795_v48 = vld [vmem:[#allocation2 + $0x58] sm:$0xf]  ;;  %v3794_v40 = vld [vmem:[#allocation2 + $0x54] sm:$0xe] }
  0x9f   : > { %v5017_v27 = vcombine.low %v3391_v8, %v3401_v7  ;;  %v3424_v29 = vrot.slane %v3422_v15, 5  ;;  %v3906_v30 = vsel %vm5404_vm9, %v5033_v60, %v3905_v13  ;;  %v3907_v32 = vrot.slane %v3905_v13, 4  ;;  %v3796_v53 = vld [vmem:[#allocation2 + $0x5c] sm:$0x1]  ;;  %v1163_v58 = vld [vmem:[#allocation2 + $0x58] sm:$0xf] }
  0xa0   : > { %v3409_v31 = vor.u32 %v3408_v23, %v3405_v5  ;;  %v1337_v33 = vshrl.u32 %v1159_v20, 16  ;;  %v1340_v34 = vshll.u32 %v1159_v20, 16  ;;  %v3420_v37 = vrot.slane %v3419_v28, 4  ;;  %v1164_v3 = vld [vmem:[#allocation2 + $0x5c] sm:$0x1] }
  0xa1   : > { %3001 = vrot.lane.b32.xlu1 %v4986_v57, %s5322_s9  ;;  %3722 = vrot.lane.b32.xlu0 %v5017_v27, %s5325_s12  ;;  %v1346_v38 = vshll.u32 %v1160_v25, 16  ;;  %v1350_v41 = vshrl.u32 %v1160_v25, 16  ;;  %v1356_v42 = vshll.u32 %v1161_v26, 16  ;;  %v5835_v44 = vpop.permute.xlu0 %1624  ;;  %v5837_v19 = vpop.permute.xlu1 %1950  ;;  %v3909_v14 = vsel %vm5404_vm9, %v3907_v32, %v3908_v18  ;;  %v1162_v57 = vld [vmem:[#allocation2 + $0x54] sm:$0xf] }
  0xa2   : > { %v3410_v47 = vrot.slane %v3409_v31, 4  ;;  %v1339_v51 = vrot.slane %v1337_v33, 4  ;;  %v1342_v6 = vrot.slane %v1340_v34, 5  ;;  %v3425_v55 = vsel %vm5494_vm14, %v3420_v37, %v3424_v29  ;;  %v1707_v18 = vld [vmem:[#allocation2 + $0x48] sm:$0xe] }
  0xa3   : > { %v5049_v56 = vcombine.low %v3906_v30, %v3909_v14  ;;  %v1348_v16 = vrot.slane %v1346_v38, 5  ;;  %v1352_v36 = vrot.slane %v1350_v41, 4  ;;  %v1358_v2 = vrot.slane %v1356_v42, 5  ;;  %v1708_v25 = vld [vmem:[#allocation2 + $0x4c] sm:$0xf] }
  0xa4   : > { %v3415_v60 = vsel %vm5494_vm14, %v3410_v47, %v3414_v59  ;;  %v1343_v63 = vor.u32 %v1342_v6, %v1339_v51  ;;  %v5034_v50 = vrot.slane %v3794_v40, 9  ;;  %v3912_v15 = vrot.slane %v3795_v48, 5  ;;  %v1709_v29 = vld [vmem:[#allocation2 + $0x50] sm:$0x1]  ;;  %v1710_v34 = vld [vmem:[#allocation2 + $0x54] sm:$0xe] }
  0xa5   : > { %3179 = vrot.lane.b32.xlu1 %v5267_v21, %s5320_s7  ;;  %v5018_v4 = vcombine.low %v3415_v60, %v3425_v55  ;;  %4043 = vrot.lane.b32.xlu0 %v5049_v56, %s5323_s10  ;;  %v1353_v12 = vor.u32 %v1352_v36, %v1348_v16  ;;  %v3915_v13 = vrot.slane %v3796_v53, 5  ;;  %v5847_v20 = vpop.permute.xlu1 %2993  ;;  %v1361_v7 = vshrl.u32 %v1162_v57, 16  ;;  %v5851_v30 = vpop.permute.xlu0 %2991  ;;  %v1711_v42 = vld [vmem:[#allocation2 + $0x58] sm:$0xf]  ;;  %v1712_v40 = vld [vmem:[#allocation2 + $0x5c] sm:$0x1] }
  0xa6   : > { %v1344_v8 = vrot.slane %v1343_v63, 4  ;;  %v1364_v5 = vshll.u32 %v1162_v57, 16  ;;  %v1370_v23 = vshll.u32 %v1163_v58, 16  ;;  %v3913_v59 = vsel %vm5404_vm9, %v5034_v50, %v3912_v15  ;;  %v2208_v50 = vld [vmem:[#allocation2 + $0x54] sm:$0xf] }
  0xa7   : > { %v1354_v26 = vrot.slane %v1353_v12, 4  ;;  %v3914_v27 = vrot.slane %v3912_v15, 4  ;;  %v1374_v28 = vshrl.u32 %v1163_v58, 16  ;;  %v1363_v31 = vrot.slane %v1361_v7, 4 }
  0xa8   : > { %v1349_v21 = vsel %vm5494_vm14, %v1344_v8, %v1348_v16  ;;  %v1366_v32 = vrot.slane %v1364_v5, 5  ;;  %v1372_v33 = vrot.slane %v1370_v23, 5  ;;  %v1380_v41 = vshll.u32 %v1164_v3, 16 }
  0xa9   : > { %3724 = vrot.lane.b32.xlu1 %v5018_v4, %s5325_s12  ;;  %v1359_v48 = vsel %vm5494_vm14, %v1354_v26, %v1358_v2  ;;  %v3916_v37 = vsel %vm5404_vm9, %v3914_v27, %v3915_v13  ;;  %v1376_v38 = vrot.slane %v1374_v28, 4  ;;  %v4907_v6 = vrot.slane %v1707_v18, 9  ;;  %v5860_v53 = vpop.permute.xlu1 %1954  ;;  %v933_v2 = vld [vmem:[#allocation2 + $0x60] sm:$0xf]  ;;  %v5868_v13 = vpop.permute.xlu0 %4035  ;;  %v362_v27 = vld [vmem:[#allocation2 + $0x68] sm:$0x1] }
  0xaa   : > { %v4891_v47 = vcombine.low %v1349_v21, %v1359_v48  ;;  %v5050_v14 = vcombine.low %v3913_v59, %v3916_v37  ;;  %v1367_v51 = vor.u32 %v1366_v32, %v1363_v31  ;;  %v1382_v56 = vrot.slane %v1380_v41, 5  ;;  %v2209_v59 = vld [vmem:[#allocation2 + $0x58] sm:$0xf]  ;;  %v2210_v31 = vld [vmem:[#allocation2 + $0x5c] sm:$0x1] }
  0xab   : > { %v1377_v55 = vor.u32 %v1376_v38, %v1372_v33  ;;  %v1832_v16 = vrot.slane %v1708_v25, 5  ;;  %v1835_v36 = vrot.slane %v1709_v29, 5  ;;  %v4908_v58 = vrot.slane %v1710_v34, 9  ;;  %v2753_v32 = vld [vmem:[#allocation2 + $0x54] sm:$0xe] }
  0xac   : > { %4045 = vrot.lane.b32.xlu0 %v5050_v14, %s5323_s10  ;;  %v1368_v57 = vrot.slane %v1367_v51, 4  ;;  %v1839_v60 = vrot.slane %v1711_v42, 5  ;;  %v1842_v63 = vrot.slane %v1712_v40, 5  ;;  %v683_v15 = vrot.slane %v681_v35, 7  ;;  %v2754_v37 = vld [vmem:[#allocation2 + $0x58] sm:$0xf] }
  0xad   : > { %1636 = vrot.lane.b32.xlu1 %v4891_v47, %s5321_s8  ;;  %v1378_v3 = vrot.slane %v1377_v55, 4  ;;  %v1833_v4 = vsel %vm5404_vm9, %v4907_v6, %v1832_v16  ;;  %v1834_v12 = vrot.slane %v1832_v16, 4  ;;  %v689_v7 = vshrl.u32 %v5800_v24, 16  ;;  %v5268_v41 = vld [vmem:[#allocation2 + $0x54] sm:$0xff]   ;;  %v2755_v14 = vld [vmem:[#allocation2 + $0x5c] sm:$0x1]  ;;  %v5899_v16 = vpop.permute.xlu0 %4037 }
  0xae   : > { %v1373_v18 = vsel %vm5494_vm14, %v1368_v57, %v1372_v33  ;;  %v1841_v8 = vrot.slane %v1839_v60, 4  ;;  %v5875_v5 = vpack.c.bf16 %v5804_v43, %v5804_v43  ;;  %v1840_v35 = vsel %vm5404_vm9, %v4908_v58, %v1839_v60 }
  0xaf   : > { %v1383_v23 = vsel %vm5494_vm14, %v1378_v3, %v1382_v56  ;;  %v1836_v25 = vsel %vm5404_vm9, %v1834_v12, %v1835_v36  ;;  %v686_v26 = vor.u32 %v684_v52, %v683_v15  ;;  %v5887_v21 = vrot.slane %v689_v7, 7  ;;  %v309_v56 = vld [vmem:[#allocation2 + $0x6c] sm:$0x1] }
  0xb0   : > { %v4892_v28 = vcombine.low %v1373_v18, %v1383_v23  ;;  %v4923_v29 = vcombine.low %v1833_v4, %v1836_v25  ;;  %v1843_v43 = vsel %vm5404_vm9, %v1841_v8, %v1842_v63  ;;  %v5889_v33 = vpop.permute.xlu1 %2672  ;;  %v687_v34 = vrot.slane %v683_v15, 4  ;;  %v410_v8 = vld [vmem:[%s5411_s28 + $0x90] sm:$0xff] }
  0xb1   : > { %v692_v48 = vshll.u32 %v5800_v24, 16  ;;  %v934_v45 = vsel %vm5439_vm10, %v686_v26, %v933_v2  ;;  %v2383_v52 = vshrl.u32 %v2208_v50, 16  ;;  %v4924_v38 = vcombine.low %v1840_v35, %v1843_v43 }
  0xb2   : > { %1638 = vrot.lane.b32.xlu1 %v4892_v28, %s5321_s8  ;;  %1960 = vrot.lane.b32.xlu0 %v4923_v29, %s5318_s29  ;;  %935 = vst [vmem:[#allocation2 + $0x60] sm:$0xf] %v934_v45  ;;  %v2386_v42 = vshll.u32 %v2208_v50, 16  ;;  %v2392_v40 = vshll.u32 %v2209_v59, 16  ;;  %v2396_v47 = vshrl.u32 %v2209_v59, 16  ;;  %v2402_v24 = vshll.u32 %v2210_v31, 16 }
  0xb3   : > { %v694_v51 = vor.u32 %v692_v48, %v5887_v21  ;;  %v2385_v6 = vrot.slane %v2383_v52, 4  ;;  %v363_v55 = vsel %vm5397_vm7, 0, %v362_v27  ;;  %v4971_v60 = vrot.slane %v2753_v32, 9  ;;  %v411_v52 = vld [vmem:[%s5411_s28 + $0x98] sm:$0xff] }
  0xb4   : > { %v2388_v36 = vrot.slane %v2386_v42, 5  ;;  %v2394_v57 = vrot.slane %v2392_v40, 5  ;;  %v2398_v58 = vrot.slane %v2396_v47, 4  ;;  %364 = vst [vmem:[#allocation2 + $0x68] sm:$0x1] %v363_v55  ;;  %v2404_v2 = vrot.slane %v2402_v24, 5 }
  0xb5   : > { %v695_v63 = vsel %vm5449_vm11, %v687_v34, %v694_v51  ;;  %v2875_v50 = vrot.slane %v2754_v37, 5  ;;  %v2878_v3 = vrot.slane %v2755_v14, 5  ;;  %v310_v15 = vsel %vm5375_vm3, 0, %v309_v56  ;;  %v5910_v7 = vpop.permute.xlu1 %3716  ;;  %v5920_v34 = vpop.permute.xlu0 %1952 }
  0xb6   : > { %1962 = vrot.lane.b32.xlu1 %v4924_v38, %s5318_s29  ;;  %2137 = vrot.lane.b32.xlu0 %v5268_v41, %s5319_s30  ;;  %936 = vst.msk [vmem:[#allocation2 + $0x64] sm:$0xf] %vm270_vm0, %v695_v63  ;;  %v2389_v4 = vor.u32 %v2388_v36, %v2385_v6  ;;  %v2399_v12 = vor.u32 %v2398_v58, %v2394_v57  ;;  %v698_v18 = vshrl.u32 %v5820_v61, 16  ;;  %311 = vst [vmem:[#allocation2 + $0x6c] sm:$0x1] %v310_v15  ;;  %v5275_v15 = vld [vmem:[#allocation2 + $0x18] sm:$0xff]  }
  0xb7   : > { %v2877_v23 = vrot.slane %v2875_v50, 4  ;;  %v701_v25 = vshll.u32 %v5820_v61, 16  ;;  %v696_v35 = vrot.slane %v5887_v21, 4  ;;  %v2876_v29 = vsel %vm5404_vm9, %v4971_v60, %v2875_v50  ;;  %1127 = vst.msk [vmem:[#allocation3 + $0x10] sm:$0xff] %vm6962_vm15, %v5275_v15 }
  0xb8   : > { %v2390_v26 = vrot.slane %v2389_v4, 4  ;;  %v2400_v59 = vrot.slane %v2399_v12, 4  ;;  %v700_v27 = vrot.slane %v698_v18, 7  ;;  %v706_v31 = vshrl.u32 %v5875_v5, 16  ;;  %v5272_v4 = vld [vmem:[#allocation2] sm:$0xff]   ;;  %v5276_v18 = vld [vmem:[#allocation2 + $0xc] sm:$0xff]  }
  0xb9   : > { %v2211_v28 = vld [vmem:[#allocation2 + $0x60] sm:$0xf]  ;;  %v2879_v43 = vsel %vm5404_vm9, %v2877_v23, %v2878_v3  ;;  %v449_v32 = vadd.f32 %v5663_v17, %v410_v8  ;;  %v709_v40 = vshll.u32 %v5875_v5, 16  ;;  %v365_v3 = vld [vmem:[#allocation2 + $0x74] sm:$0x1]  ;;  %v5277_v8 = vld [vmem:[#allocation2 + $0x24] sm:$0xff]  }
  0xba   : > { %v2395_v61 = vsel %vm5494_vm14, %v2390_v26, %v2394_v57  ;;  %v2405_v21 = vsel %vm5494_vm14, %v2400_v59, %v2404_v2  ;;  %v2407_v48 = vshrl.u32 %v2211_v28, 16  ;;  %v2410_v45 = vshll.u32 %v2211_v28, 16  ;;  %v5927_v41 = vld [vmem:[#allocation2 + $0x60] sm:$0xe]  ;;  %v5932_v24 = vpop.permute.xlu1 %1628  ;;  %v5940_v5 = vld [vmem:[%s6956_s1] ss:$0 sm:$0xff] }
  0xbb   : > { %v4955_v37 = vcombine.low %v2395_v61, %v2405_v21  ;;  %v937_v38 = vld [vmem:[#allocation2 + $0x68] sm:$0x1]  ;;  %v703_v42 = vor.u32 %v701_v25, %v700_v27  ;;  %v704_v51 = vrot.slane %v700_v27, 4  ;;  %v3252_v6 = vld [vmem:[#allocation2 + $0x60] sm:$0xf]  ;;  %v4987_v36 = vcombine.low %v2876_v29, %v2879_v43  ;;  %v5284_v28 = vld [vmem:[#allocation2 + $0x30] sm:$0xff]  }
  0xbc   : > { %v938_v17 = vsel %vm5375_vm3, %v696_v35, %v937_v38  ;;  %v2409_v47 = vrot.slane %v2407_v48, 4  ;;  %v2412_v14 = vrot.slane %v2410_v45, 5  ;;  %v5935_v57 = vrot.slane %v706_v31, 7  ;;  %v5285_v21 = vld [vmem:[#allocation2 + $0x3c] sm:$0xff]   ;;  %1125 = vst.msk [vmem:[#allocation3] sm:$0xff] %vm6962_vm15, %v5272_v4  ;;  %1126 = vst.msk [vmem:[#allocation3 + $0x8] sm:$0xff] %vm6962_vm15, %v5276_v18 }
  0xbd   : > { %v5269_v55 = vld [vmem:[#allocation2 + $0x60] sm:$0xff]   ;;  %2682 = vrot.lane.b32.xlu0 %v4955_v37, %s5324_s11  ;;  %939 = vst [vmem:[#allocation2 + $0x68] sm:$0x1] %v938_v17  ;;  %v450_v58 = vadd.f32 %v5940_v5, %v411_v52  ;;  %v5943_v12 = vpack.c.bf16 %v449_v32, %v449_v32  ;;  %v4972_v23 = vrot.slane %v5927_v41, 9  ;;  %v940_v26 = vld [vmem:[#allocation2 + $0x6c] sm:$0xf] }
  0xbe   : > { %v2212_v56 = vld [vmem:[#allocation2 + $0x64] sm:$0xf]  ;;  %v2413_v60 = vor.u32 %v2412_v14, %v2409_v47  ;;  %2139 = vrot.lane.b32.xlu1 %v5269_v55, %s5319_s30  ;;  %v711_v35 = vor.u32 %v709_v40, %v5935_v57  ;;  %v3427_v59 = vshrl.u32 %v3252_v6, 16  ;;  %v941_v32 = vsel %vm5439_vm10, %v703_v42, %v940_v26  ;;  %v3797_v47 = vld [vmem:[#allocation2 + $0x60] sm:$0xe]  ;;  %1128 = vst.msk [vmem:[#allocation3 + $0x18] sm:$0xff] %vm6962_vm15, %v5277_v8 }
  0xbf   : > { %v2416_v63 = vshll.u32 %v2212_v56, 16  ;;  %v2420_v2 = vshrl.u32 %v2212_v56, 16  ;;  %v2757_v50 = vld [vmem:[#allocation2 + $0x64] sm:$0xf]  ;;  %v1627_v27 = vpop.permute.xlu0 %1626  ;;  %v713_v37 = vrot.slane %v5935_v57, 4  ;;  %v5958_v38 = vpack.c.bf16 %v450_v58, %v450_v58  ;;  %1129 = vst.msk [vmem:[#allocation3 + $0x20] sm:$0xff] %vm6962_vm15, %v5284_v28 }
  0xc0   : > { %v2882_v25 = vrot.slane %v2757_v50, 5  ;;  %v5948_v29 = vrot.slane %v2413_v60, 4  ;;  %v3253_v61 = vld [vmem:[#allocation2 + $0x64] sm:$0xf]  ;;  %v712_v52 = vsel %vm5449_vm11, %v704_v51, %v711_v35  ;;  %942 = vst [vmem:[#allocation2 + $0x6c] sm:$0xf] %v941_v32 }
  0xc1   : > { %v5950_v43 = vrot.slane %v2416_v63, 5  ;;  %v2422_v31 = vrot.slane %v2420_v2, 4  ;;  %3003 = vrot.lane.b32.xlu0 %v4987_v36, %s5322_s9  ;;  %v5270_v45 = vld [vmem:[#allocation2 + $0x60] sm:$0xff]   ;;  %943 = vst.msk [vmem:[#allocation2 + $0x70] sm:$0xf] %vm270_vm0, %v712_v52  ;;  %v3429_v42 = vrot.slane %v3427_v59, 4 }
  0xc2   : > { %v2884_v48 = vrot.slane %v2882_v25, 4  ;;  %v3430_v40 = vshll.u32 %v3252_v6, 16  ;;  %v3436_v17 = vshll.u32 %v3253_v61, 16  ;;  %v3440_v55 = vshrl.u32 %v3253_v61, 16  ;;  %v3798_v56 = vld [vmem:[#allocation2 + $0x64] sm:$0xf] }
  0xc3   : > { %v2423_v41 = vor.u32 %v2422_v31, %v5950_v43  ;;  %v1631_v14 = vpop.permute.xlu1 %1630  ;;  %v366_v51 = vsel %vm5397_vm7, 0, %v365_v3  ;;  %vm6963_vm1 = vcmask 48152   ;;  %v412_v36 = vld [vmem:[%s5411_s28 + $0xa0] sm:$0xff]  ;;  %v413_v60 = vld [vmem:[%s5411_s28 + $0xa8] sm:$0xff]  ;;  %v2419_v63 = vsel %vm5494_vm14, %v5948_v29, %v5950_v43  ;;  %1130 = vst.msk [vmem:[#allocation3 + $0x28] sm:$0xff] %vm6962_vm15, %v5285_v21 }
  0xc4   : > { %v2213_v58 = vld [vmem:[#allocation2 + $0x68] sm:$0x1]  ;;  %v5972_v50 = vsel %vm5404_vm9, %v4972_v23, %v2882_v25  ;;  %v3432_v35 = vrot.slane %v3430_v40, 5  ;;  %367 = vst [vmem:[#allocation2 + $0x74] sm:$0x1] %v366_v51  ;;  %v3438_v25 = vrot.slane %v3436_v17, 5  ;;  %v451_v61 = vadd.f32 %v5940_v5, %v412_v36 }
  0xc5   : > { %v2424_v2 = vrot.slane %v2423_v41, 4  ;;  %v2758_v6 = vld [vmem:[#allocation2 + $0x68] sm:$0x1]  ;;  %v2426_v3 = vshll.u32 %v2213_v58, 16  ;;  %3181 = vrot.lane.b32.xlu0 %v5270_v45, %s5320_s7  ;;  %v3442_v59 = vrot.slane %v3440_v55, 4  ;;  %1673 = vst.msk [vmem:[#allocation3] sm:$0xff] %vm6963_vm1, %v5835_v44  ;;  %v6001_v21 = vadd.f32 %v5940_v5, %v413_v60 }
  0xc6   : > { %v2885_v26 = vrot.slane %v2758_v6, 5  ;;  %v3254_v23 = vld [vmem:[#allocation2 + $0x68] sm:$0x1]  ;;  %1675 = vst.msk [vmem:[#allocation3 + $0x10] sm:$0xff] %vm6963_vm1, %v5932_v24  ;;  %1674 = vst.msk [vmem:[#allocation3 + $0x8] sm:$0xff] %vm6963_vm1, %v1627_v27  ;;  %v3433_v15 = vor.u32 %v3432_v35, %v3429_v42  ;;  %vm1996_vm2 = vcmask 72752  }
  0xc7   : > { %1676 = vst.msk [vmem:[#allocation3 + $0x18] sm:$0xff] %vm6963_vm1, %v1631_v14  ;;  %v5987_v4 = vpop.permute.xlu0 %2670  ;;  %v3446_v18 = vshll.u32 %v3254_v23, 16  ;;  %v5035_v8 = vrot.slane %v3797_v47, 9  ;;  %v2428_v28 = vrot.slane %v2426_v3, 5  ;;  %v3443_v43 = vor.u32 %v3442_v59, %v3438_v25  ;;  %v3255_v31 = vld [vmem:[#allocation2 + $0x6c] sm:$0xf] }
  0xc8   : > { %v2886_v29 = vsel %vm5404_vm9, %v2884_v48, %v2885_v26  ;;  %1997 = vst.msk [vmem:[#allocation3] sm:$0xff] %vm1996_vm2, %v5793_v0  ;;  %v3919_v44 = vrot.slane %v3798_v56, 5  ;;  %1999 = vst.msk [vmem:[#allocation3 + $0x10] sm:$0xff] %vm1996_vm2, %v5920_v34  ;;  %v3434_v24 = vrot.slane %v3433_v15, 4  ;;  %v1165_v32 = vld [vmem:[#allocation2 + $0x60] sm:$0xf] }
  0xc9   : > { %1998 = vst.msk [vmem:[#allocation3 + $0x8] sm:$0xff] %vm1996_vm2, %v5837_v19  ;;  %2000 = vst.msk [vmem:[#allocation3 + $0x18] sm:$0xff] %vm1996_vm2, %v5860_v53  ;;  %v3448_v27 = vrot.slane %v3446_v18, 5  ;;  %v2429_v0 = vsel %vm5494_vm14, %v2424_v2, %v2428_v28  ;;  %v4988_v34 = vcombine.low %v5972_v50, %v2886_v29  ;;  %v3444_v48 = vrot.slane %v3443_v43, 4  ;;  %v3256_v45 = vld [vmem:[#allocation2 + $0x70] sm:$0xf] }
  0xca   : > { %v3920_v19 = vsel %vm5404_vm9, %v5035_v8, %v3919_v44  ;;  %v4956_v52 = vcombine.low %v2419_v63, %v2429_v0  ;;  %v3439_v41 = vsel %vm5494_vm14, %v3434_v24, %v3438_v25  ;;  %v3451_v42 = vshrl.u32 %v3255_v31, 16  ;;  %v3799_v17 = vld [vmem:[#allocation2 + $0x68] sm:$0x1]  ;;  %v1166_v47 = vld [vmem:[#allocation2 + $0x64] sm:$0xf]  ;;  %v5271_v24 = vld [vmem:[#allocation2 + $0x6c] sm:$0xff]  }
  0xcb   : > { %v6008_v53 = vpop.permute.xlu0 %3714  ;;  %v3454_v40 = vshll.u32 %v3255_v31, 16  ;;  %v3449_v14 = vsel %vm5494_vm14, %v3444_v48, %v3448_v27  ;;  %v944_v55 = vld [vmem:[#allocation2 + $0x74] sm:$0x1]  ;;  %v3460_v51 = vshll.u32 %v3256_v45, 16  ;;  %v3464_v56 = vshrl.u32 %v3256_v45, 16 }
  0xcc   : > { %v3921_v36 = vrot.slane %v3919_v44, 4  ;;  %2684 = vrot.lane.b32.xlu1 %v4956_v52, %s5324_s11  ;;  %v5019_v60 = vcombine.low %v3439_v41, %v3449_v14  ;;  %v945_v58 = vsel %vm5375_vm3, %v713_v37, %v944_v55  ;;  %v3453_v63 = vrot.slane %v3451_v42, 4  ;;  %v1167_v6 = vld [vmem:[#allocation2 + $0x68] sm:$0x1]  ;;  %v3800_v50 = vld [vmem:[#allocation2 + $0x6c] sm:$0xe] }
  0xcd   : > { %v3456_v2 = vrot.slane %v3454_v40, 5  ;;  %946 = vst [vmem:[#allocation2 + $0x74] sm:$0x1] %v945_v58  ;;  %v6019_v35 = vrot.slane %v3460_v51, 5  ;;  %v3466_v3 = vrot.slane %v3464_v56, 4  ;;  %v3922_v26 = vrot.slane %v3799_v17, 5 }
  0xce   : > { %v1385_v23 = vshrl.u32 %v1165_v32, 16  ;;  %v3801_v25 = vld [vmem:[#allocation2 + $0x70] sm:$0xf]  ;;  %3726 = vrot.lane.b32.xlu0 %v5019_v60, %s5325_s12  ;;  %v1388_v57 = vshll.u32 %v1165_v32, 16  ;;  %v1394_v18 = vshll.u32 %v1166_v47, 16  ;;  %v1398_v8 = vshrl.u32 %v1166_v47, 16 }
  0xcf   : > { %v6021_v59 = vpop.permute.xlu0 %2129  ;;  %v3457_v15 = vor.u32 %v3456_v2, %v3453_v63  ;;  %v1168_v37 = vld [vmem:[#allocation2 + $0x6c] sm:$0xf]  ;;  %v3467_v28 = vor.u32 %v3466_v3, %v6019_v35  ;;  %v3923_v29 = vsel %vm5404_vm9, %v3921_v36, %v3922_v26  ;;  %v1404_v44 = vshll.u32 %v1167_v6, 16  ;;  %v1169_v48 = vld [vmem:[#allocation2 + $0x70] sm:$0xf] }
  0xd0   : > { %v1387_v43 = vrot.slane %v1385_v23, 4  ;;  %3005 = vrot.lane.b32.xlu1 %v4988_v34, %s5322_s9  ;;  %v5051_v27 = vcombine.low %v3920_v19, %v3923_v29  ;;  %v1390_v31 = vrot.slane %v1388_v57, 5  ;;  %v6028_v0 = vrot.slane %v1394_v18, 5  ;;  %v1713_v2 = vld [vmem:[#allocation2 + $0x60] sm:$0xe] }
  0xd1   : > { %v6030_v45 = vpack.c.bf16 %v451_v61, %v451_v61  ;;  %v3458_v32 = vrot.slane %v3457_v15, 4  ;;  %v3468_v52 = vrot.slane %v3467_v28, 4  ;;  %v1400_v41 = vrot.slane %v1398_v8, 4  ;;  %v1714_v6 = vld [vmem:[#allocation2 + $0x64] sm:$0xf] }
  0xd2   : > { %v5036_v42 = vrot.slane %v3800_v50, 9  ;;  %4047 = vrot.lane.b32.xlu0 %v5051_v27, %s5323_s10  ;;  %v1391_v17 = vor.u32 %v1390_v31, %v1387_v43  ;;  %v1406_v47 = vrot.slane %v1404_v44, 5  ;;  %v3926_v14 = vrot.slane %v3801_v25, 5  ;;  %v1715_v28 = vld [vmem:[#allocation2 + $0x68] sm:$0x1] }
  0xd3   : > { %v6032_v40 = vpop.permute.xlu0 %2674  ;;  %v1409_v34 = vshrl.u32 %v1168_v37, 16  ;;  %v1401_v19 = vor.u32 %v1400_v41, %v6028_v0  ;;  %v1412_v55 = vshll.u32 %v1168_v37, 16  ;;  %v1418_v51 = vshll.u32 %v1169_v48, 16  ;;  %v1716_v27 = vld [vmem:[#allocation2 + $0x6c] sm:$0xe] }
  0xd4   : > { %v1422_v56 = vshrl.u32 %v1169_v48, 16  ;;  %3183 = vrot.lane.b32.xlu1 %v5271_v24, %s5320_s7  ;;  %v3257_v61 = vld [vmem:[#allocation2 + $0x74] sm:$0x1]  ;;  %v1392_v36 = vrot.slane %v1391_v17, 4  ;;  %v3927_v58 = vsel %vm5404_vm9, %v5036_v42, %v3926_v14  ;;  %v3928_v63 = vrot.slane %v3926_v14, 4  ;;  %v5290_v14 = vld [vmem:[#allocation2 + $0x48] sm:$0xff]  }
  0xd5   : > { %v3802_v60 = vld [vmem:[#allocation2 + $0x74] sm:$0x1]  ;;  %v6041_v50 = vpack.c.bf16 %v6001_v21, %v6001_v21  ;;  %v3470_v3 = vshll.u32 %v3257_v61, 16  ;;  %v1402_v26 = vrot.slane %v1401_v19, 4  ;;  %v1411_v15 = vrot.slane %v1409_v34, 4  ;;  %1131 = vst.msk [vmem:[#allocation3 + $0x30] sm:$0xff] %vm6962_vm15, %v5290_v14 }
  0xd6   : > { %v3929_v23 = vrot.slane %v3802_v60, 5  ;;  %v1170_v25 = vld [vmem:[#allocation2 + $0x74] sm:$0x1]  ;;  %v3463_v57 = vsel %vm5494_vm14, %v3458_v32, %v6019_v35  ;;  %v1414_v18 = vrot.slane %v1412_v55, 5  ;;  %v1420_v8 = vrot.slane %v1418_v51, 5  ;;  %v6058_v60 = vpop.permute.xlu1 %2131 }
  0xd7   : > { %v1424_v37 = vrot.slane %v1422_v56, 4  ;;  %v6046_v29 = vpop.permute.xlu0 %2995  ;;  %v3472_v43 = vrot.slane %v3470_v3, 5  ;;  %v1397_v21 = vsel %vm5494_vm14, %v1392_v36, %v6028_v0  ;;  %v1428_v24 = vshll.u32 %v1170_v25, 16  ;;  %v1717_v31 = vld [vmem:[#allocation2 + $0x70] sm:$0xf] }
  0xd8   : > { %v3930_v44 = vsel %vm5404_vm9, %v3928_v63, %v3929_v23  ;;  %v312_v48 = vld [vmem:[#allocation2 + $0x78] sm:$0x1]  ;;  %v1407_v35 = vsel %vm5494_vm14, %v1402_v26, %v1406_v47  ;;  %v1415_v41 = vor.u32 %v1414_v18, %v1411_v15  ;;  %v1718_v17 = vld [vmem:[#allocation2 + $0x74] sm:$0x1]  ;;  %v4909_v0 = vrot.slane %v1713_v2, 9 }
  0xd9   : > { %v5052_v32 = vcombine.low %v3927_v58, %v3930_v44  ;;  %v1425_v42 = vor.u32 %v1424_v37, %v1420_v8  ;;  %v3473_v34 = vsel %vm5494_vm14, %v3468_v52, %v3472_v43  ;;  %v1430_v19 = vrot.slane %v1428_v24, 5  ;;  %v5291_v52 = vld [vmem:[#allocation2 + $0x54] sm:$0xff]   ;;  %v2214_v25 = vld [vmem:[#allocation2 + $0x6c] sm:$0xf] }
  0xda   : > { %v1846_v55 = vrot.slane %v1714_v6, 5  ;;  %v5020_v51 = vcombine.low %v3463_v57, %v3473_v34  ;;  %v1416_v56 = vrot.slane %v1415_v41, 4  ;;  %v1849_v36 = vrot.slane %v1715_v28, 5  ;;  %1132 = vst.msk [vmem:[#allocation3 + $0x38] sm:$0xff] %vm6962_vm15, %v5291_v52 }
  0xdb   : > { %4049 = vrot.lane.b32.xlu0 %v5052_v32, %s5323_s10  ;;  %v1426_v61 = vrot.slane %v1425_v42, 4  ;;  %v4910_v63 = vrot.slane %v1716_v27, 9  ;;  %v1853_v3 = vrot.slane %v1717_v31, 5  ;;  %v4893_v2 = vcombine.low %v1397_v21, %v1407_v35  ;;  %v6068_v15 = vpop.permute.xlu0 %3173  ;;  %v2216_v27 = vld [vmem:[#allocation2 + $0x74] sm:$0x1]  ;;  %v5273_v42 = vld [vmem:[#allocation2 + $0x6c] sm:$0xff]  }
  0xdc   : > { %v1847_v47 = vsel %vm5404_vm9, %v4909_v0, %v1846_v55  ;;  %v1848_v58 = vrot.slane %v1846_v55, 4  ;;  %3728 = vrot.lane.b32.xlu1 %v5020_v51, %s5325_s12  ;;  %v1421_v6 = vsel %vm5494_vm14, %v1416_v56, %v1420_v8  ;;  %v1856_v26 = vrot.slane %v1718_v17, 5  ;;  %v2215_v8 = vld [vmem:[#allocation2 + $0x70] sm:$0xf]  ;;  %v368_v56 = vld [vmem:[#allocation2 + $0x80] sm:$0x1] }
  0xdd   : > { %v313_v23 = vsel %vm5375_vm3, 0, %v312_v48  ;;  %v1431_v57 = vsel %vm5494_vm14, %v1426_v61, %v1430_v19  ;;  %v6076_v37 = vsel %vm5404_vm9, %v4910_v63, %v1853_v3  ;;  %v1855_v28 = vrot.slane %v1853_v3, 4  ;;  %v2760_v63 = vld [vmem:[#allocation2 + $0x70] sm:$0xf] }
  0xde   : > { %v1850_v18 = vsel %vm5404_vm9, %v1848_v58, %v1849_v36  ;;  %314 = vst [vmem:[#allocation2 + $0x78] sm:$0x1] %v313_v23  ;;  %v715_v21 = vshrl.u32 %v5943_v12, 16  ;;  %v718_v44 = vshll.u32 %v5943_v12, 16  ;;  %v723_v24 = vshrl.u32 %v5958_v38, 16 }
  0xdf   : > { %v4925_v43 = vcombine.low %v1847_v47, %v1850_v18  ;;  %v6084_v31 = vsel %vm5404_vm9, %v1855_v28, %v1856_v26  ;;  %v726_v48 = vshll.u32 %v5958_v38, 16  ;;  %v2431_v35 = vshrl.u32 %v2214_v25, 16  ;;  %v2759_v58 = vld [vmem:[#allocation2 + $0x6c] sm:$0xe]  ;;  %v6098_v23 = vld [vmem:[#allocation2 + $0x74] sm:$0x1] }
  0xe0   : > { %v2434_v32 = vshll.u32 %v2214_v25, 16  ;;  %1640 = vrot.lane.b32.xlu1 %v4893_v2, %s5321_s8  ;;  %v4894_v41 = vcombine.low %v1421_v6, %v1431_v57  ;;  %v717_v17 = vrot.slane %v715_v21, 7  ;;  %v6089_v14 = vrot.slane %v723_v24, 7  ;;  %v315_v21 = vld [vmem:[#allocation2 + $0x84] sm:$0x1] }
  0xe1   : > { %1964 = vrot.lane.b32.xlu0 %v4925_v43, %s5318_s29  ;;  %v2440_v12 = vshll.u32 %v2215_v8, 16  ;;  %v2433_v19 = vrot.slane %v2431_v35, 4  ;;  %v2444_v55 = vshrl.u32 %v2215_v8, 16  ;;  %v2450_v51 = vshll.u32 %v2216_v27, 16 }
  0xe2   : > { %v2677_v34 = vpop.permute.xlu1 %2676  ;;  %v2436_v0 = vrot.slane %v2434_v32, 5  ;;  %v4926_v38 = vcombine.low %v6076_v37, %v6084_v31  ;;  %v720_v61 = vor.u32 %v718_v44, %v717_v17  ;;  %v721_v36 = vrot.slane %v717_v17, 4  ;;  %v414_v44 = vld [vmem:[%s5411_s28 + $0xb0] sm:$0xff] }
  0xe3   : > { %v728_v47 = vor.u32 %v726_v48, %v6089_v14  ;;  %v6096_v2 = vrot.slane %v2440_v12, 5  ;;  %v2446_v6 = vrot.slane %v2444_v55, 4  ;;  %v2452_v26 = vrot.slane %v2450_v51, 5 }
  0xe4   : > { %v6094_v3 = vpop.permute.xlu0 %3718  ;;  %v2437_v52 = vor.u32 %v2436_v0, %v2433_v19  ;;  %1642 = vrot.lane.b32.xlu1 %v4894_v41, %s5321_s8  ;;  %v369_v18 = vsel %vm5397_vm7, 0, %v368_v56  ;;  %vm2173_vm4 = vcmask 97352   ;;  %vm2718_vm5 = vcmask 121952  }
  0xe5   : > { %2141 = vrot.lane.b32.xlu0 %v5273_v42, %s5319_s30  ;;  %v729_v25 = vsel %vm5449_vm11, %v721_v36, %v728_v47  ;;  %v947_v57 = vld [vmem:[#allocation2 + $0x78] sm:$0xf]  ;;  %v2447_v43 = vor.u32 %v2446_v6, %v6096_v2  ;;  %370 = vst [vmem:[#allocation2 + $0x80] sm:$0x1] %v369_v18  ;;  %vm3039_vm6 = vcmask 146552   ;;  %2175 = vst.msk [vmem:[#allocation3 + $0x8] sm:$0xff] %vm2173_vm4, %v5811_v39  ;;  %v453_v31 = vadd.f32 %v5940_v5, %v414_v44 }
  0xe6   : > { %v2998_v37 = vpop.permute.xlu1 %2997  ;;  %v948_v28 = vsel %vm5439_vm10, %v720_v61, %v947_v57  ;;  %950 = vst.msk [vmem:[#allocation2 + $0x7c] sm:$0xf] %vm270_vm0, %v729_v25  ;;  %v2438_v8 = vrot.slane %v2437_v52, 4  ;;  %vm3217_vm8 = vcmask 171152   ;;  %vm6964_vm12 = vcmask 195752  }
  0xe7   : > { %2174 = vst.msk [vmem:[#allocation3] sm:$0xff] %vm2173_vm4, %v5815_v46  ;;  %2176 = vst.msk [vmem:[#allocation3 + $0x10] sm:$0xff] %vm2173_vm4, %v6021_v59  ;;  %vm4083_vm13 = vcmask 220352   ;;  %v4973_v39 = vrot.slane %v2759_v58, 9  ;;  %v2448_v59 = vrot.slane %v2447_v43, 4  ;;  %v740_v27 = vshrl.u32 %v6041_v50, 16 }
  0xe8   : > { %2177 = vst.msk [vmem:[#allocation3 + $0x18] sm:$0xff] %vm2173_vm4, %v6058_v60  ;;  %949 = vst [vmem:[#allocation2 + $0x78] sm:$0xf] %v948_v28  ;;  %v2443_v46 = vsel %vm5494_vm14, %v2438_v8, %v6096_v2  ;;  %v2889_v60 = vrot.slane %v2760_v63, 5  ;;  %v4040_v24 = vpop.permute.xlu0 %4039  ;;  %1966 = vrot.lane.b32.xlu1 %v4926_v38, %s5318_s29  ;;  %v730_v48 = vrot.slane %v6089_v14, 4  ;;  %v735_v32 = vshll.u32 %v6030_v45, 16 }
  0xe9   : > { %2720 = vst.msk [vmem:[#allocation3 + $0x8] sm:$0xff] %vm2718_vm5, %v5889_v33  ;;  %2719 = vst.msk [vmem:[#allocation3] sm:$0xff] %vm2718_vm5, %v5987_v4  ;;  %v2892_v33 = vrot.slane %v6098_v23, 5  ;;  %v371_v4 = vld [vmem:[#allocation2 + $0x8c] sm:$0x1]  ;;  %v6174_v14 = vrot.slane %v740_v27, 7  ;;  %v6183_v47 = vpack.c.bf16 %v453_v31, %v453_v31 }
  0xea   : > { %2721 = vst.msk [vmem:[#allocation3 + $0x10] sm:$0xff] %vm2718_vm5, %v6032_v40  ;;  %2722 = vst.msk [vmem:[#allocation3 + $0x18] sm:$0xff] %vm2718_vm5, %v2677_v34  ;;  %v415_v40 = vld [vmem:[%s5411_s28 + $0xb8] sm:$0xff]  ;;  %v2891_v35 = vrot.slane %v2889_v60, 4  ;;  %v417_v58 = vld [vmem:[%s5411_s28 + $0xc8] sm:$0xff]  ;;  %vm4187_vm15 = vcmask 1044480  }
  0xeb   : > { %3041 = vst.msk [vmem:[#allocation3 + $0x8] sm:$0xff] %vm3039_vm6, %v5847_v20  ;;  %3040 = vst.msk [vmem:[#allocation3] sm:$0xff] %vm3039_vm6, %v5851_v30  ;;  %v316_v20 = vsel %vm5375_vm3, 0, %v315_v21  ;;  %v732_v30 = vshrl.u32 %v6030_v45, 16  ;;  %v454_v41 = vadd.f32 %v5940_v5, %v415_v40  ;;  %v418_v28 = vld [vmem:[%s5411_s28 + $0xd0] sm:$0xff]  ;;  %v419_v8 = vld [vmem:[%s5411_s28 + $0xd8] sm:$0xff] }
  0xec   : > { %3042 = vst.msk [vmem:[#allocation3 + $0x10] sm:$0xff] %vm3039_vm6, %v6046_v29  ;;  %3043 = vst.msk [vmem:[#allocation3 + $0x18] sm:$0xff] %vm3039_vm6, %v2998_v37  ;;  %v3176_v29 = vpop.permute.xlu1 %3175  ;;  %v2893_v42 = vsel %vm5404_vm9, %v2891_v35, %v2892_v33  ;;  %v747_v21 = vrot.slane %v6174_v14, 4 }
  0xed   : > { %3219 = vst.msk [vmem:[#allocation3 + $0x8] sm:$0xff] %vm3217_vm8, %v5825_v22  ;;  %3218 = vst.msk [vmem:[#allocation3] sm:$0xff] %vm3217_vm8, %v5823_v10  ;;  %v2453_v22 = vsel %vm5494_vm14, %v2448_v59, %v2452_v26  ;;  %v2890_v10 = vsel %vm5404_vm9, %v4973_v39, %v2889_v60  ;;  %v734_v17 = vrot.slane %v732_v30, 7  ;;  %v2218_v45 = vld [vmem:[#allocation2 + $0x7c] sm:$0xf]  ;;  %v6192_v26 = vpack.c.bf16 %v454_v41, %v454_v41 }
  0xee   : > { %3220 = vst.msk [vmem:[#allocation3 + $0x10] sm:$0xff] %vm3217_vm8, %v6068_v15  ;;  %317 = vst [vmem:[#allocation2 + $0x84] sm:$0x1] %v316_v20  ;;  %v4957_v15 = vcombine.low %v2443_v46, %v2453_v22  ;;  %v4989_v12 = vcombine.low %v2890_v10, %v2893_v42  ;;  %v2464_v55 = vshll.u32 %v2218_v45, 16  ;;  %v456_v46 = vadd.f32 %v5940_v5, %v417_v58  ;;  %v3259_v40 = vld [vmem:[#allocation2 + $0x7c] sm:$0xf] }
  0xef   : > { %3764 = vst.msk [vmem:[#allocation3 + $0x8] sm:$0xff] %vm6964_vm12, %v5910_v7  ;;  %3763 = vst.msk [vmem:[#allocation3] sm:$0xff] %vm6964_vm12, %v6008_v53  ;;  %v372_v7 = vsel %vm5397_vm7, 0, %v371_v4  ;;  %v416_v53 = vld [vmem:[%s5411_s28 + $0xc0] sm:$0xff]  ;;  %v5274_v34 = vld [vmem:[#allocation2 + $0x78] sm:$0xff]   ;;  %v4042_v51 = vpop.permute.xlu0 %4041  ;;  %v737_v2 = vor.u32 %v735_v32, %v734_v17  ;;  %v738_v43 = vrot.slane %v734_v17, 4 }
  0xf0   : > { %3221 = vst.msk [vmem:[#allocation3 + $0x18] sm:$0xff] %vm3217_vm8, %v3176_v29  ;;  %373 = vst [vmem:[#allocation2 + $0x8c] sm:$0x1] %v372_v7  ;;  %2686 = vrot.lane.b32.xlu0 %v4957_v15, %s5324_s11  ;;  %v2217_v0 = vld [vmem:[#allocation2 + $0x78] sm:$0xf]  ;;  %v455_v56 = vadd.f32 %v5940_v5, %v416_v53  ;;  %2143 = vrot.lane.b32.xlu1 %v5274_v34, %s5319_s30  ;;  %v6187_v63 = vrot.slane %v2464_v55, 5  ;;  %v3721_v23 = vpop.permute.xlu1 %3720 }
  0xf1   : > { %3765 = vst.msk [vmem:[#allocation3 + $0x10] sm:$0xff] %vm6964_vm12, %v6094_v3  ;;  %v2455_v38 = vshrl.u32 %v2217_v0, 16  ;;  %v2458_v61 = vshll.u32 %v2217_v0, 16  ;;  %v6181_v36 = vld [vmem:[#allocation2 + $0x78] sm:$0xe]  ;;  %3766 = vst.msk [vmem:[#allocation3 + $0x18] sm:$0xff] %vm6964_vm12, %v3721_v23 }
  0xf2   : > { %4085 = vst.msk [vmem:[#allocation3 + $0x8] sm:$0xff] %vm4083_vm13, %v5899_v16  ;;  %4084 = vst.msk [vmem:[#allocation3] sm:$0xff] %vm4083_vm13, %v5868_v13  ;;  %v743_v16 = vshll.u32 %v6041_v50, 16  ;;  %v951_v13 = vld [vmem:[#allocation2 + $0x80] sm:$0x1]  ;;  %v2468_v50 = vshrl.u32 %v2218_v45, 16  ;;  %v6202_v59 = vpack.c.bf16 %v455_v56, %v455_v56 }
  0xf3   : > { %4086 = vst.msk [vmem:[#allocation3 + $0x10] sm:$0xff] %vm4083_vm13, %v4040_v24  ;;  %v952_v19 = vsel %vm5375_vm3, %v730_v48, %v951_v13  ;;  %v6189_v3 = vld [vmem:[#allocation2 + $0x7c] sm:$0xf]  ;;  %v2457_v25 = vrot.slane %v2455_v38, 4  ;;  %v2460_v57 = vrot.slane %v2458_v61, 5  ;;  %4087 = vst.msk [vmem:[#allocation3 + $0x18] sm:$0xff] %vm4083_vm13, %v4042_v51  ;;  %v6222_v13 = vadd.f32 %v5940_v5, %v419_v8 }
  0xf4   : > { %953 = vst [vmem:[#allocation2 + $0x80] sm:$0x1] %v952_v19  ;;  %v5278_v52 = vld [vmem:[#allocation2 + $0x78] sm:$0xff]   ;;  %v745_v6 = vor.u32 %v743_v16, %v6174_v14  ;;  %v2470_v18 = vrot.slane %v2468_v50, 4  ;;  %3007 = vrot.lane.b32.xlu0 %v4989_v12, %s5322_s9  ;;  %v2896_v37 = vrot.slane %v6189_v3, 5  ;;  %v4974_v4 = vrot.slane %v6181_v36, 9  ;;  %v1633_v48 = vpop.permute.xlu1 %1632  ;;  %v1957_v22 = vpop.permute.xlu0 %1956 }
  0xf5   : > { %v954_v44 = vld [vmem:[#allocation2 + $0x84] sm:$0xf]  ;;  %v3258_v39 = vld [vmem:[#allocation2 + $0x78] sm:$0xf]  ;;  %v2461_v60 = vor.u32 %v2460_v57, %v2457_v25  ;;  %v3484_v15 = vshll.u32 %v3259_v40, 16  ;;  %v3488_v32 = vshrl.u32 %v3259_v40, 16  ;;  %v6215_v14 = vpack.c.bf16 %v456_v46, %v456_v46 }
  0xf6   : > { %v2471_v33 = vor.u32 %v2470_v18, %v6187_v63  ;;  %v746_v20 = vsel %vm5449_vm11, %v738_v43, %v745_v6  ;;  %v955_v30 = vsel %vm5439_vm10, %v737_v2, %v954_v44  ;;  %v3475_v27 = vshrl.u32 %v3258_v39, 16  ;;  %v3803_v31 = vld [vmem:[#allocation2 + $0x78] sm:$0xe]  ;;  %v3804_v7 = vld [vmem:[#allocation2 + $0x7c] sm:$0xf]  ;;  %1677 = vst.msk [vmem:[#allocation3 + $0x20] sm:$0xff] %vm6963_vm1, %v1633_v48 }
  0xf7   : > { %v958_v24 = vld [vmem:[#allocation2 + $0x8c] sm:$0x1]  ;;  %v3478_v29 = vshll.u32 %v3258_v39, 16  ;;  %v2462_v10 = vrot.slane %v2461_v60, 4  ;;  %v2898_v35 = vrot.slane %v2896_v37, 4  ;;  %2001 = vst.msk [vmem:[#allocation3 + $0x20] sm:$0xff] %vm1996_vm2, %v1957_v22  ;;  %v6219_v16 = vadd.f32 %v5940_v5, %v418_v28 }
  0xf8   : > { %3185 = vrot.lane.b32.xlu0 %v5278_v52, %s5320_s7  ;;  %956 = vst [vmem:[#allocation2 + $0x84] sm:$0xf] %v955_v30  ;;  %957 = vst.msk [vmem:[#allocation2 + $0x88] sm:$0xf] %vm270_vm0, %v746_v20  ;;  %v959_v17 = vsel %vm5375_vm3, %v747_v21, %v958_v24  ;;  %v2472_v45 = vrot.slane %v2471_v33, 4  ;;  %v3477_v19 = vrot.slane %v3475_v27, 4  ;;  %v1635_v61 = vpop.permute.xlu1 %1634  ;;  %v2134_v50 = vpop.permute.xlu0 %2133  ;;  %v2897_v52 = vsel %vm5404_vm9, %v4974_v4, %v2896_v37 }
  0xf9   : > { %960 = vst [vmem:[#allocation2 + $0x8c] sm:$0x1] %v959_v17  ;;  %v3480_v0 = vrot.slane %v3478_v29, 5  ;;  %v3486_v55 = vrot.slane %v3484_v15, 5  ;;  %v3490_v51 = vrot.slane %v3488_v32, 4  ;;  %v2467_v36 = vsel %vm5494_vm14, %v2462_v10, %v6187_v63  ;;  %1678 = vst.msk [vmem:[#allocation3 + $0x28] sm:$0xff] %vm6963_vm1, %v1635_v61 }
  0xfa   : > { %v5037_v3 = vrot.slane %v3803_v31, 9  ;;  %v3933_v5 = vrot.slane %v3804_v7, 5  ;;  %2178 = vst.msk [vmem:[#allocation3 + $0x20] sm:$0xff] %vm2173_vm4, %v2134_v50  ;;  %v5281_v37 = vld [vmem:[%s6957_s2 + $0x8] sm:$0x3f]   ;;  %vm4188_vm1 = vcmask 1045504  }
  0xfb   : > { %v2219_v41 = vld [vmem:[#allocation2 + $0x80] sm:$0x1]  ;;  %v3481_v6 = vor.u32 %v3480_v0, %v3477_v19  ;;  %v3491_v23 = vor.u32 %v3490_v51, %v3486_v55  ;;  %v1171_v21 = vld [vmem:[#allocation2 + $0x78] sm:$0xf]  ;;  %v5326_v40 = vmov 65535  }
  0xfc   : > { %v2764_v53 = vld [vmem:[#allocation2 + $0x80] sm:$0x1]  ;;  %v2474_v12 = vshll.u32 %v2219_v41, 16  ;;  %v3935_v63 = vrot.slane %v3933_v5, 4  ;;  %v6237_v43 = vsel %vm5404_vm9, %v5037_v3, %v3933_v5  ;;  %v1959_v44 = vpop.permute.xlu1 %1958  ;;  %v4189_v24 = vsel %vm4187_vm15, 4294967295, %v5326_v40 }
  0xfd   : > { %v3260_v42 = vld [vmem:[#allocation2 + $0x80] sm:$0x1]  ;;  %v2899_v34 = vrot.slane %v2764_v53, 5  ;;  %v3482_v8 = vrot.slane %v3481_v6, 4  ;;  %v3492_v46 = vrot.slane %v3491_v23, 4  ;;  %2002 = vst.msk [vmem:[#allocation3 + $0x28] sm:$0xff] %vm1996_vm2, %v1959_v44 }
  0xfe   : > { %v3494_v56 = vshll.u32 %v3260_v42, 16  ;;  %v3805_v38 = vld [vmem:[#allocation2 + $0x80] sm:$0x1]  ;;  %v2476_v58 = vrot.slane %v2474_v12, 5  ;;  %v1172_v15 = vld [vmem:[#allocation2 + $0x7c] sm:$0xf] }
  0xff   : > { %v2900_v2 = vsel %vm5404_vm9, %v2898_v35, %v2899_v34  ;;  %v3936_v18 = vrot.slane %v3805_v38, 5  ;;  %v3261_v60 = vld [vmem:[#allocation2 + $0x84] sm:$0xf]  ;;  %v3262_v33 = vld [vmem:[#allocation2 + $0x88] sm:$0xf]  ;;  %v3487_v20 = vsel %vm5494_vm14, %v3482_v8, %v3486_v55  ;;  %v4190_v34 = vsel %vm4188_vm1, %v4189_v24, 0 }
 0x100   : > { %v2477_v25 = vsel %vm5494_vm14, %v2472_v45, %v2476_v58  ;;  %v3496_v57 = vrot.slane %v3494_v56, 5  ;;  %v4990_v39 = vcombine.low %v2897_v52, %v2900_v2  ;;  %v3263_v30 = vld [vmem:[#allocation2 + $0x8c] sm:$0x1]  ;;  %v3499_v27 = vshrl.u32 %v3261_v60, 16  ;;  %v1173_v42 = vld [vmem:[#allocation2 + $0x80] sm:$0x1]  ;;  %v2679_v17 = vpop.permute.xlu0 %2678 }
 0x101   : > { %v4958_v28 = vcombine.low %v2467_v36, %v2477_v25  ;;  %v6244_v4 = vsel %vm5404_vm9, %v3935_v63, %v3936_v18  ;;  %v3502_v29 = vshll.u32 %v3261_v60, 16  ;;  %v3508_v31 = vshll.u32 %v3262_v33, 16  ;;  %v3806_v0 = vld [vmem:[#allocation2 + $0x84] sm:$0xe]  ;;  %2723 = vst.msk [vmem:[#allocation3 + $0x20] sm:$0xff] %vm2718_vm5, %v2679_v17  ;;  %v4100_v2 = vld [vmem:[#allocation3] sm:$0xff] }
 0x102   : > { %v3497_v48 = vsel %vm5494_vm14, %v3492_v46, %v3496_v57  ;;  %v3512_v22 = vshrl.u32 %v3262_v33, 16  ;;  %v3518_v10 = vshll.u32 %v3263_v30, 16  ;;  %v5053_v35 = vcombine.low %v6237_v43, %v6244_v4  ;;  %v5279_v55 = vld [vmem:[#allocation2 + $0x84] sm:$0xff]   ;;  %v3808_v52 = vld [vmem:[#allocation2 + $0x8c] sm:$0x1] }
 0x103   : > { %2688 = vrot.lane.b32.xlu1 %v4958_v28, %s5324_s11  ;;  %v5021_v32 = vcombine.low %v3487_v20, %v3497_v48  ;;  %v3501_v7 = vrot.slane %v3499_v27, 4  ;;  %v3504_v41 = vrot.slane %v3502_v29, 5  ;;  %v3510_v53 = vrot.slane %v3508_v31, 5  ;;  %v3807_v50 = vld [vmem:[#allocation2 + $0x88] sm:$0xf]  ;;  %v2136_v6 = vpop.permute.xlu1 %2135  ;;  %v4101_v30 = vld [vmem:[#allocation3 + $0x8] sm:$0xff] }
 0x104   : > { %v3514_v45 = vrot.slane %v3512_v22, 4  ;;  %v3520_v12 = vrot.slane %v3518_v10, 5  ;;  %v1433_v19 = vshrl.u32 %v1171_v21, 16  ;;  %v4192_v56 = vand.u32 %v5281_v37, %v4190_v34  ;;  %v1174_v18 = vld [vmem:[#allocation2 + $0x84] sm:$0xf]  ;;  %v4102_v28 = vld [vmem:[#allocation3 + $0x10] sm:$0xff]  ;;  %v3000_v8 = vpop.permute.xlu0 %2999 }
 0x105   : > { %3730 = vrot.lane.b32.xlu0 %v5021_v32, %s5325_s12  ;;  %v3505_v51 = vor.u32 %v3504_v41, %v3501_v7  ;;  %v1436_v38 = vshll.u32 %v1171_v21, 16  ;;  %v1442_v61 = vshll.u32 %v1172_v15, 16  ;;  %v1446_v3 = vshrl.u32 %v1172_v15, 16  ;;  %2179 = vst.msk [vmem:[#allocation3 + $0x28] sm:$0xff] %vm2173_vm4, %v2136_v6  ;;  %v1719_v27 = vld [vmem:[#allocation2 + $0x78] sm:$0xe] }
 0x106   : > { %v3515_v36 = vor.u32 %v3514_v45, %v3510_v53  ;;  %v1435_v58 = vrot.slane %v1433_v19, 4  ;;  %v1452_v5 = vshll.u32 %v1173_v42, 16  ;;  %5200 = vmatprep.subr.bf16.mxu0 %v4192_v56  ;;  %v5038_v63 = vrot.slane %v3806_v0, 9  ;;  %5235 = vmatprep.subr.bf16.mxu1 %v4192_v56  ;;  %3044 = vst.msk [vmem:[#allocation3 + $0x20] sm:$0xff] %vm3039_vm6, %v3000_v8  ;;  %v1176_v48 = vld [vmem:[#allocation2 + $0x8c] sm:$0x1] }
 0x107   : > { %3009 = vrot.lane.b32.xlu1 %v4990_v39, %s5322_s9  ;;  %v3506_v23 = vrot.slane %v3505_v51, 4  ;;  %v1438_v25 = vrot.slane %v1436_v38, 5  ;;  %v1444_v57 = vrot.slane %v1442_v61, 5  ;;  %v1448_v37 = vrot.slane %v1446_v3, 4  ;;  %5201 = vmatpush3.bf16.msra.mxu0 %v4192_v56  ;;  %v1175_v39 = vld [vmem:[#allocation2 + $0x88] sm:$0xf] }
 0x108   : > { %v3516_v43 = vrot.slane %v3515_v36, 4  ;;  %v1454_v21 = vrot.slane %v1452_v5, 5  ;;  %v3940_v44 = vrot.slane %v3807_v50, 5  ;;  %5237 = vmatpush3.bf16.msra.mxu1 %v4192_v56  ;;  %v3943_v33 = vrot.slane %v3808_v52, 5  ;;  %v1721_v34 = vld [vmem:[#allocation2 + $0x80] sm:$0x1] }
 0x109   : > { %v3511_v46 = vsel %vm5494_vm14, %v3506_v23, %v3510_v53  ;;  %4051 = vrot.lane.b32.xlu0 %v5053_v35, %s5323_s10  ;;  %v1439_v60 = vor.u32 %v1438_v25, %v1435_v58  ;;  %vm4138_vm15 = vcmask 220160   ;;  %v1449_v40 = vor.u32 %v1448_v37, %v1444_v57  ;;  %v3178_v35 = vpop.permute.xlu0 %3177  ;;  %v1720_v53 = vld [vmem:[#allocation2 + $0x7c] sm:$0xf]  ;;  %v1722_v19 = vld [vmem:[#allocation2 + $0x84] sm:$0xe] }
 0x10a   : > { %v3521_v4 = vsel %vm5494_vm14, %v3516_v43, %v3520_v12  ;;  %v3941_v24 = vsel %vm5404_vm9, %v5038_v63, %v3940_v44  ;;  %v3942_v20 = vrot.slane %v3940_v44, 4  ;;  %5202 = vmatprep.mubr.msk.bf16.mxu0 %vm4138_vm15, %v4100_v2  ;;  %v1457_v22 = vshrl.u32 %v1174_v18, 16  ;;  %3222 = vst.msk [vmem:[#allocation3 + $0x20] sm:$0xff] %vm3217_vm8, %v3178_v35  ;;  %v318_v0 = vld [vmem:[#allocation2 + $0x90] sm:$0x1]  ;;  %v5296_v52 = vld [vmem:[#allocation2 + $0x60] sm:$0xff]  }
 0x10b   : > { %3187 = vrot.lane.b32.xlu1 %v5279_v55, %s5320_s7  ;;  %v5022_v29 = vcombine.low %v3511_v46, %v3521_v4  ;;  %v1440_v31 = vrot.slane %v1439_v60, 4  ;;  %v1460_v10 = vshll.u32 %v1174_v18, 16  ;;  %5203 = vmatmul.mubr.msk.bf16.vlgmr.msra.gmra.mrb[0].mxu0 %vm4138_vm15, %v4101_v30  ;;  %v1450_v15 = vrot.slane %v1449_v40, 4  ;;  %v1723_v61 = vld [vmem:[#allocation2 + $0x88] sm:$0xf] }
 0x10c   : > { %v3944_v32 = vsel %vm5404_vm9, %v3942_v20, %v3943_v33  ;;  %v1466_v7 = vshll.u32 %v1175_v39, 16  ;;  %v1470_v41 = vshrl.u32 %v1175_v39, 16  ;;  %5206 = vmatprep.mubr.msk.bf16.mxu0 %vm4138_vm15, %v4102_v28  ;;  %v1459_v45 = vrot.slane %v1457_v22, 4  ;;  %v1724_v5 = vld [vmem:[#allocation2 + $0x8c] sm:$0x1] }
 0x10d   : > { %v1445_v42 = vsel %vm5494_vm14, %v1440_v31, %v1444_v57  ;;  %v5054_v17 = vcombine.low %v3941_v24, %v3944_v32  ;;  %v1462_v12 = vrot.slane %v1460_v10, 5  ;;  %v1455_v55 = vsel %vm5494_vm14, %v1450_v15, %v1454_v21  ;;  %v4103_v57 = vld [vmem:[#allocation3 + $0x18] sm:$0xff]  ;;  %v2220_v43 = vld [vmem:[#allocation2 + $0x84] sm:$0xf]  ;;  %v2221_v31 = vld [vmem:[#allocation2 + $0x88] sm:$0xf] }
 0x10e   : > { %v1468_v51 = vrot.slane %v1466_v7, 5  ;;  %v1472_v56 = vrot.slane %v1470_v41, 4  ;;  %v1476_v38 = vshll.u32 %v1176_v48, 16  ;;  %v4895_v50 = vcombine.low %v1445_v42, %v1455_v55  ;;  %v5297_v24 = vld [vmem:[#allocation2 + $0x6c] sm:$0xff]   ;;  %v374_v32 = vld [vmem:[#allocation2 + $0x98] sm:$0x1] }
 0x10f   : > { %3732 = vrot.lane.b32.xlu1 %v5022_v29, %s5325_s12  ;;  %4053 = vrot.lane.b32.xlu0 %v5054_v17, %s5323_s10  ;;  %v1463_v36 = vor.u32 %v1462_v12, %v1459_v45  ;;  %v4911_v58 = vrot.slane %v1719_v27, 9  ;;  %v1860_v3 = vrot.slane %v1720_v53, 5  ;;  %v1863_v23 = vrot.slane %v1721_v34, 5  ;;  %v2681_v46 = vpop.permute.xlu1 %2680  ;;  %v2222_v15 = vld [vmem:[#allocation2 + $0x8c] sm:$0x1]  ;;  %v5282_v41 = vld [vmem:[#allocation2 + $0x84] sm:$0xff]  }
 0x110   : > { %v1473_v2 = vor.u32 %v1472_v56, %v1468_v51  ;;  %v1478_v6 = vrot.slane %v1476_v38, 5  ;;  %v4912_v25 = vrot.slane %v1722_v19, 9  ;;  %v1867_v8 = vrot.slane %v1723_v61, 5  ;;  %2724 = vst.msk [vmem:[#allocation3 + $0x28] sm:$0xff] %vm2718_vm5, %v2681_v46  ;;  %v2765_v17 = vld [vmem:[#allocation2 + $0x84] sm:$0xe] }
 0x111   : > { %v1464_v63 = vrot.slane %v1463_v36, 4  ;;  %v1861_v18 = vsel %vm5404_vm9, %v4911_v58, %v1860_v3  ;;  %v1862_v28 = vrot.slane %v1860_v3, 4  ;;  %vm6977_vm1 = vcmask 23552   ;;  %v321_v61 = vld [vmem:[#allocation2 + $0x9c] sm:$0x1] }
 0x112   : > { %1133 = vst.msk [vmem:[#allocation3 + $0x40] sm:$0xff] %vm6977_vm1, %v5296_v52  ;;  %v1474_v37 = vrot.slane %v1473_v2, 4  ;;  %v1870_v21 = vrot.slane %v1724_v5, 5  ;;  %v319_v44 = vsel %vm5375_vm3, 0, %v318_v0  ;;  %v749_v39 = vshrl.u32 %v6183_v47, 16  ;;  %1134 = vst.msk [vmem:[#allocation3 + $0x48] sm:$0xff] %vm6977_vm1, %v5297_v24 }
 0x113   : > { %1644 = vrot.lane.b32.xlu1 %v4895_v50, %s5321_s8  ;;  %v1469_v60 = vsel %vm5494_vm14, %v1464_v63, %v1468_v51  ;;  %v1864_v33 = vsel %vm5404_vm9, %v1862_v28, %v1863_v23  ;;  %v1868_v4 = vsel %vm5404_vm9, %v4912_v25, %v1867_v8  ;;  %v1869_v40 = vrot.slane %v1867_v8, 4  ;;  %320 = vst [vmem:[#allocation2 + $0x90] sm:$0x1] %v319_v44  ;;  %v3002_v45 = vpop.permute.xlu1 %3001  ;;  %v2766_v0 = vld [vmem:[#allocation2 + $0x88] sm:$0xf]  ;;  %v3723_v55 = vpop.permute.xlu0 %3722 }
 0x114   : > { %5207 = vmatmul.mubr.msk.bf16.gmra.mrb[4].mxu0 %vm4138_vm15, %v4103_v57  ;;  %v1479_v20 = vsel %vm5494_vm14, %v1474_v37, %v1478_v6  ;;  %v4927_v30 = vcombine.low %v1861_v18, %v1864_v33  ;;  %v751_v27 = vrot.slane %v749_v39, 7  ;;  %v752_v29 = vshll.u32 %v6183_v47, 16  ;;  %3045 = vst.msk [vmem:[#allocation3 + $0x28] sm:$0xff] %vm3039_vm6, %v3002_v45  ;;  %v2767_v5 = vld [vmem:[#allocation2 + $0x8c] sm:$0x1]  ;;  %v420_v45 = vld [vmem:[%s5411_s28 + $0xe0] sm:$0xff] }
 0x115   : > { %v4896_v48 = vcombine.low %v1469_v60, %v1479_v20  ;;  %v1871_v22 = vsel %vm5404_vm9, %v1869_v40, %v1870_v21  ;;  %v757_v10 = vshrl.u32 %v6192_v26, 16  ;;  %v760_v35 = vshll.u32 %v6192_v26, 16  ;;  %3767 = vst.msk [vmem:[#allocation3 + $0x20] sm:$0xff] %vm6964_vm12, %v3723_v55  ;;  %v377_v8 = vld [vmem:[#allocation2 + $0xa4] sm:$0x1] }
 0x116   : > { %1968 = vrot.lane.b32.xlu0 %v4927_v30, %s5318_s29  ;;  %v4928_v7 = vcombine.low %v1868_v4, %v1871_v22  ;;  %v754_v53 = vor.u32 %v752_v29, %v751_v27  ;;  %v755_v42 = vrot.slane %v751_v27, 4  ;;  %v2479_v47 = vshrl.u32 %v2220_v43, 16  ;;  %v324_v46 = vld [vmem:[#allocation2 + $0xa8] sm:$0x1] }
 0x117   : > { %1646 = vrot.lane.b32.xlu1 %v4896_v48, %s5321_s8  ;;  %v6306_v12 = vrot.slane %v757_v10, 7  ;;  %v2482_v34 = vshll.u32 %v2220_v43, 16  ;;  %v2488_v19 = vshll.u32 %v2221_v31, 16  ;;  %v2492_v26 = vshrl.u32 %v2221_v31, 16  ;;  %v3180_v57 = vpop.permute.xlu1 %3179  ;;  %v4044_v43 = vpop.permute.xlu0 %4043  ;;  %v5300_v10 = vld [vmem:[#allocation2 + $0x78] sm:$0xff]  }
 0x118   : > { %v2481_v51 = vrot.slane %v2479_v47, 4  ;;  %v2498_v56 = vshll.u32 %v2222_v15, 16  ;;  %v375_v38 = vsel %vm5397_vm7, 0, %v374_v32  ;;  %v6313_v50 = vpack.c.bf16 %v6219_v16, %v6219_v16  ;;  %3223 = vst.msk [vmem:[#allocation3 + $0x28] sm:$0xff] %vm3217_vm8, %v3180_v57 }
 0x119   : > { %v762_v36 = vor.u32 %v760_v35, %v6306_v12  ;;  %v2484_v58 = vrot.slane %v2482_v34, 5  ;;  %v2490_v3 = vrot.slane %v2488_v19, 5  ;;  %376 = vst [vmem:[#allocation2 + $0x98] sm:$0x1] %v375_v38  ;;  %v6319_v52 = vpack.c.bf16 %v6222_v13, %v6222_v13  ;;  %4088 = vst.msk [vmem:[#allocation3 + $0x20] sm:$0xff] %vm4083_vm13, %v4044_v43  ;;  %v5301_v35 = vld [vmem:[#allocation2 + $0x84] sm:$0xff]  }
 0x11a   : > { %2145 = vrot.lane.b32.xlu0 %v5282_v41, %s5319_s30  ;;  %v961_v2 = vld [vmem:[#allocation2 + $0x90] sm:$0xf]  ;;  %v2494_v6 = vrot.slane %v2492_v26, 4  ;;  %v2500_v23 = vrot.slane %v2498_v56, 5  ;;  %v4975_v25 = vrot.slane %v2765_v17, 9  ;;  %v2903_v16 = vrot.slane %v2766_v0, 5 }
 0x11b   : > { %1970 = vrot.lane.b32.xlu1 %v4928_v7, %s5318_s29  ;;  %v763_v63 = vsel %vm5449_vm11, %v755_v42, %v762_v36  ;;  %v962_v18 = vsel %vm5439_vm10, %v754_v53, %v961_v2  ;;  %v2485_v28 = vor.u32 %v2484_v58, %v2481_v51  ;;  %v322_v13 = vsel %vm5375_vm3, 0, %v321_v61  ;;  %v3725_v29 = vpop.permute.xlu1 %3724  ;;  %v380_v53 = vld [vmem:[#allocation2 + $0xb0] sm:$0x1]  ;;  %1135 = vst.msk [vmem:[#allocation3 + $0x50] sm:$0xff] %vm6977_vm1, %v5300_v10  ;;  %v421_v36 = vld [vmem:[%s5411_s28 + $0xe8] sm:$0xff] }
 0x11c   : > { %963 = vst [vmem:[#allocation2 + $0x90] sm:$0xf] %v962_v18  ;;  %964 = vst.msk [vmem:[#allocation2 + $0x94] sm:$0xf] %vm270_vm0, %v763_v63  ;;  %v2495_v37 = vor.u32 %v2494_v6, %v2490_v3  ;;  %v2905_v21 = vrot.slane %v2903_v16, 4  ;;  %v2906_v44 = vrot.slane %v2767_v5, 5  ;;  %v2904_v20 = vsel %vm5404_vm9, %v4975_v25, %v2903_v16 }
 0x11d   : > { %323 = vst [vmem:[#allocation2 + $0x9c] sm:$0x1] %v322_v13  ;;  %v766_v39 = vshrl.u32 %v6202_v59, 16  ;;  %v764_v60 = vrot.slane %v6306_v12, 4  ;;  %v2486_v33 = vrot.slane %v2485_v28, 4  ;;  %v774_v4 = vshrl.u32 %v6215_v14, 16 }
 0x11e   : > { %v777_v40 = vshll.u32 %v6215_v14, 16  ;;  %v2496_v24 = vrot.slane %v2495_v37, 4  ;;  %v378_v27 = vsel %vm5397_vm7, 0, %v377_v8  ;;  %v769_v48 = vshll.u32 %v6202_v59, 16  ;;  %3768 = vst.msk [vmem:[#allocation3 + $0x28] sm:$0xff] %vm6964_vm12, %v3725_v29  ;;  %vm6978_vm12 = vmmov %vm6977_vm1  ;;  %v4046_v55 = vpop.permute.xlu0 %4045 }
 0x11f   : > { %v768_v30 = vrot.slane %v766_v39, 7  ;;  %v2491_v31 = vsel %vm5494_vm14, %v2486_v33, %v2490_v3  ;;  %v6343_v22 = vrot.slane %v774_v4, 7  ;;  %379 = vst [vmem:[#allocation2 + $0xa4] sm:$0x1] %v378_v27  ;;  %v325_v14 = vsel %vm5375_vm3, 0, %v324_v46  ;;  %1136 = vst.msk [vmem:[#allocation3 + $0x58] sm:$0xff] %vm6978_vm12, %v5301_v35  ;;  %v1637_v0 = vpop.permute.xlu1 %1636 }
 0x120   : > { %v2501_v15 = vsel %vm5494_vm14, %v2496_v24, %v2500_v23  ;;  %v965_v32 = vld [vmem:[#allocation2 + $0x98] sm:$0x1]  ;;  %v2907_v7 = vsel %vm5404_vm9, %v2905_v21, %v2906_v44  ;;  %326 = vst [vmem:[#allocation2 + $0xa8] sm:$0x1] %v325_v14  ;;  %v783_v59 = vshrl.u32 %v6313_v50, 16  ;;  %v786_v19 = vshll.u32 %v6313_v50, 16 }
 0x121   : > { %v772_v41 = vrot.slane %v768_v30, 4  ;;  %v4959_v42 = vcombine.low %v2491_v31, %v2501_v15  ;;  %v966_v47 = vsel %vm5375_vm3, %v764_v60, %v965_v32  ;;  %v779_v17 = vor.u32 %v777_v40, %v6343_v22  ;;  %4089 = vst.msk [vmem:[#allocation3 + $0x28] sm:$0xff] %vm4083_vm13, %v4046_v55  ;;  %v6376_v6 = vld [vmem:[%s6956_s1] ss:$0 sm:$0xff]  ;;  %v4104_v39 = vld [vmem:[#allocation3 + $0x20] sm:$0xff] }
 0x122   : > { %967 = vst [vmem:[#allocation2 + $0x98] sm:$0x1] %v966_v47  ;;  %v781_v12 = vrot.slane %v6343_v22, 4  ;;  %v6360_v34 = vrot.slane %v783_v59, 7  ;;  %v791_v26 = vshrl.u32 %v6319_v52, 16  ;;  %v4991_v56 = vcombine.low %v2904_v20, %v2907_v7  ;;  %5210 = vmatprep.mubr.msk.bf16.mxu0 %vm4138_vm15, %v4104_v39 }
 0x123   : > { %v5283_v51 = vld [vmem:[#allocation2 + $0x90] sm:$0xff]   ;;  %2690 = vrot.lane.b32.xlu0 %v4959_v42, %s5324_s11  ;;  %v780_v38 = vsel %vm5449_vm11, %v772_v41, %v779_v17  ;;  %v381_v61 = vsel %vm5397_vm7, 0, %v380_v53  ;;  %vm6979_vm12 = vcmask 48152   ;;  %v771_v2 = vor.u32 %v769_v48, %v768_v30 }
 0x124   : > { %1679 = vst.msk [vmem:[#allocation3 + $0x30] sm:$0xff] %vm6979_vm12, %v1637_v0  ;;  %v2223_v58 = vld [vmem:[#allocation2 + $0x90] sm:$0xf]  ;;  %v2224_v3 = vld [vmem:[#allocation2 + $0x94] sm:$0xf]  ;;  %v459_v23 = vadd.f32 %v6376_v6, %v420_v45  ;;  %2147 = vrot.lane.b32.xlu1 %v5283_v51, %s5319_s30  ;;  %v794_v13 = vshll.u32 %v6319_v52, 16  ;;  %v1639_v40 = vpop.permute.xlu1 %1638  ;;  %v6383_v24 = vadd.f32 %v6376_v6, %v421_v36  ;;  %v1961_v20 = vpop.permute.xlu0 %1960  ;;  %vm6980_vm1 = vmmov %vm6979_vm12 }
 0x125   : > { %v2768_v5 = vld [vmem:[#allocation2 + $0x90] sm:$0xe]  ;;  %971 = vst.msk [vmem:[#allocation2 + $0xa0] sm:$0xf] %vm270_vm0, %v780_v38  ;;  %382 = vst [vmem:[#allocation2 + $0xb0] sm:$0x1] %v381_v61 }
 0x126   : > { %v2503_v25 = vshrl.u32 %v2223_v58, 16  ;;  %v2506_v16 = vshll.u32 %v2223_v58, 16  ;;  %v2512_v57 = vshll.u32 %v2224_v3, 16  ;;  %v2516_v63 = vshrl.u32 %v2224_v3, 16  ;;  %v2769_v18 = vld [vmem:[#allocation2 + $0x94] sm:$0xf] }
 0x127   : > { %v2910_v28 = vrot.slane %v2769_v18, 5  ;;  %3011 = vrot.lane.b32.xlu0 %v4991_v56, %s5322_s9  ;;  %v5286_v44 = vld [vmem:[#allocation2 + $0x90] sm:$0xff]   ;;  %v4976_v46 = vrot.slane %v2768_v5, 9  ;;  %v968_v33 = vld [vmem:[#allocation2 + $0x9c] sm:$0xf]  ;;  %1680 = vst.msk [vmem:[#allocation3 + $0x38] sm:$0xff] %vm6980_vm1, %v1639_v40  ;;  %v6389_v10 = vpack.c.bf16 %v459_v23, %v459_v23 }
 0x128   : > { %v2505_v8 = vrot.slane %v2503_v25, 4  ;;  %v2508_v43 = vrot.slane %v2506_v16, 5  ;;  %v2514_v37 = vrot.slane %v2512_v57, 5  ;;  %v2518_v21 = vrot.slane %v2516_v63, 4  ;;  %v3264_v4 = vld [vmem:[#allocation2 + $0x90] sm:$0xf]  ;;  %v1963_v56 = vpop.permute.xlu1 %1962  ;;  %v2138_v38 = vpop.permute.xlu0 %2137 }
 0x129   : > { %v2912_v60 = vrot.slane %v2910_v28, 4  ;;  %v2225_v30 = vld [vmem:[#allocation2 + $0x98] sm:$0x1]  ;;  %v969_v48 = vsel %vm5439_vm10, %v771_v2, %v968_v33  ;;  %v3265_v14 = vld [vmem:[#allocation2 + $0x94] sm:$0xf]  ;;  %2003 = vst.msk [vmem:[#allocation3 + $0x30] sm:$0xff] %vm1996_vm2, %v1961_v20  ;;  %v2911_v45 = vsel %vm5404_vm9, %v4976_v46, %v2910_v28 }
 0x12a   : > { %v2509_v27 = vor.u32 %v2508_v43, %v2505_v8  ;;  %v2519_v29 = vor.u32 %v2518_v21, %v2514_v37  ;;  %v2770_v31 = vld [vmem:[#allocation2 + $0x98] sm:$0x1]  ;;  %v2522_v35 = vshll.u32 %v2225_v30, 16  ;;  %970 = vst [vmem:[#allocation2 + $0x9c] sm:$0xf] %v969_v48  ;;  %v3523_v7 = vshrl.u32 %v3264_v4, 16 }
 0x12b   : > { %v2913_v15 = vrot.slane %v2770_v31, 5  ;;  %v3266_v32 = vld [vmem:[#allocation2 + $0x98] sm:$0x1]  ;;  %v3526_v41 = vshll.u32 %v3264_v4, 16  ;;  %3189 = vrot.lane.b32.xlu0 %v5286_v44, %s5320_s7  ;;  %v3532_v42 = vshll.u32 %v3265_v14, 16  ;;  %v3536_v47 = vshrl.u32 %v3265_v14, 16 }
 0x12c   : > { %v2510_v59 = vrot.slane %v2509_v27, 4  ;;  %v2520_v53 = vrot.slane %v2519_v29, 4  ;;  %v2524_v17 = vrot.slane %v2522_v35, 5  ;;  %v3525_v0 = vrot.slane %v3523_v7, 4  ;;  %v972_v51 = vld [vmem:[#allocation2 + $0xa4] sm:$0x1] }
 0x12d   : > { %v3528_v55 = vrot.slane %v3526_v41, 5  ;;  %v4105_v61 = vld [vmem:[#allocation3 + $0x28] sm:$0xff]  ;;  %v2914_v58 = vsel %vm5404_vm9, %v2912_v60, %v2913_v15  ;;  %v3534_v3 = vrot.slane %v3532_v42, 5  ;;  %v3538_v5 = vrot.slane %v3536_v47, 4  ;;  %v3809_v23 = vld [vmem:[#allocation2 + $0x90] sm:$0xe] }
 0x12e   : > { %v2515_v36 = vsel %vm5494_vm14, %v2510_v59, %v2514_v37  ;;  %v3268_v2 = vld [vmem:[#allocation2 + $0xa0] sm:$0xf]  ;;  %2004 = vst.msk [vmem:[#allocation3 + $0x38] sm:$0xff] %vm1996_vm2, %v1963_v56  ;;  %5211 = vmatmul.mubr.msk.bf16.gmra.mrb[8].mxu0 %vm4138_vm15, %v4105_v61  ;;  %v2525_v25 = vsel %vm5494_vm14, %v2520_v53, %v2524_v17  ;;  %v3542_v57 = vshll.u32 %v3266_v32, 16  ;;  %v973_v63 = vsel %vm5375_vm3, %v781_v12, %v972_v51  ;;  %v3810_v18 = vld [vmem:[#allocation2 + $0x94] sm:$0xf] }
 0x12f   : > { %2180 = vst.msk [vmem:[#allocation3 + $0x30] sm:$0xff] %vm2173_vm4, %v2138_v38  ;;  %v3529_v16 = vor.u32 %v3528_v55, %v3525_v0  ;;  %v4960_v28 = vcombine.low %v2515_v36, %v2525_v25  ;;  %v3539_v8 = vor.u32 %v3538_v5, %v3534_v3  ;;  %974 = vst [vmem:[#allocation2 + $0xa4] sm:$0x1] %v973_v63  ;;  %v3556_v43 = vshll.u32 %v3268_v2, 16  ;;  %v3811_v21 = vld [vmem:[#allocation2 + $0x98] sm:$0x1]  ;;  %v2683_v32 = vpop.permute.xlu0 %2682 }
 0x130   : > { %v3560_v37 = vshrl.u32 %v3268_v2, 16  ;;  %v3544_v39 = vrot.slane %v3542_v57, 5  ;;  %v5039_v46 = vrot.slane %v3809_v23, 9  ;;  %v3947_v60 = vrot.slane %v3810_v18, 5  ;;  %v1177_v33 = vld [vmem:[#allocation2 + $0x90] sm:$0xf]  ;;  %v2140_v56 = vpop.permute.xlu1 %2139 }
 0x131   : > { %v3530_v44 = vrot.slane %v3529_v16, 4  ;;  %2692 = vrot.lane.b32.xlu1 %v4960_v28, %s5324_s11  ;;  %v4992_v4 = vcombine.low %v2911_v45, %v2914_v58  ;;  %v3540_v40 = vrot.slane %v3539_v8, 4  ;;  %v3267_v22 = vld [vmem:[#allocation2 + $0x9c] sm:$0xf]  ;;  %v6412_v12 = vor.u32 %v786_v19, %v6360_v34  ;;  %v1178_v48 = vld [vmem:[#allocation2 + $0x94] sm:$0xf] }
 0x132   : > { %v789_v20 = vrot.slane %v6360_v34, 4  ;;  %v3547_v27 = vshrl.u32 %v3267_v22, 16  ;;  %v3550_v29 = vshll.u32 %v3267_v22, 16  ;;  %v6417_v31 = vrot.slane %v3556_v43, 5  ;;  %v1179_v19 = vld [vmem:[#allocation2 + $0x98] sm:$0x1] }
 0x133   : > { %v3535_v30 = vsel %vm5494_vm14, %v3530_v44, %v3534_v3  ;;  %v3545_v14 = vsel %vm5494_vm14, %v3540_v40, %v3544_v39  ;;  %v3562_v35 = vrot.slane %v3560_v37, 4  ;;  %v3948_v15 = vsel %vm5404_vm9, %v5039_v46, %v3947_v60  ;;  %v5287_v7 = vld [vmem:[#allocation2 + $0x9c] sm:$0xff]   ;;  %2725 = vst.msk [vmem:[#allocation3 + $0x30] sm:$0xff] %vm2718_vm5, %v2683_v32  ;;  %v5302_v47 = vld [vmem:[#allocation2 + $0x90] sm:$0xff]   ;;  %v3004_v18 = vpop.permute.xlu0 %3003 }
 0x134   : > { %v3949_v50 = vrot.slane %v3947_v60, 4  ;;  %v5023_v41 = vcombine.low %v3535_v30, %v3545_v14  ;;  %v3549_v59 = vrot.slane %v3547_v27, 4  ;;  %v3552_v53 = vrot.slane %v3550_v29, 5  ;;  %v3812_v51 = vld [vmem:[#allocation2 + $0x9c] sm:$0xe]  ;;  %2181 = vst.msk [vmem:[#allocation3 + $0x38] sm:$0xff] %vm2173_vm4, %v2140_v56 }
 0x135   : > { %v3950_v42 = vrot.slane %v3811_v21, 5  ;;  %3013 = vrot.lane.b32.xlu1 %v4992_v4, %s5322_s9  ;;  %v3563_v17 = vor.u32 %v3562_v35, %v6417_v31  ;;  %v1481_v45 = vshrl.u32 %v1177_v33, 16  ;;  %v1484_v0 = vshll.u32 %v1177_v33, 16  ;;  %v5303_v38 = vld [vmem:[#allocation2 + $0x9c] sm:$0xff]   ;;  %3046 = vst.msk [vmem:[#allocation3 + $0x30] sm:$0xff] %vm3039_vm6, %v3004_v18 }
 0x136   : > { %v1490_v55 = vshll.u32 %v1178_v48, 16  ;;  %3734 = vrot.lane.b32.xlu0 %v5023_v41, %s5325_s12  ;;  %v3269_v61 = vld [vmem:[#allocation2 + $0xa4] sm:$0x1]  ;;  %v3553_v36 = vor.u32 %v3552_v53, %v3549_v59  ;;  %v1494_v3 = vshrl.u32 %v1178_v48, 16  ;;  %v1500_v5 = vshll.u32 %v1179_v19, 16 }
 0x137   : > { %v3951_v58 = vsel %vm5404_vm9, %v3949_v50, %v3950_v42  ;;  %v3813_v2 = vld [vmem:[#allocation2 + $0xa0] sm:$0xf]  ;;  %vm6981_vm12 = vcmask 23552   ;;  %v3564_v23 = vrot.slane %v3563_v17, 4  ;;  %v3566_v25 = vshll.u32 %v3269_v61, 16  ;;  %v3182_v19 = vpop.permute.xlu0 %3181 }
 0x138   : > { %1137 = vst.msk [vmem:[#allocation3 + $0x60] sm:$0xff] %vm6981_vm12, %v5302_v47  ;;  %v5055_v16 = vcombine.low %v3948_v15, %v3951_v58  ;;  %v1483_v57 = vrot.slane %v1481_v45, 4  ;;  %v3814_v63 = vld [vmem:[#allocation2 + $0xa4] sm:$0x1]  ;;  %vm6982_vm1 = vmmov %vm6981_vm12  ;;  %v3554_v28 = vrot.slane %v3553_v36, 4  ;;  %v1486_v8 = vrot.slane %v1484_v0, 5 }
 0x139   : > { %1138 = vst.msk [vmem:[#allocation3 + $0x68] sm:$0xff] %vm6982_vm1, %v5303_v38  ;;  %v1492_v43 = vrot.slane %v1490_v55, 5  ;;  %v1496_v37 = vrot.slane %v1494_v3, 4  ;;  %v1180_v21 = vld [vmem:[#allocation2 + $0x9c] sm:$0xf]  ;;  %3191 = vrot.lane.b32.xlu1 %v5287_v7, %s5320_s7  ;;  %v3568_v44 = vrot.slane %v3566_v25, 5 }
 0x13a   : > { %v1502_v39 = vrot.slane %v1500_v5, 5  ;;  %v5040_v46 = vrot.slane %v3812_v51, 9  ;;  %v3954_v60 = vrot.slane %v3813_v2, 5  ;;  %v3559_v33 = vsel %vm5494_vm14, %v3554_v28, %v6417_v31  ;;  %4055 = vrot.lane.b32.xlu0 %v5055_v16, %s5323_s10  ;;  %v1181_v30 = vld [vmem:[#allocation2 + $0xa0] sm:$0xf]  ;;  %3224 = vst.msk [vmem:[#allocation3 + $0x30] sm:$0xff] %vm3217_vm8, %v3182_v19 }
 0x13b   : > { %v1487_v4 = vor.u32 %v1486_v8, %v1483_v57  ;;  %v1497_v40 = vor.u32 %v1496_v37, %v1492_v43  ;;  %v3957_v22 = vrot.slane %v3814_v63, 5  ;;  %v1182_v27 = vld [vmem:[#allocation2 + $0xa4] sm:$0x1]  ;;  %v3569_v29 = vsel %vm5494_vm14, %v3564_v23, %v3568_v44  ;;  %v1725_v15 = vld [vmem:[#allocation2 + $0x90] sm:$0xe] }
 0x13c   : > { %v3955_v48 = vsel %vm5404_vm9, %v5040_v46, %v3954_v60  ;;  %v3956_v14 = vrot.slane %v3954_v60, 4  ;;  %v1505_v35 = vshrl.u32 %v1180_v21, 16  ;;  %v1726_v50 = vld [vmem:[#allocation2 + $0x94] sm:$0xf]  ;;  %v5024_v32 = vcombine.low %v3559_v33, %v3569_v29  ;;  %v1727_v17 = vld [vmem:[#allocation2 + $0x98] sm:$0x1] }
 0x13d   : > { %v1488_v31 = vrot.slane %v1487_v4, 4  ;;  %v1498_v7 = vrot.slane %v1497_v40, 4  ;;  %v1508_v41 = vshll.u32 %v1180_v21, 16  ;;  %v1514_v42 = vshll.u32 %v1181_v30, 16  ;;  %v1728_v56 = vld [vmem:[#allocation2 + $0x9c] sm:$0xe] }
 0x13e   : > { %v3958_v59 = vsel %vm5404_vm9, %v3956_v14, %v3957_v22  ;;  %v1507_v53 = vrot.slane %v1505_v35, 4  ;;  %v1518_v47 = vshrl.u32 %v1181_v30, 16  ;;  %3736 = vrot.lane.b32.xlu1 %v5024_v32, %s5325_s12  ;;  %v1729_v38 = vld [vmem:[#allocation2 + $0xa0] sm:$0xf]  ;;  %v1524_v3 = vshll.u32 %v1182_v27, 16  ;;  %v2685_v60 = vpop.permute.xlu1 %2684 }
 0x13f   : > { %v1493_v45 = vsel %vm5494_vm14, %v1488_v31, %v1492_v43  ;;  %v1503_v0 = vsel %vm5494_vm14, %v1498_v7, %v1502_v39  ;;  %v5056_v55 = vcombine.low %v3955_v48, %v3958_v59  ;;  %v1510_v51 = vrot.slane %v1508_v41, 5  ;;  %v1730_v5 = vld [vmem:[#allocation2 + $0xa4] sm:$0x1]  ;;  %v975_v57 = vld [vmem:[#allocation2 + $0xa8] sm:$0xf]  ;;  %2726 = vst.msk [vmem:[#allocation3 + $0x38] sm:$0xff] %vm2718_vm5, %v2685_v60 }
 0x140   : > { %v4897_v61 = vcombine.low %v1493_v45, %v1503_v0  ;;  %v1516_v36 = vrot.slane %v1514_v42, 5  ;;  %v1520_v58 = vrot.slane %v1518_v47, 4  ;;  %v4913_v23 = vrot.slane %v1725_v15, 9  ;;  %v2226_v43 = vld [vmem:[#allocation2 + $0x9c] sm:$0xf] }
 0x141   : > { %4057 = vrot.lane.b32.xlu0 %v5056_v55, %s5323_s10  ;;  %v1511_v2 = vor.u32 %v1510_v51, %v1507_v53  ;;  %v1874_v25 = vrot.slane %v1726_v50, 5  ;;  %v1877_v16 = vrot.slane %v1727_v17, 5  ;;  %v1526_v18 = vrot.slane %v1524_v3, 5  ;;  %v2227_v46 = vld [vmem:[#allocation2 + $0xa0] sm:$0xf]  ;;  %v3727_v50 = vpop.permute.xlu0 %3726 }
 0x142   : > { %v1521_v63 = vor.u32 %v1520_v58, %v1516_v36  ;;  %v4914_v28 = vrot.slane %v1728_v56, 9  ;;  %v1881_v8 = vrot.slane %v1729_v38, 5  ;;  %1648 = vrot.lane.b32.xlu1 %v4897_v61, %s5321_s8  ;;  %v1884_v39 = vrot.slane %v1730_v5, 5  ;;  %v2228_v30 = vld [vmem:[#allocation2 + $0xa4] sm:$0x1]  ;;  %v3006_v47 = vpop.permute.xlu1 %3005  ;;  %v5288_v17 = vld [vmem:[#allocation2 + $0x9c] sm:$0xff]  }
 0x143   : > { %v1512_v37 = vrot.slane %v1511_v2, 4  ;;  %v1875_v21 = vsel %vm5404_vm9, %v4913_v23, %v1874_v25  ;;  %v1876_v44 = vrot.slane %v1874_v25, 4  ;;  %v793_v22 = vrot.slane %v791_v26, 7  ;;  %v979_v27 = vld [vmem:[#allocation2 + $0xb0] sm:$0x1]  ;;  %3047 = vst.msk [vmem:[#allocation3 + $0x38] sm:$0xff] %vm3039_vm6, %v3006_v47 }
 0x144   : > { %v1522_v33 = vrot.slane %v1521_v63, 4  ;;  %v1882_v4 = vsel %vm5404_vm9, %v4914_v28, %v1881_v8  ;;  %v1883_v40 = vrot.slane %v1881_v8, 4  ;;  %v2771_v29 = vld [vmem:[#allocation2 + $0x9c] sm:$0xe]  ;;  %v976_v35 = vsel %vm5439_vm10, %v6412_v12, %v975_v57  ;;  %v2772_v7 = vld [vmem:[#allocation2 + $0xa0] sm:$0xf] }
 0x145   : > { %v1517_v48 = vsel %vm5494_vm14, %v1512_v37, %v1516_v36  ;;  %v1878_v14 = vsel %vm5404_vm9, %v1876_v44, %v1877_v16  ;;  %v2527_v15 = vshrl.u32 %v2226_v43, 16  ;;  %v796_v31 = vor.u32 %v794_v13, %v793_v22  ;;  %977 = vst [vmem:[#allocation2 + $0xa8] sm:$0xf] %v976_v35  ;;  %v327_v42 = vld [vmem:[#allocation2 + $0xb4] sm:$0x1]  ;;  %v4048_v34 = vpop.permute.xlu0 %4047 }
 0x146   : > { %v1527_v26 = vsel %vm5494_vm14, %v1522_v33, %v1526_v18  ;;  %v4929_v19 = vcombine.low %v1875_v21, %v1878_v14  ;;  %v1885_v32 = vsel %vm5404_vm9, %v1883_v40, %v1884_v39  ;;  %vm6983_vm12 = vcmask 195752   ;;  %v2773_v55 = vld [vmem:[#allocation2 + $0xa4] sm:$0x1]  ;;  %v3184_v16 = vpop.permute.xlu1 %3183 }
 0x147   : > { %3769 = vst.msk [vmem:[#allocation3 + $0x30] sm:$0xff] %vm6983_vm12, %v3727_v50  ;;  %v4898_v41 = vcombine.low %v1517_v48, %v1527_v26  ;;  %v4930_v59 = vcombine.low %v1882_v4, %v1885_v32  ;;  %v798_v53 = vrot.slane %v793_v22, 4  ;;  %v2529_v12 = vrot.slane %v2527_v15, 4  ;;  %vm6984_vm1 = vmmov %vm6983_vm12 }
 0x148   : > { %1972 = vrot.lane.b32.xlu0 %v4929_v19, %s5318_s29  ;;  %v797_v45 = vsel %vm5449_vm11, %v789_v20, %v796_v31  ;;  %v2530_v52 = vshll.u32 %v2226_v43, 16  ;;  %v2536_v13 = vshll.u32 %v2227_v46, 16  ;;  %v2540_v0 = vshrl.u32 %v2227_v46, 16  ;;  %4090 = vst.msk [vmem:[#allocation3 + $0x30] sm:$0xff] %vm4083_vm13, %v4048_v34 }
 0x149   : > { %1650 = vrot.lane.b32.xlu1 %v4898_v41, %s5321_s8  ;;  %978 = vst.msk [vmem:[#allocation2 + $0xac] sm:$0xf] %vm270_vm0, %v797_v45  ;;  %v2546_v51 = vshll.u32 %v2228_v30, 16  ;;  %v980_v56 = vsel %vm5375_vm3, %v798_v53, %v979_v27  ;;  %v4977_v38 = vrot.slane %v2771_v29, 9  ;;  %v2917_v61 = vrot.slane %v2772_v7, 5 }
 0x14a   : > { %v2532_v36 = vrot.slane %v2530_v52, 5  ;;  %v2538_v58 = vrot.slane %v2536_v13, 5  ;;  %v2542_v20 = vrot.slane %v2540_v0, 4  ;;  %981 = vst [vmem:[#allocation2 + $0xb0] sm:$0x1] %v980_v56  ;;  %v6485_v3 = vpack.c.bf16 %v6383_v24, %v6383_v24  ;;  %3225 = vst.msk [vmem:[#allocation3 + $0x38] sm:$0xff] %vm3217_vm8, %v3184_v16 }
 0x14b   : > { %v2548_v5 = vrot.slane %v2546_v51, 5  ;;  %v2919_v2 = vrot.slane %v2917_v61, 4  ;;  %v2920_v23 = vrot.slane %v2773_v55, 5  ;;  %v328_v25 = vsel %vm5375_vm3, 0, %v327_v42 }
 0x14c   : > { %2149 = vrot.lane.b32.xlu0 %v5288_v17, %s5319_s30  ;;  %v2533_v57 = vor.u32 %v2532_v36, %v2529_v12  ;;  %v2543_v63 = vor.u32 %v2542_v20, %v2538_v58  ;;  %329 = vst [vmem:[#allocation2 + $0xb4] sm:$0x1] %v328_v25  ;;  %v800_v18 = vshrl.u32 %v6389_v10, 16  ;;  %v803_v28 = vshll.u32 %v6389_v10, 16  ;;  %v2229_v24 = vld [vmem:[#allocation2 + $0xa8] sm:$0xf] }
 0x14d   : > { %1974 = vrot.lane.b32.xlu1 %v4930_v59, %s5318_s29  ;;  %v2918_v8 = vsel %vm5404_vm9, %v4977_v38, %v2917_v61  ;;  %v2774_v43 = vld [vmem:[#allocation2 + $0xa8] sm:$0xe]  ;;  %v2551_v44 = vshrl.u32 %v2229_v24, 16  ;;  %v2554_v39 = vshll.u32 %v2229_v24, 16  ;;  %v2921_v46 = vsel %vm5404_vm9, %v2919_v2, %v2920_v23  ;;  %v4050_v26 = vpop.permute.xlu0 %4049 }
 0x14e   : > { %v2534_v37 = vrot.slane %v2533_v57, 4  ;;  %v2544_v21 = vrot.slane %v2543_v63, 4  ;;  %v4978_v60 = vrot.slane %v2774_v43, 9  ;;  %v802_v33 = vrot.slane %v800_v18, 7  ;;  %v3270_v50 = vld [vmem:[#allocation2 + $0xa8] sm:$0xf]  ;;  %v3729_v17 = vpop.permute.xlu1 %3728 }
 0x14f   : > { %v808_v10 = vshrl.u32 %v6485_v3, 16  ;;  %v2553_v27 = vrot.slane %v2551_v44, 4  ;;  %v2556_v14 = vrot.slane %v2554_v39, 5  ;;  %v4993_v32 = vcombine.low %v2918_v8, %v2921_v46  ;;  %v4106_v45 = vld [vmem:[#allocation3 + $0x30] sm:$0xff]  ;;  %3770 = vst.msk [vmem:[#allocation3 + $0x38] sm:$0xff] %vm6984_vm1, %v3729_v17 }
 0x150   : > { %v5289_v4 = vld [vmem:[#allocation2 + $0xa8] sm:$0xff]   ;;  %v2539_v40 = vsel %vm5494_vm14, %v2534_v37, %v2538_v58  ;;  %v2549_v22 = vsel %vm5494_vm14, %v2544_v21, %v2548_v5  ;;  %v805_v41 = vor.u32 %v803_v28, %v802_v33  ;;  %v806_v59 = vrot.slane %v802_v33, 4  ;;  %5214 = vmatprep.mubr.msk.bf16.mxu0 %vm4138_vm15, %v4106_v45  ;;  %v383_v58 = vld [vmem:[#allocation2 + $0xbc] sm:$0x1]  ;;  %4091 = vst.msk [vmem:[#allocation3 + $0x38] sm:$0xff] %vm4083_vm13, %v4050_v26  ;;  %v422_v26 = vld [vmem:[%s5411_s28 + $0xf0] sm:$0xff] }
 0x151   : > { %v2230_v30 = vld [vmem:[#allocation2 + $0xac] sm:$0xf]  ;;  %v4961_v29 = vcombine.low %v2539_v40, %v2549_v22  ;;  %v2231_v48 = vld [vmem:[#allocation2 + $0xb0] sm:$0x1]  ;;  %2151 = vrot.lane.b32.xlu1 %v5289_v4, %s5319_s30  ;;  %v2557_v53 = vor.u32 %v2556_v14, %v2553_v27  ;;  %v6506_v0 = vrot.slane %v808_v10, 7  ;;  %v811_v55 = vshll.u32 %v6485_v3, 16 }
 0x152   : > { %v2560_v35 = vshll.u32 %v2230_v30, 16  ;;  %v2564_v15 = vshrl.u32 %v2230_v30, 16  ;;  %v2570_v19 = vshll.u32 %v2231_v48, 16  ;;  %v2775_v31 = vld [vmem:[#allocation2 + $0xac] sm:$0xf]  ;;  %v3571_v25 = vshrl.u32 %v3270_v50, 16  ;;  %v1641_v8 = vpop.permute.xlu1 %1640 }
 0x153   : > { %v2776_v7 = vld [vmem:[#allocation2 + $0xb0] sm:$0x1]  ;;  %2694 = vrot.lane.b32.xlu0 %v4961_v29, %s5324_s11  ;;  %v2924_v47 = vrot.slane %v2775_v31, 5  ;;  %v982_v51 = vld [vmem:[#allocation2 + $0xb4] sm:$0xf]  ;;  %v2558_v56 = vrot.slane %v2557_v53, 4  ;;  %v813_v5 = vor.u32 %v811_v55, %v6506_v0  ;;  %v1965_v43 = vpop.permute.xlu0 %1964 }
 0x154   : > { %v2562_v12 = vrot.slane %v2560_v35, 5  ;;  %v2566_v42 = vrot.slane %v2564_v15, 4  ;;  %v2572_v52 = vrot.slane %v2570_v19, 5  ;;  %v2927_v13 = vrot.slane %v2776_v7, 5  ;;  %v3271_v36 = vld [vmem:[#allocation2 + $0xac] sm:$0xf] }
 0x155   : > { %v6513_v61 = vsel %vm5404_vm9, %v4978_v60, %v2924_v47  ;;  %v2926_v34 = vrot.slane %v2924_v47, 4  ;;  %v5292_v20 = vld [vmem:[#allocation2 + $0xa8] sm:$0xff]   ;;  %v815_v3 = vrot.slane %v6506_v0, 4  ;;  %v983_v2 = vsel %vm5439_vm10, %v805_v41, %v982_v51  ;;  %v3272_v23 = vld [vmem:[#allocation2 + $0xb0] sm:$0x1] }
 0x156   : > { %v2567_v38 = vor.u32 %v2566_v42, %v2562_v12  ;;  %v2563_v16 = vsel %vm5494_vm14, %v2558_v56, %v2562_v12  ;;  %984 = vst [vmem:[#allocation2 + $0xb4] sm:$0xf] %v983_v2  ;;  %v3574_v18 = vshll.u32 %v3270_v50, 16  ;;  %v3815_v28 = vld [vmem:[#allocation2 + $0xa8] sm:$0xe]  ;;  %v814_v21 = vsel %vm5449_vm11, %v806_v59, %v813_v5  ;;  %v1643_v19 = vpop.permute.xlu1 %1642 }
 0x157   : > { %3015 = vrot.lane.b32.xlu0 %v4993_v32, %s5322_s9  ;;  %v2928_v63 = vsel %vm5404_vm9, %v2926_v34, %v2927_v13  ;;  %v3816_v24 = vld [vmem:[#allocation2 + $0xac] sm:$0xf]  ;;  %v3573_v44 = vrot.slane %v3571_v25, 4  ;;  %v3580_v39 = vshll.u32 %v3271_v36, 16  ;;  %v3817_v46 = vld [vmem:[#allocation2 + $0xb0] sm:$0x1]  ;;  %v2142_v32 = vpop.permute.xlu0 %2141  ;;  %v461_v13 = vadd.f32 %v6376_v6, %v422_v26 }
 0x158   : > { %v2568_v57 = vrot.slane %v2567_v38, 4  ;;  %v4994_v37 = vcombine.low %v6513_v61, %v2928_v63  ;;  %v1183_v60 = vld [vmem:[#allocation2 + $0xa8] sm:$0xf]  ;;  %vm6985_vm12 = vcmask 48152   ;;  %985 = vst.msk [vmem:[#allocation2 + $0xb8] sm:$0xf] %vm270_vm0, %v814_v21 }
 0x159   : > { %1681 = vst.msk [vmem:[#allocation3 + $0x40] sm:$0xff] %vm6985_vm12, %v1641_v8  ;;  %v3576_v10 = vrot.slane %v3574_v18, 5  ;;  %v3584_v4 = vshrl.u32 %v3271_v36, 16  ;;  %v3590_v40 = vshll.u32 %v3272_v23, 16  ;;  %v6532_v22 = vld [vmem:[#allocation2 + $0xac] sm:$0xf]  ;;  %vm6986_vm1 = vmmov %vm6985_vm12 }
 0x15a   : > { %v2573_v33 = vsel %vm5494_vm14, %v2568_v57, %v2572_v52  ;;  %2005 = vst.msk [vmem:[#allocation3 + $0x40] sm:$0xff] %vm1996_vm2, %v1965_v43  ;;  %v3582_v27 = vrot.slane %v3580_v39, 5  ;;  %v384_v29 = vsel %vm5397_vm7, 0, %v383_v58  ;;  %v5041_v48 = vrot.slane %v3815_v28, 9  ;;  %v4107_v53 = vld [vmem:[#allocation3 + $0x38] sm:$0xff]  ;;  %v1967_v34 = vpop.permute.xlu1 %1966  ;;  %v423_v28 = vld [vmem:[%s5411_s28 + $0xf8] sm:$0xff] }
 0x15b   : > { %v4962_v30 = vcombine.low %v2563_v16, %v2573_v33  ;;  %3193 = vrot.lane.b32.xlu0 %v5292_v20, %s5320_s7  ;;  %v3577_v14 = vor.u32 %v3576_v10, %v3573_v44  ;;  %v3586_v35 = vrot.slane %v3584_v4, 4  ;;  %v3592_v15 = vrot.slane %v3590_v40, 5  ;;  %385 = vst [vmem:[#allocation2 + $0xbc] sm:$0x1] %v384_v29  ;;  %1682 = vst.msk [vmem:[#allocation3 + $0x48] sm:$0xff] %vm6986_vm1, %v1643_v19 }
 0x15c   : > { %v3961_v50 = vrot.slane %v3816_v24, 5  ;;  %v3964_v31 = vrot.slane %v3817_v46, 5  ;;  %v1529_v7 = vshrl.u32 %v1183_v60, 16  ;;  %v1532_v41 = vshll.u32 %v1183_v60, 16  ;;  %2182 = vst.msk [vmem:[#allocation3 + $0x40] sm:$0xff] %vm2173_vm4, %v2142_v32  ;;  %5215 = vmatmul.mubr.msk.bf16.gmra.mrb[12].mxu0 %vm4138_vm15, %v4107_v53 }
 0x15d   : > { %2696 = vrot.lane.b32.xlu1 %v4962_v30, %s5324_s11  ;;  %v1538_v59 = vshll.u32 %v6532_v22, 16  ;;  %v3578_v12 = vrot.slane %v3577_v14, 4  ;;  %v3587_v42 = vor.u32 %v3586_v35, %v3582_v27  ;;  %v3273_v17 = vld [vmem:[#allocation2 + $0xb4] sm:$0xf]  ;;  %v1185_v61 = vld [vmem:[#allocation2 + $0xb0] sm:$0x1] }
 0x15e   : > { %v3963_v47 = vrot.slane %v3961_v50, 4  ;;  %v1531_v45 = vrot.slane %v1529_v7, 4  ;;  %v1534_v52 = vrot.slane %v1532_v41, 5  ;;  %v3595_v56 = vshrl.u32 %v3273_v17, 16  ;;  %2006 = vst.msk [vmem:[#allocation3 + $0x48] sm:$0xff] %vm1996_vm2, %v1967_v34 }
 0x15f   : > { %v3583_v55 = vsel %vm5494_vm14, %v3578_v12, %v3582_v27  ;;  %v3588_v51 = vrot.slane %v3587_v42, 4  ;;  %v3598_v38 = vshll.u32 %v3273_v17, 16  ;;  %v5293_v36 = vld [vmem:[#allocation2 + $0xb4] sm:$0xff]   ;;  %v3962_v20 = vsel %vm5404_vm9, %v5041_v48, %v3961_v50  ;;  %v1731_v27 = vld [vmem:[#allocation2 + $0xa8] sm:$0xe] }
 0x160   : > { %v3274_v58 = vld [vmem:[#allocation2 + $0xb8] sm:$0xf]  ;;  %v3965_v5 = vsel %vm5404_vm9, %v3963_v47, %v3964_v31  ;;  %v1535_v2 = vor.u32 %v1534_v52, %v1531_v45  ;;  %v6552_v23 = vrot.slane %v1538_v59, 5  ;;  %v3597_v16 = vrot.slane %v3595_v56, 4  ;;  %v1186_v21 = vld [vmem:[#allocation2 + $0xb4] sm:$0xf] }
 0x161   : > { %3017 = vrot.lane.b32.xlu1 %v4994_v37, %s5322_s9  ;;  %v3593_v25 = vsel %vm5494_vm14, %v3588_v51, %v3592_v15  ;;  %v3600_v57 = vrot.slane %v3598_v38, 5  ;;  %v3604_v63 = vshll.u32 %v3274_v58, 16  ;;  %v6557_v18 = vld [vmem:[#allocation2 + $0xb8] sm:$0xf]  ;;  %v3608_v43 = vshrl.u32 %v3274_v58, 16  ;;  %v5304_v31 = vld [vmem:[#allocation2 + $0xa8] sm:$0xff]  }
 0x162   : > { %v5025_v24 = vcombine.low %v3583_v55, %v3593_v25  ;;  %v986_v8 = vld [vmem:[#allocation2 + $0xbc] sm:$0x1]  ;;  %v6560_v37 = vrot.slane %v1535_v2, 4  ;;  %v1542_v60 = vshrl.u32 %v6532_v22, 16  ;;  %v6569_v33 = vld [vmem:[#allocation2 + $0xb8] sm:$0xf]  ;;  %v2687_v10 = vpop.permute.xlu0 %2686  ;;  %v5057_v40 = vcombine.low %v3962_v20, %v3965_v5 }
 0x163   : > { %v987_v44 = vsel %vm5375_vm3, %v815_v3, %v986_v8  ;;  %v3601_v39 = vor.u32 %v3600_v57, %v3597_v16  ;;  %v6566_v46 = vrot.slane %v3604_v63, 5  ;;  %v3610_v4 = vrot.slane %v3608_v43, 4  ;;  %v3818_v0 = vld [vmem:[#allocation2 + $0xb4] sm:$0xe]  ;;  %v1732_v29 = vld [vmem:[#allocation2 + $0xac] sm:$0xf] }
 0x164   : > { %3738 = vrot.lane.b32.xlu0 %v5025_v24, %s5325_s12  ;;  %988 = vst [vmem:[#allocation2 + $0xbc] sm:$0x1] %v987_v44  ;;  %v1548_v30 = vshll.u32 %v1185_v61, 16  ;;  %v462_v3 = vadd.f32 %v6376_v6, %v423_v28  ;;  %2727 = vst.msk [vmem:[#allocation3 + $0x40] sm:$0xff] %vm2718_vm5, %v2687_v10  ;;  %v1544_v48 = vrot.slane %v1542_v60, 4  ;;  %v3968_v22 = vrot.slane %v6557_v18, 5  ;;  %v2144_v6 = vpop.permute.xlu1 %2143 }
 0x165   : > { %3195 = vrot.lane.b32.xlu1 %v5293_v36, %s5320_s7  ;;  %v1553_v14 = vshrl.u32 %v1186_v21, 16  ;;  %v1733_v35 = vld [vmem:[#allocation2 + $0xb0] sm:$0x1]  ;;  %v6576_v15 = vpack.c.bf16 %v461_v13, %v461_v13  ;;  %v3611_v50 = vor.u32 %v3610_v4, %v6566_v46  ;;  %v1541_v26 = vsel %vm5494_vm14, %v6560_v37, %v6552_v23  ;;  %v1735_v12 = vld [vmem:[#allocation2 + $0xb8] sm:$0xf]  ;;  %2183 = vst.msk [vmem:[#allocation3 + $0x48] sm:$0xff] %vm2173_vm4, %v2144_v6 }
 0x166   : > { %v1556_v19 = vshll.u32 %v1186_v21, 16  ;;  %v1562_v32 = vshll.u32 %v6569_v33, 16  ;;  %v3602_v7 = vrot.slane %v3601_v39, 4  ;;  %v1545_v41 = vor.u32 %v1544_v48, %v6552_v23  ;;  %v3008_v42 = vpop.permute.xlu0 %3007  ;;  %v1734_v38 = vld [vmem:[#allocation2 + $0xb4] sm:$0xe] }
 0x167   : > { %v1550_v59 = vrot.slane %v1548_v30, 5  ;;  %v5042_v53 = vrot.slane %v3818_v0, 9  ;;  %v3612_v47 = vrot.slane %v3611_v50, 4  ;;  %v3970_v17 = vrot.slane %v3968_v22, 4  ;;  %3048 = vst.msk [vmem:[#allocation3 + $0x40] sm:$0xff] %vm3039_vm6, %v3008_v42  ;;  %v5305_v20 = vld [vmem:[#allocation2 + $0xb4] sm:$0xff]  }
 0x168   : > { %4059 = vrot.lane.b32.xlu0 %v5057_v40, %s5323_s10  ;;  %v1555_v45 = vrot.slane %v1553_v14, 4  ;;  %v1558_v52 = vrot.slane %v1556_v19, 5  ;;  %vm6987_vm12 = vcmask 23552   ;;  %v1546_v13 = vrot.slane %v1545_v41, 4  ;;  %v330_v37 = vld [vmem:[#allocation2 + $0xc0] sm:$0x1] }
 0x169   : > { %1139 = vst.msk [vmem:[#allocation3 + $0x70] sm:$0xff] %vm6987_vm12, %v5304_v31  ;;  %v1566_v55 = vshrl.u32 %v6569_v33, 16  ;;  %v4915_v51 = vrot.slane %v1731_v27, 9  ;;  %v1888_v56 = vrot.slane %v1732_v29, 5  ;;  %v6590_v34 = vrot.slane %v1562_v32, 5  ;;  %vm6988_vm1 = vmmov %vm6987_vm12 }
 0x16a   : > { %v1559_v61 = vor.u32 %v1558_v52, %v1555_v45  ;;  %v1891_v36 = vrot.slane %v1733_v35, 5  ;;  %v1895_v58 = vrot.slane %v1735_v12, 5  ;;  %v3607_v2 = vsel %vm5494_vm14, %v3602_v7, %v6566_v46  ;;  %v3186_v18 = vpop.permute.xlu0 %3185  ;;  %1140 = vst.msk [vmem:[#allocation3 + $0x78] sm:$0xff] %vm6988_vm1, %v5305_v20  ;;  %v2233_v6 = vld [vmem:[#allocation2 + $0xb8] sm:$0xf] }
 0x16b   : > { %v3275_v5 = vld [vmem:[#allocation2 + $0xbc] sm:$0x1]  ;;  %v1551_v23 = vsel %vm5494_vm14, %v1546_v13, %v1550_v59  ;;  %v3969_v16 = vsel %vm5404_vm9, %v5042_v53, %v3968_v22  ;;  %v5147_v63 = vpack.c.bf16 %v462_v3, %v462_v3  ;;  %v1889_v8 = vsel %vm5404_vm9, %v4915_v51, %v1888_v56  ;;  %3226 = vst.msk [vmem:[#allocation3 + $0x40] sm:$0xff] %vm3217_vm8, %v3186_v18  ;;  %v2232_v3 = vld [vmem:[#allocation2 + $0xb4] sm:$0xf] }
 0x16c   : > { %v3820_v25 = vld [vmem:[#allocation2 + $0xbc] sm:$0x1]  ;;  %v3614_v28 = vshll.u32 %v3275_v5, 16  ;;  %v4916_v43 = vrot.slane %v1734_v38, 9  ;;  %v4899_v21 = vcombine.low %v1541_v26, %v1551_v23  ;;  %v1568_v44 = vrot.slane %v1566_v55, 4 }
 0x16d   : > { %v1188_v57 = vld [vmem:[#allocation2 + $0xbc] sm:$0x1]  ;;  %v3971_v24 = vrot.slane %v3820_v25, 5  ;;  %v1890_v46 = vrot.slane %v1888_v56, 4  ;;  %v1560_v4 = vrot.slane %v1559_v61, 4  ;;  %v1897_v40 = vrot.slane %v1895_v58, 4 }
 0x16e   : > { %v1572_v39 = vshll.u32 %v1188_v57, 16  ;;  %v1736_v60 = vld [vmem:[#allocation2 + $0xbc] sm:$0x1]  ;;  %v3616_v33 = vrot.slane %v3614_v28, 5  ;;  %v1569_v0 = vor.u32 %v1568_v44, %v6590_v34  ;;  %v331_v35 = vsel %vm5375_vm3, 0, %v330_v37  ;;  %v5294_v61 = vld [vmem:[#allocation2 + $0xb4] sm:$0xff]  }
 0x16f   : > { %v3972_v10 = vsel %vm5404_vm9, %v3970_v17, %v3971_v24  ;;  %v1892_v29 = vsel %vm5404_vm9, %v1890_v46, %v1891_v36  ;;  %v1898_v14 = vrot.slane %v1736_v60, 5  ;;  %332 = vst [vmem:[#allocation2 + $0xc0] sm:$0x1] %v331_v35  ;;  %v817_v19 = vshrl.u32 %v6576_v15, 16  ;;  %v386_v53 = vld [vmem:[#allocation2 + $0xc8] sm:$0x1] }
 0x170   : > { %v5058_v30 = vcombine.low %v3969_v16, %v3972_v10  ;;  %v1574_v27 = vrot.slane %v1572_v39, 5  ;;  %v3617_v48 = vsel %vm5494_vm14, %v3612_v47, %v3616_v33  ;;  %v4931_v22 = vcombine.low %v1889_v8, %v1892_v29  ;;  %v2777_v45 = vld [vmem:[#allocation2 + $0xb4] sm:$0xe]  ;;  %v2778_v56 = vld [vmem:[#allocation2 + $0xb8] sm:$0xf] }
 0x171   : > { %v5026_v50 = vcombine.low %v3607_v2, %v3617_v48  ;;  %v1570_v26 = vrot.slane %v1569_v0, 4  ;;  %v820_v32 = vshll.u32 %v6576_v15, 16  ;;  %v6617_v31 = vsel %vm5404_vm9, %v4916_v43, %v1895_v58  ;;  %v2234_v15 = vld [vmem:[#allocation2 + $0xbc] sm:$0x1]  ;;  %v333_v57 = vld [vmem:[#allocation2 + $0xcc] sm:$0x1] }
 0x172   : > { %4061 = vrot.lane.b32.xlu0 %v5058_v30, %s5323_s10  ;;  %v825_v7 = vshrl.u32 %v5147_v63, 16  ;;  %v828_v41 = vshll.u32 %v5147_v63, 16  ;;  %v2575_v59 = vshrl.u32 %v2232_v3, 16  ;;  %v1565_v12 = vsel %vm5494_vm14, %v1560_v4, %v6590_v34  ;;  %v2779_v5 = vld [vmem:[#allocation2 + $0xbc] sm:$0x1] }
 0x173   : > { %3740 = vrot.lane.b32.xlu1 %v5026_v50, %s5325_s12  ;;  %v1575_v42 = vsel %vm5494_vm14, %v1570_v26, %v1574_v27  ;;  %v819_v47 = vrot.slane %v817_v19, 7  ;;  %v2578_v17 = vshll.u32 %v2232_v3, 16  ;;  %v1899_v52 = vsel %vm5404_vm9, %v1897_v40, %v1898_v14  ;;  %v389_v63 = vld [vmem:[#allocation2 + $0xd4] sm:$0x1]  ;;  %v3280_v43 = vld [vmem:[#allocation2 + $0xd0] sm:$0xf] }
 0x174   : > { %v6627_v13 = vrot.slane %v825_v7, 7  ;;  %v2577_v55 = vrot.slane %v2575_v59, 4  ;;  %v2584_v51 = vshll.u32 %v2233_v6, 16  ;;  %v2588_v20 = vshrl.u32 %v2233_v6, 16 }
 0x175   : > { %v2689_v38 = vpop.permute.xlu1 %2688  ;;  %v822_v34 = vor.u32 %v820_v32, %v819_v47  ;;  %v823_v36 = vrot.slane %v819_v47, 4  ;;  %v2580_v58 = vrot.slane %v2578_v17, 5  ;;  %v4900_v2 = vcombine.low %v1565_v12, %v1575_v42 }
 0x176   : > { %1976 = vrot.lane.b32.xlu0 %v4931_v22, %s5318_s29  ;;  %2728 = vst.msk [vmem:[#allocation3 + $0x48] sm:$0xff] %vm2718_vm5, %v2689_v38  ;;  %v830_v23 = vor.u32 %v828_v41, %v6627_v13  ;;  %v2586_v25 = vrot.slane %v2584_v51, 5  ;;  %v2594_v16 = vshll.u32 %v2234_v15, 16  ;;  %v2590_v28 = vrot.slane %v2588_v20, 4  ;;  %v989_v44 = vld [vmem:[#allocation2 + $0xc0] sm:$0xf] }
 0x177   : > { %1652 = vrot.lane.b32.xlu1 %v4899_v21, %s5321_s8  ;;  %v2581_v18 = vor.u32 %v2580_v58, %v2577_v55  ;;  %v387_v24 = vsel %vm5397_vm7, 0, %v386_v53  ;;  %v4979_v8 = vrot.slane %v2777_v45, 9  ;;  %v2931_v46 = vrot.slane %v2778_v56, 5  ;;  %v3731_v10 = vpop.permute.xlu0 %3730 }
 0x178   : > { %v831_v37 = vsel %vm5449_vm11, %v823_v36, %v830_v23  ;;  %v2596_v39 = vrot.slane %v2594_v16, 5  ;;  %388 = vst [vmem:[#allocation2 + $0xc8] sm:$0x1] %v387_v24  ;;  %v2934_v60 = vrot.slane %v2779_v5, 5  ;;  %v990_v21 = vsel %vm5439_vm10, %v822_v34, %v989_v44 }
 0x179   : > { %v3010_v33 = vpop.permute.xlu1 %3009  ;;  %992 = vst.msk [vmem:[#allocation2 + $0xc4] sm:$0xf] %vm270_vm0, %v831_v37  ;;  %v2582_v4 = vrot.slane %v2581_v18, 4  ;;  %v2591_v40 = vor.u32 %v2590_v28, %v2586_v25  ;;  %v334_v54 = vsel %vm5375_vm3, 0, %v333_v57  ;;  %vm6989_vm11 = vcmask 195752  }
 0x17a   : > { %2153 = vrot.lane.b32.xlu0 %v5294_v61, %s5319_s30  ;;  %3049 = vst.msk [vmem:[#allocation3 + $0x48] sm:$0xff] %vm3039_vm6, %v3010_v33  ;;  %v4932_v30 = vcombine.low %v6617_v31, %v1899_v52  ;;  %991 = vst [vmem:[#allocation2 + $0xc0] sm:$0xf] %v990_v21  ;;  %v2933_v0 = vrot.slane %v2931_v46, 4  ;;  %v390_v49 = vsel %vm5397_vm7, 0, %v389_v63  ;;  %v3652_v3 = vshll.u32 %v3280_v43, 16 }
 0x17b   : > { %3771 = vst.msk [vmem:[#allocation3 + $0x40] sm:$0xff] %vm6989_vm11, %v3731_v10  ;;  %335 = vst [vmem:[#allocation2 + $0xcc] sm:$0x1] %v334_v54  ;;  %1654 = vrot.lane.b32.xlu1 %v4900_v2, %s5321_s8  ;;  %v2587_v27 = vsel %vm5494_vm14, %v2582_v4, %v2586_v25  ;;  %v2592_v29 = vrot.slane %v2591_v40, 4  ;;  %v3656_v48 = vshrl.u32 %v3280_v43, 16  ;;  %v832_v22 = vrot.slane %v6627_v13, 4  ;;  %v4052_v35 = vpop.permute.xlu0 %4051 }
 0x17c   : > { %391 = vst [vmem:[#allocation2 + $0xd4] sm:$0x1] %v390_v49  ;;  %v2932_v9 = vsel %vm5404_vm9, %v4979_v8, %v2931_v46  ;;  %v2935_v26 = vsel %vm5404_vm9, %v2933_v0, %v2934_v60  ;;  %4092 = vst.msk [vmem:[#allocation3 + $0x40] sm:$0xff] %vm4083_vm13, %v4052_v35  ;;  %v6661_v6 = vrot.slane %v3652_v3, 5 }
 0x17d   : > { %v3188_v14 = vpop.permute.xlu1 %3187  ;;  %v2597_v50 = vsel %vm5494_vm14, %v2592_v29, %v2596_v39  ;;  %v6663_v31 = vrot.slane %v3656_v48, 4  ;;  %v4995_v59 = vcombine.low %v2932_v9, %v2935_v26  ;;  %vm6990_vm0 = vmmov %vm6989_vm11  ;;  %vm4689_vm11 = vcmask 519168  }
 0x17e   : > { %3227 = vst.msk [vmem:[#allocation3 + $0x48] sm:$0xff] %vm3217_vm8, %v3188_v14  ;;  %v4963_v19 = vcombine.low %v2587_v27, %v2597_v50  ;;  %v6682_v27 = vld [vmem:[#allocation2 + $0xd0] sm:$0xf]  ;;  %vm6994_vm10 = vmmov %vm6990_vm0 }
 0x17f   : > { %1978 = vrot.lane.b32.xlu1 %v4932_v30, %s5318_s29  ;;  %v993_v32 = vld [vmem:[#allocation2 + $0xc8] sm:$0x1]  ;;  %v3659_v49 = vor.u32 %v6663_v31, %v6661_v6  ;;  %vm6997_vm1 = vmmov %vm6990_vm0 }
 0x180   : > { %2698 = vrot.lane.b32.xlu0 %v4963_v19, %s5324_s11  ;;  %v994_v7 = vsel %vm5375_vm3, %v832_v22, %v993_v32  ;;  %v2236_v41 = vld [vmem:[#allocation2 + $0xc4] sm:$0xf]  ;;  %vm6991_vm3 = vcmask 48152  }
 0x181   : > { %v6668_v53 = vld [vmem:[#allocation2 + $0xc4] sm:$0xf]  ;;  %v3733_v12 = vpop.permute.xlu1 %3732  ;;  %995 = vst [vmem:[#allocation2 + $0xc8] sm:$0x1] %v994_v7  ;;  %v2235_v47 = vld [vmem:[#allocation2 + $0xc0] sm:$0xf]  ;;  %v4054_v51 = vpop.permute.xlu0 %4053  ;;  %vm6992_vm7 = vmmov %vm6991_vm3 }
 0x182   : > { %v5295_v42 = vld [vmem:[#allocation2 + $0xc0] sm:$0xff]   ;;  %v2608_v15 = vshll.u32 %v2236_v41, 16  ;;  %3772 = vst.msk [vmem:[#allocation3 + $0x48] sm:$0xff] %vm6990_vm0, %v3733_v12  ;;  %v2599_v17 = vshrl.u32 %v2235_v47, 16  ;;  %v2602_v45 = vshll.u32 %v2235_v47, 16  ;;  %v2612_v52 = vshrl.u32 %v2236_v41, 16  ;;  %vm6996_vm12 = vmmov %vm6991_vm3 }
 0x183   : > { %v2780_v13 = vld [vmem:[#allocation2 + $0xc0] sm:$0xe]  ;;  %v2938_v55 = vrot.slane %v6668_v53, 5  ;;  %2155 = vrot.lane.b32.xlu1 %v5295_v42, %s5319_s30  ;;  %4093 = vst.msk [vmem:[#allocation3 + $0x48] sm:$0xff] %vm4083_vm13, %v4054_v51  ;;  %v3277_v2 = vld [vmem:[#allocation2 + $0xc4] sm:$0xf]  ;;  %s6764_s30 = scalar_lea.vmem %s6959_s4, %s5115_s27 }
 0x184   : > { %v6673_v1 = vrot.slane %v2608_v15, 5  ;;  %v4980_v56 = vrot.slane %v2780_v13, 9  ;;  %v2601_v38 = vrot.slane %v2599_v17, 4  ;;  %v2604_v61 = vrot.slane %v2602_v45, 5  ;;  %3019 = vrot.lane.b32.xlu0 %v4995_v59, %s5322_s9  ;;  %v5298_v58 = vld [vmem:[#allocation2 + $0xc0] sm:$0xff]   ;;  %v4108_v3 = vld [vmem:[#allocation3 + $0x40] sm:$0xff] }
 0x185   : > { %v2614_v34 = vrot.slane %v2612_v52, 4  ;;  %v2940_v36 = vrot.slane %v2938_v55, 4  ;;  %v1645_v20 = vpop.permute.xlu1 %1644  ;;  %v3276_v5 = vld [vmem:[#allocation2 + $0xc0] sm:$0xf]  ;;  %v3279_v63 = vld [vmem:[#allocation2 + $0xcc] sm:$0xf]  ;;  %5218 = vmatprep.mubr.msk.bf16.mxu1 %vm4138_vm15, %v4108_v3 }
 0x186   : > { %1683 = vst.msk [vmem:[#allocation3 + $0x50] sm:$0xff] %vm6991_vm3, %v1645_v20  ;;  %v2605_v23 = vor.u32 %v2604_v61, %v2601_v38  ;;  %v3619_v16 = vshrl.u32 %v3276_v5, 16  ;;  %v3622_v57 = vshll.u32 %v3276_v5, 16  ;;  %v3628_v18 = vshll.u32 %v3277_v2, 16  ;;  %v3281_v0 = vld [vmem:[#allocation2 + $0xd4] sm:$0x1] }
 0x187   : > { %v2615_v25 = vor.u32 %v2614_v34, %v6673_v1  ;;  %v3632_v28 = vshrl.u32 %v3277_v2, 16  ;;  %v3643_v24 = vshrl.u32 %v3279_v63, 16  ;;  %v3646_v8 = vshll.u32 %v3279_v63, 16  ;;  %v3821_v50 = vld [vmem:[#allocation2 + $0xc0] sm:$0xe] }
 0x188   : > { %v2237_v43 = vld [vmem:[#allocation2 + $0xc8] sm:$0x1]  ;;  %v2606_v37 = vrot.slane %v2605_v23, 4  ;;  %3197 = vrot.lane.b32.xlu0 %v5298_v58, %s5320_s7  ;;  %v3621_v10 = vrot.slane %v3619_v16, 4  ;;  %v3624_v21 = vrot.slane %v3622_v57, 5  ;;  %v1969_v4 = vpop.permute.xlu0 %1968  ;;  %v3630_v40 = vrot.slane %v3628_v18, 5 }
 0x189   : > { %v2616_v44 = vrot.slane %v2615_v25, 4  ;;  %v2782_v39 = vld [vmem:[#allocation2 + $0xc8] sm:$0x1]  ;;  %v2618_v46 = vshll.u32 %v2237_v43, 16  ;;  %v3634_v54 = vrot.slane %v3632_v28, 4  ;;  %v1647_v29 = vpop.permute.xlu1 %1646  ;;  %2007 = vst.msk [vmem:[#allocation3 + $0x50] sm:$0xff] %vm1996_vm2, %v1969_v4  ;;  %v2939_v26 = vsel %vm5404_vm9, %v4980_v56, %v2938_v55 }
 0x18a   : > { %v2941_v60 = vrot.slane %v2782_v39, 5  ;;  %v3278_v33 = vld [vmem:[#allocation2 + $0xc8] sm:$0x1]  ;;  %v2611_v48 = vsel %vm5494_vm14, %v2606_v37, %v6673_v1  ;;  %v3625_v14 = vor.u32 %v3624_v21, %v3621_v10  ;;  %v3645_v35 = vrot.slane %v3643_v24, 4  ;;  %v3822_v9 = vld [vmem:[#allocation2 + $0xc4] sm:$0xf] }
 0x18b   : > { %v3638_v30 = vshll.u32 %v3278_v33, 16  ;;  %v2620_v22 = vrot.slane %v2618_v46, 5  ;;  %1684 = vst.msk [vmem:[#allocation3 + $0x58] sm:$0xff] %vm6992_vm7, %v1647_v29  ;;  %v3635_v19 = vor.u32 %v3634_v54, %v3630_v40  ;;  %v3648_v31 = vrot.slane %v3646_v8, 5  ;;  %v3823_v7 = vld [vmem:[#allocation2 + $0xc8] sm:$0x1] }
 0x18c   : > { %v4109_v41 = vld [vmem:[#allocation3 + $0x48] sm:$0xff]  ;;  %v2942_v53 = vsel %vm5404_vm9, %v2940_v36, %v2941_v60  ;;  %v3626_v12 = vrot.slane %v3625_v14, 4  ;;  %v3662_v42 = vshll.u32 %v3281_v0, 16  ;;  %v2146_v47 = vpop.permute.xlu0 %2145  ;;  %v5043_v52 = vrot.slane %v3821_v50, 9  ;;  %v3824_v23 = vld [vmem:[#allocation2 + $0xcc] sm:$0xe] }
 0x18d   : > { %v3640_v32 = vrot.slane %v3638_v30, 5  ;;  %v2621_v59 = vsel %vm5494_vm14, %v2616_v44, %v2620_v22  ;;  %5219 = vmatmul.mubr.msk.bf16.vlgmr.msra.gmra.mrb[0].mxu1 %vm4138_vm15, %v4109_v41  ;;  %v3636_v17 = vrot.slane %v3635_v19, 4  ;;  %v3649_v45 = vor.u32 %v3648_v31, %v3645_v35  ;;  %v1971_v13 = vpop.permute.xlu1 %1970  ;;  %2184 = vst.msk [vmem:[#allocation3 + $0x50] sm:$0xff] %vm2173_vm4, %v2146_v47  ;;  %v3826_v25 = vld [vmem:[#allocation2 + $0xd4] sm:$0x1]  ;;  %v5299_v57 = vld [vmem:[#allocation2 + $0xcc] sm:$0xff]  }
 0x18e   : > { %v4964_v15 = vcombine.low %v2611_v48, %v2621_v59  ;;  %v3631_v55 = vsel %vm5494_vm14, %v3626_v12, %v3630_v40  ;;  %v3975_v51 = vrot.slane %v3822_v9, 5  ;;  %v3978_v1 = vrot.slane %v3823_v7, 5  ;;  %2008 = vst.msk [vmem:[#allocation3 + $0x58] sm:$0xff] %vm1996_vm2, %v1971_v13  ;;  %v6754_v41 = vld [vmem:[%s6958_s3] ss:$0 sm:$0xff] }
 0x18f   : > { %v3982_v56 = vrot.slane %v6682_v27, 5  ;;  %v4996_v38 = vcombine.low %v2939_v26, %v2942_v53  ;;  %v3641_v61 = vsel %vm5494_vm14, %v3636_v17, %v3640_v32  ;;  %v3660_v34 = vrot.slane %v3659_v49, 4 }
 0x190   : > { %2700 = vrot.lane.b32.xlu1 %v4964_v15, %s5324_s11  ;;  %v3664_v36 = vrot.slane %v3662_v42, 5  ;;  %v5027_v58 = vcombine.low %v3631_v55, %v3641_v61  ;;  %v3650_v20 = vrot.slane %v3649_v45, 4  ;;  %v3976_v5 = vsel %vm5404_vm9, %v5043_v52, %v3975_v51 }
 0x191   : > { %v3977_v2 = vrot.slane %v3975_v51, 4  ;;  %v5044_v18 = vrot.slane %v3824_v23, 9  ;;  %v3984_v8 = vrot.slane %v3982_v56, 4  ;;  %v3985_v43 = vrot.slane %v3826_v25, 5 }
 0x192   : > { %3742 = vrot.lane.b32.xlu0 %v5027_v58, %s5325_s12  ;;  %v3655_v28 = vsel %vm5494_vm14, %v3650_v20, %v6661_v6  ;;  %v3665_v24 = vsel %vm5494_vm14, %v3660_v34, %v3664_v36  ;;  %vm6995_vm14 = vmmov %vm6991_vm3 }
 0x193   : > { %v3979_v16 = vsel %vm5404_vm9, %v3977_v2, %v3978_v1  ;;  %v5028_v44 = vcombine.low %v3655_v28, %v3665_v24  ;;  %v3983_v46 = vsel %vm5404_vm9, %v5044_v18, %v3982_v56  ;;  %v3986_v6 = vsel %vm5404_vm9, %v3984_v8, %v3985_v43  ;;  %vm6993_vm9 = vmmov %vm6990_vm0 }
 0x194   : > { %3021 = vrot.lane.b32.xlu1 %v4996_v38, %s5322_s9  ;;  %v5059_v63 = vcombine.low %v3976_v5, %v3979_v16  ;;  %v5060_v60 = vcombine.low %v3983_v46, %v3986_v6  ;;  %vm4387_vm0 = vcmask 523264   ;;  %vm6998_vm3 = vmmov %vm6997_vm1  ;;  %s265_s9 = scalar_lea.vmem %s6960_s5, %s7003_s22 }
 0x195   : > { %v2691_v37 = vpop.permute.xlu0 %2690 }
 0x196   : > { %4063 = vrot.lane.b32.xlu0 %v5059_v63, %s5323_s10  ;;  %2729 = vst.msk [vmem:[#allocation3 + $0x50] sm:$0xff] %vm2718_vm5, %v2691_v37  ;;  %v2148_v39 = vpop.permute.xlu1 %2147 }
 0x197   : > { %2185 = vst.msk [vmem:[#allocation3 + $0x58] sm:$0xff] %vm2173_vm4, %v2148_v39 }
 0x198   : > { %3199 = vrot.lane.b32.xlu1 %v5299_v57, %s5320_s7 }
 0x199   : > { %v3012_v62 = vpop.permute.xlu0 %3011 }
 0x19a   : > { %3050 = vst.msk [vmem:[#allocation3 + $0x50] sm:$0xff] %vm3039_vm6, %v3012_v62 }
 0x19c   : > { %3744 = vrot.lane.b32.xlu1 %v5028_v44, %s5325_s12  ;;  %s268_s12 = scalar_lea.vmem %s6961_s6, %s7003_s22 }
 0x19d   : > { %v3190_v33 = vpop.permute.xlu0 %3189 }
 0x19e   : > { %3228 = vst.msk [vmem:[#allocation3 + $0x50] sm:$0xff] %vm3217_vm8, %v3190_v33 }
 0x1a0   : > { %4065 = vrot.lane.b32.xlu1 %v5060_v60, %s5323_s10 }
 0x1a3   : > { %v2693_v10 = vpop.permute.xlu1 %2692 }
 0x1a4   : > { %2730 = vst.msk [vmem:[#allocation3 + $0x58] sm:$0xff] %vm2718_vm5, %v2693_v10 }
 0x1a7   : > { %v3014_v21 = vpop.permute.xlu1 %3013 }
 0x1a8   : > { %3051 = vst.msk [vmem:[#allocation3 + $0x58] sm:$0xff] %vm3039_vm6, %v3014_v21  ;;  %v3735_v11 = vpop.permute.xlu0 %3734 }
 0x1a9   : > { %3773 = vst.msk [vmem:[#allocation3 + $0x50] sm:$0xff] %vm6993_vm9, %v3735_v11  ;;  %vm6999_vm9 = vmmov %vm6992_vm7 }
 0x1ab   : > { %v3192_v4 = vpop.permute.xlu1 %3191 }
 0x1ac   : > { %3229 = vst.msk [vmem:[#allocation3 + $0x58] sm:$0xff] %vm3217_vm8, %v3192_v4  ;;  %v4056_v40 = vpop.permute.xlu0 %4055 }
 0x1ad   : > { %4094 = vst.msk [vmem:[#allocation3 + $0x50] sm:$0xff] %vm4083_vm13, %v4056_v40 }
 0x1b0   : > { %v3737_v54 = vpop.permute.xlu1 %3736 }
 0x1b1   : > { %3774 = vst.msk [vmem:[#allocation3 + $0x58] sm:$0xff] %vm6994_vm10, %v3737_v54 }
 0x1b3   : > { %v4058_v30 = vpop.permute.xlu0 %4057 }
 0x1b4   : > { %4095 = vst.msk [vmem:[#allocation3 + $0x58] sm:$0xff] %vm4083_vm13, %v4058_v30  ;;  %v1649_v0 = vpop.permute.xlu1 %1648  ;;  %v4110_v49 = vld [vmem:[#allocation3 + $0x50] sm:$0xff] }
 0x1b5   : > { %1685 = vst.msk [vmem:[#allocation3 + $0x60] sm:$0xff] %vm6995_vm14, %v1649_v0  ;;  %5222 = vmatprep.mubr.msk.bf16.mxu1 %vm4138_vm15, %v4110_v49 }
 0x1ba   : > { %v1973_v27 = vpop.permute.xlu0 %1972 }
 0x1bb   : > { %v1651_v29 = vpop.permute.xlu1 %1650  ;;  %2009 = vst.msk [vmem:[#allocation3 + $0x60] sm:$0xff] %vm1996_vm2, %v1973_v27  ;;  %v4111_v3 = vld [vmem:[#allocation3 + $0x58] sm:$0xff] }
 0x1bc   : > { %1686 = vst.msk [vmem:[#allocation3 + $0x68] sm:$0xff] %vm6996_vm12, %v1651_v29  ;;  %5223 = vmatmul.mubr.msk.bf16.gmra.mrb[4].mxu1 %vm4138_vm15, %v4111_v3 }
 0x1be   : > { %v2150_v48 = vpop.permute.xlu0 %2149 }
 0x1bf   : > { %v1975_v22 = vpop.permute.xlu1 %1974  ;;  %2186 = vst.msk [vmem:[#allocation3 + $0x60] sm:$0xff] %vm2173_vm4, %v2150_v48 }
 0x1c0   : > { %2010 = vst.msk [vmem:[#allocation3 + $0x68] sm:$0xff] %vm1996_vm2, %v1975_v22 }
 0x1c3   : > { %v2152_v14 = vpop.permute.xlu1 %2151 }
 0x1c4   : > { %2187 = vst.msk [vmem:[#allocation3 + $0x68] sm:$0xff] %vm2173_vm4, %v2152_v14 }
 0x1c5   : > { %v2695_v35 = vpop.permute.xlu0 %2694 }
 0x1c6   : > { %2731 = vst.msk [vmem:[#allocation3 + $0x60] sm:$0xff] %vm2718_vm5, %v2695_v35 }
 0x1c9   : > { %v3016_v50 = vpop.permute.xlu0 %3015 }
 0x1ca   : > { %3052 = vst.msk [vmem:[#allocation3 + $0x60] sm:$0xff] %vm3039_vm6, %v3016_v50 }
 0x1cd   : > { %v3194_v9 = vpop.permute.xlu0 %3193 }
 0x1ce   : > { %3230 = vst.msk [vmem:[#allocation3 + $0x60] sm:$0xff] %vm3217_vm8, %v3194_v9 }
 0x1cf   : > { %v2697_v26 = vpop.permute.xlu1 %2696 }
 0x1d0   : > { %2732 = vst.msk [vmem:[#allocation3 + $0x68] sm:$0xff] %vm2718_vm5, %v2697_v26 }
 0x1d3   : > { %v3018_v19 = vpop.permute.xlu1 %3017 }
 0x1d4   : > { %3053 = vst.msk [vmem:[#allocation3 + $0x68] sm:$0xff] %vm3039_vm6, %v3018_v19 }
 0x1d6   : > { %v3739_v31 = vpop.permute.xlu0 %3738 }
 0x1d7   : > { %v3196_v32 = vpop.permute.xlu1 %3195  ;;  %3775 = vst.msk [vmem:[#allocation3 + $0x60] sm:$0xff] %vm6997_vm1, %v3739_v31 }
 0x1d8   : > { %3231 = vst.msk [vmem:[#allocation3 + $0x68] sm:$0xff] %vm3217_vm8, %v3196_v32 }
 0x1da   : > { %v4060_v7 = vpop.permute.xlu0 %4059 }
 0x1db   : > { %4096 = vst.msk [vmem:[#allocation3 + $0x60] sm:$0xff] %vm4083_vm13, %v4060_v7 }
 0x1de   : > { %v5204_v59 = vpop.f32.mrb[0].mxu0 }
 0x1df   : > { %v4237_v53 = vadd.f32 %v5204_v59, %v6754_v41  ;;  %v4228_v12 = vpop.f32.mrb[1].mxu0 }
 0x1e0   : > { %v4229_v42 = vadd.f32 %v6754_v41, %v4228_v12  ;;  %v5205_v47 = vpop.f32.mrb[2].mxu0 }
 0x1e1   : > { %v4357_v17 = vmax.f32 %v4237_v53, 0.0  ;;  %v4240_v45 = vadd.f32 %v5205_v47, %v6754_v41  ;;  %v4231_v52 = vpop.f32.mrb[3].mxu0 }
 0x1e2   : > { %v4112_v15 = vld [vmem:[#allocation3 + $0x60] sm:$0xff]  ;;  %v4355_v55 = vmax.f32 %v4229_v42, 0.0  ;;  %v4232_v51 = vadd.f32 %v6754_v41, %v4231_v52 }
 0x1e3   : > { %5226 = vmatprep.mubr.msk.bf16.mxu1 %vm4138_vm15, %v4112_v15  ;;  %v5150_v1 = vpack.c.bf16 %v4357_v17, %v4357_v17  ;;  %v4358_v56 = vmax.f32 %v4240_v45, 0.0  ;;  %v4461_v58 = vmul.f32 %v4357_v17, %v4357_v17  ;;  %v4391_v43 = vsel %vm4387_vm0, %v4357_v17, 0.0 }
 0x1e4   : > { %v4062_v13 = vpop.permute.xlu0 %4061  ;;  %v4459_v61 = vmul.f32 %v4355_v55, %v4355_v55  ;;  %v5148_v34 = vpack.c.bf16 %v4355_v55, %v4355_v55  ;;  %v4356_v36 = vmax.f32 %v4232_v51, 0.0  ;;  %v4388_v2 = vsel %vm4387_vm0, %v4355_v55, 0.0 }
 0x1e5   : > { %v3741_v38 = vpop.permute.xlu1 %3740  ;;  %4692 = vst.msk [vmem:[%s6764_s30 + $0x8] sm:$0xf] %vm4689_vm11, %v5150_v1  ;;  %v5151_v20 = vpack.c.bf16 %v4358_v56, %v4358_v56  ;;  %v4462_v63 = vmul.f32 %v4358_v56, %v4358_v56  ;;  %v4494_v11 = vsel %vm4387_vm0, %v4461_v58, 0.0  ;;  %v4393_v54 = vsel %vm4387_vm0, %v4358_v56, 0.0 }
 0x1e6   : > { %3776 = vst.msk [vmem:[#allocation3 + $0x68] sm:$0xff] %vm6998_vm3, %v3741_v38  ;;  %v4389_v23 = vsel %vm4387_vm0, %v4356_v36, 0.0  ;;  %v4460_v25 = vmul.f32 %v4356_v36, %v4356_v36  ;;  %v5149_v16 = vpack.c.bf16 %v4356_v36, %v4356_v36  ;;  %v4491_v37 = vsel %vm4387_vm0, %v4459_v61, 0.0 }
 0x1e7   : > { %4097 = vst.msk [vmem:[#allocation3 + $0x68] sm:$0xff] %vm4083_vm13, %v4062_v13  ;;  %v5208_v57 = vpop.f32.mrb[4].mxu0  ;;  %v4390_v18 = vadd.f32 %v4389_v23, %v4388_v2  ;;  %v4496_v30 = vsel %vm4387_vm0, %v4462_v63, 0.0 }
 0x1e8   : > { %v1977_v5 = vpop.permute.xlu0 %1976  ;;  %4690 = vst.msk [vmem:[%s6764_s30] sm:$0xf] %vm4689_vm11, %v5148_v34  ;;  %4693 = vst.msk [vmem:[%s6764_s30 + $0xc] sm:$0xf] %vm4689_vm11, %v5151_v20  ;;  %v4253_v28 = vadd.f32 %v5208_v57, %v6754_v41  ;;  %v4244_v24 = vpop.f32.mrb[5].mxu0  ;;  %v4492_v44 = vsel %vm4387_vm0, %v4460_v25, 0.0 }
 0x1e9   : > { %v1653_v8 = vpop.permute.xlu1 %1652  ;;  %4691 = vst.msk [vmem:[%s6764_s30 + $0x4] sm:$0xf] %vm4689_vm11, %v5149_v16  ;;  %v4245_v39 = vadd.f32 %v6754_v41, %v4244_v24  ;;  %v5209_v46 = vpop.f32.mrb[6].mxu0  ;;  %v4392_v6 = vadd.f32 %v4391_v43, %v4390_v18  ;;  %v4493_v62 = vadd.f32 %v4492_v44, %v4491_v37 }
 0x1ea   : > { %1687 = vst.msk [vmem:[#allocation3 + $0x70] sm:$0xff] %vm6992_vm7, %v1653_v8  ;;  %v4361_v60 = vmax.f32 %v4253_v28, 0.0  ;;  %v4256_v33 = vadd.f32 %v5209_v46, %v6754_v41  ;;  %v4247_v10 = vpop.f32.mrb[7].mxu0 }
 0x1eb   : > { %2011 = vst.msk [vmem:[#allocation3 + $0x70] sm:$0xff] %vm1996_vm2, %v1977_v5  ;;  %v4359_v4 = vmax.f32 %v4245_v39, 0.0  ;;  %v4248_v40 = vadd.f32 %v6754_v41, %v4247_v10  ;;  %v4495_v0 = vadd.f32 %v4494_v11, %v4493_v62  ;;  %v4394_v29 = vadd.f32 %v4393_v54, %v4392_v6 }
 0x1ec   : > { %v2154_v21 = vpop.permute.xlu0 %2153  ;;  %v5154_v49 = vpack.c.bf16 %v4361_v60, %v4361_v60  ;;  %v4362_v50 = vmax.f32 %v4256_v33, 0.0  ;;  %v4465_v59 = vmul.f32 %v4361_v60, %v4361_v60  ;;  %v4399_v17 = vsel %vm4387_vm0, %v4361_v60, 0.0 }
 0x1ed   : > { %2188 = vst.msk [vmem:[#allocation3 + $0x70] sm:$0xff] %vm2173_vm4, %v2154_v21  ;;  %v1655_v27 = vpop.permute.xlu1 %1654  ;;  %v4395_v3 = vsel %vm4387_vm0, %v4359_v4, 0.0  ;;  %v4463_v48 = vmul.f32 %v4359_v4, %v4359_v4  ;;  %v5152_v22 = vpack.c.bf16 %v4359_v4, %v4359_v4  ;;  %v4497_v35 = vadd.f32 %v4496_v30, %v4495_v0 }
 0x1ee   : > { %1688 = vst.msk [vmem:[#allocation3 + $0x78] sm:$0xff] %vm6999_vm9, %v1655_v27  ;;  %v4113_v14 = vld [vmem:[#allocation3 + $0x68] sm:$0xff]  ;;  %v4360_v9 = vmax.f32 %v4248_v40, 0.0  ;;  %v4396_v26 = vadd.f32 %v4395_v3, %v4394_v29  ;;  %v5155_v31 = vpack.c.bf16 %v4362_v50, %v4362_v50  ;;  %v4466_v45 = vmul.f32 %v4362_v50, %v4362_v50 }
 0x1ef   : > { %4696 = vst.msk [vmem:[%s6764_s30 + $0x18] sm:$0xf] %vm4689_vm11, %v5154_v49  ;;  %5227 = vmatmul.mubr.msk.bf16.gmra.mrb[8].mxu1 %vm4138_vm15, %v4113_v14  ;;  %v4498_v19 = vsel %vm4387_vm0, %v4463_v48, 0.0  ;;  %4694 = vst.msk [vmem:[%s6764_s30 + $0x10] sm:$0xf] %vm4689_vm11, %v5152_v22  ;;  %v4502_v1 = vsel %vm4387_vm0, %v4465_v59, 0.0 }
 0x1f0   : > { %v4499_v32 = vadd.f32 %v4498_v19, %v4497_v35  ;;  %v4397_v53 = vsel %vm4387_vm0, %v4360_v9, 0.0  ;;  %v4464_v12 = vmul.f32 %v4360_v9, %v4360_v9  ;;  %v5153_v42 = vpack.c.bf16 %v4360_v9, %v4360_v9  ;;  %4697 = vst.msk [vmem:[%s6764_s30 + $0x1c] sm:$0xf] %vm4689_vm11, %v5155_v31 }
 0x1f1   : > { %v1979_v7 = vpop.permute.xlu1 %1978  ;;  %v4398_v15 = vadd.f32 %v4397_v53, %v4396_v26  ;;  %v4401_v56 = vsel %vm4387_vm0, %v4362_v50, 0.0  ;;  %v4504_v36 = vsel %vm4387_vm0, %v4466_v45, 0.0 }
 0x1f2   : > { %2012 = vst.msk [vmem:[#allocation3 + $0x78] sm:$0xff] %vm1996_vm2, %v1979_v7  ;;  %v2699_v47 = vpop.permute.xlu0 %2698  ;;  %v4500_v52 = vsel %vm4387_vm0, %v4464_v12, 0.0  ;;  %vm7000_vm2 = vmmov %vm6997_vm1 }
 0x1f3   : > { %2733 = vst.msk [vmem:[#allocation3 + $0x70] sm:$0xff] %vm2718_vm5, %v2699_v47  ;;  %v4400_v13 = vadd.f32 %v4399_v17, %v4398_v15  ;;  %v4501_v55 = vadd.f32 %v4500_v52, %v4499_v32 }
 0x1f4   : > { %4695 = vst.msk [vmem:[%s6764_s30 + $0x14] sm:$0xf] %vm4689_vm11, %v5153_v42 }
 0x1f5   : > { %v2156_v51 = vpop.permute.xlu1 %2155  ;;  %v4503_v61 = vadd.f32 %v4502_v1, %v4501_v55  ;;  %v4402_v34 = vadd.f32 %v4401_v56, %v4400_v13 }
 0x1f6   : > { %2189 = vst.msk [vmem:[#allocation3 + $0x78] sm:$0xff] %vm2173_vm4, %v2156_v51  ;;  %v3020_v38 = vpop.permute.xlu0 %3019  ;;  %vm7001_vm4 = vmmov %vm6997_vm1 }
 0x1f7   : > { %3054 = vst.msk [vmem:[#allocation3 + $0x70] sm:$0xff] %vm3039_vm6, %v3020_v38  ;;  %v4505_v58 = vadd.f32 %v4504_v36, %v4503_v61 }
 0x1fa   : > { %v3198_v20 = vpop.permute.xlu0 %3197 }
 0x1fb   : > { %3232 = vst.msk [vmem:[#allocation3 + $0x70] sm:$0xff] %vm3217_vm8, %v3198_v20 }
 0x201   : > { %v5212_v5 = vpop.f32.mrb[8].mxu0 }
 0x202   : > { %v2701_v2 = vpop.permute.xlu1 %2700  ;;  %v4269_v23 = vadd.f32 %v5212_v5, %v6754_v41  ;;  %v4260_v25 = vpop.f32.mrb[9].mxu0 }
 0x203   : > { %2734 = vst.msk [vmem:[#allocation3 + $0x78] sm:$0xff] %vm2718_vm5, %v2701_v2  ;;  %v4261_v16 = vadd.f32 %v6754_v41, %v4260_v25  ;;  %v5213_v57 = vpop.f32.mrb[10].mxu0  ;;  %vm4457_vm5 = vcmask 516096  }
 0x204   : > { %v4365_v63 = vmax.f32 %v4269_v23, 0.0  ;;  %v4272_v18 = vadd.f32 %v5213_v57, %v6754_v41  ;;  %v4263_v28 = vpop.f32.mrb[11].mxu0  ;;  %v3743_v24 = vpop.permute.xlu0 %3742 }
 0x205   : > { %v4363_v8 = vmax.f32 %v4261_v16, 0.0  ;;  %v4264_v43 = vadd.f32 %v6754_v41, %v4263_v28  ;;  %3777 = vst.msk [vmem:[#allocation3 + $0x70] sm:$0xff] %vm7000_vm2, %v3743_v24 }
 0x206   : > { %v3022_v37 = vpop.permute.xlu1 %3021  ;;  %v5158_v44 = vpack.c.bf16 %v4365_v63, %v4365_v63  ;;  %v4366_v39 = vmax.f32 %v4272_v18, 0.0  ;;  %v4469_v33 = vmul.f32 %v4365_v63, %v4365_v63  ;;  %v4407_v29 = vsel %vm4387_vm0, %v4365_v63, 0.0 }
 0x207   : > { %3055 = vst.msk [vmem:[#allocation3 + $0x78] sm:$0xff] %vm3039_vm6, %v3022_v37  ;;  %v4403_v46 = vsel %vm4387_vm0, %v4363_v8, 0.0  ;;  %v4467_v6 = vmul.f32 %v4363_v8, %v4363_v8  ;;  %v5156_v62 = vpack.c.bf16 %v4363_v8, %v4363_v8  ;;  %v4364_v60 = vmax.f32 %v4264_v43, 0.0 }
 0x208   : > { %4700 = vst.msk [vmem:[%s6764_s30 + $0x28] sm:$0xf] %vm4689_vm11, %v5158_v44  ;;  %v4404_v10 = vadd.f32 %v4403_v46, %v4402_v34  ;;  %v4064_v21 = vpop.permute.xlu0 %4063  ;;  %v5159_v4 = vpack.c.bf16 %v4366_v39, %v4366_v39  ;;  %v4470_v3 = vmul.f32 %v4366_v39, %v4366_v39  ;;  %v4510_v35 = vsel %vm4387_vm0, %v4469_v33, 0.0 }
 0x209   : > { %v4506_v11 = vsel %vm4387_vm0, %v4467_v6, 0.0  ;;  %4698 = vst.msk [vmem:[%s6764_s30 + $0x20] sm:$0xf] %vm4689_vm11, %v5156_v62  ;;  %v4405_v40 = vsel %vm4387_vm0, %v4364_v60, 0.0  ;;  %v4468_v54 = vmul.f32 %v4364_v60, %v4364_v60  ;;  %v5157_v27 = vpack.c.bf16 %v4364_v60, %v4364_v60 }
 0x20a   : > { %v3200_v30 = vpop.permute.xlu1 %3199  ;;  %4098 = vst.msk [vmem:[#allocation3 + $0x70] sm:$0xff] %vm4083_vm13, %v4064_v21  ;;  %v4507_v0 = vadd.f32 %v4506_v11, %v4505_v58  ;;  %v4406_v49 = vadd.f32 %v4405_v40, %v4404_v10  ;;  %v4409_v50 = vsel %vm4387_vm0, %v4366_v39, 0.0  ;;  %v4512_v32 = vsel %vm4387_vm0, %v4470_v3, 0.0 }
 0x20b   : > { %3233 = vst.msk [vmem:[#allocation3 + $0x78] sm:$0xff] %vm3217_vm8, %v3200_v30  ;;  %v4508_v48 = vsel %vm4387_vm0, %v4468_v54, 0.0 }
 0x20c   : > { %4701 = vst.msk [vmem:[%s6764_s30 + $0x2c] sm:$0xf] %vm4689_vm11, %v5159_v4  ;;  %v4408_v22 = vadd.f32 %v4407_v29, %v4406_v49  ;;  %v4509_v14 = vadd.f32 %v4508_v48, %v4507_v0  ;;  %4699 = vst.msk [vmem:[%s6764_s30 + $0x24] sm:$0xf] %vm4689_vm11, %v5157_v27 }
 0x20e   : > { %v3745_v9 = vpop.permute.xlu1 %3744  ;;  %v4511_v26 = vadd.f32 %v4510_v35, %v4509_v14  ;;  %v4410_v19 = vadd.f32 %v4409_v50, %v4408_v22 }
 0x20f   : > { %3778 = vst.msk [vmem:[#allocation3 + $0x78] sm:$0xff] %vm7001_vm4, %v3745_v9 }
 0x210   : > { %v4513_v31 = vadd.f32 %v4512_v32, %v4511_v26 }
 0x211   : > { %v4114_v7 = vld [vmem:[#allocation3 + $0x70] sm:$0xff] }
 0x212   : > { %v4066_v59 = vpop.permute.xlu1 %4065  ;;  %5230 = vmatprep.mubr.msk.bf16.mxu1 %vm4138_vm15, %v4114_v7 }
 0x213   : > { %4099 = vst.msk [vmem:[#allocation3 + $0x78] sm:$0xff] %vm4083_vm13, %v4066_v59 }
 0x21a   : > { %v4115_v53 = vld [vmem:[#allocation3 + $0x78] sm:$0xff] }
 0x21b   : > { %5231 = vmatmul.mubr.msk.bf16.gmra.mrb[12].mxu1 %vm4138_vm15, %v4115_v53 }
 0x22f   : > { %v5216_v12 = vpop.f32.mrb[12].mxu0 }
 0x230   : > { %v4285_v42 = vadd.f32 %v5216_v12, %v6754_v41  ;;  %v4276_v47 = vpop.f32.mrb[13].mxu0 }
 0x231   : > { %v4277_v15 = vadd.f32 %v6754_v41, %v4276_v47  ;;  %v5217_v17 = vpop.f32.mrb[14].mxu0 }
 0x232   : > { %v4369_v45 = vmax.f32 %v4285_v42, 0.0  ;;  %v4288_v52 = vadd.f32 %v5217_v17, %v6754_v41  ;;  %v4279_v13 = vpop.f32.mrb[15].mxu0 }
 0x233   : > { %v4367_v55 = vmax.f32 %v4277_v15, 0.0  ;;  %v4280_v51 = vadd.f32 %v6754_v41, %v4279_v13 }
 0x234   : > { %v5162_v1 = vpack.c.bf16 %v4369_v45, %v4369_v45  ;;  %v4370_v56 = vmax.f32 %v4288_v52, 0.0  ;;  %v4473_v58 = vmul.f32 %v4369_v45, %v4369_v45  ;;  %v4415_v18 = vsel %vm4387_vm0, %v4369_v45, 0.0 }
 0x235   : > { %v4411_v38 = vsel %vm4387_vm0, %v4367_v55, 0.0  ;;  %v4471_v61 = vmul.f32 %v4367_v55, %v4367_v55  ;;  %v5160_v34 = vpack.c.bf16 %v4367_v55, %v4367_v55  ;;  %v4368_v36 = vmax.f32 %v4280_v51, 0.0 }
 0x236   : > { %4704 = vst.msk [vmem:[%s6764_s30 + $0x38] sm:$0xf] %vm4689_vm11, %v5162_v1  ;;  %v4412_v20 = vadd.f32 %v4411_v38, %v4410_v19  ;;  %v5163_v2 = vpack.c.bf16 %v4370_v56, %v4370_v56  ;;  %v4474_v28 = vmul.f32 %v4370_v56, %v4370_v56  ;;  %v4518_v37 = vsel %vm4387_vm0, %v4473_v58, 0.0 }
 0x237   : > { %v4514_v5 = vsel %vm4387_vm0, %v4471_v61, 0.0  ;;  %4702 = vst.msk [vmem:[%s6764_s30 + $0x30] sm:$0xf] %vm4689_vm11, %v5160_v34  ;;  %v4413_v23 = vsel %vm4387_vm0, %v4368_v36, 0.0  ;;  %v4472_v25 = vmul.f32 %v4368_v36, %v4368_v36  ;;  %v5161_v63 = vpack.c.bf16 %v4368_v36, %v4368_v36 }
 0x238   : > { %v4515_v16 = vadd.f32 %v4514_v5, %v4513_v31  ;;  %v4414_v57 = vadd.f32 %v4413_v23, %v4412_v20  ;;  %4705 = vst.msk [vmem:[%s6764_s30 + $0x3c] sm:$0xf] %vm4689_vm11, %v5163_v2  ;;  %v4417_v44 = vsel %vm4387_vm0, %v4370_v56, 0.0  ;;  %v4520_v6 = vsel %vm4387_vm0, %v4474_v28, 0.0 }
 0x239   : > { %v4516_v24 = vsel %vm4387_vm0, %v4472_v25, 0.0  ;;  %4703 = vst.msk [vmem:[%s6764_s30 + $0x34] sm:$0xf] %vm4689_vm11, %v5161_v63 }
 0x23a   : > { %v4416_v8 = vadd.f32 %v4415_v18, %v4414_v57  ;;  %v4517_v43 = vadd.f32 %v4516_v24, %v4515_v16 }
 0x23c   : > { %v4519_v39 = vadd.f32 %v4518_v37, %v4517_v43  ;;  %v4418_v46 = vadd.f32 %v4417_v44, %v4416_v8 }
 0x23e   : > { %v4521_v62 = vadd.f32 %v4520_v6, %v4519_v39 }
 0x260   : > { %v5220_v60 = vpop.f32.mrb[0].mxu1 }
 0x261   : > { %v4301_v33 = vadd.f32 %v5220_v60, %v6754_v41  ;;  %v4292_v10 = vpop.f32.mrb[1].mxu1 }
 0x262   : > { %v4293_v21 = vadd.f32 %v6754_v41, %v4292_v10  ;;  %v5221_v11 = vpop.f32.mrb[2].mxu1 }
 0x263   : > { %v4373_v4 = vmax.f32 %v4301_v33, 0.0  ;;  %v4304_v40 = vadd.f32 %v5221_v11, %v6754_v41  ;;  %v4295_v54 = vpop.f32.mrb[3].mxu1 }
 0x264   : > { %v4371_v30 = vmax.f32 %v4293_v21, 0.0  ;;  %v4296_v0 = vadd.f32 %v6754_v41, %v4295_v54 }
 0x265   : > { %v5166_v49 = vpack.c.bf16 %v4373_v4, %v4373_v4  ;;  %v4374_v27 = vmax.f32 %v4304_v40, 0.0  ;;  %v4477_v14 = vmul.f32 %v4373_v4, %v4373_v4  ;;  %v4423_v59 = vsel %vm4387_vm0, %v4373_v4, 0.0 }
 0x266   : > { %v4419_v29 = vsel %vm4387_vm0, %v4371_v30, 0.0  ;;  %v4475_v3 = vmul.f32 %v4371_v30, %v4371_v30  ;;  %v5164_v48 = vpack.c.bf16 %v4371_v30, %v4371_v30  ;;  %v4372_v22 = vmax.f32 %v4296_v0, 0.0 }
 0x267   : > { %4708 = vst.msk [vmem:[%s6764_s30 + $0x48] sm:$0xf] %vm4689_vm11, %v5166_v49  ;;  %v4420_v35 = vadd.f32 %v4419_v29, %v4418_v46  ;;  %v5167_v9 = vpack.c.bf16 %v4374_v27, %v4374_v27  ;;  %v4478_v53 = vmul.f32 %v4374_v27, %v4374_v27  ;;  %v4526_v15 = vsel %vm4387_vm0, %v4477_v14, 0.0 }
 0x268   : > { %v4522_v50 = vsel %vm4387_vm0, %v4475_v3, 0.0  ;;  %4706 = vst.msk [vmem:[%s6764_s30 + $0x40] sm:$0xf] %vm4689_vm11, %v5164_v48  ;;  %v4421_v26 = vsel %vm4387_vm0, %v4372_v22, 0.0  ;;  %v4476_v19 = vmul.f32 %v4372_v22, %v4372_v22  ;;  %v5165_v7 = vpack.c.bf16 %v4372_v22, %v4372_v22 }
 0x269   : > { %v4523_v32 = vadd.f32 %v4522_v50, %v4521_v62  ;;  %v4422_v31 = vadd.f32 %v4421_v26, %v4420_v35  ;;  %4709 = vst.msk [vmem:[%s6764_s30 + $0x4c] sm:$0xf] %vm4689_vm11, %v5167_v9  ;;  %v4425_v17 = vsel %vm4387_vm0, %v4374_v27, 0.0  ;;  %v4528_v13 = vsel %vm4387_vm0, %v4478_v53, 0.0 }
 0x26a   : > { %v4524_v12 = vsel %vm4387_vm0, %v4476_v19, 0.0  ;;  %4707 = vst.msk [vmem:[%s6764_s30 + $0x44] sm:$0xf] %vm4689_vm11, %v5165_v7 }
 0x26b   : > { %v4424_v42 = vadd.f32 %v4423_v59, %v4422_v31  ;;  %v4525_v47 = vadd.f32 %v4524_v12, %v4523_v32 }
 0x26d   : > { %v4527_v45 = vadd.f32 %v4526_v15, %v4525_v47  ;;  %v4426_v52 = vadd.f32 %v4425_v17, %v4424_v42 }
 0x26f   : > { %v4529_v55 = vadd.f32 %v4528_v13, %v4527_v45 }
 0x28f   : > { %v5224_v51 = vpop.f32.mrb[4].mxu1 }
 0x290   : > { %v4317_v1 = vadd.f32 %v5224_v51, %v6754_v41  ;;  %v4308_v56 = vpop.f32.mrb[5].mxu1 }
 0x291   : > { %v4309_v38 = vadd.f32 %v6754_v41, %v4308_v56  ;;  %v5225_v61 = vpop.f32.mrb[6].mxu1 }
 0x292   : > { %v4377_v34 = vmax.f32 %v4317_v1, 0.0  ;;  %v4320_v36 = vadd.f32 %v5225_v61, %v6754_v41  ;;  %v4311_v58 = vpop.f32.mrb[7].mxu1 }
 0x293   : > { %v4375_v20 = vmax.f32 %v4309_v38, 0.0  ;;  %v4312_v5 = vadd.f32 %v6754_v41, %v4311_v58 }
 0x294   : > { %v5170_v2 = vpack.c.bf16 %v4377_v34, %v4377_v34  ;;  %v4378_v23 = vmax.f32 %v4320_v36, 0.0  ;;  %v4481_v18 = vmul.f32 %v4377_v34, %v4377_v34  ;;  %v4431_v6 = vsel %vm4387_vm0, %v4377_v34, 0.0 }
 0x295   : > { %v4427_v25 = vsel %vm4387_vm0, %v4375_v20, 0.0  ;;  %v4479_v16 = vmul.f32 %v4375_v20, %v4375_v20  ;;  %v5168_v57 = vpack.c.bf16 %v4375_v20, %v4375_v20  ;;  %v4376_v63 = vmax.f32 %v4312_v5, 0.0 }
 0x296   : > { %4712 = vst.msk [vmem:[%s6764_s30 + $0x58] sm:$0xf] %vm4689_vm11, %v5170_v2  ;;  %v4428_v28 = vadd.f32 %v4427_v25, %v4426_v52  ;;  %v5171_v8 = vpack.c.bf16 %v4378_v23, %v4378_v23  ;;  %v4482_v62 = vmul.f32 %v4378_v23, %v4378_v23  ;;  %v4534_v21 = vsel %vm4387_vm0, %v4481_v18, 0.0 }
 0x297   : > { %v4530_v24 = vsel %vm4387_vm0, %v4479_v16, 0.0  ;;  %4710 = vst.msk [vmem:[%s6764_s30 + $0x50] sm:$0xf] %vm4689_vm11, %v5168_v57  ;;  %v4429_v43 = vsel %vm4387_vm0, %v4376_v63, 0.0  ;;  %v4480_v37 = vmul.f32 %v4376_v63, %v4376_v63  ;;  %v5169_v46 = vpack.c.bf16 %v4376_v63, %v4376_v63 }
 0x298   : > { %v4531_v44 = vadd.f32 %v4530_v24, %v4529_v55  ;;  %v4430_v39 = vadd.f32 %v4429_v43, %v4428_v28  ;;  %4713 = vst.msk [vmem:[%s6764_s30 + $0x5c] sm:$0xf] %vm4689_vm11, %v5171_v8  ;;  %v4433_v11 = vsel %vm4387_vm0, %v4378_v23, 0.0  ;;  %v4536_v54 = vsel %vm4387_vm0, %v4482_v62, 0.0 }
 0x299   : > { %v4532_v60 = vsel %vm4387_vm0, %v4480_v37, 0.0  ;;  %4711 = vst.msk [vmem:[%s6764_s30 + $0x54] sm:$0xf] %vm4689_vm11, %v5169_v46 }
 0x29a   : > { %v4432_v33 = vadd.f32 %v4431_v6, %v4430_v39  ;;  %v4533_v10 = vadd.f32 %v4532_v60, %v4531_v44 }
 0x29c   : > { %v4535_v4 = vadd.f32 %v4534_v21, %v4533_v10  ;;  %v4434_v40 = vadd.f32 %v4433_v11, %v4432_v33 }
 0x29e   : > { %v4537_v30 = vadd.f32 %v4536_v54, %v4535_v4 }
 0x2c2   : > { %v5228_v0 = vpop.f32.mrb[8].mxu1 }
 0x2c3   : > { %v4333_v49 = vadd.f32 %v5228_v0, %v6754_v41  ;;  %v4324_v27 = vpop.f32.mrb[9].mxu1 }
 0x2c4   : > { %v4325_v29 = vadd.f32 %v6754_v41, %v4324_v27  ;;  %v5229_v3 = vpop.f32.mrb[10].mxu1 }
 0x2c5   : > { %v4381_v48 = vmax.f32 %v4333_v49, 0.0  ;;  %v4336_v22 = vadd.f32 %v5229_v3, %v6754_v41  ;;  %v4327_v14 = vpop.f32.mrb[11].mxu1 }
 0x2c6   : > { %v4379_v35 = vmax.f32 %v4325_v29, 0.0  ;;  %v4328_v50 = vadd.f32 %v6754_v41, %v4327_v14 }
 0x2c7   : > { %v5174_v9 = vpack.c.bf16 %v4381_v48, %v4381_v48  ;;  %v4382_v26 = vmax.f32 %v4336_v22, 0.0  ;;  %v4485_v59 = vmul.f32 %v4381_v48, %v4381_v48  ;;  %v4439_v13 = vsel %vm4387_vm0, %v4381_v48, 0.0 }
 0x2c8   : > { %v4435_v19 = vsel %vm4387_vm0, %v4379_v35, 0.0  ;;  %v4483_v32 = vmul.f32 %v4379_v35, %v4379_v35  ;;  %v5172_v31 = vpack.c.bf16 %v4379_v35, %v4379_v35  ;;  %v4380_v7 = vmax.f32 %v4328_v50, 0.0 }
 0x2c9   : > { %4716 = vst.msk [vmem:[%s6764_s30 + $0x68] sm:$0xf] %vm4689_vm11, %v5174_v9  ;;  %v4436_v53 = vadd.f32 %v4435_v19, %v4434_v40  ;;  %v5175_v42 = vpack.c.bf16 %v4382_v26, %v4382_v26  ;;  %v4486_v55 = vmul.f32 %v4382_v26, %v4382_v26  ;;  %v4542_v38 = vsel %vm4387_vm0, %v4485_v59, 0.0 }
 0x2ca   : > { %v4538_v12 = vsel %vm4387_vm0, %v4483_v32, 0.0  ;;  %4714 = vst.msk [vmem:[%s6764_s30 + $0x60] sm:$0xf] %vm4689_vm11, %v5172_v31  ;;  %v4437_v47 = vsel %vm4387_vm0, %v4380_v7, 0.0  ;;  %v4484_v15 = vmul.f32 %v4380_v7, %v4380_v7  ;;  %v5173_v52 = vpack.c.bf16 %v4380_v7, %v4380_v7 }
 0x2cb   : > { %v4539_v17 = vadd.f32 %v4538_v12, %v4537_v30  ;;  %v4438_v45 = vadd.f32 %v4437_v47, %v4436_v53  ;;  %4717 = vst.msk [vmem:[%s6764_s30 + $0x6c] sm:$0xf] %vm4689_vm11, %v5175_v42  ;;  %v4441_v61 = vsel %vm4387_vm0, %v4382_v26, 0.0  ;;  %v4544_v58 = vsel %vm4387_vm0, %v4486_v55, 0.0 }
 0x2cc   : > { %v4540_v51 = vsel %vm4387_vm0, %v4484_v15, 0.0  ;;  %4715 = vst.msk [vmem:[%s6764_s30 + $0x64] sm:$0xf] %vm4689_vm11, %v5173_v52 }
 0x2cd   : > { %v4440_v1 = vadd.f32 %v4439_v13, %v4438_v45  ;;  %v4541_v56 = vadd.f32 %v4540_v51, %v4539_v17 }
 0x2cf   : > { %v4543_v34 = vadd.f32 %v4542_v38, %v4541_v56  ;;  %v4442_v36 = vadd.f32 %v4441_v61, %v4440_v1 }
 0x2d1   : > { %v4545_v20 = vadd.f32 %v4544_v58, %v4543_v34 }
 0x2ee   : > { %v5232_v5 = vpop.f32.mrb[12].mxu1 }
 0x2ef   : > { %v4349_v2 = vadd.f32 %v5232_v5, %v6754_v41  ;;  %v4340_v23 = vpop.f32.mrb[13].mxu1 }
 0x2f0   : > { %v4341_v25 = vadd.f32 %v6754_v41, %v4340_v23  ;;  %v5233_v16 = vpop.f32.mrb[14].mxu1 }
 0x2f1   : > { %v4385_v57 = vmax.f32 %v4349_v2, 0.0  ;;  %v4352_v63 = vadd.f32 %v5233_v16, %v6754_v41  ;;  %v4343_v18 = vpop.f32.mrb[15].mxu1 }
 0x2f2   : > { %v4383_v28 = vmax.f32 %v4341_v25, 0.0  ;;  %v4344_v24 = vadd.f32 %v6754_v41, %v4343_v18 }
 0x2f3   : > { %v5178_v8 = vpack.c.bf16 %v4385_v57, %v4385_v57  ;;  %v4386_v43 = vmax.f32 %v4352_v63, 0.0  ;;  %v4489_v6 = vmul.f32 %v4385_v57, %v4385_v57  ;;  %v4447_v40 = vsel %vm4387_vm0, %v4385_v57, 0.0 }
 0x2f4   : > { %v4443_v37 = vsel %vm4387_vm0, %v4383_v28, 0.0  ;;  %v4487_v44 = vmul.f32 %v4383_v28, %v4383_v28  ;;  %v5176_v39 = vpack.c.bf16 %v4383_v28, %v4383_v28  ;;  %v4384_v46 = vmax.f32 %v4344_v24, 0.0 }
 0x2f5   : > { %4720 = vst.msk [vmem:[%s6764_s30 + $0x78] sm:$0xf] %vm4689_vm11, %v5178_v8  ;;  %v4444_v62 = vadd.f32 %v4443_v37, %v4442_v36  ;;  %v5179_v33 = vpack.c.bf16 %v4386_v43, %v4386_v43  ;;  %v4490_v54 = vmul.f32 %v4386_v43, %v4386_v43  ;;  %v4550_v27 = vsel %vm4387_vm0, %v4489_v6, 0.0 }
 0x2f6   : > { %v4546_v60 = vsel %vm4387_vm0, %v4487_v44, 0.0  ;;  %4718 = vst.msk [vmem:[%s6764_s30 + $0x70] sm:$0xf] %vm4689_vm11, %v5176_v39  ;;  %v4445_v41 = vsel %vm4387_vm0, %v4384_v46, 0.0  ;;  %v4488_v10 = vmul.f32 %v4384_v46, %v4384_v46  ;;  %v5177_v4 = vpack.c.bf16 %v4384_v46, %v4384_v46 }
 0x2f7   : > { %v4547_v21 = vadd.f32 %v4546_v60, %v4545_v20  ;;  %v4446_v11 = vadd.f32 %v4445_v41, %v4444_v62  ;;  %4721 = vst.msk [vmem:[%s6764_s30 + $0x7c] sm:$0xf] %vm4689_vm11, %v5179_v33  ;;  %v4449_v29 = vsel %vm4387_vm0, %v4386_v43, 0.0  ;;  %v4552_v22 = vsel %vm4387_vm0, %v4490_v54, 0.0 }
 0x2f8   : > { %v4548_v30 = vsel %vm4387_vm0, %v4488_v10, 0.0  ;;  %4719 = vst.msk [vmem:[%s6764_s30 + $0x74] sm:$0xf] %vm4689_vm11, %v5177_v4 }
 0x2f9   : > { %v4448_v0 = vadd.f32 %v4447_v40, %v4446_v11  ;;  %v4549_v49 = vadd.f32 %v4548_v30, %v4547_v21 }
 0x2fb   : > { %v4450_v3 = vadd.f32 %v4449_v29, %v4448_v0  ;;  %v4551_v48 = vadd.f32 %v4550_v27, %v4549_v49 }
 0x2fd   : > { %v4451_v14 = vrot.slane %v4450_v3, 4  ;;  %v4553_v35 = vadd.f32 %v4552_v22, %v4551_v48 }
 0x2ff   : > { %v4452_v50 = vadd.f32 %v4451_v14, %v4450_v3  ;;  %v4554_v9 = vrot.slane %v4553_v35, 4 }
 0x301   : > { %v4453_v26 = vrot.slane %v4452_v50, 2  ;;  %v4555_v19 = vadd.f32 %v4554_v9, %v4553_v35 }
 0x303   : > { %v4454_v32 = vadd.f32 %v4453_v26, %v4452_v50  ;;  %v4556_v31 = vrot.slane %v4555_v19, 2 }
 0x305   : > { %v4455_v7 = vrot.slane %v4454_v32, 1  ;;  %v4557_v59 = vadd.f32 %v4556_v31, %v4555_v19 }
 0x307   : > { %v4456_v53 = vadd.f32 %v4455_v7, %v4454_v32  ;;  %v4558_v12 = vrot.slane %v4557_v59, 1 }
 0x309   : > { %4458 = vst.msk [vmem:[%s265_s9] sm:$0x1] %vm4457_vm5, %v4456_v53  ;;  %v4559_v42 = vadd.f32 %v4558_v12, %v4557_v59 }
 0x30b   : > { %4560 = vst.msk [vmem:[%s268_s12] sm:$0x1] %vm4457_vm5, %v4559_v42 }
 0x30c PF: > { %s17_s21 = sadd.s32 1, %s5315_s21  }
 0x30d   : > { %p14_p4 = scmp.ge.s32.totalorder %s17_s21, 4  }
 0x30f   :  { %16 = sbr.rel (!%p14_p4) target bundleno = 1 (0x1), region = 93 }

// kernel: kan_forward.3
= control target key start
LH: loop header
LB: loop body
LE: loop exit
PB: predicated region body
PF: predicated region fallthrough
CT: control target
= control target key end

     0   :  { %s5972_s23 = smov 0   ;;  %s7688_s0 = inlined_call_operand.vmem [shape: bf16[2,16,16,64], index: 0, kind: input, shape index: {}]   ;;  %s7689_s1 = inlined_call_operand.vmem [shape: f32[1,64], index: 1, kind: input, shape index: {}]   ;;  %s7690_s2 = inlined_call_operand.vmem [shape: bf16[576,32], index: 2, kind: input, shape index: {}]   ;;  %s7691_s3 = inlined_call_operand.vmem [shape: f32[1,32], index: 3, kind: input, shape index: {}]   ;;  %s7692_s4 = inlined_call_operand.vmem [shape: bf16[1,32], index: 4, kind: input, shape index: {}]   ;;  %s7693_s5 = inlined_call_operand.<no memory space> [shape: f32[1,1], index: 5, kind: input, shape index: {}]   ;;  %s7694_s6 = inlined_call_operand.vmem [shape: f32[2,1,256], index: 6, kind: output, shape index: {}]  }
   0x1   :  { %v11_v0 = vstv %s7693_s5 }
   0x2   :  { %12 = vst [vmem:[#allocation4] sm:$0x1] %v11_v0 }
   0x3 LB: > { %s5114_s24 = sadd.s32 4294967295, %s5929_s23   ;;  %p5118_p0 = scmp.ge.s32.totalorder %s5929_s23, 1  ;;  %s5929_s23 = sphi %s5972_s23, %s18_s23  }
   0x4   : > { %p214_p1 = scmp.lt.s32.totalorder %s5929_s23, 3 }
   0x6   : > { %p215_p2 = pnand %p5118_p0, %p214_p1 }
   0x8   : > { %218 = sbr.rel (%p215_p2) target bundleno = 920 (0x398), region = 44 }
   0xf   : > { %p243_p3 = scmp.lt.s32.totalorder %s5114_s24, 1  ;;  %vm253_vm0 = vcmask 519168   ;;  %vm256_vm1 = vcmask 516096   ;;  %vm263_vm2 = vsmask.f32 256  ;;  %v7700_v1 = vmov 0 }
  0x10   : > { %vm5981_vm3 = vmand %vm256_vm1, %vm263_vm2  ;;  %v268_v2 = vld [vmem:[#allocation2 + $0xc] sm:$0x1]  ;;  %vm319_vm4 = vsmask.f32 7938  ;;  %v7703_v4 = vmov 0  ;;  %v5931_v5 = vmov 0  }
  0x11   : > { %v7701_v1 = vsel %vm5981_vm3, 4294967295, %v7700_v1  ;;  %s7727_s24 = smov (!%p243_p3, %s5114_s24), 1  ;;  %v269_v3 = vsel %vm5981_vm3, 0, %v268_v2  ;;  %vm5990_vm5 = vmand %vm256_vm1, %vm319_vm4  ;;  %254 = vst.msk [vmem:[#allocation2] sm:$0xf] %vm253_vm0, %v5931_v5  ;;  %5836 = vset.pattern.permute.xlu0 %v5931_v5  ;;  %s5932_s30 = smov 64  }
  0x12   : > { %7702 = vst [vmem:[#allocation5_spill] sm:$0xff] %v7701_v1  ;;  %v7704_v4 = vsel %vm5990_vm5, 4294967295, %v7703_v4  ;;  %270 = vst [vmem:[#allocation2 + $0xc] sm:$0x1] %v269_v3  ;;  %v271_v6 = vld [vmem:[#allocation2 + $0x18] sm:$0x1] }
  0x13   : > { %7705 = vst [vmem:[#allocation6_spill] sm:$0xff] %v7704_v4  ;;  %255 = vst.msk [vmem:[#allocation2 + $0x4] sm:$0xf] %vm253_vm0, %v5931_v5  ;;  %s5403_s5 = sshll.u32 %s7727_s24, 7  ;;  %v6002_v7 = vld [vmem:[%s7689_s1] ss:$0 sm:$0xff] }
  0x14   : > { %257 = vst.msk [vmem:[#allocation2 + $0x8] sm:$0x1] %vm256_vm1, %v5931_v5  ;;  %261 = vst.msk [vmem:[#allocation2 + $0xd4] sm:$0x1] %vm256_vm1, %v5931_v5  ;;  %vm574_vm6 = vsmask.f32 4368  ;;  %s6009_s29 = scalar_lea.vmem %s7688_s0, %s5403_s5 }
  0x15   : > { %259 = vst.msk [vmem:[#allocation2 + $0xcc] sm:$0xf] %vm253_vm0, %v5931_v5  ;;  %260 = vst.msk [vmem:[#allocation2 + $0xd0] sm:$0xf] %vm253_vm0, %v5931_v5  ;;  %v272_v8 = vsel %vm5981_vm3, 0, %v271_v6  ;;  %v5437_v15 = vld [vmem:[%s6009_s29] sm:$0xff]  }
  0x16   : > { %v324_v9 = vld [vmem:[#allocation2 + $0x14] sm:$0x1]  ;;  %v274_v10 = vld [vmem:[#allocation2 + $0x24] sm:$0x1]  ;;  %273 = vst [vmem:[#allocation2 + $0x18] sm:$0x1] %v272_v8  ;;  %v5438_v20 = vunpack.c.l.bf16 %v5437_v15  ;;  %v5439_v21 = vunpack.c.h.bf16 %v5437_v15  ;;  %vm6043_vm9 = vmor %vm263_vm2, %vm574_vm6 }
  0x17   : > { %v325_v11 = vsel %vm5990_vm5, 0, %v324_v9  ;;  %v275_v12 = vsel %vm5981_vm3, 0, %v274_v10  ;;  %v327_v13 = vld [vmem:[#allocation2 + $0x20] sm:$0x1]  ;;  %v277_v14 = vld [vmem:[#allocation2 + $0x30] sm:$0x1]  ;;  %vm6049_vm10 = vmand %vm253_vm0, %vm319_vm4 }
  0x18   : > { %v5500_v16 = vld [vmem:[%s6009_s29 + $0x8] sm:$0xff]   ;;  %326 = vst [vmem:[#allocation2 + $0x14] sm:$0x1] %v325_v11  ;;  %276 = vst [vmem:[#allocation2 + $0x24] sm:$0x1] %v275_v12  ;;  %v5501_v17 = vld [vmem:[%s6009_s29 + $0x10] sm:$0xff]   ;;  %v446_v29 = vadd.f32 %v5438_v20, %v6002_v7  ;;  %v447_v30 = vadd.f32 %v5439_v21, %v6002_v7 }
  0x19   : > { %v328_v18 = vsel %vm5990_vm5, 0, %v327_v13  ;;  %v278_v19 = vsel %vm5981_vm3, 0, %v277_v14  ;;  %v5442_v22 = vunpack.c.l.bf16 %v5500_v16  ;;  %v5443_v23 = vunpack.c.h.bf16 %v5500_v16  ;;  %v5502_v24 = vld [vmem:[%s6009_s29 + $0x18] sm:$0xff]   ;;  %v265_v33 = vld [vmem:[#allocation2] sm:$0x1]  ;;  %s5121_s21 = sshll.u32 %s7727_s24, 1 }
  0x1a   : > { %329 = vst [vmem:[#allocation2 + $0x20] sm:$0x1] %v328_v18  ;;  %279 = vst [vmem:[#allocation2 + $0x30] sm:$0x1] %v278_v19  ;;  %v5446_v25 = vunpack.c.l.bf16 %v5501_v17  ;;  %v5447_v26 = vunpack.c.h.bf16 %v5501_v17  ;;  %v5450_v27 = vunpack.c.l.bf16 %v5502_v24  ;;  %v5451_v28 = vunpack.c.h.bf16 %v5502_v24  ;;  %v1157_v43 = vld [vmem:[#allocation2 + $0x4] sm:$0xf]  ;;  %s251_s25 = scalar_lea.vmem %s7694_s6, %s5121_s21 }
  0x1b   : > { %v448_v31 = vadd.f32 %v5442_v22, %v6002_v7  ;;  %v449_v32 = vadd.f32 %v5443_v23, %v6002_v7  ;;  %v321_v34 = vld [vmem:[#allocation2 + $0x8] sm:$0x1]  ;;  %vm1204_vm7 = vsmask.f32 3328  ;;  %vm1205_vm8 = vsmask.f32 7440 }
  0x1c   : > { %v450_v35 = vadd.f32 %v5446_v25, %v6002_v7  ;;  %v451_v36 = vadd.f32 %v5447_v26, %v6002_v7  ;;  %v6030_v37 = vadd.f32 %v5450_v27, %v6002_v7  ;;  %v6033_v38 = vadd.f32 %v5451_v28, %v6002_v7  ;;  %v899_v62 = vld [vmem:[#allocation2 + $0xc] sm:$0xf]  ;;  %vm6065_vm11 = vmor %vm1204_vm7, %vm1205_vm8 }
  0x1d   : > { %v5404_v39 = vpack.c.bf16 %v446_v29, %v446_v29  ;;  %v5405_v40 = vpack.c.bf16 %v447_v30, %v447_v30  ;;  %v266_v41 = vsel %vm5981_vm3, 0, %v265_v33  ;;  %v322_v42 = vsel %vm5990_vm5, 0, %v321_v34  ;;  %v906_v15 = vld [vmem:[#allocation2 + $0x18] sm:$0xf]  ;;  %v330_v26 = vld [vmem:[#allocation2 + $0x2c] sm:$0x1] }
  0x1e   : > { %267 = vst [vmem:[#allocation2] sm:$0x1] %v266_v41  ;;  %323 = vst [vmem:[#allocation2 + $0x8] sm:$0x1] %v322_v42  ;;  %v1217_v44 = vshll.u32 %v1157_v43, 16  ;;  %v1221_v45 = vshrl.u32 %v1157_v43, 16  ;;  %v5406_v46 = vpack.c.bf16 %v448_v31, %v448_v31  ;;  %v5407_v47 = vpack.c.bf16 %v449_v32, %v449_v32 }
  0x1f   : > { %v577_v48 = vshrl.u32 %v5404_v39, 16  ;;  %v580_v49 = vshll.u32 %v5404_v39, 16  ;;  %v585_v50 = vshrl.u32 %v5405_v40, 16  ;;  %v588_v51 = vshll.u32 %v5405_v40, 16  ;;  %v903_v2 = vld [vmem:[#allocation2 + $0x14] sm:$0x1] }
  0x20   : > { %v6039_v52 = vrot.slane %v1217_v44, 5  ;;  %v1223_v53 = vrot.slane %v1221_v45, 4  ;;  %v594_v54 = vshrl.u32 %v5406_v46, 16  ;;  %v597_v55 = vshll.u32 %v5406_v46, 16  ;;  %v913_v39 = vld [vmem:[#allocation2 + $0x24] sm:$0xf] }
  0x21   : > { %v579_v57 = vrot.slane %v577_v48, 7  ;;  %v587_v58 = vrot.slane %v585_v50, 7  ;;  %v602_v59 = vshrl.u32 %v5407_v47, 16  ;;  %v605_v60 = vshll.u32 %v5407_v47, 16  ;;  %v910_v32 = vld [vmem:[#allocation2 + $0x20] sm:$0x1] }
  0x22   : > { %v1224_v63 = vor.u32 %v1223_v53, %v6039_v52  ;;  %v596_v0 = vrot.slane %v594_v54, 7  ;;  %v5408_v3 = vpack.c.bf16 %v450_v35, %v450_v35  ;;  %v5409_v5 = vpack.c.bf16 %v451_v36, %v451_v36  ;;  %v280_v44 = vld [vmem:[#allocation2 + $0x3c] sm:$0x1] }
  0x23   : > { %v582_v6 = vor.u32 %v580_v49, %v579_v57  ;;  %v583_v8 = vrot.slane %v579_v57, 4  ;;  %v590_v9 = vor.u32 %v588_v51, %v587_v58  ;;  %v592_v10 = vrot.slane %v587_v58, 4  ;;  %v6082_v49 = vld [vmem:[%s6009_s29 + $0x20] sm:$0xff]   ;;  %v6098_v57 = vld [vmem:[%s6009_s29 + $0x30] sm:$0xff]  }
  0x24   : > { %v6054_v11 = vrot.slane %v1224_v63, 4  ;;  %v599_v12 = vor.u32 %v597_v55, %v596_v0  ;;  %v600_v13 = vrot.slane %v596_v0, 4  ;;  %v604_v14 = vrot.slane %v602_v59, 7  ;;  %v6095_v55 = vld [vmem:[%s6009_s29 + $0x28] sm:$0xff]  }
  0x25   : > { %v591_v16 = vsel %vm6043_vm9, %v583_v8, %v590_v9  ;;  %v900_v17 = vsel %vm6049_vm10, %v582_v6, %v899_v62  ;;  %v1156_v18 = vld [vmem:[#allocation2] sm:$0xf]  ;;  %v1158_v19 = vld [vmem:[#allocation2 + $0x8] sm:$0x1]  ;;  %v904_v20 = vsel %vm5981_vm3, %v592_v10, %v903_v2  ;;  %v611_v21 = vshrl.u32 %v5408_v3, 16 }
  0x26   : > { %901 = vst [vmem:[#allocation2 + $0xc] sm:$0xf] %v900_v17  ;;  %902 = vst.msk [vmem:[#allocation2 + $0x10] sm:$0xf] %vm253_vm0, %v591_v16  ;;  %v1208_v22 = vshrl.u32 %v1156_v18, 16  ;;  %v1211_v23 = vshll.u32 %v1156_v18, 16  ;;  %v607_v25 = vor.u32 %v605_v60, %v604_v14  ;;  %v907_v29 = vsel %vm6049_vm10, %v599_v12, %v906_v15 }
  0x27   : > { %v1227_v24 = vshll.u32 %v1158_v19, 16  ;;  %905 = vst [vmem:[#allocation2 + $0x14] sm:$0x1] %v904_v20  ;;  %v609_v28 = vrot.slane %v604_v14, 4  ;;  %v613_v30 = vrot.slane %v611_v21, 7  ;;  %v614_v31 = vshll.u32 %v5408_v3, 16 }
  0x28   : > { %v1210_v33 = vrot.slane %v1208_v22, 4  ;;  %v1213_v34 = vrot.slane %v1211_v23, 5  ;;  %v608_v36 = vsel %vm6043_vm9, %v600_v13, %v607_v25  ;;  %908 = vst [vmem:[#allocation2 + $0x18] sm:$0xf] %v907_v29  ;;  %v619_v42 = vshrl.u32 %v5409_v5, 16 }
  0x29   : > { %v1229_v35 = vrot.slane %v1227_v24, 5  ;;  %909 = vst.msk [vmem:[#allocation2 + $0x1c] sm:$0xf] %vm253_vm0, %v608_v36  ;;  %v616_v40 = vor.u32 %v614_v31, %v613_v30  ;;  %v617_v41 = vrot.slane %v613_v30, 4  ;;  %v622_v43 = vshll.u32 %v5409_v5, 16 }
  0x2a   : > { %v1214_v45 = vor.u32 %v1213_v34, %v1210_v33  ;;  %v911_v47 = vsel %vm5981_vm3, %v609_v28, %v910_v32  ;;  %v5410_v48 = vpack.c.bf16 %v6030_v37, %v6030_v37  ;;  %v6084_v50 = vrot.slane %v619_v42, 7  ;;  %v920_v42 = vld [vmem:[#allocation2 + $0x30] sm:$0xf] }
  0x2b   : > { %v1230_v46 = vsel %vm6065_vm11, %v6054_v11, %v1229_v35  ;;  %v914_v51 = vsel %vm6049_vm10, %v616_v40, %v913_v39  ;;  %912 = vst [vmem:[#allocation2 + $0x20] sm:$0x1] %v911_v47  ;;  %v6090_v53 = vpack.c.bf16 %v6033_v38, %v6033_v38  ;;  %v331_v54 = vsel %vm5990_vm5, 0, %v330_v26 }
  0x2c   : > { %v1215_v37 = vrot.slane %v1214_v45, 4  ;;  %915 = vst [vmem:[#allocation2 + $0x24] sm:$0xf] %v914_v51  ;;  %v628_v58 = vshrl.u32 %v5410_v48, 16  ;;  %v631_v59 = vshll.u32 %v5410_v48, 16  ;;  %v281_v60 = vsel %vm5981_vm3, 0, %v280_v44 }
  0x2d   : > { %332 = vst [vmem:[#allocation2 + $0x2c] sm:$0x1] %v331_v54  ;;  %v5837_v62 = vld [vmem:[#allocation2 + $0xc] sm:$0xff]   ;;  %v624_v63 = vor.u32 %v622_v43, %v6084_v50  ;;  %v626_v38 = vrot.slane %v6084_v50, 4  ;;  %282 = vst [vmem:[#allocation2 + $0x3c] sm:$0x1] %v281_v60  ;;  %v5454_v0 = vunpack.c.l.bf16 %v6082_v49  ;;  %v5455_v2 = vunpack.c.h.bf16 %v6082_v49 }
  0x2e   : > { %v1220_v3 = vsel %vm6065_vm11, %v1215_v37, %v6039_v52  ;;  %v1159_v5 = vld [vmem:[#allocation2 + $0xc] sm:$0xf]  ;;  %v1160_v6 = vld [vmem:[#allocation2 + $0x10] sm:$0xf]  ;;  %v1161_v8 = vld [vmem:[#allocation2 + $0x14] sm:$0x1]  ;;  %v5458_v9 = vunpack.c.l.bf16 %v6095_v55  ;;  %v5459_v10 = vunpack.c.h.bf16 %v6095_v55  ;;  %v5462_v11 = vunpack.c.l.bf16 %v6098_v57  ;;  %2107 = vrot.lane.b32.xlu0 %v5837_v62, %s5932_s30 }
  0x2f   : > { %v5171_v12 = vcombine.low %v1220_v3, %v1230_v46  ;;  %v1232_v13 = vshrl.u32 %v1159_v5, 16  ;;  %v1235_v14 = vshll.u32 %v1159_v5, 16  ;;  %v1241_v15 = vshll.u32 %v1160_v6, 16  ;;  %v1162_v23 = vld [vmem:[#allocation2 + $0x18] sm:$0xf] }
  0x30   : > { %v5838_v16 = vld [vmem:[#allocation2 + $0x18] sm:$0xff]   ;;  %v1245_v17 = vshrl.u32 %v1160_v6, 16  ;;  %v1251_v18 = vshll.u32 %v1161_v8, 16  ;;  %v625_v52 = vsel %vm6043_vm9, %v617_v41, %v624_v63  ;;  %v630_v19 = vrot.slane %v628_v58, 7 }
  0x31   : > { %v1234_v20 = vrot.slane %v1232_v13, 4  ;;  %v1237_v21 = vrot.slane %v1235_v14, 5  ;;  %v1243_v22 = vrot.slane %v1241_v15, 5  ;;  %916 = vst.msk [vmem:[#allocation2 + $0x28] sm:$0xf] %vm253_vm0, %v625_v52  ;;  %v636_v24 = vshrl.u32 %v6090_v53, 16  ;;  %2109 = vrot.lane.b32.xlu1 %v5838_v16, %s5932_s30 }
  0x32   : > { %v1247_v25 = vrot.slane %v1245_v17, 4  ;;  %v1253_v26 = vrot.slane %v1251_v18, 5  ;;  %v1163_v28 = vld [vmem:[#allocation2 + $0x1c] sm:$0xf]  ;;  %v1164_v29 = vld [vmem:[#allocation2 + $0x20] sm:$0x1]  ;;  %v633_v30 = vor.u32 %v631_v59, %v630_v19  ;;  %v454_v31 = vadd.f32 %v5454_v0, %v6002_v7  ;;  %1639 = vrot.lane.b32.xlu0 %v5171_v12, %s5932_s30 }
  0x33   : > { %v1238_v32 = vor.u32 %v1237_v21, %v1234_v20  ;;  %v1256_v33 = vshrl.u32 %v1162_v23, 16  ;;  %v1259_v34 = vshll.u32 %v1162_v23, 16  ;;  %v1265_v35 = vshll.u32 %v1163_v28, 16  ;;  %v1165_v58 = vld [vmem:[#allocation2 + $0x24] sm:$0xf] }
  0x34   : > { %v1248_v36 = vor.u32 %v1247_v25, %v1243_v22  ;;  %v1269_v39 = vshrl.u32 %v1163_v28, 16  ;;  %v1275_v40 = vshll.u32 %v1164_v29, 16  ;;  %v634_v41 = vrot.slane %v630_v19, 4  ;;  %v917_v47 = vld [vmem:[#allocation2 + $0x2c] sm:$0x1] }
  0x35   : > { %v1239_v43 = vrot.slane %v1238_v32, 4  ;;  %v1258_v44 = vrot.slane %v1256_v33, 4  ;;  %v1261_v45 = vrot.slane %v1259_v34, 5  ;;  %v1267_v46 = vrot.slane %v1265_v35, 5  ;;  %v333_v19 = vld [vmem:[#allocation2 + $0x38] sm:$0x1] }
  0x36   : > { %v1249_v48 = vrot.slane %v1248_v36, 4  ;;  %v1271_v51 = vrot.slane %v1269_v39, 4  ;;  %v1277_v54 = vrot.slane %v1275_v40, 5  ;;  %v6120_v37 = vrot.slane %v636_v24, 7 }
  0x37   : > { %v1244_v59 = vsel %vm6065_vm11, %v1239_v43, %v1243_v22  ;;  %v1262_v60 = vor.u32 %v1261_v45, %v1258_v44  ;;  %v639_v62 = vshll.u32 %v6090_v53, 16  ;;  %v921_v63 = vsel %vm6049_vm10, %v633_v30, %v920_v42  ;;  %v283_v22 = vld [vmem:[#allocation2 + $0x48] sm:$0x1] }
  0x38   : > { %v1254_v0 = vsel %vm6065_vm11, %v1249_v48, %v1253_v26  ;;  %v5839_v3 = vld [vmem:[#allocation2 + $0x24] sm:$0xff]   ;;  %v1272_v5 = vor.u32 %v1271_v51, %v1267_v46  ;;  %v643_v6 = vrot.slane %v6120_v37, 4  ;;  %922 = vst [vmem:[#allocation2 + $0x30] sm:$0xf] %v921_v63  ;;  %v918_v8 = vsel %vm5981_vm3, %v626_v38, %v917_v47 }
  0x39   : > { %v1166_v12 = vld [vmem:[#allocation2 + $0x28] sm:$0xf]  ;;  %v5172_v13 = vcombine.low %v1244_v59, %v1254_v0  ;;  %v1263_v14 = vrot.slane %v1262_v60, 4  ;;  %v641_v53 = vor.u32 %v639_v62, %v6120_v37  ;;  %919 = vst [vmem:[#allocation2 + $0x2c] sm:$0x1] %v918_v8  ;;  %v1280_v15 = vshrl.u32 %v1165_v58, 16  ;;  %2111 = vrot.lane.b32.xlu0 %v5839_v3, %s5932_s30 }
  0x3a   : > { %v1273_v16 = vrot.slane %v1272_v5, 4  ;;  %v1283_v17 = vshll.u32 %v1165_v58, 16  ;;  %v1289_v18 = vshll.u32 %v1166_v12, 16  ;;  %v1293_v52 = vshrl.u32 %v1166_v12, 16 }
  0x3b   : > { %1641 = vrot.lane.b32.xlu1 %v5172_v13, %s5932_s30  ;;  %v1268_v50 = vsel %vm6065_vm11, %v1263_v14, %v1267_v46  ;;  %v642_v38 = vsel %vm6043_vm9, %v634_v41, %v641_v53  ;;  %v1282_v20 = vrot.slane %v1280_v15, 4  ;;  %v455_v21 = vadd.f32 %v5455_v2, %v6002_v7 }
  0x3c   : > { %v1278_v23 = vsel %vm6065_vm11, %v1273_v16, %v1277_v54  ;;  %923 = vst.msk [vmem:[#allocation2 + $0x34] sm:$0xf] %vm253_vm0, %v642_v38  ;;  %v1285_v24 = vrot.slane %v1283_v17, 5  ;;  %v1291_v25 = vrot.slane %v1289_v18, 5  ;;  %v1295_v26 = vrot.slane %v1293_v52, 4 }
  0x3d   : > { %v5173_v28 = vcombine.low %v1268_v50, %v1278_v23  ;;  %v5412_v29 = vpack.c.bf16 %v454_v31, %v454_v31  ;;  %v5413_v30 = vpack.c.bf16 %v455_v21, %v455_v21  ;;  %v334_v32 = vsel %vm5990_vm5, 0, %v333_v19  ;;  %v927_v54 = vld [vmem:[#allocation2 + $0x3c] sm:$0xf]  ;;  %v336_v18 = vld [vmem:[#allocation2 + $0x44] sm:$0x1] }
  0x3e   : > { %v1286_v33 = vor.u32 %v1285_v24, %v1282_v20  ;;  %v1296_v34 = vor.u32 %v1295_v26, %v1291_v25  ;;  %335 = vst [vmem:[#allocation2 + $0x38] sm:$0x1] %v334_v32  ;;  %v284_v49 = vsel %vm5981_vm3, 0, %v283_v22  ;;  %v456_v2 = vadd.f32 %v5458_v9, %v6002_v7  ;;  %v286_v20 = vld [vmem:[#allocation2 + $0x54] sm:$0x1] }
  0x3f   : > { %1643 = vrot.lane.b32.xlu1 %v5173_v28, %s5932_s30  ;;  %v645_v35 = vshrl.u32 %v5412_v29, 16  ;;  %v648_v36 = vshll.u32 %v5412_v29, 16  ;;  %v653_v39 = vshrl.u32 %v5413_v30, 16  ;;  %v656_v31 = vshll.u32 %v5413_v30, 16  ;;  %285 = vst [vmem:[#allocation2 + $0x48] sm:$0x1] %v284_v49 }
  0x40   : > { %v1167_v40 = vld [vmem:[#allocation2 + $0x2c] sm:$0x1]  ;;  %v1287_v41 = vrot.slane %v1286_v33, 4  ;;  %v1297_v42 = vrot.slane %v1296_v34, 4  ;;  %v1168_v43 = vld [vmem:[#allocation2 + $0x30] sm:$0xf]  ;;  %v457_v44 = vadd.f32 %v5459_v10, %v6002_v7  ;;  %v5414_v45 = vpack.c.bf16 %v456_v2, %v456_v2 }
  0x41   : > { %v1299_v46 = vshll.u32 %v1167_v40, 16  ;;  %v647_v47 = vrot.slane %v645_v35, 7  ;;  %v6158_v48 = vrot.slane %v653_v39, 7  ;;  %v1304_v9 = vshrl.u32 %v1168_v43, 16  ;;  %v289_v49 = vld [vmem:[#allocation2 + $0x60] sm:$0x1] }
  0x42   : > { %v1292_v51 = vsel %vm6065_vm11, %v1287_v41, %v1291_v25  ;;  %v1307_v58 = vshll.u32 %v1168_v43, 16  ;;  %v5415_v59 = vpack.c.bf16 %v457_v44, %v457_v44  ;;  %v662_v60 = vshrl.u32 %v5414_v45, 16  ;;  %v339_v25 = vld [vmem:[#allocation2 + $0x50] sm:$0x1]  ;;  %v6189_v2 = vld [vmem:[%s6009_s29 + $0x38] sm:$0xff]   ;;  %v6202_v41 = vld [vmem:[%s6009_s29 + $0x40] sm:$0xff]  }
  0x43   : > { %v5840_v62 = vld [vmem:[#allocation2 + $0x30] sm:$0xff]   ;;  %v1301_v63 = vrot.slane %v1299_v46, 5  ;;  %v650_v0 = vor.u32 %v648_v36, %v647_v47  ;;  %v651_v3 = vrot.slane %v647_v47, 4  ;;  %v658_v55 = vor.u32 %v656_v31, %v6158_v48  ;;  %v342_v40 = vld [vmem:[#allocation2 + $0x5c] sm:$0x1]  ;;  %v6210_v46 = vld [vmem:[%s6009_s29 + $0x48] sm:$0xff]  }
  0x44   : > { %v660_v10 = vrot.slane %v6158_v48, 4  ;;  %v1169_v5 = vld [vmem:[#allocation2 + $0x34] sm:$0xf]  ;;  %v1306_v8 = vrot.slane %v1304_v9, 4  ;;  %v1309_v12 = vrot.slane %v1307_v58, 5  ;;  %v664_v13 = vrot.slane %v662_v60, 7  ;;  %2113 = vrot.lane.b32.xlu0 %v5840_v62, %s5932_s30 }
  0x45   : > { %v1302_v14 = vsel %vm6065_vm11, %v1297_v42, %v1301_v63  ;;  %v659_v53 = vsel %vm6043_vm9, %v651_v3, %v658_v55  ;;  %v928_v15 = vsel %vm6049_vm10, %v650_v0, %v927_v54  ;;  %v924_v16 = vld [vmem:[#allocation2 + $0x38] sm:$0x1]  ;;  %v1313_v17 = vshll.u32 %v1169_v5, 16 }
  0x46   : > { %v5174_v52 = vcombine.low %v1292_v51, %v1302_v14  ;;  %929 = vst [vmem:[#allocation2 + $0x3c] sm:$0xf] %v928_v15  ;;  %930 = vst.msk [vmem:[#allocation2 + $0x40] sm:$0xf] %vm253_vm0, %v659_v53  ;;  %v925_v19 = vsel %vm5981_vm3, %v643_v6, %v924_v16  ;;  %v1310_v50 = vor.u32 %v1309_v12, %v1306_v8  ;;  %v1317_v38 = vshrl.u32 %v1169_v5, 16 }
  0x47   : > { %926 = vst [vmem:[#allocation2 + $0x38] sm:$0x1] %v925_v19  ;;  %v6176_v21 = vrot.slane %v1313_v17, 5  ;;  %v665_v22 = vshll.u32 %v5414_v45, 16  ;;  %v668_v23 = vrot.slane %v664_v13, 4  ;;  %v670_v24 = vshrl.u32 %v5415_v59, 16 }
  0x48   : > { %1645 = vrot.lane.b32.xlu1 %v5174_v52, %s5932_s30  ;;  %v6179_v26 = vrot.slane %v1310_v50, 4  ;;  %v1319_v28 = vrot.slane %v1317_v38, 4  ;;  %v673_v37 = vshll.u32 %v5415_v59, 16  ;;  %v934_v29 = vld [vmem:[#allocation2 + $0x48] sm:$0xf]  ;;  %v337_v6 = vsel %vm5990_vm5, 0, %v336_v18 }
  0x49   : > { %v667_v30 = vor.u32 %v665_v22, %v664_v13  ;;  %v6183_v32 = vrot.slane %v670_v24, 7  ;;  %338 = vst [vmem:[#allocation2 + $0x44] sm:$0x1] %v337_v6  ;;  %v287_v33 = vsel %vm5981_vm3, 0, %v286_v20  ;;  %v5463_v34 = vunpack.c.h.bf16 %v6098_v57 }
  0x4a   : > { %v1316_v35 = vsel %vm6065_vm11, %v6179_v26, %v6176_v21  ;;  %v1320_v36 = vor.u32 %v1319_v28, %v6176_v21  ;;  %288 = vst [vmem:[#allocation2 + $0x54] sm:$0x1] %v287_v33  ;;  %v458_v39 = vadd.f32 %v5462_v11, %v6002_v7  ;;  %v340_v31 = vsel %vm5990_vm5, 0, %v339_v25 }
  0x4b   : > { %v675_v42 = vor.u32 %v673_v37, %v6183_v32  ;;  %v677_v43 = vrot.slane %v6183_v32, 4  ;;  %v935_v44 = vsel %vm6049_vm10, %v667_v30, %v934_v29  ;;  %v459_v45 = vadd.f32 %v5463_v34, %v6002_v7  ;;  %341 = vst [vmem:[#allocation2 + $0x50] sm:$0x1] %v340_v31  ;;  %v292_v34 = vld [vmem:[#allocation2 + $0x6c] sm:$0x1] }
  0x4c   : > { %v1321_v57 = vrot.slane %v1320_v36, 4  ;;  %936 = vst [vmem:[#allocation2 + $0x48] sm:$0xf] %v935_v44  ;;  %v5416_v11 = vpack.c.bf16 %v458_v39, %v458_v39  ;;  %v290_v47 = vsel %vm5981_vm3, 0, %v289_v49  ;;  %v5466_v9 = vunpack.c.l.bf16 %v6189_v2 }
  0x4d   : > { %v5841_v51 = vld [vmem:[#allocation2 + $0x3c] sm:$0xff]   ;;  %v676_v54 = vsel %vm6043_vm9, %v668_v23, %v675_v42  ;;  %v5417_v58 = vpack.c.bf16 %v459_v45, %v459_v45  ;;  %291 = vst [vmem:[#allocation2 + $0x60] sm:$0x1] %v290_v47  ;;  %v5467_v59 = vunpack.c.h.bf16 %v6189_v2  ;;  %v343_v60 = vsel %vm5990_vm5, 0, %v342_v40 }
  0x4e   : > { %v1170_v62 = vld [vmem:[#allocation2 + $0x38] sm:$0x1]  ;;  %937 = vst.msk [vmem:[#allocation2 + $0x4c] sm:$0xf] %vm253_vm0, %v676_v54  ;;  %v1171_v63 = vld [vmem:[#allocation2 + $0x3c] sm:$0xf]  ;;  %v460_v3 = vadd.f32 %v5466_v9, %v6002_v7  ;;  %v5470_v55 = vunpack.c.l.bf16 %v6202_v41  ;;  %v5471_v5 = vunpack.c.h.bf16 %v6202_v41  ;;  %v5474_v8 = vunpack.c.l.bf16 %v6210_v46  ;;  %2115 = vrot.lane.b32.xlu0 %v5841_v51, %s5932_s30 }
  0x4f   : > { %v1172_v0 = vld [vmem:[#allocation2 + $0x40] sm:$0xf]  ;;  %344 = vst [vmem:[#allocation2 + $0x5c] sm:$0x1] %v343_v60  ;;  %v1323_v12 = vshll.u32 %v1170_v62, 16  ;;  %v1328_v13 = vshrl.u32 %v1171_v63, 16 }
  0x50   : > { %v1331_v14 = vshll.u32 %v1171_v63, 16  ;;  %v1337_v53 = vshll.u32 %v1172_v0, 16  ;;  %v931_v15 = vld [vmem:[#allocation2 + $0x44] sm:$0x1]  ;;  %v1341_v16 = vshrl.u32 %v1172_v0, 16  ;;  %v679_v17 = vshrl.u32 %v5416_v11, 16 }
  0x51   : > { %v682_v18 = vshll.u32 %v5416_v11, 16  ;;  %v687_v52 = vshrl.u32 %v5417_v58, 16  ;;  %v1325_v19 = vrot.slane %v1323_v12, 5  ;;  %v932_v50 = vsel %vm5981_vm3, %v660_v10, %v931_v15  ;;  %v941_v21 = vld [vmem:[#allocation2 + $0x54] sm:$0xf] }
  0x52   : > { %v1330_v38 = vrot.slane %v1328_v13, 4  ;;  %v1333_v20 = vrot.slane %v1331_v14, 5  ;;  %933 = vst [vmem:[#allocation2 + $0x44] sm:$0x1] %v932_v50  ;;  %v6230_v22 = vrot.slane %v1337_v53, 5  ;;  %v1343_v23 = vrot.slane %v1341_v16, 4 }
  0x53   : > { %v681_v24 = vrot.slane %v679_v17, 7  ;;  %v689_v25 = vrot.slane %v687_v52, 7  ;;  %v938_v26 = vld [vmem:[#allocation2 + $0x50] sm:$0x1]  ;;  %v1326_v28 = vsel %vm6065_vm11, %v1321_v57, %v1325_v19  ;;  %v690_v29 = vshll.u32 %v5417_v58, 16 }
  0x54   : > { %v1334_v37 = vor.u32 %v1333_v20, %v1330_v38  ;;  %v939_v48 = vsel %vm5981_vm3, %v677_v43, %v938_v26  ;;  %v1174_v6 = vld [vmem:[#allocation2 + $0x48] sm:$0xf]  ;;  %v5175_v10 = vcombine.low %v1316_v35, %v1326_v28  ;;  %v1344_v30 = vor.u32 %v1343_v23, %v6230_v22 }
  0x55   : > { %v684_v32 = vor.u32 %v682_v18, %v681_v24  ;;  %v685_v33 = vrot.slane %v681_v24, 4  ;;  %940 = vst [vmem:[#allocation2 + $0x50] sm:$0x1] %v939_v48  ;;  %v5842_v49 = vld [vmem:[#allocation2 + $0x48] sm:$0xff]   ;;  %v692_v36 = vor.u32 %v690_v29, %v689_v25  ;;  %v694_v39 = vrot.slane %v689_v25, 4 }
  0x56   : > { %v1335_v2 = vrot.slane %v1334_v37, 4  ;;  %v1352_v31 = vshrl.u32 %v1174_v6, 16  ;;  %1647 = vrot.lane.b32.xlu1 %v5175_v10, %s5932_s30  ;;  %v1345_v40 = vrot.slane %v1344_v30, 4  ;;  %v1175_v43 = vld [vmem:[#allocation2 + $0x4c] sm:$0xf]  ;;  %v1355_v44 = vshll.u32 %v1174_v6, 16  ;;  %2117 = vrot.lane.b32.xlu0 %v5842_v49, %s5932_s30 }
  0x57   : > { %v942_v42 = vsel %vm6049_vm10, %v684_v32, %v941_v21  ;;  %v461_v35 = vadd.f32 %v5467_v59, %v6002_v7  ;;  %v945_v45 = vld [vmem:[#allocation2 + $0x5c] sm:$0x1]  ;;  %v693_v11 = vsel %vm6043_vm9, %v685_v33, %v692_v36  ;;  %v1361_v9 = vshll.u32 %v1175_v43, 16 }
  0x58   : > { %v1340_v57 = vsel %vm6065_vm11, %v1335_v2, %v6230_v22  ;;  %943 = vst [vmem:[#allocation2 + $0x54] sm:$0xf] %v942_v42  ;;  %v1354_v47 = vrot.slane %v1352_v31, 4  ;;  %944 = vst.msk [vmem:[#allocation2 + $0x58] sm:$0xf] %vm253_vm0, %v693_v11  ;;  %v1357_v51 = vrot.slane %v1355_v44, 5  ;;  %v5418_v58 = vpack.c.bf16 %v460_v3, %v460_v3 }
  0x59   : > { %v1365_v54 = vshrl.u32 %v1175_v43, 16  ;;  %v5419_v60 = vpack.c.bf16 %v461_v35, %v461_v35  ;;  %v1173_v59 = vld [vmem:[#allocation2 + $0x44] sm:$0x1]  ;;  %v1363_v62 = vrot.slane %v1361_v9, 5  ;;  %v946_v63 = vsel %vm5981_vm3, %v694_v39, %v945_v45  ;;  %v948_v22 = vld [vmem:[#allocation2 + $0x60] sm:$0xf] }
  0x5a   : > { %v293_v0 = vsel %vm5981_vm3, 0, %v292_v34  ;;  %v462_v12 = vadd.f32 %v5470_v55, %v6002_v7  ;;  %v1347_v13 = vshll.u32 %v1173_v59, 16  ;;  %v1358_v14 = vor.u32 %v1357_v51, %v1354_v47  ;;  %947 = vst [vmem:[#allocation2 + $0x5c] sm:$0x1] %v946_v63  ;;  %v5853_v2 = vld [vmem:[%s7690_s2 + $0x40] sm:$0xff]  }
  0x5b   : > { %v1367_v53 = vrot.slane %v1365_v54, 4  ;;  %v696_v15 = vshrl.u32 %v5418_v58, 16  ;;  %294 = vst [vmem:[#allocation2 + $0x6c] sm:$0x1] %v293_v0  ;;  %v699_v17 = vshll.u32 %v5418_v58, 16  ;;  %v704_v3 = vshrl.u32 %v5419_v60, 16  ;;  %5515 = vmatprep.subr.bf16.mxu0 %v5853_v2 }
  0x5c   : > { %v1176_v16 = vld [vmem:[#allocation2 + $0x50] sm:$0x1]  ;;  %v707_v18 = vshll.u32 %v5419_v60, 16  ;;  %v463_v52 = vadd.f32 %v5471_v5, %v6002_v7  ;;  %v1349_v19 = vrot.slane %v1347_v13, 5  ;;  %v1359_v50 = vrot.slane %v1358_v14, 4  ;;  %v5854_v44 = vld [vmem:[%s7690_s2] sm:$0xff]  }
  0x5d   : > { %v1368_v38 = vor.u32 %v1367_v53, %v1363_v62  ;;  %v1371_v20 = vshll.u32 %v1176_v16, 16  ;;  %v698_v21 = vrot.slane %v696_v15, 7  ;;  %v6256_v55 = vrot.slane %v704_v3, 7  ;;  %v345_v43 = vld [vmem:[#allocation2 + $0x68] sm:$0x1]  ;;  %5516 = vmatpush3.bf16.msra.mxu0 %v5854_v44  ;;  %v6284_v0 = vld [vmem:[%s6009_s29 + $0x50] sm:$0xff]  }
  0x5e   : > { %v5420_v23 = vpack.c.bf16 %v462_v12, %v462_v12  ;;  %v6258_v24 = vpack.c.bf16 %v463_v52, %v463_v52  ;;  %v1350_v25 = vsel %vm6065_vm11, %v1345_v40, %v1349_v19  ;;  %v1364_v26 = vsel %vm6065_vm11, %v1359_v50, %v1363_v62  ;;  %v295_v47 = vld [vmem:[#allocation2 + $0x78] sm:$0x1]  ;;  %v5855_v12 = vld [vmem:[%s7690_s2 + $0x48] sm:$0xff]   ;;  %v348_v16 = vld [vmem:[#allocation2 + $0x74] sm:$0x1] }
  0x5f   : > { %v1369_v28 = vrot.slane %v1368_v38, 4  ;;  %v1373_v41 = vrot.slane %v1371_v20, 5  ;;  %v1177_v5 = vld [vmem:[#allocation2 + $0x54] sm:$0xf]  ;;  %v5176_v37 = vcombine.low %v1340_v57, %v1350_v25  ;;  %v701_v48 = vor.u32 %v699_v17, %v698_v21  ;;  %v1178_v30 = vld [vmem:[#allocation2 + $0x58] sm:$0xf]  ;;  %5517 = vmatprep.subr.bf16.mxu0 %v5855_v12 }
  0x60   : > { %v5843_v29 = vld [vmem:[#allocation2 + $0x54] sm:$0xff]   ;;  %v702_v6 = vrot.slane %v698_v21, 4  ;;  %v709_v10 = vor.u32 %v707_v18, %v6256_v55  ;;  %v711_v33 = vrot.slane %v6256_v55, 4  ;;  %v1376_v34 = vshrl.u32 %v1177_v5, 16  ;;  %v5856_v50 = vld [vmem:[%s7690_s2 + $0x8] sm:$0xff]  }
  0x61   : > { %v1374_v32 = vsel %vm6065_vm11, %v1369_v28, %v1373_v41  ;;  %v1379_v49 = vshll.u32 %v1177_v5, 16  ;;  %1649 = vrot.lane.b32.xlu1 %v5176_v37, %s5932_s30  ;;  %2119 = vrot.lane.b32.xlu0 %v5843_v29, %s5932_s30  ;;  %v949_v31 = vsel %vm6049_vm10, %v701_v48, %v948_v22  ;;  %v1179_v40 = vld [vmem:[#allocation2 + $0x5c] sm:$0x1]  ;;  %v1385_v42 = vshll.u32 %v1178_v30, 16  ;;  %v3163_v61 = vld [vmem:[#allocation2 + $0x54] sm:$0xf] }
  0x62   : > { %v5177_v36 = vcombine.low %v1364_v26, %v1374_v32  ;;  %v710_v39 = vsel %vm6043_vm9, %v702_v6, %v709_v10  ;;  %950 = vst [vmem:[#allocation2 + $0x60] sm:$0xf] %v949_v31  ;;  %v1378_v35 = vrot.slane %v1376_v34, 4  ;;  %v1389_v57 = vshrl.u32 %v1178_v30, 16  ;;  %v955_v18 = vld [vmem:[#allocation2 + $0x6c] sm:$0xf]  ;;  %5518 = vmatpush3.bf16.msra.mxu0 %v5856_v50 }
  0x63   : > { %951 = vst.msk [vmem:[#allocation2 + $0x64] sm:$0xf] %vm253_vm0, %v710_v39  ;;  %v1381_v45 = vrot.slane %v1379_v49, 5  ;;  %v1395_v11 = vshll.u32 %v1179_v40, 16  ;;  %v1387_v9 = vrot.slane %v1385_v42, 5  ;;  %v713_v51 = vshrl.u32 %v5420_v23, 16 }
  0x64   : > { %v716_v54 = vshll.u32 %v5420_v23, 16  ;;  %v721_v58 = vshrl.u32 %v6258_v24, 16  ;;  %v1391_v59 = vrot.slane %v1389_v57, 4  ;;  %v724_v63 = vshll.u32 %v6258_v24, 16  ;;  %v351_v39 = vld [vmem:[#allocation2 + $0x80] sm:$0x1] }
  0x65   : > { %v1382_v60 = vor.u32 %v1381_v45, %v1378_v35  ;;  %v1397_v62 = vrot.slane %v1395_v11, 5  ;;  %1651 = vrot.lane.b32.xlu1 %v5177_v36, %s5932_s30  ;;  %v715_v13 = vrot.slane %v713_v51, 7  ;;  %v346_v53 = vsel %vm5990_vm5, 0, %v345_v43  ;;  %v5858_v31 = vld [vmem:[%s7690_s2 + $0x10] sm:$0xff]  }
  0x66   : > { %v6290_v14 = vrot.slane %v721_v58, 7  ;;  %v296_v15 = vsel %vm5981_vm3, 0, %v295_v47  ;;  %v1392_v3 = vor.u32 %v1391_v59, %v1387_v9  ;;  %347 = vst [vmem:[#allocation2 + $0x68] sm:$0x1] %v346_v53  ;;  %v5475_v52 = vunpack.c.h.bf16 %v6210_v46  ;;  %v298_v46 = vld [vmem:[#allocation2 + $0x84] sm:$0x1] }
  0x67   : > { %v1383_v17 = vrot.slane %v1382_v60, 4  ;;  %297 = vst [vmem:[#allocation2 + $0x78] sm:$0x1] %v296_v15  ;;  %v464_v19 = vadd.f32 %v5474_v8, %v6002_v7  ;;  %v718_v38 = vor.u32 %v716_v54, %v715_v13  ;;  %v719_v20 = vrot.slane %v715_v13, 4  ;;  %v5857_v8 = vld [vmem:[%s7690_s2 + $0x50] sm:$0xff]   ;;  %v5510_v53 = vld [vmem:[%s6009_s29 + $0x58] sm:$0xff]  }
  0x68   : > { %v726_v21 = vor.u32 %v724_v63, %v6290_v14  ;;  %v728_v22 = vrot.slane %v6290_v14, 4  ;;  %v1393_v24 = vrot.slane %v1392_v3, 4  ;;  %v465_v25 = vadd.f32 %v5475_v52, %v6002_v7  ;;  %5519 = vmatprep.subr.bf16.mxu0 %v5857_v8  ;;  %v301_v35 = vld [vmem:[#allocation2 + $0x90] sm:$0x1]  ;;  %v6340_v13 = vld [vmem:[%s7689_s1] ss:$0 sm:$0xff] }
  0x69   : > { %v1388_v23 = vsel %vm6065_vm11, %v1383_v17, %v1387_v9  ;;  %v5422_v26 = vpack.c.bf16 %v464_v19, %v464_v19  ;;  %v956_v5 = vsel %vm6049_vm10, %v718_v38, %v955_v18  ;;  %v349_v37 = vsel %vm5990_vm5, 0, %v348_v16  ;;  %v1180_v48 = vld [vmem:[#allocation2 + $0x60] sm:$0xf]  ;;  %5520 = vmatpush3.bf16.msra.mxu0 %v5858_v31 }
  0x6a   : > { %v5844_v28 = vld [vmem:[#allocation2 + $0x60] sm:$0xff]   ;;  %v727_v41 = vsel %vm6043_vm9, %v719_v20, %v726_v21  ;;  %v5478_v29 = vunpack.c.l.bf16 %v6284_v0  ;;  %v1398_v7 = vsel %vm6065_vm11, %v1393_v24, %v1397_v62  ;;  %957 = vst [vmem:[#allocation2 + $0x6c] sm:$0xf] %v956_v5  ;;  %v5423_v10 = vpack.c.bf16 %v465_v25, %v465_v25  ;;  %350 = vst [vmem:[#allocation2 + $0x74] sm:$0x1] %v349_v37 }
  0x6b   : > { %958 = vst.msk [vmem:[#allocation2 + $0x70] sm:$0xf] %vm253_vm0, %v727_v41  ;;  %v1181_v6 = vld [vmem:[#allocation2 + $0x64] sm:$0xf]  ;;  %v730_v30 = vshrl.u32 %v5422_v26, 16  ;;  %v733_v32 = vshll.u32 %v5422_v26, 16  ;;  %2121 = vrot.lane.b32.xlu0 %v5844_v28, %s5932_s30  ;;  %v5178_v34 = vcombine.low %v1388_v23, %v1398_v7  ;;  %v5479_v12 = vunpack.c.h.bf16 %v6284_v0 }
  0x6c   : > { %v1400_v49 = vshrl.u32 %v1180_v48, 16  ;;  %v1403_v2 = vshll.u32 %v1180_v48, 16  ;;  %v1409_v36 = vshll.u32 %v1181_v6, 16  ;;  %v1413_v40 = vshrl.u32 %v1181_v6, 16  ;;  %v5860_v41 = vld [vmem:[%s7690_s2 + $0x18] sm:$0xff]   ;;  %v5861_v14 = vld [vmem:[%s7690_s2 + $0x60] sm:$0xff]  }
  0x6d   : > { %v732_v42 = vrot.slane %v730_v30, 7  ;;  %v738_v43 = vshrl.u32 %v5423_v10, 16  ;;  %v741_v44 = vshll.u32 %v5423_v10, 16  ;;  %1653 = vrot.lane.b32.xlu1 %v5178_v34, %s5932_s30  ;;  %v952_v45 = vld [vmem:[#allocation2 + $0x68] sm:$0x1]  ;;  %v299_v9 = vsel %vm5981_vm3, 0, %v298_v46 }
  0x6e   : > { %v1402_v57 = vrot.slane %v1400_v49, 4  ;;  %v1405_v11 = vrot.slane %v1403_v2, 5  ;;  %v6326_v47 = vrot.slane %v1409_v36, 5  ;;  %v953_v51 = vsel %vm5981_vm3, %v711_v33, %v952_v45  ;;  %v962_v59 = vld [vmem:[#allocation2 + $0x78] sm:$0xf]  ;;  %v5862_v30 = vld [vmem:[%s7690_s2 + $0x20] sm:$0xff]  }
  0x6f   : > { %v1415_v54 = vrot.slane %v1413_v40, 4  ;;  %v735_v58 = vor.u32 %v733_v32, %v732_v42  ;;  %v736_v60 = vrot.slane %v732_v42, 4  ;;  %300 = vst [vmem:[#allocation2 + $0x84] sm:$0x1] %v299_v9  ;;  %954 = vst [vmem:[#allocation2 + $0x68] sm:$0x1] %v953_v51  ;;  %v466_v55 = vadd.f32 %v6340_v13, %v5478_v29 }
  0x70   : > { %v1406_v62 = vor.u32 %v1405_v11, %v1402_v57  ;;  %v6334_v63 = vrot.slane %v738_v43, 7  ;;  %v5859_v33 = vld [vmem:[%s7690_s2 + $0x58] sm:$0xff]   ;;  %v352_v0 = vsel %vm5990_vm5, 0, %v351_v39  ;;  %v302_v17 = vsel %vm5981_vm3, 0, %v301_v35  ;;  %v5908_v4 = vld [vmem:[#allocation2 + $0x60] sm:$0xff]  }
  0x71   : > { %v1416_v15 = vor.u32 %v1415_v54, %v6326_v47  ;;  %v963_v16 = vsel %vm6049_vm10, %v735_v58, %v962_v59  ;;  %v467_v19 = vadd.f32 %v6340_v13, %v5479_v12  ;;  %v5424_v50 = vpack.c.bf16 %v466_v55, %v466_v55  ;;  %353 = vst [vmem:[#allocation2 + $0x80] sm:$0x1] %v352_v0  ;;  %v959_v21 = vld [vmem:[#allocation2 + $0x74] sm:$0x1]  ;;  %v1183_v23 = vld [vmem:[#allocation2 + $0x6c] sm:$0xf] }
  0x72   : > { %v5845_v3 = vld [vmem:[#allocation2 + $0x6c] sm:$0xff]   ;;  %v6354_v18 = vrot.slane %v1406_v62, 4  ;;  %v743_v52 = vor.u32 %v741_v44, %v6334_v63  ;;  %964 = vst [vmem:[#allocation2 + $0x78] sm:$0xf] %v963_v16  ;;  %303 = vst [vmem:[#allocation2 + $0x90] sm:$0x1] %v302_v17  ;;  %5521 = vmatprep.subr.bf16.mxu0 %v5859_v33  ;;  %v5482_v24 = vunpack.c.l.bf16 %v5510_v53  ;;  %v960_v26 = vsel %vm5981_vm3, %v728_v22, %v959_v21 }
  0x73   : > { %v6358_v38 = vrot.slane %v1416_v15, 4  ;;  %v745_v20 = vrot.slane %v6334_v63, 4  ;;  %2123 = vrot.lane.b32.xlu0 %v5845_v3, %s5932_s30  ;;  %v1184_v46 = vld [vmem:[#allocation2 + $0x70] sm:$0xf]  ;;  %v1424_v8 = vshrl.u32 %v1183_v23, 16  ;;  %v5483_v28 = vunpack.c.h.bf16 %v5510_v53  ;;  %5522 = vmatpush3.bf16.msra.mxu0 %v5860_v41  ;;  %v5863_v44 = vld [vmem:[%s7690_s2 + $0x68] sm:$0xff]  }
  0x74   : > { %v744_v25 = vsel %vm6043_vm9, %v736_v60, %v743_v52  ;;  %961 = vst [vmem:[#allocation2 + $0x74] sm:$0x1] %v960_v26  ;;  %v1427_v5 = vshll.u32 %v1183_v23, 16  ;;  %v1433_v37 = vshll.u32 %v1184_v46, 16  ;;  %v1437_v29 = vshrl.u32 %v1184_v46, 16  ;;  %5523 = vmatprep.subr.bf16.mxu0 %v5861_v14  ;;  %v5864_v62 = vld [vmem:[%s7690_s2 + $0x28] sm:$0xff]  }
  0x75   : > { %965 = vst.msk [vmem:[#allocation2 + $0x7c] sm:$0xf] %vm253_vm0, %v744_v25  ;;  %v5425_v7 = vpack.c.bf16 %v467_v19, %v467_v19  ;;  %v1426_v48 = vrot.slane %v1424_v8, 4  ;;  %v747_v22 = vshrl.u32 %v5424_v50, 16  ;;  %v750_v6 = vshll.u32 %v5424_v50, 16 }
  0x76   : > { %v468_v10 = vadd.f32 %v6340_v13, %v5482_v24  ;;  %v1182_v32 = vld [vmem:[#allocation2 + $0x68] sm:$0x1]  ;;  %v1429_v34 = vrot.slane %v1427_v5, 5  ;;  %v6379_v49 = vrot.slane %v1433_v37, 5  ;;  %v1439_v2 = vrot.slane %v1437_v29, 4 }
  0x77   : > { %v755_v36 = vshrl.u32 %v5425_v7, 16  ;;  %v1419_v39 = vshll.u32 %v1182_v32, 16  ;;  %v749_v31 = vrot.slane %v747_v22, 7  ;;  %v758_v40 = vshll.u32 %v5425_v7, 16  ;;  %v969_v42 = vld [vmem:[#allocation2 + $0x84] sm:$0xf]  ;;  %5524 = vmatpush3.bf16.msra.mxu0 %v5862_v30 }
  0x78   : > { %v469_v43 = vadd.f32 %v6340_v13, %v5483_v28  ;;  %v1412_v35 = vsel %vm6065_vm11, %v6354_v18, %v6326_v47  ;;  %v1430_v45 = vor.u32 %v1429_v34, %v1426_v48  ;;  %v1440_v57 = vor.u32 %v1439_v2, %v6379_v49  ;;  %v966_v9 = vld [vmem:[#allocation2 + $0x80] sm:$0x1]  ;;  %5525 = vmatprep.subr.bf16.mxu0 %v5863_v44  ;;  %v354_v3 = vld [vmem:[#allocation2 + $0x8c] sm:$0x1]  ;;  %v3148_v41 = vld [vmem:[#allocation2 + $0x18] sm:$0xf] }
  0x79   : > { %v6390_v11 = vrot.slane %v755_v36, 7  ;;  %v1421_v51 = vrot.slane %v1419_v39, 5  ;;  %v752_v54 = vor.u32 %v750_v6, %v749_v31  ;;  %v753_v58 = vrot.slane %v749_v31, 4  ;;  %v1186_v59 = vld [vmem:[#allocation2 + $0x78] sm:$0xf]  ;;  %v5867_v30 = vld [vmem:[%s7690_s2 + $0x30] sm:$0xff]  }
  0x7a   : > { %v967_v60 = vsel %vm5981_vm3, %v745_v20, %v966_v9  ;;  %v1431_v63 = vrot.slane %v1430_v45, 4  ;;  %v1441_v47 = vrot.slane %v1440_v57, 4  ;;  %v5426_v55 = vpack.c.bf16 %v468_v10, %v468_v10  ;;  %v6421_v10 = vld [vmem:[%s6009_s29 + $0x60] sm:$0xff]   ;;  %v976_v36 = vld [vmem:[#allocation2 + $0x90] sm:$0xf]  ;;  %v5868_v31 = vld [vmem:[%s7690_s2 + $0x78] sm:$0xff]  }
  0x7b   : > { %v760_v12 = vor.u32 %v758_v40, %v6390_v11  ;;  %968 = vst [vmem:[#allocation2 + $0x80] sm:$0x1] %v967_v60  ;;  %v1422_v53 = vsel %vm6065_vm11, %v6358_v38, %v1421_v51  ;;  %v1185_v15 = vld [vmem:[#allocation2 + $0x74] sm:$0x1]  ;;  %v970_v16 = vsel %vm6049_vm10, %v752_v54, %v969_v42  ;;  %v1448_v0 = vshrl.u32 %v1186_v59, 16  ;;  %5526 = vmatpush3.bf16.msra.mxu0 %v5864_v62 }
  0x7c   : > { %v5846_v33 = vld [vmem:[#allocation2 + $0x78] sm:$0xff]   ;;  %v5427_v17 = vpack.c.bf16 %v469_v43, %v469_v43  ;;  %v5179_v18 = vcombine.low %v1412_v35, %v1422_v53  ;;  %v1436_v52 = vsel %vm6065_vm11, %v1431_v63, %v6379_v49  ;;  %v1443_v19 = vshll.u32 %v1185_v15, 16  ;;  %971 = vst [vmem:[#allocation2 + $0x84] sm:$0xf] %v970_v16  ;;  %v5866_v38 = vld [vmem:[%s7690_s2 + $0x70] sm:$0xff]  }
  0x7d   : > { %v761_v50 = vsel %vm6043_vm9, %v753_v58, %v760_v12  ;;  %v1187_v20 = vld [vmem:[#allocation2 + $0x7c] sm:$0xf]  ;;  %2125 = vrot.lane.b32.xlu0 %v5846_v33, %s5932_s30  ;;  %v1450_v21 = vrot.slane %v1448_v0, 4  ;;  %v1451_v23 = vshll.u32 %v1186_v59, 16  ;;  %v764_v46 = vshrl.u32 %v5426_v55, 16  ;;  %5527 = vmatprep.subr.bf16.mxu0 %v5866_v38 }
  0x7e   : > { %972 = vst.msk [vmem:[#allocation2 + $0x88] sm:$0xf] %vm253_vm0, %v761_v50  ;;  %v1457_v24 = vshll.u32 %v1187_v20, 16  ;;  %v1461_v25 = vshrl.u32 %v1187_v20, 16  ;;  %1655 = vrot.lane.b32.xlu1 %v5179_v18, %s5932_s30  ;;  %v1445_v26 = vrot.slane %v1443_v19, 5  ;;  %v767_v8 = vshll.u32 %v5426_v55, 16 }
  0x7f   : > { %v772_v28 = vshrl.u32 %v5427_v17, 16  ;;  %v1453_v5 = vrot.slane %v1451_v23, 5  ;;  %v775_v7 = vshll.u32 %v5427_v17, 16  ;;  %v766_v48 = vrot.slane %v764_v46, 7  ;;  %v3149_v35 = vld [vmem:[#allocation2 + $0x1c] sm:$0xf]  ;;  %5528 = vmatpush3.bf16.msra.mxu0 %v5867_v30 }
  0x80   : > { %v1459_v37 = vrot.slane %v1457_v24, 5  ;;  %v1463_v29 = vrot.slane %v1461_v25, 4  ;;  %v1446_v14 = vsel %vm6065_vm11, %v1441_v47, %v1445_v26  ;;  %v355_v6 = vsel %vm5990_vm5, 0, %v354_v3  ;;  %5529 = vmatprep.subr.bf16.mxu0 %v5868_v31  ;;  %v3150_v63 = vld [vmem:[#allocation2 + $0x20] sm:$0x1] }
  0x81   : > { %v6416_v22 = vrot.slane %v772_v28, 7  ;;  %v5180_v32 = vcombine.low %v1436_v52, %v1446_v14  ;;  %v1454_v49 = vor.u32 %v1453_v5, %v1450_v21  ;;  %356 = vst [vmem:[#allocation2 + $0x8c] sm:$0x1] %v355_v6  ;;  %v3197_v39 = vshrl.u32 %v3148_v41, 16  ;;  %v2683_v3 = vld [vmem:[#allocation2 + $0xc] sm:$0xe] }
  0x82   : > { %v1188_v34 = vld [vmem:[#allocation2 + $0x80] sm:$0x1]  ;;  %v1464_v2 = vor.u32 %v1463_v29, %v1459_v37  ;;  %v769_v42 = vor.u32 %v767_v8, %v766_v48  ;;  %v770_v43 = vrot.slane %v766_v48, 4  ;;  %vm1800_vm12 = vcmask 1042432   ;;  %v2684_v18 = vld [vmem:[#allocation2 + $0x10] sm:$0xf] }
  0x83   : > { %v1467_v40 = vshll.u32 %v1188_v34, 16  ;;  %v777_v44 = vor.u32 %v775_v7, %v6416_v22  ;;  %1657 = vrot.lane.b32.xlu1 %v5180_v32, %s5932_s30  ;;  %v762_v45 = vrot.slane %v6390_v11, 4  ;;  %v1455_v57 = vrot.slane %v1454_v49, 4  ;;  %v1189_v62 = vld [vmem:[#allocation2 + $0x84] sm:$0xf]  ;;  %v5870_v52 = vld [vmem:[%s7690_s2 + $0x38] sm:$0xff]  }
  0x84   : > { %v1465_v9 = vrot.slane %v1464_v2, 4  ;;  %v3199_v51 = vrot.slane %v3197_v39, 4  ;;  %v977_v59 = vsel %vm6049_vm10, %v769_v42, %v976_v36  ;;  %v5486_v47 = vunpack.c.l.bf16 %v6421_v10  ;;  %5530 = vmatpush3.bf16.msra.mxu0 %v5870_v52  ;;  %v304_v5 = vld [vmem:[#allocation2 + $0x9c] sm:$0x1]  ;;  %v357_v14 = vld [vmem:[#allocation2 + $0x98] sm:$0x1] }
  0x85   : > { %v5847_v54 = vld [vmem:[#allocation2 + $0x84] sm:$0xff]   ;;  %v1469_v58 = vrot.slane %v1467_v40, 5  ;;  %v778_v60 = vsel %vm6043_vm9, %v770_v43, %v777_v44  ;;  %v1460_v12 = vsel %vm6065_vm11, %v1455_v57, %v1459_v37  ;;  %978 = vst [vmem:[#allocation2 + $0x90] sm:$0xf] %v977_v59  ;;  %v1472_v55 = vshrl.u32 %v1189_v62, 16 }
  0x86   : > { %979 = vst.msk [vmem:[#allocation2 + $0x94] sm:$0xf] %vm253_vm0, %v778_v60  ;;  %v1190_v11 = vld [vmem:[#allocation2 + $0x88] sm:$0xf]  ;;  %v1475_v53 = vshll.u32 %v1189_v62, 16  ;;  %v3200_v33 = vshll.u32 %v3148_v41, 16  ;;  %2127 = vrot.lane.b32.xlu0 %v5847_v54, %s5932_s30  ;;  %v5487_v39 = vunpack.c.h.bf16 %v6421_v10  ;;  %v470_v31 = vadd.f32 %v6340_v13, %v5486_v47 }
  0x87   : > { %v1470_v15 = vsel %vm6065_vm11, %v1465_v9, %v1469_v58  ;;  %v1481_v16 = vshll.u32 %v1190_v11, 16  ;;  %v1485_v0 = vshrl.u32 %v1190_v11, 16  ;;  %v3206_v17 = vshll.u32 %v3149_v35, 16  ;;  %v2685_v30 = vld [vmem:[#allocation2 + $0x14] sm:$0x1]  ;;  %v5876_v47 = vld [vmem:[%s7690_s2 + $0xc0] sm:$0xff]  }
  0x88   : > { %v5181_v19 = vcombine.low %v1460_v12, %v1470_v15  ;;  %v1474_v50 = vrot.slane %v1472_v55, 4  ;;  %v1477_v20 = vrot.slane %v1475_v53, 5  ;;  %v3202_v38 = vrot.slane %v3200_v33, 5  ;;  %v973_v21 = vld [vmem:[#allocation2 + $0x8c] sm:$0x1]  ;;  %v5877_v33 = vld [vmem:[%s7690_s2 + $0x80] sm:$0xff]   ;;  %5627 = vmatprep.subr.bf16.mxu1 %v5876_v47 }
  0x89   : > { %v6446_v23 = vrot.slane %v1481_v16, 5  ;;  %v1487_v24 = vrot.slane %v1485_v0, 4  ;;  %v3208_v25 = vrot.slane %v3206_v17, 5  ;;  %v3210_v26 = vshrl.u32 %v3149_v35, 16  ;;  %5628 = vmatpush3.bf16.msra.mxu1 %v5877_v33 }
  0x8a   : > { %1659 = vrot.lane.b32.xlu1 %v5181_v19, %s5932_s30  ;;  %v974_v46 = vsel %vm5981_vm3, %v762_v45, %v973_v21  ;;  %v1478_v8 = vor.u32 %v1477_v20, %v1474_v50  ;;  %v3203_v28 = vor.u32 %v3202_v38, %v3199_v51  ;;  %v3216_v41 = vshll.u32 %v3150_v63, 16  ;;  %v3151_v63 = vld [vmem:[#allocation2 + $0x24] sm:$0xf] }
  0x8b   : > { %v779_v37 = vrot.slane %v6416_v22, 4  ;;  %975 = vst [vmem:[#allocation2 + $0x8c] sm:$0x1] %v974_v46  ;;  %v1488_v29 = vor.u32 %v1487_v24, %v6446_v23  ;;  %v3212_v7 = vrot.slane %v3210_v26, 4  ;;  %vm1801_vm13 = vcmask 1046532  }
  0x8c   : > { %v6453_v48 = vrot.slane %v1478_v8, 4  ;;  %v3204_v6 = vrot.slane %v3203_v28, 4  ;;  %v5251_v32 = vrot.slane %v2683_v3, 9  ;;  %v2781_v34 = vrot.slane %v2684_v18, 5  ;;  %vm6465_vm14 = vmor %vm1800_vm12, %vm1801_vm13  ;;  %v1192_v45 = vld [vmem:[#allocation2 + $0x90] sm:$0xf] }
  0x8d   : > { %v5848_v49 = vld [vmem:[#allocation2 + $0x90] sm:$0xff]   ;;  %v3213_v2 = vor.u32 %v3212_v7, %v3208_v25  ;;  %v3218_v36 = vrot.slane %v3216_v41, 5  ;;  %v1489_v42 = vrot.slane %v1488_v29, 4  ;;  %v2784_v9 = vrot.slane %v2685_v30, 5  ;;  %v3152_v26 = vld [vmem:[#allocation2 + $0x28] sm:$0xf] }
  0x8e   : > { %v1484_v40 = vsel %vm6065_vm11, %v6453_v48, %v6446_v23  ;;  %v3209_v43 = vsel %vm6065_vm11, %v3204_v6, %v3208_v25  ;;  %v2783_v35 = vrot.slane %v2781_v34, 4  ;;  %v1193_v10 = vld [vmem:[#allocation2 + $0x94] sm:$0xf]  ;;  %2129 = vrot.lane.b32.xlu0 %v5848_v49, %s5932_s30  ;;  %v305_v51 = vsel %vm5981_vm3, 0, %v304_v5  ;;  %v2686_v7 = vld [vmem:[#allocation2 + $0x18] sm:$0xe] }
  0x8f   : > { %v3214_v57 = vrot.slane %v3213_v2, 4  ;;  %v471_v54 = vadd.f32 %v6340_v13, %v5487_v39  ;;  %306 = vst [vmem:[#allocation2 + $0x9c] sm:$0x1] %v305_v51  ;;  %v5428_v58 = vpack.c.bf16 %v470_v31, %v470_v31  ;;  %v358_v60 = vsel %vm5990_vm5, 0, %v357_v14  ;;  %v2687_v14 = vld [vmem:[#allocation2 + $0x1c] sm:$0xf] }
  0x90   : > { %v1496_v59 = vshrl.u32 %v1192_v45, 16  ;;  %v1499_v62 = vshll.u32 %v1192_v45, 16  ;;  %v6482_v11 = vsel %vm6465_vm14, %v5251_v32, %v2781_v34  ;;  %359 = vst [vmem:[#allocation2 + $0x98] sm:$0x1] %v358_v60  ;;  %v1505_v53 = vshll.u32 %v1193_v10, 16  ;;  %v5512_v60 = vld [vmem:[%s6009_s29 + $0x68] sm:$0xff]  }
  0x91   : > { %v3219_v12 = vsel %vm6065_vm11, %v3214_v57, %v3218_v36  ;;  %v5429_v55 = vpack.c.bf16 %v471_v54, %v471_v54  ;;  %v6489_v0 = vsel %vm6465_vm14, %v2783_v35, %v2784_v9  ;;  %v781_v17 = vshrl.u32 %v5428_v58, 16  ;;  %v3153_v34 = vld [vmem:[#allocation2 + $0x2c] sm:$0x1]  ;;  %v2688_v2 = vld [vmem:[#allocation2 + $0x20] sm:$0x1] }
  0x92   : > { %v1191_v15 = vld [vmem:[#allocation2 + $0x8c] sm:$0x1]  ;;  %v5299_v16 = vcombine.low %v3209_v43, %v3219_v12  ;;  %v784_v3 = vshll.u32 %v5428_v58, 16  ;;  %v1498_v50 = vrot.slane %v1496_v59, 4  ;;  %v1501_v38 = vrot.slane %v1499_v62, 5 }
  0x93   : > { %v1491_v18 = vshll.u32 %v1191_v15, 16  ;;  %v789_v52 = vshrl.u32 %v5429_v55, 16  ;;  %v792_v19 = vshll.u32 %v5429_v55, 16  ;;  %v783_v20 = vrot.slane %v781_v17, 7  ;;  %v307_v36 = vld [vmem:[#allocation2 + $0xa8] sm:$0x1] }
  0x94   : > { %3628 = vrot.lane.b32.xlu0 %v5299_v16, %s5932_s30  ;;  %v6492_v21 = vrot.slane %v1505_v53, 5  ;;  %v1509_v23 = vshrl.u32 %v1193_v10, 16  ;;  %v3221_v46 = vshrl.u32 %v3151_v63, 16  ;;  %v3224_v8 = vshll.u32 %v3151_v63, 16  ;;  %v360_v9 = vld [vmem:[#allocation2 + $0xa4] sm:$0x1] }
  0x95   : > { %v1493_v24 = vrot.slane %v1491_v18, 5  ;;  %v6494_v25 = vrot.slane %v789_v52, 7  ;;  %v786_v28 = vor.u32 %v784_v3, %v783_v20  ;;  %v787_v41 = vrot.slane %v783_v20, 4  ;;  %v3154_v12 = vld [vmem:[#allocation2 + $0x30] sm:$0xf] }
  0x96   : > { %v1502_v5 = vor.u32 %v1501_v38, %v1498_v50  ;;  %v1511_v29 = vrot.slane %v1509_v23, 4  ;;  %v5267_v6 = vcombine.low %v6482_v11, %v6489_v0  ;;  %v983_v32 = vld [vmem:[#allocation2 + $0x9c] sm:$0xf]  ;;  %v3223_v49 = vrot.slane %v3221_v46, 4  ;;  %v5880_v11 = vld [vmem:[%s7690_s2 + $0x88] sm:$0xff]   ;;  %v6533_v18 = vld [vmem:[%s6009_s29 + $0x70] sm:$0xff]  }
  0x97   : > { %v1494_v48 = vsel %vm6065_vm11, %v1489_v42, %v1493_v24  ;;  %v794_v30 = vor.u32 %v792_v19, %v6494_v25  ;;  %v796_v31 = vrot.slane %v6494_v25, 4  ;;  %v984_v43 = vsel %vm6049_vm10, %v786_v28, %v983_v32  ;;  %v980_v35 = vld [vmem:[#allocation2 + $0x98] sm:$0x1] }
  0x98   : > { %v5182_v39 = vcombine.low %v1484_v40, %v1494_v48  ;;  %v6504_v45 = vrot.slane %v1502_v5, 4  ;;  %985 = vst [vmem:[#allocation2 + $0x9c] sm:$0xf] %v984_v43  ;;  %v981_v10 = vsel %vm5981_vm3, %v779_v37, %v980_v35  ;;  %v3226_v57 = vrot.slane %v3224_v8, 5  ;;  %v5879_v37 = vld [vmem:[%s7690_s2 + $0xc8] sm:$0xff]  }
  0x99   : > { %v795_v42 = vsel %vm6043_vm9, %v787_v41, %v794_v30  ;;  %v3230_v40 = vshll.u32 %v3152_v26, 16  ;;  %982 = vst [vmem:[#allocation2 + $0x98] sm:$0x1] %v981_v10  ;;  %v1512_v54 = vor.u32 %v1511_v29, %v6492_v21  ;;  %v3234_v58 = vshrl.u32 %v3152_v26, 16  ;;  %5629 = vmatprep.subr.bf16.mxu1 %v5879_v37  ;;  %v6550_v30 = vld [vmem:[#allocation2 + $0x34] sm:$0xf] }
  0x9a   : > { %1661 = vrot.lane.b32.xlu1 %v5182_v39, %s5932_s30  ;;  %986 = vst.msk [vmem:[#allocation2 + $0xa0] sm:$0xf] %vm253_vm0, %v795_v42  ;;  %v1508_v51 = vsel %vm6065_vm11, %v6504_v45, %v6492_v21  ;;  %v3240_v22 = vshll.u32 %v3153_v34, 16  ;;  %v3227_v59 = vor.u32 %v3226_v57, %v3223_v49  ;;  %v5252_v63 = vrot.slane %v2686_v7, 9  ;;  %5630 = vmatpush3.bf16.msra.mxu1 %v5880_v11  ;;  %v5882_v57 = vld [vmem:[%s7690_s2 + $0xd0] sm:$0xff]  }
  0x9b   : > { %v3232_v62 = vrot.slane %v3230_v40, 5  ;;  %v2788_v47 = vrot.slane %v2687_v14, 5  ;;  %v3236_v55 = vrot.slane %v3234_v58, 4  ;;  %v2791_v33 = vrot.slane %v2688_v2, 5  ;;  %5631 = vmatprep.subr.bf16.mxu1 %v5882_v57 }
  0x9c   : > { %v3242_v53 = vrot.slane %v3240_v22, 5  ;;  %v308_v15 = vsel %vm5981_vm3, 0, %v307_v36  ;;  %v3228_v16 = vrot.slane %v3227_v59, 4  ;;  %v5490_v3 = vunpack.c.l.bf16 %v5512_v60 }
  0x9d   : > { %v6530_v0 = vsel %vm6465_vm14, %v5252_v63, %v2788_v47  ;;  %v2790_v17 = vrot.slane %v2788_v47, 4  ;;  %309 = vst [vmem:[#allocation2 + $0xa8] sm:$0x1] %v308_v15  ;;  %v3237_v52 = vor.u32 %v3236_v55, %v3232_v62  ;;  %v5491_v19 = vunpack.c.h.bf16 %v5512_v60 }
  0x9e   : > { %2939 = vrot.lane.b32.xlu1 %v5267_v6, %s5932_s30  ;;  %v361_v50 = vsel %vm5990_vm5, 0, %v360_v9  ;;  %v3245_v20 = vshrl.u32 %v3154_v12, 16  ;;  %v1513_v38 = vrot.slane %v1512_v54, 4  ;;  %v472_v24 = vadd.f32 %v6340_v13, %v5490_v3  ;;  %v2689_v3 = vld [vmem:[#allocation2 + $0x24] sm:$0xe] }
  0x9f   : > { %v6540_v23 = vsel %vm6465_vm14, %v2790_v17, %v2791_v33  ;;  %362 = vst [vmem:[#allocation2 + $0xa4] sm:$0x1] %v361_v50  ;;  %v3248_v26 = vshll.u32 %v3154_v12, 16  ;;  %v3233_v46 = vsel %vm6065_vm11, %v3228_v16, %v3232_v62  ;;  %v3238_v8 = vrot.slane %v3237_v52, 4  ;;  %v1195_v41 = vld [vmem:[#allocation2 + $0x9c] sm:$0xf] }
  0xa0   : > { %v473_v28 = vadd.f32 %v6340_v13, %v5491_v19  ;;  %v6546_v5 = vrot.slane %v3245_v20, 4  ;;  %v1194_v7 = vld [vmem:[#allocation2 + $0x98] sm:$0x1]  ;;  %v5268_v14 = vcombine.low %v6530_v0, %v6540_v23  ;;  %v5430_v48 = vpack.c.bf16 %v472_v24, %v472_v24  ;;  %v5883_v52 = vld [vmem:[%s7690_s2 + $0x90] sm:$0xff]   ;;  %v2691_v50 = vld [vmem:[#allocation2 + $0x2c] sm:$0x1] }
  0xa1   : > { %v5849_v29 = vld [vmem:[#allocation2 + $0x9c] sm:$0xff]   ;;  %v1520_v6 = vshrl.u32 %v1195_v41, 16  ;;  %v5494_v32 = vunpack.c.l.bf16 %v6533_v18  ;;  %v1515_v34 = vshll.u32 %v1194_v7, 16  ;;  %v3243_v49 = vsel %vm6065_vm11, %v3238_v8, %v3242_v53  ;;  %v3156_v17 = vld [vmem:[#allocation2 + $0x38] sm:$0x1]  ;;  %5632 = vmatpush3.bf16.msra.mxu1 %v5883_v52 }
  0xa2   : > { %v5431_v2 = vpack.c.bf16 %v473_v28, %v473_v28  ;;  %v1196_v36 = vld [vmem:[#allocation2 + $0xa0] sm:$0xf]  ;;  %v1523_v39 = vshll.u32 %v1195_v41, 16  ;;  %2131 = vrot.lane.b32.xlu0 %v5849_v29, %s5932_s30  ;;  %v5300_v43 = vcombine.low %v3233_v46, %v3243_v49  ;;  %v798_v35 = vshrl.u32 %v5430_v48, 16  ;;  %v363_v46 = vld [vmem:[#allocation2 + $0xb0] sm:$0x1] }
  0xa3   : > { %v801_v42 = vshll.u32 %v5430_v48, 16  ;;  %v1522_v10 = vrot.slane %v1520_v6, 4  ;;  %v1517_v40 = vrot.slane %v1515_v34, 5  ;;  %v1529_v60 = vshll.u32 %v1196_v36, 16  ;;  %v3157_v7 = vld [vmem:[#allocation2 + $0x3c] sm:$0xf] }
  0xa4   : > { %v806_v9 = vshrl.u32 %v5431_v2, 16  ;;  %v809_v54 = vshll.u32 %v5431_v2, 16  ;;  %v1525_v58 = vrot.slane %v1523_v39, 5  ;;  %v800_v22 = vrot.slane %v798_v35, 7  ;;  %v990_v47 = vld [vmem:[#allocation2 + $0xa8] sm:$0xf] }
  0xa5   : > { %v1533_v37 = vshrl.u32 %v1196_v36, 16  ;;  %v3250_v59 = vrot.slane %v3248_v26, 5  ;;  %v1518_v62 = vsel %vm6065_vm11, %v1513_v38, %v1517_v40  ;;  %v3254_v55 = vshll.u32 %v6550_v30, 16  ;;  %v310_v26 = vld [vmem:[#allocation2 + $0xb4] sm:$0x1]  ;;  %v5885_v2 = vld [vmem:[%s7690_s2 + $0xd8] sm:$0xff]  }
  0xa6   : > { %v6561_v63 = vrot.slane %v806_v9, 7  ;;  %v987_v12 = vld [vmem:[#allocation2 + $0xa4] sm:$0x1]  ;;  %v1526_v11 = vor.u32 %v1525_v58, %v1522_v10  ;;  %v5183_v53 = vcombine.low %v1508_v51, %v1518_v62  ;;  %3630 = vrot.lane.b32.xlu0 %v5300_v43, %s5932_s30  ;;  %v803_v33 = vor.u32 %v801_v42, %v800_v22  ;;  %v2690_v51 = vld [vmem:[#allocation2 + $0x28] sm:$0xf]  ;;  %5633 = vmatprep.subr.bf16.mxu1 %v5885_v2  ;;  %v5886_v23 = vld [vmem:[%s7690_s2 + $0x98] sm:$0xff]  }
  0xa7   : > { %v804_v15 = vrot.slane %v800_v22, 4  ;;  %v988_v16 = vsel %vm5981_vm3, %v796_v31, %v987_v12  ;;  %v6580_v45 = vrot.slane %v1529_v60, 5  ;;  %v5495_v25 = vunpack.c.h.bf16 %v6533_v18  ;;  %v6597_v49 = vld [vmem:[#allocation2 + $0x40] sm:$0xf]  ;;  %5634 = vmatpush3.bf16.msra.mxu1 %v5886_v23 }
  0xa8   : > { %v811_v19 = vor.u32 %v809_v54, %v6561_v63  ;;  %989 = vst [vmem:[#allocation2 + $0xa4] sm:$0x1] %v988_v16  ;;  %v6578_v21 = vrot.slane %v1526_v11, 4  ;;  %1663 = vrot.lane.b32.xlu1 %v5183_v53, %s5932_s30  ;;  %v813_v31 = vrot.slane %v6561_v63, 4  ;;  %v991_v20 = vsel %vm6049_vm10, %v803_v33, %v990_v47  ;;  %v5892_v63 = vld [vmem:[%s7690_s2 + $0xa8] sm:$0xff]  }
  0xa9   : > { %v1535_v38 = vrot.slane %v1533_v37, 4  ;;  %v3251_v24 = vor.u32 %v3250_v59, %v6546_v5  ;;  %992 = vst [vmem:[#allocation2 + $0xa8] sm:$0xf] %v991_v20  ;;  %v3256_v28 = vrot.slane %v3254_v55, 5  ;;  %v3258_v41 = vshrl.u32 %v6550_v30, 16 }
  0xaa   : > { %v812_v8 = vsel %vm6043_vm9, %v804_v15, %v811_v19  ;;  %v3264_v29 = vshll.u32 %v3156_v17, 16  ;;  %v1532_v48 = vsel %vm6065_vm11, %v6578_v21, %v6580_v45  ;;  %v5253_v6 = vrot.slane %v2689_v3, 9  ;;  %v6633_v3 = vld [vmem:[%s6009_s29 + $0x78] sm:$0xff]  }
  0xab   : > { %993 = vst.msk [vmem:[#allocation2 + $0xac] sm:$0xf] %vm253_vm0, %v812_v8  ;;  %v1536_v5 = vor.u32 %v1535_v38, %v6580_v45  ;;  %v2795_v34 = vrot.slane %v2690_v51, 5  ;;  %v3252_v30 = vrot.slane %v3251_v24, 4  ;;  %v3260_v36 = vrot.slane %v3258_v41, 4 }
  0xac   : > { %v2798_v39 = vrot.slane %v2691_v50, 5  ;;  %v311_v43 = vsel %vm5981_vm3, 0, %v310_v26  ;;  %2941 = vrot.lane.b32.xlu1 %v5268_v14, %s5932_s30  ;;  %v3266_v42 = vrot.slane %v3264_v29, 5  ;;  %v474_v9 = vadd.f32 %v6340_v13, %v5494_v32  ;;  %v5888_v50 = vld [vmem:[%s7690_s2 + $0xe0] sm:$0xff]  }
  0xad   : > { %v1537_v35 = vrot.slane %v1536_v5, 4  ;;  %v6610_v10 = vsel %vm6465_vm14, %v5253_v6, %v2795_v34  ;;  %v2797_v57 = vrot.slane %v2795_v34, 4  ;;  %312 = vst [vmem:[#allocation2 + $0xb4] sm:$0x1] %v311_v43  ;;  %v3261_v40 = vor.u32 %v3260_v36, %v3256_v28  ;;  %v3159_v26 = vld [vmem:[#allocation2 + $0x44] sm:$0x1]  ;;  %5635 = vmatprep.subr.bf16.mxu1 %v5888_v50  ;;  %v6648_v36 = vpop.permute.xlu1 %2109 }
  0xae   : > { %v475_v54 = vadd.f32 %v6340_v13, %v5495_v25  ;;  %v364_v0 = vsel %vm5990_vm5, 0, %v363_v46  ;;  %v3269_v22 = vshrl.u32 %v3157_v7, 16  ;;  %v3272_v60 = vshll.u32 %v3157_v7, 16  ;;  %v5889_v46 = vld [vmem:[%s7690_s2 + $0xa0] sm:$0xff]  }
  0xaf   : > { %v1197_v14 = vld [vmem:[#allocation2 + $0xa4] sm:$0x1]  ;;  %v6623_v58 = vsel %vm6465_vm14, %v2797_v57, %v2798_v39  ;;  %365 = vst [vmem:[#allocation2 + $0xb0] sm:$0x1] %v364_v0  ;;  %v3278_v18 = vshll.u32 %v6597_v49, 16  ;;  %v3257_v13 = vsel %vm6065_vm11, %v3252_v30, %v3256_v28  ;;  %v3262_v37 = vrot.slane %v3261_v40, 4  ;;  %5636 = vmatpush3.bf16.msra.mxu1 %v5889_v46 }
  0xb0   : > { %v1539_v32 = vshll.u32 %v1197_v14, 16  ;;  %v5432_v59 = vpack.c.bf16 %v474_v9, %v474_v9  ;;  %v5269_v62 = vcombine.low %v6610_v10, %v6623_v58  ;;  %v5433_v47 = vpack.c.bf16 %v475_v54, %v475_v54  ;;  %v1198_v12 = vld [vmem:[#allocation2 + $0xa8] sm:$0xf]  ;;  %v2693_v57 = vld [vmem:[#allocation2 + $0x34] sm:$0xf] }
  0xb1   : > { %v3271_v11 = vrot.slane %v3269_v22, 4  ;;  %v3274_v55 = vrot.slane %v3272_v60, 5  ;;  %v3267_v15 = vsel %vm6065_vm11, %v3262_v37, %v3266_v42  ;;  %v1544_v51 = vshrl.u32 %v1198_v12, 16  ;;  %v5891_v39 = vld [vmem:[%s7690_s2 + $0xe8] sm:$0xff]   ;;  %v2692_v42 = vld [vmem:[#allocation2 + $0x30] sm:$0xe] }
  0xb2   : > { %v5850_v53 = vld [vmem:[#allocation2 + $0xa8] sm:$0xff]   ;;  %v1541_v33 = vrot.slane %v1539_v32, 5  ;;  %v815_v16 = vshrl.u32 %v5432_v59, 16  ;;  %v818_v17 = vshll.u32 %v5432_v59, 16  ;;  %v5301_v52 = vcombine.low %v3257_v13, %v3267_v15  ;;  %v2694_v14 = vld [vmem:[#allocation2 + $0x38] sm:$0x1]  ;;  %5637 = vmatprep.subr.bf16.mxu1 %v5891_v39 }
  0xb3   : > { %v823_v19 = vshrl.u32 %v5433_v47, 16  ;;  %v826_v21 = vshll.u32 %v5433_v47, 16  ;;  %v1199_v45 = vld [vmem:[#allocation2 + $0xac] sm:$0xf]  ;;  %2133 = vrot.lane.b32.xlu0 %v5850_v53, %s5932_s30  ;;  %v1547_v38 = vshll.u32 %v1198_v12, 16  ;;  %v1546_v29 = vrot.slane %v1544_v51, 4  ;;  %5638 = vmatpush3.bf16.msra.mxu1 %v5892_v63 }
  0xb4   : > { %v1542_v25 = vsel %vm6065_vm11, %v1537_v35, %v1541_v33  ;;  %v817_v20 = vrot.slane %v815_v16, 7  ;;  %v1553_v24 = vshll.u32 %v1199_v45, 16  ;;  %v997_v41 = vld [vmem:[#allocation2 + $0xb4] sm:$0xf]  ;;  %v1557_v7 = vshrl.u32 %v1199_v45, 16 }
  0xb5   : > { %v5184_v8 = vcombine.low %v1532_v48, %v1542_v25  ;;  %v6644_v28 = vrot.slane %v823_v19, 7  ;;  %v1549_v2 = vrot.slane %v1547_v38, 5  ;;  %v5498_v40 = vunpack.c.l.bf16 %v6633_v3  ;;  %v313_v13 = vld [vmem:[#allocation2 + $0xc0] sm:$0x1]  ;;  %v366_v12 = vld [vmem:[#allocation2 + $0xbc] sm:$0x1] }
  0xb6   : > { %v820_v5 = vor.u32 %v818_v17, %v817_v20  ;;  %v821_v6 = vrot.slane %v817_v20, 4  ;;  %v994_v34 = vld [vmem:[#allocation2 + $0xb0] sm:$0x1]  ;;  %v6646_v30 = vrot.slane %v1553_v24, 5  ;;  %v1559_v35 = vrot.slane %v1557_v7, 4 }
  0xb7   : > { %1665 = vrot.lane.b32.xlu1 %v5184_v8, %s5932_s30  ;;  %v828_v48 = vor.u32 %v826_v21, %v6644_v28  ;;  %v995_v43 = vsel %vm5981_vm3, %v813_v31, %v994_v34  ;;  %3632 = vrot.lane.b32.xlu0 %v5301_v52, %s5932_s30  ;;  %v1550_v54 = vor.u32 %v1549_v2, %v1546_v29  ;;  %v3280_v23 = vrot.slane %v3278_v18, 5  ;;  %v6676_v33 = vld [vmem:[#allocation2 + $0x48] sm:$0xf]  ;;  %v6682_v52 = vpop.permute.xlu1 %1641  ;;  %v5922_v58 = vld [vmem:[%s7689_s1] ss:$0 sm:$0xff]  ;;  %v5894_v45 = vld [vmem:[%s7690_s2 + $0xf0] sm:$0xff]  }
  0xb8   : > { %v998_v9 = vsel %vm6049_vm10, %v820_v5, %v997_v41  ;;  %996 = vst [vmem:[#allocation2 + $0xb0] sm:$0x1] %v995_v43  ;;  %v3275_v0 = vor.u32 %v3274_v55, %v3271_v11  ;;  %v1560_v22 = vor.u32 %v1559_v35, %v6646_v30  ;;  %v3282_v60 = vshrl.u32 %v6597_v49, 16  ;;  %v5895_v20 = vld [vmem:[%s7690_s2 + $0xb0] sm:$0xff]   ;;  %5639 = vmatprep.subr.bf16.mxu1 %v5894_v45  ;;  %v6715_v35 = vpop.permute.xlu0 %2107 }
  0xb9   : > { %v829_v31 = vsel %vm6043_vm9, %v821_v6, %v828_v48  ;;  %999 = vst [vmem:[#allocation2 + $0xb4] sm:$0xf] %v998_v9  ;;  %v3288_v32 = vshll.u32 %v3159_v26, 16  ;;  %v830_v37 = vrot.slane %v6644_v28, 4  ;;  %v5254_v59 = vrot.slane %v2692_v42, 9  ;;  %5640 = vmatpush3.bf16.msra.mxu1 %v5895_v20 }
  0xba   : > { %1000 = vst.msk [vmem:[#allocation2 + $0xb8] sm:$0xf] %vm253_vm0, %v829_v31  ;;  %v3276_v18 = vrot.slane %v3275_v0, 4  ;;  %v2802_v47 = vrot.slane %v2693_v57, 5  ;;  %v1551_v11 = vrot.slane %v1550_v54, 4  ;;  %v1561_v55 = vrot.slane %v1560_v22, 4 }
  0xbb   : > { %2943 = vrot.lane.b32.xlu1 %v5269_v62, %s5932_s30  ;;  %v3284_v53 = vrot.slane %v3282_v60, 4  ;;  %v2805_v49 = vrot.slane %v2694_v14, 5  ;;  %v3290_v15 = vrot.slane %v3288_v32, 5  ;;  %v314_v21 = vsel %vm5981_vm3, 0, %v313_v13  ;;  %v6720_v0 = vpop.permute.xlu1 %1643  ;;  %v3161_v60 = vld [vmem:[#allocation2 + $0x4c] sm:$0xf] }
  0xbc   : > { %v6680_v16 = vsel %vm6465_vm14, %v5254_v59, %v2802_v47  ;;  %v2804_v17 = vrot.slane %v2802_v47, 4  ;;  %v5499_v10 = vunpack.c.h.bf16 %v6633_v3  ;;  %v476_v62 = vadd.f32 %v5922_v58, %v5498_v40  ;;  %315 = vst [vmem:[#allocation2 + $0xc0] sm:$0x1] %v314_v21  ;;  %v2695_v47 = vld [vmem:[#allocation2 + $0x3c] sm:$0xe] }
  0xbd   : > { %v3285_v19 = vor.u32 %v3284_v53, %v3280_v23  ;;  %v3281_v51 = vsel %vm6065_vm11, %v3276_v18, %v3280_v23  ;;  %v367_v3 = vsel %vm5990_vm5, 0, %v366_v12  ;;  %v3293_v25 = vshrl.u32 %v6676_v33, 16  ;;  %v5898_v23 = vld [vmem:[%s7690_s2 + $0xb8] sm:$0xff]  }
  0xbe   : > { %v6697_v50 = vsel %vm6465_vm14, %v2804_v17, %v2805_v49  ;;  %v477_v26 = vadd.f32 %v5922_v58, %v5499_v10  ;;  %v5434_v46 = vpack.c.bf16 %v476_v62, %v476_v62  ;;  %368 = vst [vmem:[#allocation2 + $0xbc] sm:$0x1] %v367_v3  ;;  %v3296_v8 = vshll.u32 %v6676_v33, 16  ;;  %v6741_v3 = vpop.permute.xlu0 %1639 }
  0xbf   : > { %v1200_v38 = vld [vmem:[#allocation2 + $0xb0] sm:$0x1]  ;;  %v3286_v24 = vrot.slane %v3285_v19, 4  ;;  %v1556_v41 = vsel %vm6065_vm11, %v1551_v11, %v6646_v30  ;;  %v5270_v7 = vcombine.low %v6680_v16, %v6697_v50  ;;  %v6711_v6 = vrot.slane %v3293_v25, 4  ;;  %v5897_v30 = vld [vmem:[%s7690_s2 + $0xf8] sm:$0xff]   ;;  %v6768_v16 = vld [vmem:[%s7690_s2 + $0x100] sm:$0xff]  }
  0xc0   : > { %v1563_v29 = vshll.u32 %v1200_v38, 16  ;;  %v1201_v5 = vld [vmem:[#allocation2 + $0xb4] sm:$0xf]  ;;  %v5435_v39 = vpack.c.bf16 %v477_v26, %v477_v26  ;;  %v832_v48 = vshrl.u32 %v5434_v46, 16  ;;  %v835_v43 = vshll.u32 %v5434_v46, 16  ;;  %5641 = vmatprep.subr.bf16.mxu1 %v5897_v30  ;;  %v6747_v46 = vpop.permute.xlu1 %1645  ;;  %5777 = vmatprep.subr.bf16.mxu0 %v6768_v16 }
  0xc1   : > { %v5851_v34 = vld [vmem:[#allocation2 + $0xb4] sm:$0xff]   ;;  %v3291_v2 = vsel %vm6065_vm11, %v3286_v24, %v3290_v15  ;;  %v1568_v9 = vshrl.u32 %v1201_v5, 16  ;;  %v1571_v54 = vshll.u32 %v1201_v5, 16  ;;  %5642 = vmatpush3.bf16.msra.mxu1 %v5898_v23  ;;  %v3162_v15 = vld [vmem:[#allocation2 + $0x50] sm:$0x1]  ;;  %v3298_v58 = vrot.slane %v3296_v8, 5 }
  0xc2   : > { %v1565_v42 = vrot.slane %v1563_v29, 5  ;;  %v5302_v57 = vcombine.low %v3281_v51, %v3291_v2  ;;  %v1202_v40 = vld [vmem:[#allocation2 + $0xb8] sm:$0xf]  ;;  %2135 = vrot.lane.b32.xlu0 %v5851_v34, %s5932_s30  ;;  %v834_v14 = vrot.slane %v832_v48, 7  ;;  %v840_v63 = vshrl.u32 %v5435_v39, 16 }
  0xc3   : > { %v843_v31 = vshll.u32 %v5435_v39, 16  ;;  %v1577_v22 = vshll.u32 %v1202_v40, 16  ;;  %v1570_v13 = vrot.slane %v1568_v9, 4  ;;  %v1573_v18 = vrot.slane %v1571_v54, 5  ;;  %v1004_v33 = vld [vmem:[#allocation2 + $0xc0] sm:$0xf] }
  0xc4   : > { %v1566_v32 = vsel %vm6065_vm11, %v1561_v55, %v1565_v42  ;;  %v1581_v59 = vshrl.u32 %v1202_v40, 16  ;;  %v837_v11 = vor.u32 %v835_v43, %v834_v14  ;;  %v838_v53 = vrot.slane %v834_v14, 4  ;;  %v2696_v51 = vld [vmem:[#allocation2 + $0x40] sm:$0xf]  ;;  %v2697_v26 = vld [vmem:[#allocation2 + $0x44] sm:$0x1]  ;;  %v6759_v42 = vpop.permute.xlu0 %2111 }
  0xc5   : > { %v5185_v12 = vcombine.low %v1556_v41, %v1566_v32  ;;  %v6728_v49 = vrot.slane %v840_v63, 7  ;;  %v1001_v17 = vld [vmem:[#allocation2 + $0xbc] sm:$0x1]  ;;  %v1574_v19 = vor.u32 %v1573_v18, %v1570_v13  ;;  %v6730_v21 = vrot.slane %v1577_v22, 5  ;;  %v3164_v29 = vld [vmem:[#allocation2 + $0x58] sm:$0xf] }
  0xc6   : > { %v1583_v10 = vrot.slane %v1581_v59, 4  ;;  %3634 = vrot.lane.b32.xlu0 %v5302_v57, %s5932_s30  ;;  %v1005_v62 = vsel %vm6049_vm10, %v837_v11, %v1004_v33  ;;  %v1002_v45 = vsel %vm5981_vm3, %v830_v37, %v1001_v17  ;;  %v3299_v38 = vor.u32 %v3298_v58, %v6711_v6  ;;  %v3165_v30 = vld [vmem:[#allocation2 + $0x5c] sm:$0x1]  ;;  %7715 = vst [vmem:[#allocation8_spill] sm:$0xff] %v6759_v42  ;;  %v2698_v23 = vld [vmem:[#allocation2 + $0x48] sm:$0xe] }
  0xc7   : > { %7714 = vst [vmem:[#allocation7_spill] sm:$0xff] %v6728_v49  ;;  %1667 = vrot.lane.b32.xlu1 %v5185_v12, %s5932_s30  ;;  %v845_v55 = vor.u32 %v843_v31, %v6728_v49  ;;  %1006 = vst [vmem:[#allocation2 + $0xc0] sm:$0xf] %v1005_v62  ;;  %v6743_v25 = vrot.slane %v1574_v19, 4  ;;  %v3302_v24 = vshll.u32 %v3161_v60, 16  ;;  %v3306_v37 = vshrl.u32 %v3161_v60, 16 }
  0xc8   : > { %1003 = vst [vmem:[#allocation2 + $0xbc] sm:$0x1] %v1002_v45  ;;  %v1584_v20 = vor.u32 %v1583_v10, %v6730_v21  ;;  %v3312_v8 = vshll.u32 %v3162_v15, 16  ;;  %v5255_v41 = vrot.slane %v2695_v47, 9  ;;  %v3300_v2 = vrot.slane %v3299_v38, 4  ;;  %v6774_v47 = vpop.permute.xlu1 %1647  ;;  %v5907_v49 = vld [vmem:[#allocation2 + $0x54] sm:$0xff]  }
  0xc9   : > { %v846_v28 = vsel %vm6043_vm9, %v838_v53, %v845_v55  ;;  %v3304_v6 = vrot.slane %v3302_v24, 5  ;;  %v3308_v39 = vrot.slane %v3306_v37, 4  ;;  %v2809_v48 = vrot.slane %v2696_v51, 5  ;;  %v2699_v14 = vld [vmem:[#allocation2 + $0x4c] sm:$0xf] }
  0xca   : > { %1007 = vst.msk [vmem:[#allocation2 + $0xc4] sm:$0xf] %vm253_vm0, %v846_v28  ;;  %v6753_v34 = vrot.slane %v1584_v20, 4  ;;  %v3314_v56 = vrot.slane %v3312_v8, 5  ;;  %v2812_v43 = vrot.slane %v2697_v26, 5  ;;  %v1580_v57 = vsel %vm6065_vm11, %v6743_v25, %v6730_v21  ;;  %v6787_v20 = vpop.permute.xlu0 %2113 }
  0xcb   : > { %2945 = vrot.lane.b32.xlu1 %v5270_v7, %s5932_s30  ;;  %v3317_v40 = vshrl.u32 %v3163_v61, 16  ;;  %v3320_v9 = vshll.u32 %v3163_v61, 16  ;;  %v3326_v54 = vshll.u32 %v3164_v29, 16  ;;  %v3309_v50 = vor.u32 %v3308_v39, %v3304_v6  ;;  %v2700_v22 = vld [vmem:[#allocation2 + $0x50] sm:$0x1]  ;;  %7716 = vst [vmem:[#allocation9_spill] sm:$0xff] %v6787_v20 }
  0xcc   : > { %v6772_v7 = vsel %vm6465_vm14, %v5255_v41, %v2809_v48  ;;  %v2811_v63 = vrot.slane %v2809_v48, 4  ;;  %v3330_v31 = vshrl.u32 %v3164_v29, 16  ;;  %v3336_v18 = vshll.u32 %v3165_v30, 16  ;;  %v3166_v59 = vld [vmem:[#allocation2 + $0x60] sm:$0xf] }
  0xcd   : > { %v3319_v60 = vrot.slane %v3317_v40, 4  ;;  %v3322_v32 = vrot.slane %v3320_v9, 5  ;;  %v3328_v13 = vrot.slane %v3326_v54, 5  ;;  %v3305_v11 = vsel %vm6065_vm11, %v3300_v2, %v3304_v6  ;;  %v3167_v17 = vld [vmem:[#allocation2 + $0x64] sm:$0xf] }
  0xce   : > { %v3310_v53 = vrot.slane %v3309_v50, 4  ;;  %v6781_v33 = vsel %vm6465_vm14, %v2811_v63, %v2812_v43  ;;  %v3332_v15 = vrot.slane %v3330_v31, 4  ;;  %v3338_v58 = vrot.slane %v3336_v18, 5  ;;  %v2701_v28 = vld [vmem:[#allocation2 + $0x54] sm:$0xe] }
  0xcf   : > { %v1203_v12 = vld [vmem:[#allocation2 + $0xbc] sm:$0x1]  ;;  %v5271_v21 = vcombine.low %v6772_v7, %v6781_v33  ;;  %v3323_v10 = vor.u32 %v3322_v32, %v3319_v60  ;;  %v5256_v51 = vrot.slane %v2698_v23, 9  ;;  %v2816_v25 = vrot.slane %v2699_v14, 5  ;;  %v2702_v37 = vld [vmem:[#allocation2 + $0x58] sm:$0xf] }
  0xd0   : > { %v1587_v19 = vshll.u32 %v1203_v12, 16  ;;  %v3315_v62 = vsel %vm6065_vm11, %v3310_v53, %v3314_v56  ;;  %v3333_v45 = vor.u32 %v3332_v15, %v3328_v13  ;;  %v2819_v61 = vrot.slane %v2700_v22, 5  ;;  %v3168_v2 = vld [vmem:[#allocation2 + $0x68] sm:$0x1]  ;;  %v6794_v39 = vld [vmem:[#allocation2 + $0x5c] sm:$0x1]  ;;  %v6815_v12 = vpop.permute.xlu0 %2115 }
  0xd1   : > { %v5852_v55 = vld [vmem:[#allocation2 + $0xc0] sm:$0xff]   ;;  %v5303_v24 = vcombine.low %v3305_v11, %v3315_v62  ;;  %v3324_v26 = vrot.slane %v3323_v10, 4  ;;  %v6792_v41 = vsel %vm6465_vm14, %v5256_v51, %v2816_v25  ;;  %v2818_v29 = vrot.slane %v2816_v25, 4  ;;  %v3169_v40 = vld [vmem:[#allocation2 + $0x6c] sm:$0xf]  ;;  %7717 = vst [vmem:[#allocation10_spill] sm:$0xff] %v6815_v12 }
  0xd2   : > { %v1589_v38 = vrot.slane %v1587_v19, 5  ;;  %2137 = vrot.lane.b32.xlu0 %v5852_v55, %s5932_s30  ;;  %v3334_v8 = vrot.slane %v3333_v45, 4  ;;  %v3341_v6 = vshrl.u32 %v3166_v59, 16  ;;  %v3344_v43 = vshll.u32 %v3166_v59, 16  ;;  %v3170_v60 = vld [vmem:[#allocation2 + $0x70] sm:$0xf] }
  0xd3   : > { %v3329_v48 = vsel %vm6065_vm11, %v3324_v26, %v3328_v13  ;;  %v3350_v30 = vshll.u32 %v3167_v17, 16  ;;  %v6801_v9 = vpop.permute.xlu1 %1649  ;;  %v6807_v14 = vsel %vm6465_vm14, %v2818_v29, %v2819_v61  ;;  %v3360_v32 = vshll.u32 %v3168_v2, 16  ;;  %v3171_v59 = vld [vmem:[#allocation2 + $0x74] sm:$0x1]  ;;  %v6818_v10 = vld [vmem:[#allocation2 + $0x60] sm:$0xe] }
  0xd4   : > { %v1590_v56 = vsel %vm6065_vm11, %v6753_v34, %v1589_v38  ;;  %v3339_v23 = vsel %vm6065_vm11, %v3334_v8, %v3338_v58  ;;  %v3343_v50 = vrot.slane %v3341_v6, 4  ;;  %v3346_v31 = vrot.slane %v3344_v43, 5  ;;  %v6826_v45 = vld [vmem:[#allocation2 + $0x64] sm:$0xf]  ;;  %v6828_v51 = vld [vmem:[#allocation2 + $0x68] sm:$0x1]  ;;  %v6860_v42 = vpop.permute.xlu0 %2117 }
  0xd5   : > { %v5186_v54 = vcombine.low %v1580_v57, %v1590_v56  ;;  %v5304_v63 = vcombine.low %v3329_v48, %v3339_v23  ;;  %v6811_v22 = vrot.slane %v3350_v30, 5  ;;  %v3354_v57 = vshrl.u32 %v3167_v17, 16  ;;  %v5865_v25 = vld [vmem:[#allocation2] sm:$0xff]   ;;  %v5869_v38 = vld [vmem:[#allocation2 + $0xc] sm:$0xff]   ;;  %v5878_v8 = vld [vmem:[#allocation2 + $0x54] sm:$0xff]  }
  0xd6   : > { %3636 = vrot.lane.b32.xlu0 %v5303_v24, %s5932_s30  ;;  %v5257_v13 = vrot.slane %v2701_v28, 9  ;;  %v2823_v18 = vrot.slane %v2702_v37, 5  ;;  %v3347_v11 = vor.u32 %v3346_v31, %v3343_v50  ;;  %v2826_v53 = vrot.slane %v6794_v39, 5  ;;  %v5871_v24 = vld [vmem:[#allocation2 + $0x18] sm:$0xff]   ;;  %v5872_v26 = vld [vmem:[#allocation2 + $0x24] sm:$0xff]   ;;  %v5873_v61 = vld [vmem:[#allocation2 + $0x30] sm:$0xff]  }
  0xd7   : > { %1669 = vrot.lane.b32.xlu1 %v5186_v54, %s5932_s30  ;;  %v3365_v15 = vshrl.u32 %v3169_v40, 16  ;;  %v3368_v19 = vshll.u32 %v3169_v40, 16  ;;  %v3356_v58 = vrot.slane %v3354_v57, 4  ;;  %v6820_v55 = vrot.slane %v3360_v32, 5  ;;  %v5874_v28 = vld [vmem:[#allocation2 + $0x3c] sm:$0xff]   ;;  %v5875_v37 = vld [vmem:[#allocation2 + $0x48] sm:$0xff]   ;;  %v6832_v5 = vpop.permute.xlu1 %1651 }
  0xd8   : > { %v6824_v62 = vsel %vm6465_vm14, %v5257_v13, %v2823_v18  ;;  %v2825_v17 = vrot.slane %v2823_v18, 4  ;;  %v5881_v29 = vld [vmem:[#allocation2 + $0x60] sm:$0xff]   ;;  %v5884_v2 = vld [vmem:[#allocation2 + $0x6c] sm:$0xff]   ;;  %v5887_v6 = vld [vmem:[#allocation2 + $0x78] sm:$0xff]   ;;  %v3348_v31 = vrot.slane %v3347_v11, 4  ;;  %v3374_v13 = vshll.u32 %v3170_v60, 16 }
  0xd9   : > { %v5890_v39 = vld [vmem:[#allocation2 + $0x84] sm:$0xff]   ;;  %v5893_v56 = vld [vmem:[#allocation2 + $0x18] sm:$0xff]   ;;  %v5896_v48 = vld [vmem:[#allocation2 + $0x90] sm:$0xff]   ;;  %v3367_v57 = vrot.slane %v3365_v15, 4  ;;  %v3370_v32 = vrot.slane %v3368_v19, 5  ;;  %v3357_v34 = vor.u32 %v3356_v58, %v6811_v22  ;;  %v3378_v11 = vshrl.u32 %v3170_v60, 16 }
  0xda   : > { %v5899_v43 = vld [vmem:[#allocation2 + $0x24] sm:$0xff]   ;;  %v5900_v30 = vld [vmem:[#allocation2 + $0x9c] sm:$0xff]   ;;  %v5901_v40 = vld [vmem:[#allocation2 + $0x30] sm:$0xff]   ;;  %3638 = vrot.lane.b32.xlu0 %v5304_v63, %s5932_s30  ;;  %v6842_v1 = vsel %vm6465_vm14, %v2825_v17, %v2826_v53  ;;  %v3384_v15 = vshll.u32 %v3171_v59, 16  ;;  %v3353_v12 = vsel %vm6065_vm11, %v3348_v31, %v6811_v22  ;;  %v5258_v17 = vrot.slane %v6818_v10, 9 }
  0xdb   : > { %v5902_v54 = vld [vmem:[#allocation2 + $0xa8] sm:$0xff]   ;;  %v5903_v23 = vld [vmem:[#allocation2 + $0x3c] sm:$0xff]   ;;  %v5905_v50 = vld [vmem:[#allocation2 + $0xb4] sm:$0xff]   ;;  %2947 = vrot.lane.b32.xlu1 %v5271_v21, %s5932_s30  ;;  %v5273_v7 = vcombine.low %v6824_v62, %v6842_v1  ;;  %v3371_v33 = vor.u32 %v3370_v32, %v3367_v57  ;;  %v6849_v21 = vrot.slane %v3374_v13, 5  ;;  %v3358_v53 = vrot.slane %v3357_v34, 4 }
  0xdc   : > { %v6830_v18 = vld [vmem:[#allocation2] sm:$0xe]  ;;  %v5906_v19 = vld [vmem:[#allocation2 + $0x48] sm:$0xff]   ;;  %v6851_v63 = vld [vmem:[#allocation2 + $0x4] sm:$0xf]  ;;  %v3380_v60 = vrot.slane %v3378_v11, 4  ;;  %v7718_v34 = vcombine.low %v6792_v41, %v6807_v14 }
  0xdd   : > { %v6853_v58 = vld [vmem:[#allocation2 + $0x8] sm:$0x1]  ;;  %v6855_v59 = vrot.slane %v3384_v15, 5  ;;  %v6858_v20 = vld [vmem:[#allocation2 + $0x78] sm:$0xf]  ;;  %v6862_v22 = vrot.slane %v3371_v33, 4  ;;  %v3363_v10 = vsel %vm6065_vm11, %v3358_v53, %v6820_v55 }
  0xde   : > { %v2830_v31 = vrot.slane %v6826_v45, 5  ;;  %v2833_v57 = vrot.slane %v6828_v51, 5  ;;  %vm1139_vm15 = vcmask 523264   ;;  %v6866_v32 = vld [vmem:[#allocation2 + $0x7c] sm:$0xf]  ;;  %v3381_v13 = vor.u32 %v3380_v60, %v6849_v21 }
  0xdf   : > { %2949 = vrot.lane.b32.xlu1 %v7718_v34, %s5932_s30  ;;  %vm1687_vm0 = vcmask 1048064   ;;  %v5187_v11 = vrot.slane %v6830_v18, 9  ;;  %1140 = vst.msk [vmem:[#allocation3] sm:$0xff] %vm1139_vm15, %v5865_v25  ;;  %1141 = vst.msk [vmem:[#allocation3 + $0x28] sm:$0xff] %vm1139_vm15, %v5869_v38  ;;  %v5305_v41 = vcombine.low %v3353_v12, %v3363_v10  ;;  %v3377_v14 = vsel %vm6065_vm11, %v6862_v22, %v6849_v21  ;;  %v3174_v51 = vld [vmem:[#allocation2 + $0x80] sm:$0x1] }
  0xe0   : > { %1142 = vst.msk [vmem:[#allocation3 + $0x50] sm:$0xff] %vm1139_vm15, %v5871_v24  ;;  %1143 = vst.msk [vmem:[#allocation3 + $0x78] sm:$0xff] %vm1139_vm15, %v5872_v26  ;;  %v2831_v55 = vsel %vm6465_vm14, %v5258_v17, %v2830_v31  ;;  %v2832_v45 = vrot.slane %v2830_v31, 4  ;;  %v2707_v25 = vld [vmem:[#allocation2 + $0x6c] sm:$0xe]  ;;  %vm4945_vm1 = vcmask 261120  }
  0xe1   : > { %1144 = vst.msk [vmem:[#allocation3 + $0xa0] sm:$0xff] %vm1139_vm15, %v5873_v61  ;;  %1145 = vst.msk [vmem:[#allocation3 + $0xc8] sm:$0xff] %vm1139_vm15, %v5874_v28  ;;  %v2708_v12 = vld [vmem:[#allocation2 + $0x70] sm:$0xf]  ;;  %v2709_v38 = vld [vmem:[#allocation2 + $0x74] sm:$0x1]  ;;  %3640 = vrot.lane.b32.xlu0 %v5305_v41, %s5932_s30 }
  0xe2   : > { %1146 = vst.msk [vmem:[#allocation3 + $0xf0] sm:$0xff] %vm1139_vm15, %v5875_v37  ;;  %1147 = vst.msk [vmem:[#allocation3 + $0x118] sm:$0xff] %vm1139_vm15, %v5878_v8  ;;  %v1707_v24 = vld [vmem:[#allocation2 + $0xc] sm:$0xe]  ;;  %v1708_v8 = vld [vmem:[#allocation2 + $0x10] sm:$0xf] }
  0xe3   : > { %1148 = vst.msk [vmem:[#allocation3 + $0x140] sm:$0xff] %vm1139_vm15, %v5881_v29  ;;  %1149 = vst.msk [vmem:[#allocation3 + $0x168] sm:$0xff] %vm1139_vm15, %v5884_v2  ;;  %v5909_v26 = vld [vmem:[#allocation2 + $0x6c] sm:$0xff]   ;;  %2951 = vrot.lane.b32.xlu1 %v5273_v7, %s5932_s30  ;;  %v1709_v29 = vld [vmem:[#allocation2 + $0x14] sm:$0x1]  ;;  %v6939_v2 = vpop.permute.xlu0 %2119  ;;  %v2840_v18 = vrot.slane %v2709_v38, 5 }
  0xe4   : > { %1150 = vst.msk [vmem:[#allocation3 + $0x190] sm:$0xff] %vm1139_vm15, %v5887_v6  ;;  %1151 = vst.msk [vmem:[#allocation3 + $0x1b8] sm:$0xff] %vm1139_vm15, %v5890_v39  ;;  %v5188_v7 = vrot.slane %v1707_v24, 9  ;;  %v1812_v33 = vrot.slane %v1708_v8, 5  ;;  %v3176_v21 = vld [vmem:[#allocation2 + $0x88] sm:$0xf] }
  0xe5   : > { %3132 = vst.msk [vmem:[#allocation3 + $0x18] sm:$0xff] %vm1139_vm15, %v5893_v56  ;;  %1152 = vst.msk [vmem:[#allocation3 + $0x1e0] sm:$0xff] %vm1139_vm15, %v5896_v48  ;;  %v1815_v60 = vrot.slane %v1709_v29, 5  ;;  %v2710_v17 = vld [vmem:[#allocation2 + $0x78] sm:$0xe] }
  0xe6   : > { %3133 = vst.msk [vmem:[#allocation3 + $0x40] sm:$0xff] %vm1139_vm15, %v5899_v43  ;;  %1153 = vst.msk [vmem:[#allocation3 + $0x208] sm:$0xff] %vm1139_vm15, %v5900_v30  ;;  %v3175_v43 = vld [vmem:[#allocation2 + $0x84] sm:$0xf]  ;;  %v3408_v30 = vshll.u32 %v3174_v51, 16 }
  0xe7   : > { %3134 = vst.msk [vmem:[#allocation3 + $0x68] sm:$0xff] %vm1139_vm15, %v5901_v40  ;;  %1154 = vst.msk [vmem:[#allocation3 + $0x230] sm:$0xff] %vm1139_vm15, %v5902_v54  ;;  %v5259_v40 = vrot.slane %v2707_v25, 9  ;;  %v2711_v22 = vld [vmem:[#allocation2 + $0x7c] sm:$0xf]  ;;  %v3413_v34 = vshrl.u32 %v3175_v43, 16 }
  0xe8   : > { %3135 = vst.msk [vmem:[#allocation3 + $0x90] sm:$0xff] %vm1139_vm15, %v5903_v23  ;;  %1155 = vst.msk [vmem:[#allocation3 + $0x258] sm:$0xff] %vm1139_vm15, %v5905_v50  ;;  %v2837_v50 = vrot.slane %v2708_v12, 5  ;;  %v2712_v10 = vld [vmem:[#allocation2 + $0x80] sm:$0x1]  ;;  %v2844_v24 = vrot.slane %v2711_v22, 5 }
  0xe9   : > { %3136 = vst.msk [vmem:[#allocation3 + $0xb8] sm:$0xff] %vm1139_vm15, %v5906_v19  ;;  %3137 = vst.msk [vmem:[#allocation3 + $0xe0] sm:$0xff] %vm1139_vm15, %v5907_v49  ;;  %v3382_v49 = vrot.slane %v3381_v13, 4  ;;  %v3410_v19 = vrot.slane %v3408_v30, 5  ;;  %v6953_v13 = vpop.permute.xlu0 %2121  ;;  %v1711_v51 = vld [vmem:[#allocation2 + $0x1c] sm:$0xf] }
  0xea   : > { %3138 = vst.msk [vmem:[#allocation3 + $0x108] sm:$0xff] %vm1139_vm15, %v5908_v4  ;;  %v1654_v4 = vpop.permute.xlu1 %1653  ;;  %3139 = vst.msk [vmem:[#allocation3 + $0x130] sm:$0xff] %vm1139_vm15, %v5909_v26  ;;  %v2839_v53 = vrot.slane %v2837_v50, 4  ;;  %v1712_v38 = vld [vmem:[#allocation2 + $0x20] sm:$0x1]  ;;  %v5911_v22 = vld [vmem:[#allocation2 + $0x78] sm:$0xff]  }
  0xeb   : > { %1688 = vst.msk [vmem:[#allocation3] sm:$0xff] %vm1687_vm0, %v6741_v3  ;;  %1689 = vst.msk [vmem:[#allocation3 + $0x28] sm:$0xff] %vm1687_vm0, %v6682_v52  ;;  %v1805_v3 = vrot.slane %v6851_v63, 5  ;;  %v1808_v52 = vrot.slane %v6853_v58, 5  ;;  %v3387_v61 = vsel %vm6065_vm11, %v3382_v49, %v6855_v59  ;;  %v2838_v58 = vsel %vm6465_vm14, %v5259_v40, %v2837_v50  ;;  %v3177_v59 = vld [vmem:[#allocation2 + $0x8c] sm:$0x1] }
  0xec   : > { %1690 = vst.msk [vmem:[#allocation3 + $0x50] sm:$0xff] %vm1687_vm0, %v6720_v0  ;;  %1691 = vst.msk [vmem:[#allocation3 + $0x78] sm:$0xff] %vm1687_vm0, %v6747_v46  ;;  %v3389_v0 = vshrl.u32 %v6858_v20, 16  ;;  %v2834_v46 = vsel %vm6465_vm14, %v2832_v45, %v2833_v57  ;;  %v5306_v6 = vcombine.low %v3377_v14, %v3387_v61  ;;  %v1813_v57 = vsel %vm6465_vm14, %v5188_v7, %v1812_v33  ;;  %v1710_v45 = vld [vmem:[#allocation2 + $0x18] sm:$0xe] }
  0xed   : > { %1692 = vst.msk [vmem:[#allocation3 + $0xa0] sm:$0xff] %vm1687_vm0, %v6774_v47  ;;  %1693 = vst.msk [vmem:[#allocation3 + $0xc8] sm:$0xff] %vm1687_vm0, %v6801_v9  ;;  %v3392_v47 = vshll.u32 %v6858_v20, 16  ;;  %v3402_v9 = vshrl.u32 %v6866_v32, 16  ;;  %v5274_v28 = vcombine.low %v2831_v55, %v2834_v46  ;;  %v1806_v37 = vsel %vm6465_vm14, %v5187_v11, %v1805_v3  ;;  %v1713_v46 = vld [vmem:[#allocation2 + $0x24] sm:$0xe] }
  0xee   : > { %1694 = vst.msk [vmem:[#allocation3 + $0xf0] sm:$0xff] %vm1687_vm0, %v6832_v5  ;;  %1695 = vst.msk [vmem:[#allocation3 + $0x118] sm:$0xff] %vm1687_vm0, %v1654_v4  ;;  %v3398_v5 = vshll.u32 %v6866_v32, 16  ;;  %v1807_v20 = vrot.slane %v1805_v3, 4  ;;  %v3391_v39 = vrot.slane %v3389_v0, 4  ;;  %3642 = vrot.lane.b32.xlu0 %v5306_v6, %s5932_s30  ;;  %v1814_v32 = vrot.slane %v1812_v33, 4 }
  0xef   : > { %v3394_v56 = vrot.slane %v3392_v47, 5  ;;  %v3404_v62 = vrot.slane %v3402_v9, 4  ;;  %2953 = vrot.lane.b32.xlu1 %v5274_v28, %s5932_s30  ;;  %v2841_v41 = vsel %vm6465_vm14, %v2839_v53, %v2840_v18  ;;  %v3416_v14 = vshll.u32 %v3175_v43, 16  ;;  %v1714_v26 = vld [vmem:[#allocation2 + $0x28] sm:$0xf]  ;;  %3140 = vst.msk [vmem:[#allocation3 + $0x158] sm:$0xff] %vm1139_vm15, %v5911_v22 }
  0xf0   : > { %v3400_v48 = vrot.slane %v3398_v5, 5  ;;  %v1809_v1 = vsel %vm6465_vm14, %v1807_v20, %v1808_v52  ;;  %v3422_v55 = vshll.u32 %v3176_v21, 16  ;;  %v5275_v25 = vcombine.low %v2838_v58, %v2841_v41  ;;  %v1715_v8 = vld [vmem:[#allocation2 + $0x2c] sm:$0x1]  ;;  %v3178_v43 = vld [vmem:[#allocation2 + $0x90] sm:$0xf] }
  0xf1   : > { %v5203_v54 = vcombine.low %v1806_v37, %v1809_v1  ;;  %v3395_v23 = vor.u32 %v3394_v56, %v3391_v39  ;;  %v1816_v4 = vsel %vm6465_vm14, %v1814_v32, %v1815_v60  ;;  %v3415_v49 = vrot.slane %v3413_v34, 4  ;;  %v3179_v1 = vld [vmem:[#allocation2 + $0x94] sm:$0xf]  ;;  %v3180_v18 = vld [vmem:[#allocation2 + $0x98] sm:$0x1] }
  0xf2   : > { %v3405_v15 = vor.u32 %v3404_v62, %v3400_v48  ;;  %v5204_v52 = vcombine.low %v1813_v57, %v1816_v4  ;;  %v3418_v0 = vrot.slane %v3416_v14, 5  ;;  %v6963_v12 = vrot.slane %v3422_v55, 5  ;;  %v6972_v62 = vpop.permute.xlu0 %2123  ;;  %v1717_v41 = vld [vmem:[#allocation2 + $0x34] sm:$0xf] }
  0xf3   : > { %1979 = vst.msk [vmem:[#allocation3 + $0x8] sm:$0xff] %vm1139_vm15, %v5203_v54  ;;  %v3396_v63 = vrot.slane %v3395_v23, 4  ;;  %2955 = vrot.lane.b32.xlu1 %v5275_v25, %s5932_s30  ;;  %v3426_v47 = vshrl.u32 %v3176_v21, 16  ;;  %v3432_v5 = vshll.u32 %v3177_v59, 16  ;;  %v5260_v9 = vrot.slane %v2710_v17, 9 }
  0xf4   : > { %2155 = vst.msk [vmem:[#allocation3 + $0x8] sm:$0xff] %vm1687_vm0, %v6715_v35  ;;  %v3406_v31 = vrot.slane %v3405_v15, 4  ;;  %v3419_v61 = vor.u32 %v3418_v0, %v3415_v49  ;;  %v2847_v28 = vrot.slane %v2712_v10, 5  ;;  %v5189_v37 = vrot.slane %v1710_v45, 9  ;;  %v5910_v15 = vld [vmem:[%s7690_s2 + $0x108] sm:$0xff]  }
  0xf5   : > { %v3401_v11 = vsel %vm6065_vm11, %v3396_v63, %v3400_v48  ;;  %1980 = vst.msk [vmem:[#allocation3 + $0x30] sm:$0xff] %vm1139_vm15, %v5204_v52  ;;  %v1819_v20 = vrot.slane %v1711_v51, 5  ;;  %v3428_v29 = vrot.slane %v3426_v47, 4  ;;  %v3434_v6 = vrot.slane %v3432_v5, 5  ;;  %v3980_v48 = vld [vmem:[#allocation3] sm:$0xff]  ;;  %v1656_v63 = vpop.permute.xlu1 %1655 }
  0xf6   : > { %v3411_v35 = vsel %vm6065_vm11, %v3406_v31, %v3410_v19  ;;  %2156 = vst.msk [vmem:[#allocation3 + $0x30] sm:$0xff] %vm1687_vm0, %v6648_v36  ;;  %v2845_v39 = vsel %vm6465_vm14, %v5260_v9, %v2844_v24  ;;  %v2846_v56 = vrot.slane %v2844_v24, 4  ;;  %v3420_v40 = vrot.slane %v3419_v61, 4  ;;  %v6976_v36 = vld [vmem:[#allocation2 + $0x84] sm:$0xe]  ;;  %1696 = vst.msk [vmem:[#allocation3 + $0x140] sm:$0xff] %vm1687_vm0, %v1656_v63  ;;  %v7001_v0 = vpop.permute.xlu0 %2125 }
  0xf7   : > { %v5307_v3 = vcombine.low %v3401_v11, %v3411_v35  ;;  %v1820_v54 = vsel %vm6465_vm14, %v5189_v37, %v1819_v20  ;;  %v1821_v23 = vrot.slane %v1819_v20, 4  ;;  %v1822_v50 = vrot.slane %v1712_v38, 5  ;;  %v2714_v17 = vld [vmem:[#allocation2 + $0x88] sm:$0xf]  ;;  %v2715_v10 = vld [vmem:[#allocation2 + $0x8c] sm:$0x1] }
  0xf8   : > { %v3429_v19 = vor.u32 %v3428_v29, %v6963_v12  ;;  %v2848_v7 = vsel %vm6465_vm14, %v2846_v56, %v2847_v28  ;;  %v5190_v33 = vrot.slane %v1713_v46, 9  ;;  %v1826_v21 = vrot.slane %v1714_v26, 5  ;;  %v1716_v11 = vld [vmem:[#allocation2 + $0x30] sm:$0xe]  ;;  %v1718_v35 = vld [vmem:[#allocation2 + $0x38] sm:$0x1] }
  0xf9   : > { %3644 = vrot.lane.b32.xlu0 %v5307_v3, %s5932_s30  ;;  %v3425_v58 = vsel %vm6065_vm11, %v3420_v40, %v6963_v12  ;;  %v5276_v53 = vcombine.low %v2845_v39, %v2848_v7  ;;  %v1823_v60 = vsel %vm6465_vm14, %v1821_v23, %v1822_v50  ;;  %v1829_v59 = vrot.slane %v1715_v8, 5  ;;  %v3985_v3 = vld [vmem:[#allocation3 + $0x28] sm:$0xff]  ;;  %v1719_v52 = vld [vmem:[#allocation2 + $0x3c] sm:$0xe]  ;;  %v7719_v38 = vld [vmem:[#allocation8_spill] sm:$0xff]  ;;  %v1658_v61 = vpop.permute.xlu1 %1657 }
  0xfa   : > { %v3430_v31 = vrot.slane %v3429_v19, 4  ;;  %v5205_v57 = vcombine.low %v1820_v54, %v1823_v60  ;;  %v1827_v32 = vsel %vm6465_vm14, %v5190_v33, %v1826_v21  ;;  %v1828_v34 = vrot.slane %v1826_v21, 4  ;;  %v1720_v24 = vld [vmem:[#allocation2 + $0x40] sm:$0xf]  ;;  %v7005_v26 = vld [vmem:[#allocation2 + $0x44] sm:$0x1] }
  0xfb   : > { %v3981_v30 = vld [vmem:[#allocation3 + $0x8] sm:$0xff]  ;;  %2957 = vrot.lane.b32.xlu1 %v5276_v53, %s5932_s30  ;;  %v3437_v14 = vshrl.u32 %v3178_v43, 16  ;;  %v3440_v55 = vshll.u32 %v3178_v43, 16  ;;  %v3446_v45 = vshll.u32 %v3179_v1, 16  ;;  %v3450_v51 = vshrl.u32 %v3179_v1, 16  ;;  %1697 = vst.msk [vmem:[#allocation3 + $0x168] sm:$0xff] %vm1687_vm0, %v1658_v61 }
  0xfc   : > { %4435 = vmatprep.mubr.bf16.mxu0 %v3981_v30  ;;  %v3435_v25 = vsel %vm6065_vm11, %v3430_v31, %v3434_v6  ;;  %1981 = vst.msk [vmem:[#allocation3 + $0x58] sm:$0xff] %vm1139_vm15, %v5205_v57  ;;  %v1830_v4 = vsel %vm6465_vm14, %v1828_v34, %v1829_v59  ;;  %v3456_v49 = vshll.u32 %v3180_v18, 16  ;;  %v5912_v28 = vld [vmem:[#allocation2 + $0x84] sm:$0xff]   ;;  %v2851_v29 = vrot.slane %v2714_v17, 5  ;;  %v7007_v6 = vld [vmem:[#allocation2 + $0x9c] sm:$0xf]  ;;  %v7022_v59 = vpop.permute.xlu0 %2127 }
  0xfd   : > { %4436 = vmatmul.mubr.bf16.vlgmr.msra.gmra.mrb[0].mxu0 %v3980_v48  ;;  %v5308_v12 = vcombine.low %v3425_v58, %v3435_v25  ;;  %2157 = vst.msk [vmem:[#allocation3 + $0x58] sm:$0xff] %vm1687_vm0, %v7719_v38  ;;  %v5206_v46 = vcombine.low %v1827_v32, %v1830_v4  ;;  %v3986_v47 = vld [vmem:[#allocation3 + $0x30] sm:$0xff]  ;;  %v3439_v5 = vrot.slane %v3437_v14, 4  ;;  %v3442_v9 = vrot.slane %v3440_v55, 5  ;;  %v7720_v1 = vld [vmem:[#allocation9_spill] sm:$0xff]  ;;  %v5913_v17 = vld [vmem:[#allocation2 + $0x90] sm:$0xff]  }
  0xfe   : > { %5778 = vmatpush3.bf16.msra.mxu0 %v6768_v16  ;;  %v5261_v16 = vrot.slane %v6976_v36, 9  ;;  %4443 = vmatprep.mubr.bf16.mxu0 %v3986_v47  ;;  %v3448_v37 = vrot.slane %v3446_v45, 5  ;;  %v3452_v20 = vrot.slane %v3450_v51, 4  ;;  %v3458_v8 = vrot.slane %v3456_v49, 5  ;;  %3141 = vst.msk [vmem:[#allocation3 + $0x180] sm:$0xff] %vm1139_vm15, %v5912_v28  ;;  %3142 = vst.msk [vmem:[#allocation3 + $0x1a8] sm:$0xff] %vm1139_vm15, %v5913_v17 }
  0xff   : > { %5779 = vmatprep.subr.bf16.mxu0 %v5910_v15  ;;  %3646 = vrot.lane.b32.xlu0 %v5308_v12, %s5932_s30  ;;  %1982 = vst.msk [vmem:[#allocation3 + $0x80] sm:$0xff] %vm1139_vm15, %v5206_v46  ;;  %v3443_v39 = vor.u32 %v3442_v9, %v3439_v5  ;;  %v2854_v56 = vrot.slane %v2715_v10, 5  ;;  %v5191_v48 = vrot.slane %v1716_v11, 9  ;;  %v1833_v43 = vrot.slane %v1717_v41, 5  ;;  %v3182_v50 = vld [vmem:[#allocation2 + $0xa0] sm:$0xf]  ;;  %v1660_v10 = vpop.permute.xlu1 %1659 }
 0x100   : > { %2158 = vst.msk [vmem:[#allocation3 + $0x80] sm:$0xff] %vm1687_vm0, %v7720_v1  ;;  %v3453_v30 = vor.u32 %v3452_v20, %v3448_v37  ;;  %v2852_v40 = vsel %vm6465_vm14, %v5261_v16, %v2851_v29  ;;  %v2853_v54 = vrot.slane %v2851_v29, 4  ;;  %v1836_v23 = vrot.slane %v1718_v35, 5  ;;  %v3183_v7 = vld [vmem:[#allocation2 + $0xa4] sm:$0x1]  ;;  %v5914_v11 = vld [vmem:[%s7690_s2 + $0x110] sm:$0xff]  }
 0x101   : > { %v3444_v18 = vrot.slane %v3443_v39, 4  ;;  %v1834_v36 = vsel %vm6465_vm14, %v5191_v48, %v1833_v43  ;;  %v5192_v19 = vrot.slane %v1719_v52, 9  ;;  %v2716_v33 = vld [vmem:[#allocation2 + $0x90] sm:$0xe]  ;;  %v1840_v58 = vrot.slane %v1720_v24, 5  ;;  %1698 = vst.msk [vmem:[#allocation3 + $0x190] sm:$0xff] %vm1687_vm0, %v1660_v10 }
 0x102   : > { %5780 = vmatpush3.bf16.msra.mxu0 %v5910_v15  ;;  %v1835_v15 = vrot.slane %v1833_v43, 4  ;;  %v3454_v21 = vrot.slane %v3453_v30, 4  ;;  %v2855_v63 = vsel %vm6465_vm14, %v2853_v54, %v2854_v56  ;;  %v1843_v53 = vrot.slane %v7005_v26, 5  ;;  %v2717_v60 = vld [vmem:[#allocation2 + $0x94] sm:$0xf]  ;;  %v3990_v24 = vld [vmem:[#allocation3 + $0x50] sm:$0xff]  ;;  %v7046_v43 = vpop.permute.xlu0 %2129 }
 0x103   : > { %v3449_v22 = vsel %vm6065_vm11, %v3444_v18, %v3448_v37  ;;  %v5277_v31 = vcombine.low %v2852_v40, %v2855_v63  ;;  %v3461_v32 = vshrl.u32 %v7007_v6, 16  ;;  %v2718_v34 = vld [vmem:[#allocation2 + $0x98] sm:$0x1]  ;;  %v1841_v55 = vsel %vm6465_vm14, %v5192_v19, %v1840_v58  ;;  %v1722_v51 = vld [vmem:[#allocation2 + $0x48] sm:$0xe]  ;;  %5781 = vmatprep.subr.bf16.mxu0 %v5914_v11  ;;  %v7721_v26 = vld [vmem:[#allocation10_spill] sm:$0xff] }
 0x104   : > { %v1837_v57 = vsel %vm6465_vm14, %v1835_v15, %v1836_v23  ;;  %v3459_v41 = vsel %vm6065_vm11, %v3454_v21, %v3458_v8  ;;  %v1842_v45 = vrot.slane %v1840_v58, 4  ;;  %v1723_v35 = vld [vmem:[#allocation2 + $0x4c] sm:$0xf]  ;;  %v3991_v25 = vld [vmem:[#allocation3 + $0x58] sm:$0xff]  ;;  %v3464_v16 = vshll.u32 %v7007_v6, 16 }
 0x105   : > { %4444 = vmatmul.mubr.bf16.gmra.mrb[4].mxu0 %v3985_v3  ;;  %v5207_v14 = vcombine.low %v1834_v36, %v1837_v57  ;;  %v5309_v4 = vcombine.low %v3449_v22, %v3459_v41  ;;  %2959 = vrot.lane.b32.xlu1 %v5277_v31, %s5932_s30  ;;  %v3463_v49 = vrot.slane %v3461_v32, 4  ;;  %v3470_v3 = vshll.u32 %v3182_v50, 16  ;;  %v1724_v52 = vld [vmem:[#allocation2 + $0x50] sm:$0x1]  ;;  %v1725_v12 = vld [vmem:[#allocation2 + $0x54] sm:$0xe] }
 0x106   : > { %4451 = vmatprep.mubr.bf16.mxu0 %v3991_v25  ;;  %v1726_v38 = vld [vmem:[#allocation2 + $0x58] sm:$0xf]  ;;  %v1844_v46 = vsel %vm6465_vm14, %v1842_v45, %v1843_v53  ;;  %v3474_v47 = vshrl.u32 %v3182_v50, 16  ;;  %v3480_v5 = vshll.u32 %v3183_v7, 16  ;;  %v5262_v9 = vrot.slane %v2716_v33, 9  ;;  %5782 = vmatpush3.bf16.msra.mxu0 %v5914_v11  ;;  %v3629_v45 = vpop.permute.xlu0 %3628 }
 0x107   : > { %1983 = vst.msk [vmem:[#allocation3 + $0xa8] sm:$0xff] %vm1139_vm15, %v5207_v14  ;;  %3648 = vrot.lane.b32.xlu0 %v5309_v4, %s5932_s30  ;;  %v5208_v61 = vcombine.low %v1841_v55, %v1844_v46  ;;  %v3466_v28 = vrot.slane %v3464_v16, 5  ;;  %v3472_v37 = vrot.slane %v3470_v3, 5  ;;  %v2858_v20 = vrot.slane %v2717_v60, 5  ;;  %v3996_v8 = vld [vmem:[#allocation3 + $0x80] sm:$0xff]  ;;  %v3995_v16 = vld [vmem:[#allocation3 + $0x78] sm:$0xff] }
 0x108   : > { %2159 = vst.msk [vmem:[#allocation3 + $0xa8] sm:$0xff] %vm1687_vm0, %v7721_v26  ;;  %v3476_v29 = vrot.slane %v3474_v47, 4  ;;  %v3482_v6 = vrot.slane %v3480_v5, 5  ;;  %v2861_v39 = vrot.slane %v2718_v34, 5  ;;  %v5193_v56 = vrot.slane %v1722_v51, 9  ;;  %v5915_v7 = vld [vmem:[%s7690_s2 + $0x118] sm:$0xff]  }
 0x109   : > { %v1727_v48 = vld [vmem:[#allocation2 + $0x5c] sm:$0x1]  ;;  %1984 = vst.msk [vmem:[#allocation3 + $0xd0] sm:$0xff] %vm1139_vm15, %v5208_v61  ;;  %v3467_v1 = vor.u32 %v3466_v28, %v3463_v49  ;;  %v2859_v30 = vsel %vm6465_vm14, %v5262_v9, %v2858_v20  ;;  %v2860_v40 = vrot.slane %v2858_v20, 4  ;;  %v1847_v54 = vrot.slane %v1723_v35, 5  ;;  %5783 = vmatprep.subr.bf16.mxu0 %v5915_v7 }
 0x10a   : > { %v3184_v23 = vld [vmem:[#allocation2 + $0xa8] sm:$0xf]  ;;  %v3185_v50 = vld [vmem:[#allocation2 + $0xac] sm:$0xf]  ;;  %2160 = vst.msk [vmem:[#allocation3 + $0xd0] sm:$0xff] %vm1687_vm0, %v6860_v42  ;;  %v3477_v18 = vor.u32 %v3476_v29, %v3472_v37  ;;  %v1850_v36 = vrot.slane %v1724_v52, 5  ;;  %5784 = vmatpush3.bf16.msra.mxu0 %v5915_v7 }
 0x10b   : > { %v5194_v15 = vrot.slane %v1725_v12, 9  ;;  %v1854_v19 = vrot.slane %v1726_v38, 5  ;;  %v3468_v33 = vrot.slane %v3467_v1, 4  ;;  %v2862_v21 = vsel %vm6465_vm14, %v2860_v40, %v2861_v39  ;;  %v3186_v53 = vld [vmem:[#allocation2 + $0xb0] sm:$0x1]  ;;  %3676 = vst.msk [vmem:[#allocation3 + $0x18] sm:$0xff] %vm1687_vm0, %v3629_v45 }
 0x10c   : > { %v1848_v63 = vsel %vm6465_vm14, %v5193_v56, %v1847_v54  ;;  %v1849_v58 = vrot.slane %v1847_v54, 4  ;;  %v3478_v60 = vrot.slane %v3477_v18, 4  ;;  %v5278_v42 = vcombine.low %v2859_v30, %v2862_v21  ;;  %v2719_v31 = vld [vmem:[#allocation2 + $0x9c] sm:$0xe]  ;;  %v2720_v57 = vld [vmem:[#allocation2 + $0xa0] sm:$0xf] }
 0x10d   : > { %4452 = vmatmul.mubr.bf16.gmra.mrb[8].mxu0 %v3990_v24  ;;  %v1855_v17 = vsel %vm6465_vm14, %v5194_v15, %v1854_v19  ;;  %v1856_v22 = vrot.slane %v1854_v19, 4  ;;  %v7062_v32 = vld [vmem:[#allocation2 + $0xa4] sm:$0x1]  ;;  %v3473_v34 = vsel %vm6065_vm11, %v3468_v33, %v3472_v37  ;;  %v1857_v11 = vrot.slane %v1727_v48, 5  ;;  %v1728_v14 = vld [vmem:[#allocation2 + $0x60] sm:$0xe] }
 0x10e   : > { %4459 = vmatprep.mubr.bf16.mxu0 %v3996_v8  ;;  %v1851_v10 = vsel %vm6465_vm14, %v1849_v58, %v1850_v36  ;;  %v3485_v41 = vshrl.u32 %v3184_v23, 16  ;;  %v1729_v55 = vld [vmem:[#allocation2 + $0x64] sm:$0xf]  ;;  %v3483_v51 = vsel %vm6065_vm11, %v3478_v60, %v3482_v6  ;;  %2961 = vrot.lane.b32.xlu1 %v5278_v42, %s5932_s30  ;;  %v3488_v25 = vshll.u32 %v3184_v23, 16  ;;  %v1730_v49 = vld [vmem:[#allocation2 + $0x68] sm:$0x1]  ;;  %v1662_v36 = vpop.permute.xlu1 %1661 }
 0x10f   : > { %v5209_v35 = vcombine.low %v1848_v63, %v1851_v10  ;;  %v3494_v4 = vshll.u32 %v3185_v50, 16  ;;  %v4001_v3 = vld [vmem:[#allocation3 + $0xa8] sm:$0xff]  ;;  %v5310_v52 = vcombine.low %v3473_v34, %v3483_v51  ;;  %v1858_v12 = vsel %vm6465_vm14, %v1856_v22, %v1857_v11  ;;  %v1731_v47 = vld [vmem:[#allocation2 + $0x6c] sm:$0xe]  ;;  %v1732_v61 = vld [vmem:[#allocation2 + $0x70] sm:$0xf] }
 0x110   : > { %v3487_v38 = vrot.slane %v3485_v41, 4  ;;  %v3498_v46 = vshrl.u32 %v3185_v50, 16  ;;  %v5210_v5 = vcombine.low %v1855_v17, %v1858_v12  ;;  %v3490_v9 = vrot.slane %v3488_v25, 5  ;;  %v5916_v28 = vld [vmem:[#allocation2 + $0x9c] sm:$0xff]   ;;  %v5917_v6 = vld [vmem:[#allocation2 + $0xa8] sm:$0xff]   ;;  %1699 = vst.msk [vmem:[#allocation3 + $0x1b8] sm:$0xff] %vm1687_vm0, %v1662_v36 }
 0x111   : > { %1985 = vst.msk [vmem:[#allocation3 + $0xf8] sm:$0xff] %vm1139_vm15, %v5209_v35  ;;  %v3496_v24 = vrot.slane %v3494_v4, 5  ;;  %v3504_v26 = vshll.u32 %v3186_v53, 16  ;;  %3650 = vrot.lane.b32.xlu0 %v5310_v52, %s5932_s30  ;;  %v5263_v20 = vrot.slane %v2719_v31, 9  ;;  %v2865_v8 = vrot.slane %v2720_v57, 5  ;;  %3143 = vst.msk [vmem:[#allocation3 + $0x1d0] sm:$0xff] %vm1139_vm15, %v5916_v28 }
 0x112   : > { %2161 = vst.msk [vmem:[#allocation3 + $0xf8] sm:$0xff] %vm1687_vm0, %v6939_v2  ;;  %v3500_v37 = vrot.slane %v3498_v46, 4  ;;  %v2868_v29 = vrot.slane %v7062_v32, 5  ;;  %v3491_v39 = vor.u32 %v3490_v9, %v3487_v38  ;;  %v5195_v48 = vrot.slane %v1728_v14, 9  ;;  %v1733_v30 = vld [vmem:[#allocation2 + $0x74] sm:$0x1] }
 0x113   : > { %1986 = vst.msk [vmem:[#allocation3 + $0x120] sm:$0xff] %vm1139_vm15, %v5210_v5  ;;  %v3506_v56 = vrot.slane %v3504_v26, 5  ;;  %v1861_v1 = vrot.slane %v1729_v55, 5  ;;  %v2866_v40 = vsel %vm6465_vm14, %v5263_v20, %v2865_v8  ;;  %v2867_v54 = vrot.slane %v2865_v8, 4  ;;  %v3187_v50 = vld [vmem:[#allocation2 + $0xb4] sm:$0xf] }
 0x114   : > { %2162 = vst.msk [vmem:[#allocation3 + $0x120] sm:$0xff] %vm1687_vm0, %v6953_v13  ;;  %v3501_v2 = vor.u32 %v3500_v37, %v3496_v24  ;;  %v1864_v23 = vrot.slane %v1730_v49, 5  ;;  %v3188_v18 = vld [vmem:[#allocation2 + $0xb8] sm:$0xf]  ;;  %v3492_v15 = vrot.slane %v3491_v39, 4  ;;  %v5196_v33 = vrot.slane %v1731_v47, 9 }
 0x115   : > { %4460 = vmatmul.mubr.bf16.gmra.mrb[12].mxu0 %v3995_v16  ;;  %3144 = vst.msk [vmem:[#allocation3 + $0x1f8] sm:$0xff] %vm1139_vm15, %v5917_v6  ;;  %v1862_v19 = vsel %vm6465_vm14, %v5195_v48, %v1861_v1  ;;  %v1863_v7 = vrot.slane %v1861_v1, 4  ;;  %v3189_v21 = vld [vmem:[#allocation2 + $0xbc] sm:$0x1]  ;;  %v2722_v63 = vld [vmem:[#allocation2 + $0xa8] sm:$0xe]  ;;  %v2869_v58 = vsel %vm6465_vm14, %v2867_v54, %v2868_v29 }
 0x116   : > { %4467 = vmatprep.mubr.bf16.mxu0 %v4001_v3  ;;  %v3502_v13 = vrot.slane %v3501_v2, 4  ;;  %v1868_v53 = vrot.slane %v1732_v61, 5  ;;  %v1871_v60 = vrot.slane %v1733_v30, 5  ;;  %v2723_v42 = vld [vmem:[#allocation2 + $0xac] sm:$0xf]  ;;  %v3983_v17 = vld [vmem:[#allocation3 + $0x18] sm:$0xff]  ;;  %v3497_v22 = vsel %vm6065_vm11, %v3492_v15, %v3496_v24  ;;  %v7110_v2 = vpop.permute.xlu1 %2939 }
 0x117   : > { %v5279_v31 = vcombine.low %v2866_v40, %v2869_v58  ;;  %v1865_v57 = vsel %vm6465_vm14, %v1863_v7, %v1864_v23  ;;  %v3509_v32 = vshrl.u32 %v3187_v50, 16  ;;  %v2724_v34 = vld [vmem:[#allocation2 + $0xb0] sm:$0x1]  ;;  %v1734_v10 = vld [vmem:[#allocation2 + $0x78] sm:$0xe]  ;;  %4596 = vmatprep.mubr.bf16.mxu1 %v3983_v17  ;;  %v4006_v35 = vld [vmem:[#allocation3 + $0xd0] sm:$0xff]  ;;  %v7112_v40 = vpop.permute.xlu0 %2131 }
 0x118   : > { %v4000_v11 = vld [vmem:[#allocation3 + $0xa0] sm:$0xff]  ;;  %v3507_v41 = vsel %vm6065_vm11, %v3502_v13, %v3506_v56  ;;  %v5211_v14 = vcombine.low %v1862_v19, %v1865_v57  ;;  %v1869_v55 = vsel %vm6465_vm14, %v5196_v33, %v1868_v53  ;;  %v1870_v45 = vrot.slane %v1868_v53, 4  ;;  %v1736_v3 = vld [vmem:[#allocation2 + $0x80] sm:$0x1]  ;;  %v1737_v47 = vld [vmem:[#allocation2 + $0x84] sm:$0xe] }
 0x119   : > { %v1735_v51 = vld [vmem:[#allocation2 + $0x7c] sm:$0xf]  ;;  %v5311_v25 = vcombine.low %v3497_v22, %v3507_v41  ;;  %2963 = vrot.lane.b32.xlu1 %v5279_v31, %s5932_s30  ;;  %v3511_v4 = vrot.slane %v3509_v32, 4  ;;  %v3512_v49 = vshll.u32 %v3187_v50, 16  ;;  %v3518_v16 = vshll.u32 %v3188_v18, 16  ;;  %v5918_v5 = vld [vmem:[#allocation2 + $0xb4] sm:$0xff]  }
 0x11a   : > { %1987 = vst.msk [vmem:[#allocation3 + $0x148] sm:$0xff] %vm1139_vm15, %v5211_v14  ;;  %v1872_v52 = vsel %vm6465_vm14, %v1870_v45, %v1871_v60  ;;  %v3522_v12 = vshrl.u32 %v3188_v18, 16  ;;  %v3528_v38 = vshll.u32 %v3189_v21, 16  ;;  %v5264_v46 = vrot.slane %v2722_v63, 9  ;;  %v1738_v28 = vld [vmem:[#allocation2 + $0x88] sm:$0xf] }
 0x11b   : > { %3652 = vrot.lane.b32.xlu0 %v5311_v25, %s5932_s30  ;;  %2163 = vst.msk [vmem:[#allocation3 + $0x148] sm:$0xff] %vm1687_vm0, %v6972_v62  ;;  %v5212_v9 = vcombine.low %v1869_v55, %v1872_v52  ;;  %v3514_v24 = vrot.slane %v3512_v49, 5  ;;  %v3520_v26 = vrot.slane %v3518_v16, 5  ;;  %v2872_v61 = vrot.slane %v2723_v42, 5  ;;  %v1739_v6 = vld [vmem:[#allocation2 + $0x8c] sm:$0x1]  ;;  %v1664_v16 = vpop.permute.xlu1 %1663 }
 0x11c   : > { %v3524_v37 = vrot.slane %v3522_v12, 4  ;;  %v3530_v20 = vrot.slane %v3528_v38, 5  ;;  %v2875_v8 = vrot.slane %v2724_v34, 5  ;;  %v5197_v29 = vrot.slane %v1734_v10, 9  ;;  %3145 = vst.msk [vmem:[#allocation3 + $0x220] sm:$0xff] %vm1139_vm15, %v5918_v5  ;;  %v4005_v15 = vld [vmem:[#allocation3 + $0xc8] sm:$0xff]  ;;  %v3631_v34 = vpop.permute.xlu0 %3630 }
 0x11d   : > { %4468 = vmatmul.mubr.bf16.gmra.mrb[16].mxu0 %v4000_v11  ;;  %1988 = vst.msk [vmem:[#allocation3 + $0x170] sm:$0xff] %vm1139_vm15, %v5212_v9  ;;  %v3515_v39 = vor.u32 %v3514_v24, %v3511_v4  ;;  %v2873_v56 = vsel %vm6465_vm14, %v5264_v46, %v2872_v61  ;;  %v2874_v62 = vrot.slane %v2872_v61, 4  ;;  %v1875_v48 = vrot.slane %v1735_v51, 5  ;;  %v369_v1 = vld [vmem:[#allocation2 + $0xc8] sm:$0x1]  ;;  %v4011_v53 = vld [vmem:[#allocation3 + $0xf8] sm:$0xff] }
 0x11e   : > { %4475 = vmatprep.mubr.bf16.mxu0 %v4006_v35  ;;  %v3190_v30 = vld [vmem:[#allocation2 + $0xc0] sm:$0xf]  ;;  %2164 = vst.msk [vmem:[#allocation3 + $0x170] sm:$0xff] %vm1687_vm0, %v7001_v0  ;;  %v3525_v54 = vor.u32 %v3524_v37, %v3520_v26  ;;  %v1878_v23 = vrot.slane %v1736_v3, 5  ;;  %v5198_v50 = vrot.slane %v1737_v47, 9  ;;  %v1882_v18 = vrot.slane %v1738_v28, 5 }
 0x11f   : > { %v3191_v36 = vld [vmem:[#allocation2 + $0xc4] sm:$0xf]  ;;  %v3516_v19 = vrot.slane %v3515_v39, 4  ;;  %v2876_v7 = vsel %vm6465_vm14, %v2874_v62, %v2875_v8  ;;  %v1876_v33 = vsel %vm6465_vm14, %v5197_v29, %v1875_v48  ;;  %v1877_v21 = vrot.slane %v1875_v48, 4  ;;  %v2725_v57 = vld [vmem:[#allocation2 + $0xb4] sm:$0xe] }
 0x120   : > { %v3526_v63 = vrot.slane %v3525_v54, 4  ;;  %v5280_v13 = vcombine.low %v2873_v56, %v2876_v7  ;;  %v1883_v58 = vsel %vm6465_vm14, %v5198_v50, %v1882_v18  ;;  %v1884_v0 = vrot.slane %v1882_v18, 4  ;;  %v2726_v32 = vld [vmem:[#allocation2 + $0xb8] sm:$0xf]  ;;  %v2727_v55 = vld [vmem:[#allocation2 + $0xbc] sm:$0x1] }
 0x121   : > { %v3521_v60 = vsel %vm6065_vm11, %v3516_v19, %v3520_v26  ;;  %v1879_v42 = vsel %vm6465_vm14, %v1877_v21, %v1878_v23  ;;  %v1885_v17 = vrot.slane %v1739_v6, 5  ;;  %v370_v31 = vsel %vm5990_vm5, 0, %v369_v1  ;;  %v2171_v45 = vld [vmem:[#allocation2 + $0xc] sm:$0xf]  ;;  %3677 = vst.msk [vmem:[#allocation3 + $0x40] sm:$0xff] %vm1687_vm0, %v3631_v34  ;;  %1700 = vst.msk [vmem:[#allocation3 + $0x1e0] sm:$0xff] %vm1687_vm0, %v1664_v16  ;;  %v7159_v34 = vpop.permute.xlu1 %2941 }
 0x122   : > { %v3531_v10 = vsel %vm6065_vm11, %v3526_v63, %v3530_v20  ;;  %2965 = vrot.lane.b32.xlu1 %v5280_v13, %s5932_s30  ;;  %v5213_v11 = vcombine.low %v1876_v33, %v1879_v42  ;;  %371 = vst [vmem:[#allocation2 + $0xc8] sm:$0x1] %v370_v31  ;;  %v3533_v41 = vshrl.u32 %v3190_v30, 16  ;;  %v3536_v14 = vshll.u32 %v3190_v30, 16  ;;  %v2172_v49 = vld [vmem:[#allocation2 + $0x10] sm:$0xf] }
 0x123   : > { %v5312_v51 = vcombine.low %v3521_v60, %v3531_v10  ;;  %v1886_v35 = vsel %vm6465_vm14, %v1884_v0, %v1885_v17  ;;  %v3542_v25 = vshll.u32 %v3191_v36, 16  ;;  %v3546_v4 = vshrl.u32 %v3191_v36, 16  ;;  %v2173_v46 = vld [vmem:[#allocation2 + $0x14] sm:$0x1]  ;;  %v1740_v20 = vld [vmem:[#allocation2 + $0x90] sm:$0xe] }
 0x124   : > { %1989 = vst.msk [vmem:[#allocation3 + $0x198] sm:$0xff] %vm1139_vm15, %v5213_v11  ;;  %v5214_v3 = vcombine.low %v1883_v58, %v1886_v35  ;;  %v3535_v52 = vrot.slane %v3533_v41, 4  ;;  %v3538_v12 = vrot.slane %v3536_v14, 5  ;;  %v5265_v38 = vrot.slane %v2725_v57, 9  ;;  %v1741_v8 = vld [vmem:[#allocation2 + $0x94] sm:$0xf] }
 0x125   : > { %4476 = vmatmul.mubr.bf16.gmra.mrb[20].mxu0 %v4005_v15  ;;  %3654 = vrot.lane.b32.xlu0 %v5312_v51, %s5932_s30  ;;  %2165 = vst.msk [vmem:[#allocation3 + $0x198] sm:$0xff] %vm1687_vm0, %v7022_v59  ;;  %v7139_v47 = vrot.slane %v3542_v25, 5  ;;  %v3548_v5 = vrot.slane %v3546_v4, 4  ;;  %v2879_v9 = vrot.slane %v2726_v32, 5  ;;  %v2882_v24 = vrot.slane %v2727_v55, 5  ;;  %v4010_v29 = vld [vmem:[#allocation3 + $0xf0] sm:$0xff]  ;;  %v7173_v22 = vpop.permute.xlu0 %2133 }
 0x126   : > { %4483 = vmatprep.mubr.bf16.mxu0 %v4011_v53  ;;  %1990 = vst.msk [vmem:[#allocation3 + $0x1c0] sm:$0xff] %vm1139_vm15, %v5214_v3  ;;  %v3539_v26 = vor.u32 %v3538_v12, %v3535_v52  ;;  %v2220_v61 = vshrl.u32 %v2171_v45, 16  ;;  %v2223_v28 = vshll.u32 %v2171_v45, 16  ;;  %v2229_v37 = vshll.u32 %v2172_v49, 16  ;;  %v1742_v56 = vld [vmem:[#allocation2 + $0x98] sm:$0x1] }
 0x127   : > { %2166 = vst.msk [vmem:[#allocation3 + $0x1c0] sm:$0xff] %vm1687_vm0, %v7046_v43  ;;  %v2880_v59 = vsel %vm6465_vm14, %v5265_v38, %v2879_v9  ;;  %v2881_v6 = vrot.slane %v2879_v9, 4  ;;  %v2233_v39 = vshrl.u32 %v2172_v49, 16  ;;  %v316_v30 = vld [vmem:[#allocation2 + $0xcc] sm:$0x1]  ;;  %v4016_v54 = vld [vmem:[#allocation3 + $0x120] sm:$0xff]  ;;  %v3549_v50 = vor.u32 %v3548_v5, %v7139_v47 }
 0x128   : > { %v2222_v62 = vrot.slane %v2220_v61, 4  ;;  %v2225_v48 = vrot.slane %v2223_v28, 5  ;;  %v2231_v1 = vrot.slane %v2229_v37, 5  ;;  %v2239_v15 = vshll.u32 %v2173_v46, 16  ;;  %v372_v43 = vld [vmem:[#allocation2 + $0xd4] sm:$0x1] }
 0x129   : > { %v1008_v23 = vld [vmem:[#allocation2 + $0xc8] sm:$0x1]  ;;  %v2883_v18 = vsel %vm6465_vm14, %v2881_v6, %v2882_v24  ;;  %v2235_v36 = vrot.slane %v2233_v39, 4  ;;  %v7723_v19 = vld [vmem:[#allocation7_spill] sm:$0xff]  ;;  %v7153_v63 = vrot.slane %v3539_v26, 4  ;;  %v5199_v17 = vrot.slane %v1740_v20, 9  ;;  %v1666_v39 = vpop.permute.xlu1 %1665 }
 0x12a   : > { %v7724_v7 = vrot.slane %v7723_v19, 4  ;;  %v5281_v13 = vcombine.low %v2880_v59, %v2883_v18  ;;  %v2226_v58 = vor.u32 %v2225_v48, %v2222_v62  ;;  %v3194_v0 = vld [vmem:[#allocation2 + $0xd0] sm:$0xf]  ;;  %v7155_v53 = vld [vmem:[#allocation2 + $0xc4] sm:$0xf]  ;;  %v2241_v42 = vrot.slane %v2239_v15, 5 }
 0x12b   : > { %v2236_v60 = vor.u32 %v2235_v36, %v2231_v1  ;;  %v1889_v31 = vrot.slane %v1741_v8, 5  ;;  %v7157_v57 = vld [vmem:[#allocation2 + $0xc0] sm:$0xe]  ;;  %v2174_v32 = vld [vmem:[#allocation2 + $0x18] sm:$0xf]  ;;  %v1892_v11 = vrot.slane %v1742_v56, 5  ;;  %v3545_v15 = vsel %vm6065_vm11, %v7153_v63, %v7139_v47 }
 0x12c   : > { %v1009_v21 = vsel %vm5981_vm3, %v7724_v7, %v1008_v23  ;;  %2967 = vrot.lane.b32.xlu1 %v5281_v13, %s5932_s30  ;;  %v2227_v10 = vrot.slane %v2226_v58, 4  ;;  %v317_v41 = vsel %vm5981_vm3, 0, %v316_v30  ;;  %v373_v14 = vsel %vm5990_vm5, 0, %v372_v43  ;;  %v2175_v55 = vld [vmem:[#allocation2 + $0x1c] sm:$0xf]  ;;  %v4015_v12 = vld [vmem:[#allocation3 + $0x118] sm:$0xff] }
 0x12d   : > { %4484 = vmatmul.mubr.bf16.gmra.mrb[24].mxu0 %v4010_v29  ;;  %1010 = vst [vmem:[#allocation2 + $0xc8] sm:$0x1] %v1009_v21  ;;  %v2237_v45 = vrot.slane %v2236_v60, 4  ;;  %v1890_v51 = vsel %vm6465_vm14, %v5199_v17, %v1889_v31  ;;  %v1891_v35 = vrot.slane %v1889_v31, 4  ;;  %318 = vst [vmem:[#allocation2 + $0xcc] sm:$0x1] %v317_v41 }
 0x12e   : > { %4491 = vmatprep.mubr.bf16.mxu0 %v4016_v54  ;;  %374 = vst [vmem:[#allocation2 + $0xd4] sm:$0x1] %v373_v14  ;;  %v3566_v25 = vshll.u32 %v3194_v0, 16  ;;  %v2176_v4 = vld [vmem:[#allocation2 + $0x20] sm:$0x1]  ;;  %v7168_v49 = vrot.slane %v3549_v50, 4  ;;  %v2232_v16 = vsel %vm6065_vm11, %v2227_v10, %v2231_v1  ;;  %v3633_v54 = vpop.permute.xlu0 %3632 }
 0x12f   : > { %v3570_v3 = vshrl.u32 %v3194_v0, 16  ;;  %v2886_v52 = vrot.slane %v7155_v53, 5  ;;  %v2242_v38 = vsel %vm6065_vm11, %v2237_v45, %v2241_v42  ;;  %v1893_v46 = vsel %vm6465_vm14, %v1891_v35, %v1892_v11  ;;  %v4021_v37 = vld [vmem:[#allocation3 + $0x148] sm:$0xff]  ;;  %1701 = vst.msk [vmem:[#allocation3 + $0x208] sm:$0xff] %vm1687_vm0, %v1666_v39  ;;  %3678 = vst.msk [vmem:[#allocation3 + $0x68] sm:$0xff] %vm1687_vm0, %v3633_v54  ;;  %v7217_v39 = vpop.permute.xlu1 %2943 }
 0x130   : > { %v7179_v5 = vrot.slane %v3566_v25, 5  ;;  %v2244_v9 = vshrl.u32 %v2174_v32, 16  ;;  %v5235_v24 = vcombine.low %v2232_v16, %v2242_v38  ;;  %v5215_v26 = vcombine.low %v1890_v51, %v1893_v46  ;;  %v5919_v20 = vld [vmem:[#allocation2 + $0xc0] sm:$0xff]   ;;  %v2178_v14 = vld [vmem:[#allocation2 + $0x28] sm:$0xf] }
 0x131   : > { %v3572_v61 = vrot.slane %v3570_v3, 4  ;;  %v5266_v28 = vrot.slane %v7157_v57, 9  ;;  %v2888_v8 = vrot.slane %v2886_v52, 4  ;;  %v2247_v59 = vshll.u32 %v2174_v32, 16  ;;  %3146 = vst.msk [vmem:[#allocation3 + $0x248] sm:$0xff] %vm1139_vm15, %v5919_v20  ;;  %v4026_v46 = vld [vmem:[#allocation3 + $0x170] sm:$0xff] }
 0x132   : > { %v2246_v29 = vrot.slane %v2244_v9, 4  ;;  %v2253_v6 = vshll.u32 %v2175_v55, 16  ;;  %2667 = vst.msk [vmem:[#allocation3 + $0x10] sm:$0xff] %vm1139_vm15, %v5235_v24  ;;  %1991 = vst.msk [vmem:[#allocation3 + $0x1e8] sm:$0xff] %vm1139_vm15, %v5215_v26  ;;  %v2257_v1 = vshrl.u32 %v2175_v55, 16  ;;  %v2263_v30 = vshll.u32 %v2176_v4, 16 }
 0x133   : > { %v3573_v62 = vor.u32 %v3572_v61, %v7179_v5  ;;  %2987 = vst.msk [vmem:[#allocation3 + $0x10] sm:$0xff] %vm1687_vm0, %v7110_v2  ;;  %2167 = vst.msk [vmem:[#allocation3 + $0x1e8] sm:$0xff] %vm1687_vm0, %v7112_v40  ;;  %v2249_v18 = vrot.slane %v2247_v59, 5  ;;  %v2887_v2 = vsel %vm6465_vm14, %v5266_v28, %v2886_v52  ;;  %v1743_v40 = vld [vmem:[#allocation2 + $0x9c] sm:$0xe] }
 0x134   : > { %v3192_v56 = vld [vmem:[#allocation2 + $0xc8] sm:$0x1]  ;;  %v2255_v36 = vrot.slane %v2253_v6, 5  ;;  %v3193_v43 = vld [vmem:[#allocation2 + $0xcc] sm:$0xf]  ;;  %v2259_v33 = vrot.slane %v2257_v1, 4 }
 0x135   : > { %v2730_v48 = vld [vmem:[#allocation2 + $0xc8] sm:$0x1]  ;;  %4492 = vmatmul.mubr.bf16.gmra.mrb[28].mxu0 %v4015_v12  ;;  %v3552_v23 = vshll.u32 %v3192_v56, 16  ;;  %v3195_v19 = vld [vmem:[#allocation2 + $0xd4] sm:$0x1]  ;;  %v7196_v7 = vrot.slane %v3573_v62, 4  ;;  %v2250_v42 = vor.u32 %v2249_v18, %v2246_v29 }
 0x136   : > { %v2889_v50 = vrot.slane %v2730_v48, 5  ;;  %4499 = vmatprep.mubr.bf16.mxu0 %v4021_v37  ;;  %v1744_v21 = vld [vmem:[#allocation2 + $0xa0] sm:$0xf]  ;;  %v3557_v58 = vshrl.u32 %v3193_v43, 16  ;;  %v3560_v0 = vshll.u32 %v3193_v43, 16  ;;  %v3576_v53 = vshll.u32 %v3195_v19, 16 }
 0x137   : > { %v3554_v13 = vrot.slane %v3552_v23, 5  ;;  %v2260_v17 = vor.u32 %v2259_v33, %v2255_v36  ;;  %v2265_v47 = vrot.slane %v2263_v30, 5  ;;  %v1745_v63 = vld [vmem:[#allocation2 + $0xa4] sm:$0x1]  ;;  %v5920_v57 = vld [vmem:[#allocation2 + $0xcc] sm:$0xff]   ;;  %v4020_v55 = vld [vmem:[#allocation3 + $0x140] sm:$0xff] }
 0x138   : > { %v2890_v60 = vsel %vm6465_vm14, %v2888_v8, %v2889_v50  ;;  %v2177_v31 = vld [vmem:[#allocation2 + $0x24] sm:$0xf]  ;;  %v3559_v10 = vrot.slane %v3557_v58, 4  ;;  %v3562_v11 = vrot.slane %v3560_v0, 5  ;;  %v3578_v41 = vrot.slane %v3576_v53, 5  ;;  %3147 = vst.msk [vmem:[#allocation3 + $0x270] sm:$0xff] %vm1139_vm15, %v5920_v57 }
 0x139   : > { %v3555_v32 = vsel %vm6065_vm11, %v7168_v49, %v3554_v13  ;;  %v5282_v51 = vcombine.low %v2887_v2, %v2890_v60  ;;  %v2251_v35 = vrot.slane %v2250_v42, 4  ;;  %v2261_v25 = vrot.slane %v2260_v17, 4  ;;  %v2179_v4 = vld [vmem:[#allocation2 + $0x2c] sm:$0x1]  ;;  %v3988_v49 = vld [vmem:[#allocation3 + $0x40] sm:$0xff]  ;;  %v1668_v57 = vpop.permute.xlu1 %1667 }
 0x13a   : > { %v5313_v45 = vcombine.low %v3545_v15, %v3555_v32  ;;  %v3563_v16 = vor.u32 %v3562_v11, %v3559_v10  ;;  %v3579_v3 = vsel %vm6065_vm11, %v7196_v7, %v3578_v41  ;;  %v5200_v52 = vrot.slane %v1743_v40, 9  ;;  %v1746_v38 = vld [vmem:[#allocation2 + $0xa8] sm:$0xe]  ;;  %v1747_v37 = vld [vmem:[#allocation2 + $0xac] sm:$0xf]  ;;  %v2136_v15 = vpop.permute.xlu0 %2135  ;;  %v4031_v41 = vld [vmem:[#allocation3 + $0x198] sm:$0xff] }
 0x13b   : > { %v1896_v12 = vrot.slane %v1744_v21, 5  ;;  %2969 = vrot.lane.b32.xlu1 %v5282_v51, %s5932_s30  ;;  %v2256_v9 = vsel %vm6065_vm11, %v2251_v35, %v2255_v36  ;;  %v2266_v24 = vsel %vm6065_vm11, %v2261_v25, %v2265_v47  ;;  %v3982_v26 = vld [vmem:[#allocation3 + $0x10] sm:$0xff]  ;;  %v1899_v61 = vrot.slane %v1745_v63, 5  ;;  %v1748_v20 = vld [vmem:[#allocation2 + $0xb0] sm:$0x1]  ;;  %v4025_v47 = vld [vmem:[#allocation3 + $0x168] sm:$0xff] }
 0x13c   : > { %3656 = vrot.lane.b32.xlu0 %v5313_v45, %s5932_s30  ;;  %v2268_v28 = vshrl.u32 %v2177_v31, 16  ;;  %v3564_v8 = vrot.slane %v3563_v16, 4  ;;  %v5236_v29 = vcombine.low %v2256_v9, %v2266_v24  ;;  %4597 = vmatmul.mubr.bf16.vlgmr.msra.gmra.mrb[0].mxu1 %v3982_v26  ;;  %v2180_v56 = vld [vmem:[#allocation2 + $0x30] sm:$0xf]  ;;  %v2271_v48 = vshll.u32 %v2177_v31, 16  ;;  %1702 = vst.msk [vmem:[#allocation3 + $0x230] sm:$0xff] %vm1687_vm0, %v1668_v57 }
 0x13d   : > { %v1897_v59 = vsel %vm6465_vm14, %v5200_v52, %v1896_v12  ;;  %v1898_v6 = vrot.slane %v1896_v12, 4  ;;  %4500 = vmatmul.mubr.bf16.gmra.mrb[32].mxu0 %v4020_v55  ;;  %4604 = vmatprep.mubr.bf16.mxu1 %v3988_v49  ;;  %v2277_v1 = vshll.u32 %v2178_v14, 16  ;;  %v2281_v30 = vshrl.u32 %v2178_v14, 16  ;;  %v2181_v54 = vld [vmem:[#allocation2 + $0x34] sm:$0xf]  ;;  %v3993_v49 = vld [vmem:[#allocation3 + $0x68] sm:$0xff] }
 0x13e   : > { %v2270_v62 = vrot.slane %v2268_v28, 4  ;;  %4507 = vmatprep.mubr.bf16.mxu0 %v4026_v46  ;;  %v3569_v23 = vsel %vm6065_vm11, %v3564_v8, %v7179_v5  ;;  %2668 = vst.msk [vmem:[#allocation3 + $0x38] sm:$0xff] %vm1139_vm15, %v5236_v29  ;;  %v2287_v18 = vshll.u32 %v2179_v4, 16  ;;  %v5201_v36 = vrot.slane %v1746_v38, 9  ;;  %v2182_v33 = vld [vmem:[#allocation2 + $0x38] sm:$0x1]  ;;  %v3635_v32 = vpop.permute.xlu0 %3634 }
 0x13f   : > { %v1900_v50 = vsel %vm6465_vm14, %v1898_v6, %v1899_v61  ;;  %v5314_v43 = vcombine.low %v3569_v23, %v3579_v3  ;;  %2988 = vst.msk [vmem:[#allocation3 + $0x38] sm:$0xff] %vm1687_vm0, %v7159_v34  ;;  %v2273_v7 = vrot.slane %v2271_v48, 5  ;;  %v2279_v2 = vrot.slane %v2277_v1, 5  ;;  %v1749_v58 = vld [vmem:[#allocation2 + $0xb4] sm:$0xe]  ;;  %3679 = vst.msk [vmem:[#allocation3 + $0x90] sm:$0xff] %vm1687_vm0, %v3635_v32 }
 0x140   : > { %v5216_v19 = vcombine.low %v1897_v59, %v1900_v50  ;;  %v2283_v40 = vrot.slane %v2281_v30, 4  ;;  %v2289_v21 = vrot.slane %v2287_v18, 5  ;;  %v1903_v13 = vrot.slane %v1747_v37, 5  ;;  %v1750_v17 = vld [vmem:[#allocation2 + $0xb8] sm:$0xf]  ;;  %v4030_v23 = vld [vmem:[#allocation3 + $0x190] sm:$0xff] }
 0x141   : > { %v1906_v5 = vrot.slane %v1748_v20, 5  ;;  %3658 = vrot.lane.b32.xlu0 %v5314_v43, %s5932_s30  ;;  %v2274_v0 = vor.u32 %v2273_v7, %v2270_v62  ;;  %v2292_v53 = vshrl.u32 %v2180_v56, 16  ;;  %v2295_v60 = vshll.u32 %v2180_v56, 16  ;;  %v1751_v11 = vld [vmem:[#allocation2 + $0xbc] sm:$0x1] }
 0x142   : > { %1992 = vst.msk [vmem:[#allocation3 + $0x210] sm:$0xff] %vm1139_vm15, %v5216_v19  ;;  %v2301_v42 = vshll.u32 %v2181_v54, 16  ;;  %v2284_v34 = vor.u32 %v2283_v40, %v2279_v2  ;;  %v1904_v63 = vsel %vm6465_vm14, %v5201_v36, %v1903_v13  ;;  %v1905_v31 = vrot.slane %v1903_v13, 4  ;;  %v2183_v35 = vld [vmem:[#allocation2 + $0x3c] sm:$0xf]  ;;  %v2946_v13 = vpop.permute.xlu1 %2945 }
 0x143   : > { %2168 = vst.msk [vmem:[#allocation3 + $0x210] sm:$0xff] %vm1687_vm0, %v7173_v22  ;;  %v2305_v10 = vshrl.u32 %v2181_v54, 16  ;;  %v2275_v14 = vrot.slane %v2274_v0, 4  ;;  %v2294_v55 = vrot.slane %v2292_v53, 4  ;;  %v2297_v45 = vrot.slane %v2295_v60, 5  ;;  %v4036_v19 = vld [vmem:[#allocation3 + $0x1c0] sm:$0xff] }
 0x144   : > { %v2303_v51 = vrot.slane %v2301_v42, 5  ;;  %v2285_v22 = vrot.slane %v2284_v34, 4  ;;  %v1907_v25 = vsel %vm6465_vm14, %v1905_v31, %v1906_v5  ;;  %v2311_v16 = vshll.u32 %v2182_v33, 16  ;;  %v2184_v3 = vld [vmem:[#allocation2 + $0x40] sm:$0xf]  ;;  %v2138_v32 = vpop.permute.xlu0 %2137 }
 0x145   : > { %v2307_v4 = vrot.slane %v2305_v10, 4  ;;  %4508 = vmatmul.mubr.bf16.gmra.mrb[36].mxu0 %v4025_v47  ;;  %v2280_v52 = vsel %vm6065_vm11, %v2275_v14, %v2279_v2  ;;  %v5217_v12 = vcombine.low %v1904_v63, %v1907_v25  ;;  %v2298_v38 = vor.u32 %v2297_v45, %v2294_v55  ;;  %v2185_v37 = vld [vmem:[#allocation2 + $0x44] sm:$0x1]  ;;  %v2186_v6 = vld [vmem:[#allocation2 + $0x48] sm:$0xf] }
 0x146   : > { %v5202_v46 = vrot.slane %v1749_v58, 9  ;;  %4515 = vmatprep.mubr.bf16.mxu0 %v4031_v41  ;;  %v2290_v9 = vsel %vm6065_vm11, %v2285_v22, %v2289_v21  ;;  %v3987_v24 = vld [vmem:[#allocation3 + $0x38] sm:$0xff]  ;;  %v2313_v61 = vrot.slane %v2311_v16, 5  ;;  %v1910_v28 = vrot.slane %v1750_v17, 5  ;;  %v2187_v30 = vld [vmem:[#allocation2 + $0x4c] sm:$0xf] }
 0x147   : > { %v2308_v26 = vor.u32 %v2307_v4, %v2303_v51  ;;  %v5237_v20 = vcombine.low %v2280_v52, %v2290_v9  ;;  %4605 = vmatmul.mubr.bf16.gmra.mrb[4].mxu1 %v3987_v24  ;;  %1993 = vst.msk [vmem:[#allocation3 + $0x238] sm:$0xff] %vm1139_vm15, %v5217_v12  ;;  %v2299_v8 = vrot.slane %v2298_v38, 4  ;;  %v1913_v29 = vrot.slane %v1751_v11, 5  ;;  %v2188_v54 = vld [vmem:[#allocation2 + $0x50] sm:$0x1]  ;;  %v3998_v45 = vld [vmem:[#allocation3 + $0x90] sm:$0xff] }
 0x148   : > { %v2316_v59 = vshrl.u32 %v2183_v35, 16  ;;  %2169 = vst.msk [vmem:[#allocation3 + $0x238] sm:$0xff] %vm1687_vm0, %v2136_v15  ;;  %4612 = vmatprep.mubr.bf16.mxu1 %v3993_v49  ;;  %v1911_v62 = vsel %vm6465_vm14, %v5202_v46, %v1910_v28  ;;  %v1912_v48 = vrot.slane %v1910_v28, 4  ;;  %v2319_v1 = vshll.u32 %v2183_v35, 16  ;;  %v2189_v40 = vld [vmem:[#allocation2 + $0x54] sm:$0xf]  ;;  %v3637_v28 = vpop.permute.xlu0 %3636 }
 0x149   : > { %v2309_v56 = vrot.slane %v2308_v26, 4  ;;  %2669 = vst.msk [vmem:[#allocation3 + $0x60] sm:$0xff] %vm1139_vm15, %v5237_v20  ;;  %v2304_v50 = vsel %vm6065_vm11, %v2299_v8, %v2303_v51  ;;  %v2325_v36 = vshll.u32 %v2184_v3, 16  ;;  %v2329_v43 = vshrl.u32 %v2184_v3, 16  ;;  %v2191_v57 = vld [vmem:[#allocation2 + $0x5c] sm:$0x1] }
 0x14a   : > { %v2318_v18 = vrot.slane %v2316_v59, 4  ;;  %2989 = vst.msk [vmem:[#allocation3 + $0x60] sm:$0xff] %vm1687_vm0, %v7217_v39  ;;  %v1914_v7 = vsel %vm6465_vm14, %v1912_v48, %v1913_v29  ;;  %v2321_v2 = vrot.slane %v2319_v1, 5  ;;  %v2335_v33 = vshll.u32 %v2185_v37, 16  ;;  %v2190_v39 = vld [vmem:[#allocation2 + $0x58] sm:$0xf] }
 0x14b   : > { %v2314_v15 = vsel %vm6065_vm11, %v2309_v56, %v2313_v61  ;;  %v5218_v5 = vcombine.low %v1911_v62, %v1914_v7  ;;  %v2327_v58 = vrot.slane %v2325_v36, 5  ;;  %v2331_v0 = vrot.slane %v2329_v43, 4  ;;  %v2192_v55 = vld [vmem:[#allocation2 + $0x60] sm:$0xf]  ;;  %v2193_v12 = vld [vmem:[#allocation2 + $0x64] sm:$0xf]  ;;  %v1670_v61 = vpop.permute.xlu1 %1669 }
 0x14c   : > { %v5238_v21 = vcombine.low %v2304_v50, %v2314_v15  ;;  %v2322_v53 = vor.u32 %v2321_v2, %v2318_v18  ;;  %v2337_v60 = vrot.slane %v2335_v33, 5  ;;  %v2340_v42 = vshrl.u32 %v2186_v6, 16  ;;  %v4035_v26 = vld [vmem:[#allocation3 + $0x1b8] sm:$0xff]  ;;  %v4041_v59 = vld [vmem:[#allocation3 + $0x1e8] sm:$0xff]  ;;  %1703 = vst.msk [vmem:[#allocation3 + $0x258] sm:$0xff] %vm1687_vm0, %v1670_v61  ;;  %3680 = vst.msk [vmem:[#allocation3 + $0xb8] sm:$0xff] %vm1687_vm0, %v3637_v28  ;;  %v3639_v2 = vpop.permute.xlu0 %3638 }
 0x14d   : > { %v2343_v17 = vshll.u32 %v2186_v6, 16  ;;  %4516 = vmatmul.mubr.bf16.gmra.mrb[40].mxu0 %v4030_v23  ;;  %1994 = vst.msk [vmem:[#allocation3 + $0x260] sm:$0xff] %vm1139_vm15, %v5218_v5  ;;  %v2332_v47 = vor.u32 %v2331_v0, %v2327_v58  ;;  %v2349_v34 = vshll.u32 %v2187_v30, 16  ;;  %v2353_v63 = vshrl.u32 %v2187_v30, 16  ;;  %v2194_v23 = vld [vmem:[#allocation2 + $0x68] sm:$0x1] }
 0x14e   : > { %2670 = vst.msk [vmem:[#allocation3 + $0x88] sm:$0xff] %vm1139_vm15, %v5238_v21  ;;  %v2359_v31 = vshll.u32 %v2188_v54, 16  ;;  %4523 = vmatprep.mubr.bf16.mxu0 %v4036_v19  ;;  %v2323_v10 = vrot.slane %v2322_v53, 4  ;;  %v2342_v11 = vrot.slane %v2340_v42, 4  ;;  %v2364_v14 = vshrl.u32 %v2189_v40, 16 }
 0x14f   : > { %2990 = vst.msk [vmem:[#allocation3 + $0x88] sm:$0xff] %vm1687_vm0, %v2946_v13  ;;  %v2345_v41 = vrot.slane %v2343_v17, 5  ;;  %2170 = vst.msk [vmem:[#allocation3 + $0x260] sm:$0xff] %vm1687_vm0, %v2138_v32  ;;  %v2333_v51 = vrot.slane %v2332_v47, 4  ;;  %v2351_v35 = vrot.slane %v2349_v34, 5  ;;  %v2355_v22 = vrot.slane %v2353_v63, 4  ;;  %v2948_v7 = vpop.permute.xlu1 %2947 }
 0x150   : > { %v2361_v25 = vrot.slane %v2359_v31, 5  ;;  %v2328_v4 = vsel %vm6065_vm11, %v2323_v10, %v2327_v58  ;;  %v2366_v3 = vrot.slane %v2364_v14, 4  ;;  %v2367_v52 = vshll.u32 %v2189_v40, 16  ;;  %v2195_v18 = vld [vmem:[#allocation2 + $0x6c] sm:$0xf]  ;;  %3681 = vst.msk [vmem:[#allocation3 + $0xe0] sm:$0xff] %vm1687_vm0, %v3639_v2 }
 0x151   : > { %v2346_v16 = vor.u32 %v2345_v41, %v2342_v11  ;;  %v3992_v49 = vld [vmem:[#allocation3 + $0x60] sm:$0xff]  ;;  %v2338_v38 = vsel %vm6065_vm11, %v2333_v51, %v2337_v60  ;;  %v2356_v46 = vor.u32 %v2355_v22, %v2351_v35  ;;  %v2373_v9 = vshll.u32 %v2190_v39, 16  ;;  %v2196_v5 = vld [vmem:[#allocation2 + $0x70] sm:$0xf]  ;;  %v2197_v34 = vld [vmem:[#allocation2 + $0x74] sm:$0x1] }
 0x152   : > { %v2377_v24 = vshrl.u32 %v2190_v39, 16  ;;  %4613 = vmatmul.mubr.bf16.gmra.mrb[8].mxu1 %v3992_v49  ;;  %v5239_v37 = vcombine.low %v2328_v4, %v2338_v38  ;;  %v2369_v8 = vrot.slane %v2367_v52, 5  ;;  %v2383_v29 = vshll.u32 %v2191_v57, 16  ;;  %v2198_v31 = vld [vmem:[#allocation2 + $0x78] sm:$0xf] }
 0x153   : > { %v2347_v20 = vrot.slane %v2346_v16, 4  ;;  %4620 = vmatprep.mubr.bf16.mxu1 %v3998_v45  ;;  %v2357_v6 = vrot.slane %v2356_v46, 4  ;;  %v2375_v56 = vrot.slane %v2373_v9, 5  ;;  %v2388_v48 = vshrl.u32 %v2192_v55, 16  ;;  %v4040_v10 = vld [vmem:[#allocation3 + $0x1e0] sm:$0xff]  ;;  %v2950_v45 = vpop.permute.xlu1 %2949 }
 0x154   : > { %v2379_v62 = vrot.slane %v2377_v24, 4  ;;  %2671 = vst.msk [vmem:[#allocation3 + $0xb0] sm:$0xff] %vm1139_vm15, %v5239_v37  ;;  %v2370_v30 = vor.u32 %v2369_v8, %v2366_v3  ;;  %v2385_v54 = vrot.slane %v2383_v29, 5  ;;  %v2391_v50 = vshll.u32 %v2192_v55, 16  ;;  %v2199_v14 = vld [vmem:[#allocation2 + $0x7c] sm:$0xf] }
 0x155   : > { %v2352_v1 = vsel %vm6065_vm11, %v2347_v20, %v2351_v35  ;;  %4524 = vmatmul.mubr.bf16.gmra.mrb[44].mxu0 %v4035_v26  ;;  %v2362_v36 = vsel %vm6065_vm11, %v2357_v6, %v2361_v25  ;;  %v2390_v19 = vrot.slane %v2388_v48, 4  ;;  %v2397_v15 = vshll.u32 %v2193_v12, 16  ;;  %2991 = vst.msk [vmem:[#allocation3 + $0xb0] sm:$0xff] %vm1687_vm0, %v2948_v7  ;;  %v4003_v55 = vld [vmem:[#allocation3 + $0xb8] sm:$0xff]  ;;  %v4046_v25 = vld [vmem:[#allocation3 + $0x210] sm:$0xff]  ;;  %v3641_v26 = vpop.permute.xlu0 %3640 }
 0x156   : > { %v2380_v43 = vor.u32 %v2379_v62, %v2375_v56  ;;  %4531 = vmatprep.mubr.bf16.mxu0 %v4041_v59  ;;  %v5240_v33 = vcombine.low %v2352_v1, %v2362_v36  ;;  %v2371_v40 = vrot.slane %v2370_v30, 4  ;;  %v2393_v21 = vrot.slane %v2391_v50, 5  ;;  %v3997_v58 = vld [vmem:[#allocation3 + $0x88] sm:$0xff]  ;;  %3682 = vst.msk [vmem:[#allocation3 + $0x108] sm:$0xff] %vm1687_vm0, %v3641_v26  ;;  %v2202_v48 = vld [vmem:[#allocation2 + $0x88] sm:$0xf] }
 0x157   : > { %v2401_v13 = vshrl.u32 %v2193_v12, 16  ;;  %v2399_v53 = vrot.slane %v2397_v15, 5  ;;  %v2407_v60 = vshll.u32 %v2194_v23, 16  ;;  %v2412_v42 = vshrl.u32 %v2195_v18, 16  ;;  %v2200_v9 = vld [vmem:[#allocation2 + $0x80] sm:$0x1]  ;;  %v2952_v29 = vpop.permute.xlu1 %2951 }
 0x158   : > { %v2381_v0 = vrot.slane %v2380_v43, 4  ;;  %2672 = vst.msk [vmem:[#allocation3 + $0xd8] sm:$0xff] %vm1139_vm15, %v5240_v33  ;;  %v2376_v17 = vsel %vm6065_vm11, %v2371_v40, %v2375_v56  ;;  %v2394_v39 = vor.u32 %v2393_v21, %v2390_v19  ;;  %v2415_v63 = vshll.u32 %v2195_v18, 16  ;;  %v2201_v8 = vld [vmem:[#allocation2 + $0x84] sm:$0xf]  ;;  %v4008_v36 = vld [vmem:[#allocation3 + $0xe0] sm:$0xff] }
 0x159   : > { %v2403_v47 = vrot.slane %v2401_v13, 4  ;;  %v2409_v32 = vrot.slane %v2407_v60, 5  ;;  %v2414_v11 = vrot.slane %v2412_v42, 4  ;;  %v2421_v41 = vshll.u32 %v2196_v5, 16  ;;  %2992 = vst.msk [vmem:[#allocation3 + $0xd8] sm:$0xff] %vm1687_vm0, %v2950_v45  ;;  %v4045_v19 = vld [vmem:[#allocation3 + $0x208] sm:$0xff] }
 0x15a   : > { %v2386_v57 = vsel %vm6065_vm11, %v2381_v0, %v2385_v54  ;;  %4621 = vmatmul.mubr.bf16.gmra.mrb[12].mxu1 %v3997_v58  ;;  %v2395_v35 = vrot.slane %v2394_v39, 4  ;;  %v2417_v4 = vrot.slane %v2415_v63, 5  ;;  %v2425_v3 = vshrl.u32 %v2196_v5, 16  ;;  %v2203_v18 = vld [vmem:[#allocation2 + $0x8c] sm:$0x1]  ;;  %v4051_v42 = vld [vmem:[#allocation3 + $0x238] sm:$0xff] }
 0x15b   : > { %v5241_v51 = vcombine.low %v2376_v17, %v2386_v57  ;;  %v2404_v22 = vor.u32 %v2403_v47, %v2399_v53  ;;  %4628 = vmatprep.mubr.bf16.mxu1 %v4003_v55  ;;  %v7277_v16 = vrot.slane %v2421_v41, 5  ;;  %v2431_v52 = vshll.u32 %v2197_v34, 16  ;;  %v3692_v33 = vld [vmem:[#allocation2 + $0x18] sm:$0xe]  ;;  %v3693_v40 = vld [vmem:[#allocation2 + $0x1c] sm:$0xf] }
 0x15c   : > { %v2436_v12 = vshrl.u32 %v2198_v31, 16  ;;  %v2400_v49 = vsel %vm6065_vm11, %v2395_v35, %v2399_v53  ;;  %v2418_v46 = vor.u32 %v2417_v4, %v2414_v11  ;;  %v2439_v24 = vshll.u32 %v2198_v31, 16  ;;  %v4002_v1 = vld [vmem:[#allocation3 + $0xb0] sm:$0xff]  ;;  %v3694_v53 = vld [vmem:[#allocation2 + $0x20] sm:$0x1] }
 0x15d   : > { %2673 = vst.msk [vmem:[#allocation3 + $0x100] sm:$0xff] %vm1139_vm15, %v5241_v51  ;;  %v2405_v38 = vrot.slane %v2404_v22, 4  ;;  %4532 = vmatmul.mubr.bf16.gmra.mrb[48].mxu0 %v4040_v10  ;;  %v2427_v61 = vrot.slane %v2425_v3, 4  ;;  %v2433_v28 = vrot.slane %v2431_v52, 5  ;;  %v2445_v20 = vshll.u32 %v2199_v14, 16 }
 0x15e   : > { %4539 = vmatprep.mubr.bf16.mxu0 %v4046_v25  ;;  %v2438_v37 = vrot.slane %v2436_v12, 4  ;;  %v2419_v6 = vrot.slane %v2418_v46, 4  ;;  %v2441_v56 = vrot.slane %v2439_v24, 5  ;;  %v2449_v62 = vshrl.u32 %v2199_v14, 16  ;;  %2993 = vst.msk [vmem:[#allocation3 + $0x100] sm:$0xff] %vm1687_vm0, %v2952_v29  ;;  %v4056_v29 = vld [vmem:[#allocation3 + $0x260] sm:$0xff] }
 0x15f   : > { %v2410_v59 = vsel %vm6065_vm11, %v2405_v38, %v2409_v32  ;;  %v2428_v54 = vor.u32 %v2427_v61, %v7277_v16  ;;  %v2447_v23 = vrot.slane %v2445_v20, 5  ;;  %v2455_v50 = vshll.u32 %v2200_v9, 16  ;;  %v2204_v63 = vld [vmem:[#allocation2 + $0x90] sm:$0xf]  ;;  %v2205_v25 = vld [vmem:[#allocation2 + $0x94] sm:$0xf] }
 0x160   : > { %v5242_v30 = vcombine.low %v2400_v49, %v2410_v59  ;;  %v2424_v43 = vsel %vm6065_vm11, %v2419_v6, %v7277_v16  ;;  %v2442_v15 = vor.u32 %v2441_v56, %v2438_v37  ;;  %v2451_v7 = vrot.slane %v2449_v62, 4  ;;  %v3643_v21 = vpop.permute.xlu0 %3642  ;;  %v2206_v52 = vld [vmem:[#allocation2 + $0x98] sm:$0x1]  ;;  %v3695_v49 = vld [vmem:[#allocation2 + $0x24] sm:$0xe]  ;;  %v4007_v38 = vld [vmem:[#allocation3 + $0xd8] sm:$0xff] }
 0x161   : > { %v2460_v2 = vshrl.u32 %v2201_v8, 16  ;;  %v2429_v13 = vrot.slane %v2428_v54, 4  ;;  %v2457_v5 = vrot.slane %v2455_v50, 5  ;;  %v2463_v58 = vshll.u32 %v2201_v8, 16  ;;  %3683 = vst.msk [vmem:[#allocation3 + $0x130] sm:$0xff] %vm1687_vm0, %v3643_v21  ;;  %v2954_v60 = vpop.permute.xlu1 %2953  ;;  %v4050_v9 = vld [vmem:[#allocation3 + $0x230] sm:$0xff] }
 0x162   : > { %2674 = vst.msk [vmem:[#allocation3 + $0x128] sm:$0xff] %vm1139_vm15, %v5242_v30  ;;  %v2469_v0 = vshll.u32 %v2202_v48, 16  ;;  %4629 = vmatmul.mubr.bf16.gmra.mrb[16].mxu1 %v4002_v1  ;;  %v2443_v17 = vrot.slane %v2442_v15, 4  ;;  %v2452_v39 = vor.u32 %v2451_v7, %v2447_v23  ;;  %v2473_v34 = vshrl.u32 %v2202_v48, 16  ;;  %v3697_v37 = vld [vmem:[#allocation2 + $0x2c] sm:$0x1] }
 0x163   : > { %v2462_v47 = vrot.slane %v2460_v2, 4  ;;  %4636 = vmatprep.mubr.bf16.mxu1 %v4008_v36  ;;  %2994 = vst.msk [vmem:[#allocation3 + $0x128] sm:$0xff] %vm1687_vm0, %v2954_v60  ;;  %v2434_v31 = vsel %vm6065_vm11, %v2429_v13, %v2433_v28  ;;  %v2465_v57 = vrot.slane %v2463_v58, 5  ;;  %v2479_v10 = vshll.u32 %v2203_v18, 16  ;;  %v3696_v28 = vld [vmem:[#allocation2 + $0x28] sm:$0xf] }
 0x164   : > { %v2471_v32 = vrot.slane %v2469_v0, 5  ;;  %v5243_v11 = vcombine.low %v2424_v43, %v2434_v31  ;;  %v2448_v41 = vsel %vm6065_vm11, %v2443_v17, %v2447_v23  ;;  %v2453_v14 = vrot.slane %v2452_v39, 4  ;;  %v4013_v20 = vld [vmem:[#allocation3 + $0x108] sm:$0xff]  ;;  %v3698_v50 = vld [vmem:[#allocation2 + $0x30] sm:$0xe] }
 0x165   : > { %4540 = vmatmul.mubr.bf16.gmra.mrb[52].mxu0 %v4045_v19  ;;  %v2475_v55 = vrot.slane %v2473_v34, 4  ;;  %v2466_v45 = vor.u32 %v2465_v57, %v2462_v47  ;;  %v2481_v51 = vrot.slane %v2479_v10, 5  ;;  %v5315_v35 = vrot.slane %v3692_v33, 9  ;;  %v2956_v8 = vpop.permute.xlu1 %2955  ;;  %v3699_v18 = vld [vmem:[#allocation2 + $0x34] sm:$0xf] }
 0x166   : > { %4547 = vmatprep.mubr.bf16.mxu0 %v4051_v42  ;;  %v3790_v22 = vrot.slane %v3693_v40, 5  ;;  %2675 = vst.msk [vmem:[#allocation3 + $0x150] sm:$0xff] %vm1139_vm15, %v5243_v11  ;;  %v2458_v4 = vsel %vm6065_vm11, %v2453_v14, %v2457_v5  ;;  %v3793_v3 = vrot.slane %v3694_v53, 5  ;;  %v2484_v12 = vshrl.u32 %v2204_v63, 16  ;;  %v3700_v7 = vld [vmem:[#allocation2 + $0x38] sm:$0x1] }
 0x167   : > { %v2476_v16 = vor.u32 %v2475_v55, %v2471_v32  ;;  %v5244_v46 = vcombine.low %v2448_v41, %v2458_v4  ;;  %v2467_v24 = vrot.slane %v2466_v45, 4  ;;  %v2487_v56 = vshll.u32 %v2204_v63, 16  ;;  %2995 = vst.msk [vmem:[#allocation3 + $0x150] sm:$0xff] %vm1687_vm0, %v2956_v8  ;;  %v2207_v2 = vld [vmem:[#allocation2 + $0x9c] sm:$0xf] }
 0x168   : > { %v3791_v26 = vsel %vm6465_vm14, %v5315_v35, %v3790_v22  ;;  %v3792_v61 = vrot.slane %v3790_v22, 4  ;;  %v2486_v6 = vrot.slane %v2484_v12, 4  ;;  %v2493_v62 = vshll.u32 %v2205_v25, 16  ;;  %v2208_v5 = vld [vmem:[#allocation2 + $0xa0] sm:$0xf]  ;;  %v4012_v11 = vld [vmem:[#allocation3 + $0x100] sm:$0xff] }
 0x169   : > { %v2477_v59 = vrot.slane %v2476_v16, 4  ;;  %2676 = vst.msk [vmem:[#allocation3 + $0x178] sm:$0xff] %vm1139_vm15, %v5244_v46  ;;  %v2472_v1 = vsel %vm6065_vm11, %v2467_v24, %v2471_v32  ;;  %v2497_v54 = vshrl.u32 %v2205_v25, 16  ;;  %v2503_v23 = vshll.u32 %v2206_v52, 16  ;;  %v2209_v57 = vld [vmem:[#allocation2 + $0xa4] sm:$0x1] }
 0x16a   : > { %v3794_v30 = vsel %vm6465_vm14, %v3792_v61, %v3793_v3  ;;  %4637 = vmatmul.mubr.bf16.gmra.mrb[20].mxu1 %v4007_v38  ;;  %v2489_v19 = vrot.slane %v2487_v56, 5  ;;  %v2495_v15 = vrot.slane %v2493_v62, 5  ;;  %v5316_v13 = vrot.slane %v3695_v49, 9  ;;  %v3701_v10 = vld [vmem:[#allocation2 + $0x3c] sm:$0xe]  ;;  %v4018_v22 = vld [vmem:[#allocation3 + $0x130] sm:$0xff] }
 0x16b   : > { %v3645_v48 = vpop.permute.xlu0 %3644  ;;  %v2482_v36 = vsel %vm6065_vm11, %v2477_v59, %v2481_v51  ;;  %v5331_v43 = vcombine.low %v3791_v26, %v3794_v30  ;;  %4644 = vmatprep.mubr.bf16.mxu1 %v4013_v20  ;;  %v2499_v40 = vrot.slane %v2497_v54, 4  ;;  %v2505_v21 = vrot.slane %v2503_v23, 5  ;;  %v3702_v35 = vld [vmem:[#allocation2 + $0x40] sm:$0xf]  ;;  %v3703_v52 = vld [vmem:[#allocation2 + $0x44] sm:$0x1] }
 0x16c   : > { %3684 = vst.msk [vmem:[#allocation3 + $0x158] sm:$0xff] %vm1687_vm0, %v3645_v48  ;;  %v5245_v33 = vcombine.low %v2472_v1, %v2482_v36  ;;  %v2490_v58 = vor.u32 %v2489_v19, %v2486_v6  ;;  %v3797_v0 = vrot.slane %v3696_v28, 5  ;;  %v3800_v53 = vrot.slane %v3697_v37, 5  ;;  %v4055_v12 = vld [vmem:[#allocation3 + $0x258] sm:$0xff]  ;;  %v3704_v24 = vld [vmem:[#allocation2 + $0x48] sm:$0xe] }
 0x16d   : > { %4548 = vmatmul.mubr.bf16.gmra.mrb[56].mxu0 %v4050_v9  ;;  %3964 = vst.msk [vmem:[#allocation3 + $0x20] sm:$0xff] %vm1139_vm15, %v5331_v43  ;;  %v5317_v60 = vrot.slane %v3698_v50, 9  ;;  %v2500_v42 = vor.u32 %v2499_v40, %v2495_v15  ;;  %v3804_v17 = vrot.slane %v3699_v18, 5  ;;  %v3807_v39 = vrot.slane %v3700_v7, 5  ;;  %v2958_v41 = vpop.permute.xlu1 %2957  ;;  %v3705_v26 = vld [vmem:[#allocation2 + $0x4c] sm:$0xf] }
 0x16e   : > { %4555 = vmatprep.mubr.bf16.mxu0 %v4056_v29  ;;  %2677 = vst.msk [vmem:[#allocation3 + $0x1a0] sm:$0xff] %vm1139_vm15, %v5245_v33  ;;  %v2508_v47 = vshrl.u32 %v2207_v2, 16  ;;  %v2491_v34 = vrot.slane %v2490_v58, 4  ;;  %v3798_v63 = vsel %vm6465_vm14, %v5316_v13, %v3797_v0  ;;  %v3799_v31 = vrot.slane %v3797_v0, 4  ;;  %v3706_v8 = vld [vmem:[#allocation2 + $0x50] sm:$0x1] }
 0x16f   : > { %v2511_v32 = vshll.u32 %v2207_v2, 16  ;;  %v2501_v14 = vrot.slane %v2500_v42, 4  ;;  %v3805_v55 = vsel %vm6465_vm14, %v5317_v60, %v3804_v17  ;;  %v3806_v45 = vrot.slane %v3804_v17, 4  ;;  %2996 = vst.msk [vmem:[#allocation3 + $0x178] sm:$0xff] %vm1687_vm0, %v2958_v41  ;;  %v2210_v29 = vld [vmem:[#allocation2 + $0xa8] sm:$0xf] }
 0x170   : > { %v2510_v51 = vrot.slane %v2508_v47, 4  ;;  %v2496_v25 = vsel %vm6065_vm11, %v2491_v34, %v2495_v15  ;;  %v3801_v4 = vsel %vm6465_vm14, %v3799_v31, %v3800_v53  ;;  %v2517_v3 = vshll.u32 %v2208_v5, 16  ;;  %v2211_v18 = vld [vmem:[#allocation2 + $0xac] sm:$0xf]  ;;  %v2212_v7 = vld [vmem:[#allocation2 + $0xb0] sm:$0x1] }
 0x171   : > { %v2513_v16 = vrot.slane %v2511_v32, 5  ;;  %v2506_v49 = vsel %vm6065_vm11, %v2501_v14, %v2505_v21  ;;  %v5332_v38 = vcombine.low %v3798_v63, %v3801_v4  ;;  %v3808_v46 = vsel %vm6465_vm14, %v3806_v45, %v3807_v39  ;;  %v3647_v59 = vpop.permute.xlu0 %3646  ;;  %v3707_v13 = vld [vmem:[#allocation2 + $0x54] sm:$0xe]  ;;  %v3708_v42 = vld [vmem:[#allocation2 + $0x58] sm:$0xf] }
 0x172   : > { %v2521_v9 = vshrl.u32 %v2208_v5, 16  ;;  %4645 = vmatmul.mubr.bf16.gmra.mrb[24].mxu1 %v4012_v11  ;;  %v5246_v61 = vcombine.low %v2496_v25, %v2506_v49  ;;  %v5333_v28 = vcombine.low %v3805_v55, %v3808_v46  ;;  %v2519_v20 = vrot.slane %v2517_v3, 5  ;;  %3685 = vst.msk [vmem:[#allocation3 + $0x180] sm:$0xff] %vm1687_vm0, %v3647_v59  ;;  %v4017_v5 = vld [vmem:[#allocation3 + $0x128] sm:$0xff]  ;;  %v3709_v31 = vld [vmem:[#allocation2 + $0x5c] sm:$0x1] }
 0x173   : > { %v2514_v37 = vor.u32 %v2513_v16, %v2510_v51  ;;  %4652 = vmatprep.mubr.bf16.mxu1 %v4018_v22  ;;  %3965 = vst.msk [vmem:[#allocation3 + $0x48] sm:$0xff] %vm1139_vm15, %v5332_v38  ;;  %v2527_v62 = vshll.u32 %v2209_v57, 16  ;;  %v5318_v48 = vrot.slane %v3701_v10, 9  ;;  %v3811_v1 = vrot.slane %v3702_v35, 5  ;;  %v4023_v17 = vld [vmem:[#allocation3 + $0x158] sm:$0xff] }
 0x174   : > { %v3984_v6 = vld [vmem:[#allocation3 + $0x20] sm:$0xff]  ;;  %v2523_v56 = vrot.slane %v2521_v9, 4  ;;  %2678 = vst.msk [vmem:[#allocation3 + $0x1c8] sm:$0xff] %vm1139_vm15, %v5246_v61  ;;  %3966 = vst.msk [vmem:[#allocation3 + $0x70] sm:$0xff] %vm1139_vm15, %v5333_v28  ;;  %v3814_v54 = vrot.slane %v3703_v52, 5  ;;  %v5319_v23 = vrot.slane %v3704_v24, 9 }
 0x175   : > { %4556 = vmatmul.mubr.bf16.gmra.mrb[60].mxu0 %v4055_v12  ;;  %v2515_v30 = vrot.slane %v2514_v37, 4  ;;  %v3818_v50 = vrot.slane %v3705_v26, 5  ;;  %v2529_v43 = vrot.slane %v2527_v62, 5  ;;  %v3812_v19 = vsel %vm6465_vm14, %v5318_v48, %v3811_v1  ;;  %v3710_v14 = vld [vmem:[#allocation2 + $0x60] sm:$0xe] }
 0x176   : > { %5785 = vmatprep.mubr.msk.bf16.mxu0 %vm1139_vm15, %v3984_v6  ;;  %v2524_v36 = vor.u32 %v2523_v56, %v2519_v20  ;;  %v3813_v15 = vrot.slane %v3811_v1, 4  ;;  %v3821_v21 = vrot.slane %v3706_v8, 5  ;;  %v2532_v53 = vshrl.u32 %v2210_v29, 16  ;;  %v3711_v55 = vld [vmem:[#allocation2 + $0x64] sm:$0xf]  ;;  %v4022_v56 = vld [vmem:[#allocation3 + $0x150] sm:$0xff] }
 0x177   : > { %v2520_v2 = vsel %vm6065_vm11, %v2515_v30, %v2519_v20  ;;  %v3819_v33 = vsel %vm6465_vm14, %v5319_v23, %v3818_v50  ;;  %v3820_v40 = vrot.slane %v3818_v50, 4  ;;  %v2535_v60 = vshll.u32 %v2210_v29, 16  ;;  %v2960_v57 = vpop.permute.xlu1 %2959  ;;  %v3712_v4 = vld [vmem:[#allocation2 + $0x68] sm:$0x1]  ;;  %v2213_v46 = vld [vmem:[#allocation2 + $0xb4] sm:$0xf] }
 0x178   : > { %v2525_v58 = vrot.slane %v2524_v36, 4  ;;  %v3815_v0 = vsel %vm6465_vm14, %v3813_v15, %v3814_v54  ;;  %v2541_v34 = vshll.u32 %v2211_v18, 16  ;;  %v2545_v63 = vshrl.u32 %v2211_v18, 16  ;;  %2997 = vst.msk [vmem:[#allocation3 + $0x1a0] sm:$0xff] %vm1687_vm0, %v2960_v57  ;;  %v2214_v28 = vld [vmem:[#allocation2 + $0xb8] sm:$0xf] }
 0x179   : > { %v5334_v39 = vcombine.low %v3812_v19, %v3815_v0  ;;  %v3822_v47 = vsel %vm6465_vm14, %v3820_v40, %v3821_v21  ;;  %v2534_v11 = vrot.slane %v2532_v53, 4  ;;  %v2537_v41 = vrot.slane %v2535_v60, 5  ;;  %v3649_v16 = vpop.permute.xlu0 %3648  ;;  %v2215_v59 = vld [vmem:[#allocation2 + $0xbc] sm:$0x1]  ;;  %v3713_v6 = vld [vmem:[#allocation2 + $0x6c] sm:$0xe] }
 0x17a   : > { %v2530_v32 = vsel %vm6065_vm11, %v2525_v58, %v2529_v43  ;;  %v5335_v10 = vcombine.low %v3819_v33, %v3822_v47  ;;  %4653 = vmatmul.mubr.bf16.gmra.mrb[28].mxu1 %v4017_v5  ;;  %v3989_v45 = vld [vmem:[#allocation3 + $0x48] sm:$0xff]  ;;  %v2543_v35 = vrot.slane %v2541_v34, 5  ;;  %v2547_v22 = vrot.slane %v2545_v63, 4  ;;  %3686 = vst.msk [vmem:[#allocation3 + $0x1a8] sm:$0xff] %vm1687_vm0, %v3649_v16  ;;  %v3714_v54 = vld [vmem:[#allocation2 + $0x70] sm:$0xf] }
 0x17b   : > { %v5247_v51 = vcombine.low %v2520_v2, %v2530_v32  ;;  %3967 = vst.msk [vmem:[#allocation3 + $0x98] sm:$0xff] %vm1139_vm15, %v5334_v39  ;;  %v2551_v25 = vshll.u32 %v2212_v7, 16  ;;  %4660 = vmatprep.mubr.bf16.mxu1 %v4023_v17  ;;  %v3994_v3 = vld [vmem:[#allocation3 + $0x70] sm:$0xff]  ;;  %v2538_v52 = vor.u32 %v2537_v41, %v2534_v11  ;;  %v5320_v12 = vrot.slane %v3707_v13, 9  ;;  %v3715_v43 = vld [vmem:[#allocation2 + $0x74] sm:$0x1] }
 0x17c   : > { %3968 = vst.msk [vmem:[#allocation3 + $0xc0] sm:$0xff] %vm1139_vm15, %v5335_v10  ;;  %v3825_v49 = vrot.slane %v3708_v42, 5  ;;  %v3828_v38 = vrot.slane %v3709_v31, 5  ;;  %v2548_v9 = vor.u32 %v2547_v22, %v2543_v35  ;;  %v5321_v26 = vrot.slane %v3710_v14, 9  ;;  %v3716_v19 = vld [vmem:[#allocation2 + $0x78] sm:$0xe] }
 0x17d   : > { %5786 = vmatmul.mubr.msk.bf16.vlgmr.msra.gmra.mrb[64].mxu0 %vm1139_vm15, %v3989_v45  ;;  %2679 = vst.msk [vmem:[#allocation3 + $0x1f0] sm:$0xff] %vm1139_vm15, %v5247_v51  ;;  %v2553_v24 = vrot.slane %v2551_v25, 5  ;;  %v3832_v61 = vrot.slane %v3711_v55, 5  ;;  %v2539_v37 = vrot.slane %v2538_v52, 4  ;;  %v3835_v29 = vrot.slane %v3712_v4, 5  ;;  %v4028_v15 = vld [vmem:[#allocation3 + $0x180] sm:$0xff] }
 0x17e   : > { %5789 = vmatprep.mubr.msk.bf16.mxu0 %vm1139_vm15, %v3994_v3  ;;  %v3826_v20 = vsel %vm6465_vm14, %v5320_v12, %v3825_v49  ;;  %v3827_v8 = vrot.slane %v3825_v49, 4  ;;  %v2549_v62 = vrot.slane %v2548_v9, 4  ;;  %v2556_v30 = vshrl.u32 %v2213_v46, 16  ;;  %v3717_v21 = vld [vmem:[#allocation2 + $0x7c] sm:$0xf] }
 0x17f   : > { %v3833_v48 = vsel %vm6465_vm14, %v5321_v26, %v3832_v61  ;;  %v3834_v1 = vrot.slane %v3832_v61, 4  ;;  %v2544_v23 = vsel %vm6065_vm11, %v2539_v37, %v2543_v35  ;;  %v2559_v18 = vshll.u32 %v2213_v46, 16  ;;  %v3718_v13 = vld [vmem:[#allocation2 + $0x80] sm:$0x1]  ;;  %v2217_v41 = vld [vmem:[#allocation2 + $0xc4] sm:$0xf] }
 0x180   : > { %v3829_v50 = vsel %vm6465_vm14, %v3827_v8, %v3828_v38  ;;  %v2565_v36 = vshll.u32 %v2214_v28, 16  ;;  %v2554_v7 = vsel %vm6065_vm11, %v2549_v62, %v2553_v24  ;;  %v2558_v40 = vrot.slane %v2556_v30, 4  ;;  %v2216_v42 = vld [vmem:[#allocation2 + $0xc0] sm:$0xf]  ;;  %v2962_v17 = vpop.permute.xlu1 %2961  ;;  %v2218_v35 = vld [vmem:[#allocation2 + $0xc8] sm:$0x1] }
 0x181   : > { %v5336_v2 = vcombine.low %v3826_v20, %v3829_v50  ;;  %v3836_v33 = vsel %vm6465_vm14, %v3834_v1, %v3835_v29  ;;  %v5248_v58 = vcombine.low %v2544_v23, %v2554_v7  ;;  %v2561_v53 = vrot.slane %v2559_v18, 5  ;;  %2998 = vst.msk [vmem:[#allocation3 + $0x1c8] sm:$0xff] %vm1687_vm0, %v2962_v17  ;;  %v3719_v52 = vld [vmem:[#allocation2 + $0x84] sm:$0xe]  ;;  %v3720_v9 = vld [vmem:[#allocation2 + $0x88] sm:$0xf] }
 0x182   : > { %v3999_v5 = vld [vmem:[#allocation3 + $0x98] sm:$0xff]  ;;  %v5337_v0 = vcombine.low %v3833_v48, %v3836_v33  ;;  %v7362_v60 = vrot.slane %v2565_v36, 5  ;;  %4661 = vmatmul.mubr.bf16.gmra.mrb[32].mxu1 %v4022_v56  ;;  %v2569_v47 = vshrl.u32 %v2214_v28, 16  ;;  %v2575_v34 = vshll.u32 %v2215_v59, 16  ;;  %v3721_v24 = vld [vmem:[#allocation2 + $0x8c] sm:$0x1] }
 0x183   : > { %v4004_v39 = vld [vmem:[#allocation3 + $0xc0] sm:$0xff]  ;;  %3969 = vst.msk [vmem:[#allocation3 + $0xe8] sm:$0xff] %vm1139_vm15, %v5336_v2  ;;  %v5322_v63 = vrot.slane %v3713_v6, 9  ;;  %v3839_v31 = vrot.slane %v3714_v54, 5  ;;  %4668 = vmatprep.mubr.bf16.mxu1 %v4028_v15  ;;  %2680 = vst.msk [vmem:[#allocation3 + $0x218] sm:$0xff] %vm1139_vm15, %v5248_v58  ;;  %v2562_v57 = vor.u32 %v2561_v53, %v2558_v40  ;;  %v3842_v32 = vrot.slane %v3715_v43, 5  ;;  %v3651_v22 = vpop.permute.xlu0 %3650 }
 0x184   : > { %3970 = vst.msk [vmem:[#allocation3 + $0x110] sm:$0xff] %vm1139_vm15, %v5337_v0  ;;  %v5323_v10 = vrot.slane %v3716_v19, 9  ;;  %v3846_v11 = vrot.slane %v3717_v21, 5  ;;  %v2571_v14 = vrot.slane %v2569_v47, 4  ;;  %v2577_v55 = vrot.slane %v2575_v34, 5  ;;  %v4027_v26 = vld [vmem:[#allocation3 + $0x178] sm:$0xff] }
 0x185   : > { %5790 = vmatmul.mubr.msk.bf16.gmra.mrb[68].mxu0 %vm1139_vm15, %v3999_v5  ;;  %v3840_v45 = vsel %vm6465_vm14, %v5322_v63, %v3839_v31  ;;  %v3841_v51 = vrot.slane %v3839_v31, 4  ;;  %v2563_v25 = vrot.slane %v2562_v57, 4  ;;  %v3849_v3 = vrot.slane %v3718_v13, 5  ;;  %3687 = vst.msk [vmem:[#allocation3 + $0x1d0] sm:$0xff] %vm1687_vm0, %v3651_v22  ;;  %v3722_v8 = vld [vmem:[#allocation2 + $0x90] sm:$0xe] }
 0x186   : > { %5793 = vmatprep.mubr.msk.bf16.mxu0 %vm1139_vm15, %v4004_v39  ;;  %v3847_v4 = vsel %vm6465_vm14, %v5323_v10, %v3846_v11  ;;  %v3848_v16 = vrot.slane %v3846_v11, 4  ;;  %v2572_v12 = vor.u32 %v2571_v14, %v7362_v60  ;;  %v2580_v38 = vshrl.u32 %v2216_v42, 16  ;;  %v3723_v29 = vld [vmem:[#allocation2 + $0x94] sm:$0xf]  ;;  %v4033_v59 = vld [vmem:[#allocation3 + $0x1a8] sm:$0xff]  ;;  %v4032_v11 = vld [vmem:[#allocation3 + $0x1a0] sm:$0xff] }
 0x187   : > { %v3843_v49 = vsel %vm6465_vm14, %v3841_v51, %v3842_v32  ;;  %v2583_v46 = vshll.u32 %v2216_v42, 16  ;;  %v2568_v61 = vsel %vm6065_vm11, %v2563_v25, %v7362_v60  ;;  %v2589_v20 = vshll.u32 %v2217_v41, 16  ;;  %v3724_v1 = vld [vmem:[#allocation2 + $0x98] sm:$0x1]  ;;  %v3725_v30 = vld [vmem:[#allocation2 + $0x9c] sm:$0xe] }
 0x188   : > { %v5338_v28 = vcombine.low %v3840_v45, %v3843_v49  ;;  %v3850_v37 = vsel %vm6465_vm14, %v3848_v16, %v3849_v3  ;;  %v2573_v6 = vrot.slane %v2572_v12, 4  ;;  %v2582_v62 = vrot.slane %v2580_v38, 4  ;;  %v3726_v33 = vld [vmem:[#allocation2 + $0xa0] sm:$0xf]  ;;  %v3727_v58 = vld [vmem:[#allocation2 + $0xa4] sm:$0x1] }
 0x189   : > { %v5339_v56 = vcombine.low %v3847_v4, %v3850_v37  ;;  %v2585_v48 = vrot.slane %v2583_v46, 5  ;;  %v7384_v23 = vrot.slane %v2589_v20, 5  ;;  %v2593_v50 = vshrl.u32 %v2217_v41, 16  ;;  %v3728_v0 = vld [vmem:[#allocation2 + $0xa8] sm:$0xe] }
 0x18a   : > { %v4009_v54 = vld [vmem:[#allocation3 + $0xe8] sm:$0xff]  ;;  %3971 = vst.msk [vmem:[#allocation3 + $0x138] sm:$0xff] %vm1139_vm15, %v5338_v28  ;;  %v2599_v18 = vshll.u32 %v2218_v35, 16  ;;  %v5324_v36 = vrot.slane %v3719_v52, 9  ;;  %4669 = vmatmul.mubr.bf16.gmra.mrb[36].mxu1 %v4027_v26  ;;  %v2578_v19 = vsel %vm6065_vm11, %v2573_v6, %v2577_v55  ;;  %v3853_v7 = vrot.slane %v3720_v9, 5 }
 0x18b   : > { %v4014_v43 = vld [vmem:[#allocation3 + $0x110] sm:$0xff]  ;;  %3972 = vst.msk [vmem:[#allocation3 + $0x160] sm:$0xff] %vm1139_vm15, %v5339_v56  ;;  %v2586_v15 = vor.u32 %v2585_v48, %v2582_v62  ;;  %v3856_v2 = vrot.slane %v3721_v24, 5  ;;  %4676 = vmatprep.mubr.bf16.mxu1 %v4033_v59  ;;  %v5249_v40 = vcombine.low %v2568_v61, %v2578_v19  ;;  %v2595_v21 = vrot.slane %v2593_v50, 4  ;;  %v2964_v60 = vpop.permute.xlu1 %2963  ;;  %v3730_v34 = vld [vmem:[#allocation2 + $0xb0] sm:$0x1] }
 0x18c   : > { %v2601_v13 = vrot.slane %v2599_v18, 5  ;;  %v5325_v5 = vrot.slane %v3722_v8, 9  ;;  %v3729_v53 = vld [vmem:[#allocation2 + $0xac] sm:$0xf]  ;;  %v3854_v17 = vsel %vm6465_vm14, %v5324_v36, %v3853_v7  ;;  %v3855_v39 = vrot.slane %v3853_v7, 4  ;;  %2999 = vst.msk [vmem:[#allocation3 + $0x1f0] sm:$0xff] %vm1687_vm0, %v2964_v60 }
 0x18d   : > { %5794 = vmatmul.mubr.msk.bf16.gmra.mrb[72].mxu0 %vm1139_vm15, %v4009_v54  ;;  %v2587_v42 = vrot.slane %v2586_v15, 4  ;;  %v3860_v47 = vrot.slane %v3723_v29, 5  ;;  %2681 = vst.msk [vmem:[#allocation3 + $0x240] sm:$0xff] %vm1139_vm15, %v5249_v40  ;;  %v2596_v63 = vor.u32 %v2595_v21, %v7384_v23  ;;  %v3863_v31 = vrot.slane %v3724_v1, 5  ;;  %v3731_v10 = vld [vmem:[#allocation2 + $0xb4] sm:$0xe]  ;;  %v3653_v41 = vpop.permute.xlu0 %3652 }
 0x18e   : > { %5797 = vmatprep.mubr.msk.bf16.mxu0 %vm1139_vm15, %v4014_v43  ;;  %v5326_v57 = vrot.slane %v3725_v30, 9  ;;  %v3867_v32 = vrot.slane %v3726_v33, 5  ;;  %v3857_v55 = vsel %vm6465_vm14, %v3855_v39, %v3856_v2  ;;  %v3732_v35 = vld [vmem:[#allocation2 + $0xb8] sm:$0xf]  ;;  %v3733_v22 = vld [vmem:[#allocation2 + $0xbc] sm:$0x1] }
 0x18f   : > { %v2592_v14 = vsel %vm6065_vm11, %v2587_v42, %v7384_v23  ;;  %v3861_v45 = vsel %vm6465_vm14, %v5325_v5, %v3860_v47  ;;  %v3862_v51 = vrot.slane %v3860_v47, 4  ;;  %3688 = vst.msk [vmem:[#allocation3 + $0x1f8] sm:$0xff] %vm1687_vm0, %v3653_v41  ;;  %v2597_v25 = vrot.slane %v2596_v63, 4  ;;  %v3734_v52 = vld [vmem:[#allocation2 + $0xc0] sm:$0xe]  ;;  %v4038_v49 = vld [vmem:[#allocation3 + $0x1d0] sm:$0xff] }
 0x190   : > { %v5340_v4 = vcombine.low %v3854_v17, %v3857_v55  ;;  %v3868_v16 = vsel %vm6465_vm14, %v5326_v57, %v3867_v32  ;;  %v3869_v3 = vrot.slane %v3867_v32, 4  ;;  %v3735_v12 = vld [vmem:[#allocation2 + $0xc4] sm:$0xf]  ;;  %v3870_v46 = vrot.slane %v3727_v58, 5  ;;  %v3736_v26 = vld [vmem:[#allocation2 + $0xc8] sm:$0x1] }
 0x191   : > { %v3864_v38 = vsel %vm6465_vm14, %v3862_v51, %v3863_v31  ;;  %v5327_v9 = vrot.slane %v3728_v0, 9  ;;  %v3874_v24 = vrot.slane %v3729_v53, 5  ;;  %v4019_v61 = vld [vmem:[#allocation3 + $0x138] sm:$0xff]  ;;  %v2602_v28 = vsel %vm6065_vm11, %v2597_v25, %v2601_v13  ;;  %v3737_v29 = vld [vmem:[#allocation2 + $0xcc] sm:$0xe]  ;;  %v4037_v58 = vld [vmem:[#allocation3 + $0x1c8] sm:$0xff] }
 0x192   : > { %3973 = vst.msk [vmem:[#allocation3 + $0x188] sm:$0xff] %vm1139_vm15, %v5340_v4  ;;  %v5341_v37 = vcombine.low %v3861_v45, %v3864_v38  ;;  %v3877_v20 = vrot.slane %v3730_v34, 5  ;;  %v5328_v8 = vrot.slane %v3731_v10, 9  ;;  %4677 = vmatmul.mubr.bf16.gmra.mrb[40].mxu1 %v4032_v11  ;;  %v4024_v59 = vld [vmem:[#allocation3 + $0x160] sm:$0xff]  ;;  %v5250_v6 = vcombine.low %v2592_v14, %v2602_v28  ;;  %v3738_v1 = vld [vmem:[#allocation2 + $0xd0] sm:$0xf] }
 0x193   : > { %v3871_v56 = vsel %vm6465_vm14, %v3869_v3, %v3870_v46  ;;  %v3875_v62 = vsel %vm6465_vm14, %v5327_v9, %v3874_v24  ;;  %v3876_v48 = vrot.slane %v3874_v24, 4  ;;  %4684 = vmatprep.mubr.bf16.mxu1 %v4038_v49  ;;  %v3881_v30 = vrot.slane %v3732_v35, 5  ;;  %v3739_v50 = vld [vmem:[#allocation2 + $0xd4] sm:$0x1]  ;;  %v4042_v10 = vld [vmem:[#allocation3 + $0x1f0] sm:$0xff] }
 0x194   : > { %3974 = vst.msk [vmem:[#allocation3 + $0x1b0] sm:$0xff] %vm1139_vm15, %v5341_v37  ;;  %v5342_v27 = vcombine.low %v3868_v16, %v3871_v56  ;;  %v3884_v54 = vrot.slane %v3733_v22, 5  ;;  %v5329_v23 = vrot.slane %v3734_v52, 9  ;;  %2682 = vst.msk [vmem:[#allocation3 + $0x268] sm:$0xff] %vm1139_vm15, %v5250_v6  ;;  %v3888_v36 = vrot.slane %v3735_v12, 5  ;;  %v2966_v15 = vpop.permute.xlu1 %2965 }
 0x195   : > { %5798 = vmatmul.mubr.msk.bf16.gmra.mrb[76].mxu0 %vm1139_vm15, %v4019_v61  ;;  %v3878_v18 = vsel %vm6465_vm14, %v3876_v48, %v3877_v20  ;;  %v3891_v43 = vrot.slane %v3736_v26, 5  ;;  %v5330_v19 = vrot.slane %v3737_v29, 9  ;;  %v3882_v2 = vsel %vm6465_vm14, %v5328_v8, %v3881_v30  ;;  %3000 = vst.msk [vmem:[#allocation3 + $0x218] sm:$0xff] %vm1687_vm0, %v2966_v15 }
 0x196   : > { %5801 = vmatprep.mubr.msk.bf16.mxu0 %vm1139_vm15, %v4024_v59  ;;  %3975 = vst.msk [vmem:[#allocation3 + $0x1d8] sm:$0xff] %vm1139_vm15, %v5342_v27  ;;  %v5343_v7 = vcombine.low %v3875_v62, %v3878_v18  ;;  %v3883_v33 = vrot.slane %v3881_v30, 4  ;;  %v3895_v40 = vrot.slane %v3738_v1, 5  ;;  %v3889_v21 = vsel %vm6465_vm14, %v5329_v23, %v3888_v36  ;;  %v4043_v17 = vld [vmem:[#allocation3 + $0x1f8] sm:$0xff] }
 0x197   : > { %v3890_v13 = vrot.slane %v3888_v36, 4  ;;  %v3898_v5 = vrot.slane %v3739_v50, 5  ;;  %v3655_v42 = vpop.permute.xlu0 %3654 }
 0x198   : > { %3976 = vst.msk [vmem:[#allocation3 + $0x200] sm:$0xff] %vm1139_vm15, %v5343_v7  ;;  %v3885_v0 = vsel %vm6465_vm14, %v3883_v33, %v3884_v54  ;;  %v3896_v53 = vsel %vm6465_vm14, %v5330_v19, %v3895_v40  ;;  %v3897_v60 = vrot.slane %v3895_v40, 4 }
 0x199   : > { %v5344_v39 = vcombine.low %v3882_v2, %v3885_v0  ;;  %v3892_v47 = vsel %vm6465_vm14, %v3890_v13, %v3891_v43  ;;  %3689 = vst.msk [vmem:[#allocation3 + $0x220] sm:$0xff] %vm1687_vm0, %v3655_v42  ;;  %v4029_v34 = vld [vmem:[#allocation3 + $0x188] sm:$0xff] }
 0x19a   : > { %v5345_v63 = vcombine.low %v3889_v21, %v3892_v47  ;;  %v3899_v31 = vsel %vm6465_vm14, %v3897_v60, %v3898_v5  ;;  %4685 = vmatmul.mubr.bf16.gmra.mrb[44].mxu1 %v4037_v58 }
 0x19b   : > { %v4034_v57 = vld [vmem:[#allocation3 + $0x1b0] sm:$0xff]  ;;  %3977 = vst.msk [vmem:[#allocation3 + $0x228] sm:$0xff] %vm1139_vm15, %v5344_v39  ;;  %v5346_v32 = vcombine.low %v3896_v53, %v3899_v31  ;;  %4692 = vmatprep.mubr.bf16.mxu1 %v4043_v17 }
 0x19c   : > { %3978 = vst.msk [vmem:[#allocation3 + $0x250] sm:$0xff] %vm1139_vm15, %v5345_v63  ;;  %v4047_v55 = vld [vmem:[#allocation3 + $0x218] sm:$0xff] }
 0x19d   : > { %5802 = vmatmul.mubr.msk.bf16.gmra.mrb[80].mxu0 %vm1139_vm15, %v4029_v34  ;;  %3979 = vst.msk [vmem:[#allocation3 + $0x278] sm:$0xff] %vm1139_vm15, %v5346_v32  ;;  %v4039_v44 = vld [vmem:[#allocation3 + $0x1d8] sm:$0xff] }
 0x19e   : > { %5805 = vmatprep.mubr.msk.bf16.mxu0 %vm1139_vm15, %v4034_v57  ;;  %v2968_v11 = vpop.permute.xlu1 %2967 }
 0x19f   : > { %3001 = vst.msk [vmem:[#allocation3 + $0x240] sm:$0xff] %vm1687_vm0, %v2968_v11  ;;  %v4044_v14 = vld [vmem:[#allocation3 + $0x200] sm:$0xff] }
 0x1a0   : > { %v4048_v41 = vld [vmem:[#allocation3 + $0x220] sm:$0xff] }
 0x1a2   : > { %4693 = vmatmul.mubr.bf16.gmra.mrb[48].mxu1 %v4042_v10  ;;  %v4049_v45 = vld [vmem:[#allocation3 + $0x228] sm:$0xff] }
 0x1a3   : > { %4700 = vmatprep.mubr.bf16.mxu1 %v4048_v41  ;;  %v4054_v51 = vld [vmem:[#allocation3 + $0x250] sm:$0xff]  ;;  %v7482_v10 = vld [vmem:[%s7691_s3] ss:$0 sm:$0xff] }
 0x1a4   : > { %v4059_v25 = vld [vmem:[#allocation3 + $0x278] sm:$0xff] }
 0x1a5   : > { %5806 = vmatmul.mubr.msk.bf16.gmra.mrb[84].mxu0 %vm1139_vm15, %v4039_v44 }
 0x1a6   : > { %5809 = vmatprep.mubr.msk.bf16.mxu0 %vm1139_vm15, %v4044_v14  ;;  %v4052_v16 = vld [vmem:[#allocation3 + $0x240] sm:$0xff] }
 0x1aa   : > { %4701 = vmatmul.mubr.bf16.gmra.mrb[52].mxu1 %v4047_v55 }
 0x1ad   : > { %5810 = vmatmul.mubr.msk.bf16.gmra.mrb[88].mxu0 %vm1139_vm15, %v4049_v45  ;;  %v2970_v22 = vpop.permute.xlu1 %2969 }
 0x1ae   : > { %v3657_v35 = vpop.permute.xlu0 %3656  ;;  %5813 = vmatprep.mubr.msk.bf16.mxu0 %vm1139_vm15, %v4054_v51  ;;  %3002 = vst.msk [vmem:[#allocation3 + $0x268] sm:$0xff] %vm1687_vm0, %v2970_v22 }
 0x1af   : > { %3690 = vst.msk [vmem:[#allocation3 + $0x248] sm:$0xff] %vm1687_vm0, %v3657_v35 }
 0x1b3   : > { %v3659_v4 = vpop.permute.xlu0 %3658 }
 0x1b4   : > { %3691 = vst.msk [vmem:[#allocation3 + $0x270] sm:$0xff] %vm1687_vm0, %v3659_v4 }
 0x1b5   : > { %5814 = vmatmul.mubr.msk.bf16.gmra.mrb[92].mxu0 %vm1139_vm15, %v4059_v25  ;;  %v4057_v12 = vld [vmem:[#allocation3 + $0x268] sm:$0xff] }
 0x1b6   : > { %v4053_v3 = vld [vmem:[#allocation3 + $0x248] sm:$0xff] }
 0x1b7   : > { %4708 = vmatprep.mubr.bf16.mxu1 %v4053_v3 }
 0x1b8   : > { %4709 = vmatmul.mubr.bf16.gmra.mrb[56].mxu1 %v4052_v16 }
 0x1bb   : > { %v4058_v52 = vld [vmem:[#allocation3 + $0x270] sm:$0xff] }
 0x1bc   : > { %4716 = vmatprep.mubr.bf16.mxu1 %v4058_v52 }
 0x1c0   : > { %4717 = vmatmul.mubr.bf16.gmra.mrb[60].mxu1 %v4057_v12 }
 0x1d0   : > { %v5531_v49 = vpop.f32.mrb[0].mxu0 }
 0x1d1   : > { %v5532_v38 = vpop.f32.mrb[1].mxu0 }
 0x1d2   : > { %v5533_v46 = vadd.f32 %v5532_v38, %v5531_v49  ;;  %v5534_v9 = vpop.f32.mrb[2].mxu0 }
 0x1d3   : > { %v5535_v24 = vpop.f32.mrb[3].mxu0 }
 0x1d4   : > { %v5536_v26 = vadd.f32 %v5535_v24, %v5534_v9  ;;  %v4438_v55 = vadd.f32 %v5533_v46, %v7482_v10 }
 0x1d6   : > { %v4441_v16 = vadd.f32 %v5536_v26, %v7482_v10 }
 0x1d8   : > { %v5537_v61 = vpop.f32.mrb[4].mxu0 }
 0x1d9   : > { %v5538_v28 = vpop.f32.mrb[5].mxu0 }
 0x1da   : > { %v7451_v37 = vadd.f32 %v5538_v28, %v5537_v61  ;;  %v5540_v20 = vpop.f32.mrb[6].mxu0 }
 0x1db   : > { %v5541_v8 = vpop.f32.mrb[7].mxu0 }
 0x1dc   : > { %v7453_v29 = vadd.f32 %v5541_v8, %v5540_v20  ;;  %v4446_v26 = vadd.f32 %v7451_v37, %v7482_v10 }
 0x1e0   : > { %v5543_v59 = vpop.f32.mrb[8].mxu0 }
 0x1e1   : > { %v5544_v6 = vpop.f32.mrb[9].mxu0 }
 0x1e2   : > { %v7455_v56 = vadd.f32 %v5544_v6, %v5543_v59  ;;  %v5546_v62 = vpop.f32.mrb[10].mxu0 }
 0x1e3   : > { %v5547_v48 = vpop.f32.mrb[11].mxu0 }
 0x1e4   : > { %v7457_v1 = vadd.f32 %v5547_v48, %v5546_v62  ;;  %v4449_v48 = vadd.f32 %v7453_v29, %v7482_v10 }
 0x1e8   : > { %v5549_v27 = vpop.f32.mrb[12].mxu0 }
 0x1e9   : > { %v5550_v30 = vpop.f32.mrb[13].mxu0 }
 0x1ea   : > { %v7459_v54 = vadd.f32 %v5550_v30, %v5549_v27  ;;  %v5552_v23 = vpop.f32.mrb[14].mxu0 }
 0x1eb   : > { %v5553_v50 = vpop.f32.mrb[15].mxu0 }
 0x1ec   : > { %v7461_v18 = vadd.f32 %v5553_v50, %v5552_v23 }
 0x1f0   : > { %v5555_v36 = vpop.f32.mrb[16].mxu0 }
 0x1f1   : > { %v5556_v43 = vpop.f32.mrb[17].mxu0 }
 0x1f2   : > { %v7463_v19 = vadd.f32 %v5556_v43, %v5555_v36  ;;  %v5558_v15 = vpop.f32.mrb[18].mxu0 }
 0x1f3   : > { %v5559_v7 = vpop.f32.mrb[19].mxu0 }
 0x1f4   : > { %v7465_v2 = vadd.f32 %v5559_v7, %v5558_v15 }
 0x1f8   : > { %v5561_v33 = vpop.f32.mrb[20].mxu0 }
 0x1f9   : > { %v5562_v40 = vpop.f32.mrb[21].mxu0 }
 0x1fa   : > { %v7467_v21 = vadd.f32 %v5562_v40, %v5561_v33  ;;  %v5564_v13 = vpop.f32.mrb[22].mxu0 }
 0x1fb   : > { %v5565_v5 = vpop.f32.mrb[23].mxu0 }
 0x1fc   : > { %v7469_v58 = vadd.f32 %v5565_v5, %v5564_v13  ;;  %v4454_v13 = vadd.f32 %v7455_v56, %v7482_v10 }
 0x200   : > { %v5567_v0 = vpop.f32.mrb[24].mxu0 }
 0x201   : > { %v5568_v53 = vpop.f32.mrb[25].mxu0 }
 0x202   : > { %v7471_v60 = vadd.f32 %v5568_v53, %v5567_v0  ;;  %v5570_v42 = vpop.f32.mrb[26].mxu0 }
 0x203   : > { %v5571_v17 = vpop.f32.mrb[27].mxu0 }
 0x204   : > { %v7473_v39 = vadd.f32 %v5571_v17, %v5570_v42  ;;  %v4457_v17 = vadd.f32 %v7457_v1, %v7482_v10 }
 0x208   : > { %v5573_v47 = vpop.f32.mrb[28].mxu0 }
 0x209   : > { %v5574_v34 = vpop.f32.mrb[29].mxu0 }
 0x20a   : > { %v7475_v63 = vadd.f32 %v5574_v34, %v5573_v47  ;;  %v5576_v31 = vpop.f32.mrb[30].mxu0 }
 0x20b   : > { %v5577_v57 = vpop.f32.mrb[31].mxu0 }
 0x20c   : > { %v7477_v32 = vadd.f32 %v5577_v57, %v5576_v31 }
 0x20f   : > { %v5643_v11 = vpop.f32.mrb[0].mxu1 }
 0x210   : > { %v5579_v41 = vpop.f32.mrb[32].mxu0  ;;  %v5644_v44 = vpop.f32.mrb[1].mxu1 }
 0x211   : > { %v5580_v14 = vpop.f32.mrb[33].mxu0  ;;  %v5645_v45 = vadd.f32 %v5644_v44, %v5643_v11  ;;  %v5646_v51 = vpop.f32.mrb[2].mxu1 }
 0x212   : > { %v7485_v35 = vadd.f32 %v5580_v14, %v5579_v41  ;;  %v5582_v22 = vpop.f32.mrb[34].mxu0  ;;  %v5647_v25 = vpop.f32.mrb[3].mxu1 }
 0x213   : > { %v5583_v4 = vpop.f32.mrb[35].mxu0  ;;  %v5648_v3 = vadd.f32 %v5647_v25, %v5646_v51  ;;  %v7490_v12 = vadd.f32 %v5645_v45, %v4438_v55  ;;  %v4462_v55 = vadd.f32 %v7459_v54, %v7482_v10  ;;  %v7533_v54 = vld [vmem:[%s7692_s4] sm:$0x1] }
 0x214   : > { %v7488_v52 = vadd.f32 %v5583_v4, %v5582_v22  ;;  %v4465_v4 = vadd.f32 %v7461_v18, %v7482_v10  ;;  %5775 = vmatprep.mubr.msk.bf16.mxu1 %vm4945_vm1, %v7533_v54 }
 0x215   : > { %v7492_v49 = vadd.f32 %v5648_v3, %v4441_v16 }
 0x218   : > { %v5585_v38 = vpop.f32.mrb[36].mxu0 }
 0x219   : > { %v5586_v9 = vpop.f32.mrb[37].mxu0 }
 0x21a   : > { %v7494_v24 = vadd.f32 %v5586_v9, %v5585_v38  ;;  %v5588_v46 = vpop.f32.mrb[38].mxu0  ;;  %v5649_v61 = vpop.f32.mrb[4].mxu1 }
 0x21b   : > { %v5589_v28 = vpop.f32.mrb[39].mxu0  ;;  %v5650_v20 = vpop.f32.mrb[5].mxu1 }
 0x21c   : > { %v7496_v8 = vadd.f32 %v5589_v28, %v5588_v46  ;;  %v5651_v59 = vadd.f32 %v5650_v20, %v5649_v61  ;;  %v5652_v6 = vpop.f32.mrb[6].mxu1 }
 0x21d   : > { %v5653_v62 = vpop.f32.mrb[7].mxu1 }
 0x21e   : > { %v5654_v27 = vadd.f32 %v5653_v62, %v5652_v6  ;;  %v7502_v30 = vadd.f32 %v5651_v59, %v4446_v26  ;;  %v4470_v26 = vadd.f32 %v7463_v19, %v7482_v10 }
 0x220   : > { %v5591_v23 = vpop.f32.mrb[40].mxu0  ;;  %v7504_v36 = vadd.f32 %v5654_v27, %v4449_v48 }
 0x221   : > { %v5592_v50 = vpop.f32.mrb[41].mxu0 }
 0x222   : > { %v7506_v43 = vadd.f32 %v5592_v50, %v5591_v23  ;;  %v5594_v15 = vpop.f32.mrb[42].mxu0  ;;  %v4473_v23 = vadd.f32 %v7465_v2, %v7482_v10 }
 0x223   : > { %v5595_v7 = vpop.f32.mrb[43].mxu0 }
 0x224   : > { %v7508_v33 = vadd.f32 %v5595_v7, %v5594_v15 }
 0x225   : > { %v5655_v37 = vpop.f32.mrb[8].mxu1 }
 0x226   : > { %v5656_v40 = vpop.f32.mrb[9].mxu1 }
 0x227   : > { %v5657_v5 = vadd.f32 %v5656_v40, %v5655_v37  ;;  %v5658_v29 = vpop.f32.mrb[10].mxu1  ;;  %v4935_v40 = vld [vmem:[#allocation4] sm:$0x1] }
 0x228   : > { %v5597_v0 = vpop.f32.mrb[44].mxu0  ;;  %v5659_v53 = vpop.f32.mrb[11].mxu1  ;;  %4938 = vperm.xlu0 %5836, %v4935_v40  }
 0x229   : > { %v5598_v42 = vpop.f32.mrb[45].mxu0  ;;  %v5660_v47 = vadd.f32 %v5659_v53, %v5658_v29  ;;  %v7516_v57 = vadd.f32 %v5657_v5, %v4454_v13  ;;  %v4478_v53 = vadd.f32 %v7467_v21, %v7482_v10 }
 0x22a   : > { %v7514_v34 = vadd.f32 %v5598_v42, %v5597_v0  ;;  %v5600_v31 = vpop.f32.mrb[46].mxu0 }
 0x22b   : > { %v5601_v11 = vpop.f32.mrb[47].mxu0  ;;  %v7520_v44 = vadd.f32 %v5660_v47, %v4457_v17 }
 0x22c   : > { %v7518_v41 = vadd.f32 %v5601_v11, %v5600_v31  ;;  %v4481_v11 = vadd.f32 %v7469_v58, %v7482_v10 }
 0x22d   : > { %v5661_v56 = vpop.f32.mrb[12].mxu1 }
 0x22e   : > { %v5662_v14 = vpop.f32.mrb[13].mxu1 }
 0x22f   : > { %v5663_v45 = vadd.f32 %v5662_v14, %v5661_v56  ;;  %v5664_v51 = vpop.f32.mrb[14].mxu1 }
 0x230   : > { %v5603_v22 = vpop.f32.mrb[48].mxu0  ;;  %v5665_v1 = vpop.f32.mrb[15].mxu1 }
 0x231   : > { %v5604_v25 = vpop.f32.mrb[49].mxu0  ;;  %v5666_v16 = vadd.f32 %v5665_v1, %v5664_v51  ;;  %v7528_v9 = vadd.f32 %v5663_v45, %v4462_v55 }
 0x232   : > { %v7526_v3 = vadd.f32 %v5604_v25, %v5603_v22  ;;  %v5606_v38 = vpop.f32.mrb[50].mxu0 }
 0x233   : > { %v5607_v46 = vpop.f32.mrb[51].mxu0  ;;  %v7537_v28 = vadd.f32 %v5666_v16, %v4465_v4  ;;  %v4486_v4 = vadd.f32 %v7471_v60, %v7482_v10 }
 0x234   : > { %v7535_v61 = vadd.f32 %v5607_v46, %v5606_v38 }
 0x235   : > { %v5667_v18 = vpop.f32.mrb[16].mxu1 }
 0x236   : > { %v5668_v20 = vpop.f32.mrb[17].mxu1 }
 0x237   : > { %v5669_v59 = vadd.f32 %v5668_v20, %v5667_v18  ;;  %v5670_v6 = vpop.f32.mrb[18].mxu1  ;;  %v4489_v20 = vadd.f32 %v7473_v39, %v7482_v10 }
 0x238   : > { %v5609_v62 = vpop.f32.mrb[52].mxu0  ;;  %v5671_v48 = vpop.f32.mrb[19].mxu1 }
 0x239   : > { %v5610_v27 = vpop.f32.mrb[53].mxu0  ;;  %v5672_v50 = vadd.f32 %v5671_v48, %v5670_v6  ;;  %v7547_v37 = vadd.f32 %v5669_v59, %v4470_v26 }
 0x23a   : > { %v7545_v15 = vadd.f32 %v5610_v27, %v5609_v62  ;;  %v5612_v7 = vpop.f32.mrb[54].mxu0 }
 0x23b   : > { %v5613_v13 = vpop.f32.mrb[55].mxu0  ;;  %v7551_v19 = vadd.f32 %v5672_v50, %v4473_v23 }
 0x23c   : > { %v7549_v5 = vadd.f32 %v5613_v13, %v5612_v7  ;;  %v4494_v7 = vadd.f32 %v7475_v63, %v7482_v10 }
 0x23d   : > { %v5673_v29 = vpop.f32.mrb[20].mxu1 }
 0x23e   : > { %v5674_v0 = vpop.f32.mrb[21].mxu1 }
 0x23f   : > { %v5675_v42 = vadd.f32 %v5674_v0, %v5673_v29  ;;  %v5676_v2 = vpop.f32.mrb[22].mxu1 }
 0x240   : > { %v5615_v17 = vpop.f32.mrb[56].mxu0  ;;  %v5677_v47 = vpop.f32.mrb[23].mxu1 }
 0x241   : > { %v5616_v31 = vpop.f32.mrb[57].mxu0  ;;  %v5678_v56 = vadd.f32 %v5677_v47, %v5676_v2  ;;  %v7559_v45 = vadd.f32 %v5675_v42, %v4478_v53  ;;  %v4497_v42 = vadd.f32 %v7477_v32, %v7482_v10 }
 0x242   : > { %v7557_v14 = vadd.f32 %v5616_v31, %v5615_v17  ;;  %v5618_v55 = vpop.f32.mrb[58].mxu0 }
 0x243   : > { %v5619_v51 = vpop.f32.mrb[59].mxu0  ;;  %v7563_v1 = vadd.f32 %v5678_v56, %v4481_v11 }
 0x244   : > { %v7561_v22 = vadd.f32 %v5619_v51, %v5618_v55 }
 0x245   : > { %v5679_v21 = vpop.f32.mrb[24].mxu1 }
 0x246   : > { %v5680_v25 = vpop.f32.mrb[25].mxu1 }
 0x247   : > { %v5681_v16 = vadd.f32 %v5680_v25, %v5679_v21  ;;  %v5682_v38 = vpop.f32.mrb[26].mxu1 }
 0x248   : > { %v5621_v46 = vpop.f32.mrb[60].mxu0  ;;  %v5683_v58 = vpop.f32.mrb[27].mxu1 }
 0x249   : > { %v5622_v18 = vpop.f32.mrb[61].mxu0  ;;  %v5684_v26 = vadd.f32 %v5683_v58, %v5682_v38  ;;  %v7571_v62 = vadd.f32 %v5681_v16, %v4486_v4 }
 0x24a   : > { %v7569_v59 = vadd.f32 %v5622_v18, %v5621_v46  ;;  %v5624_v6 = vpop.f32.mrb[62].mxu0 }
 0x24b   : > { %v5625_v48 = vpop.f32.mrb[63].mxu0  ;;  %v7575_v23 = vadd.f32 %v5684_v26, %v4489_v20  ;;  %v4505_v26 = vadd.f32 %v7488_v52, %v7482_v10 }
 0x24c   : > { %v7573_v27 = vadd.f32 %v5625_v48, %v5624_v6 }
 0x24d   : > { %v5685_v60 = vpop.f32.mrb[28].mxu1 }
 0x24e   : > { %v5686_v50 = vpop.f32.mrb[29].mxu1 }
 0x24f   : > { %v5687_v40 = vadd.f32 %v5686_v50, %v5685_v60  ;;  %v5688_v13 = vpop.f32.mrb[30].mxu1 }
 0x250   : > { %v5787_v29 = vpop.f32.mrb[64].mxu0  ;;  %v5689_v39 = vpop.f32.mrb[31].mxu1 }
 0x251   : > { %v4768_v0 = vadd.f32 %v5787_v29, %v7502_v30  ;;  %v4759_v53 = vpop.f32.mrb[65].mxu0  ;;  %v5690_v2 = vadd.f32 %v5689_v39, %v5688_v13  ;;  %v7583_v31 = vadd.f32 %v5687_v40, %v4494_v7 }
 0x252   : > { %v4760_v17 = vadd.f32 %v4759_v53, %v7490_v12  ;;  %v5788_v47 = vpop.f32.mrb[66].mxu0  ;;  %v4502_v12 = vadd.f32 %v7485_v35, %v7482_v10 }
 0x253   : > { %v4771_v11 = vadd.f32 %v5788_v47, %v7504_v36  ;;  %v4762_v56 = vpop.f32.mrb[67].mxu0  ;;  %v7587_v55 = vadd.f32 %v5690_v2, %v4497_v42  ;;  %v4888_v51 = vmax.f32 %v4768_v0, 0.0 }
 0x254   : > { %v4763_v63 = vadd.f32 %v4762_v56, %v7492_v49  ;;  %v4886_v25 = vmax.f32 %v4760_v17, 0.0 }
 0x255   : > { %v4889_v21 = vmax.f32 %v4771_v11, 0.0  ;;  %v5691_v30 = vpop.f32.mrb[32].mxu1 }
 0x256   : > { %v4887_v4 = vmax.f32 %v4763_v63, 0.0  ;;  %v5692_v16 = vpop.f32.mrb[33].mxu1  ;;  %v4513_v63 = vadd.f32 %v7496_v8, %v7482_v10  ;;  %v4518_v8 = vadd.f32 %v7506_v43, %v7482_v10 }
 0x257   : > { %v7589_v32 = vpack.c.bf16 %v4889_v21, %v4888_v51  ;;  %v5693_v38 = vadd.f32 %v5692_v16, %v5691_v30  ;;  %v5694_v46 = vpop.f32.mrb[34].mxu1 }
 0x258   : > { %v7593_v58 = vpack.c.bf16 %v4887_v4, %v4886_v25  ;;  %v5791_v36 = vpop.f32.mrb[68].mxu0  ;;  %v5695_v18 = vpop.f32.mrb[35].mxu1 }
 0x259   : > { %v4784_v49 = vadd.f32 %v5791_v36, %v7528_v9  ;;  %v4775_v20 = vpop.f32.mrb[69].mxu0  ;;  %v5696_v6 = vadd.f32 %v5695_v18, %v5694_v46  ;;  %v7599_v50 = vadd.f32 %v5693_v38, %v4502_v12 }
 0x25a   : > { %v4776_v48 = vadd.f32 %v4775_v20, %v7516_v57  ;;  %v5792_v60 = vpop.f32.mrb[70].mxu0  ;;  %v4510_v57 = vadd.f32 %v7494_v24, %v7482_v10 }
 0x25b   : > { %v4787_v35 = vadd.f32 %v5792_v60, %v7537_v28  ;;  %v4778_v7 = vpop.f32.mrb[71].mxu0  ;;  %v7603_v13 = vadd.f32 %v5696_v6, %v4505_v26  ;;  %v4892_v29 = vmax.f32 %v4784_v49, 0.0 }
 0x25c   : > { %v4779_v40 = vadd.f32 %v4778_v7, %v7520_v44  ;;  %v4890_v0 = vmax.f32 %v4776_v48, 0.0 }
 0x25d   : > { %v4893_v39 = vmax.f32 %v4787_v35, 0.0  ;;  %v5697_v9 = vpop.f32.mrb[36].mxu1  ;;  %v4521_v35 = vadd.f32 %v7508_v33, %v7482_v10  ;;  %v4526_v33 = vadd.f32 %v7514_v34, %v7482_v10 }
 0x25e   : > { %v4891_v53 = vmax.f32 %v4779_v40, 0.0  ;;  %v5698_v42 = vpop.f32.mrb[37].mxu1 }
 0x25f   : > { %v7605_v52 = vpack.c.bf16 %v4893_v39, %v4892_v29  ;;  %v5699_v2 = vadd.f32 %v5698_v42, %v5697_v9  ;;  %v5700_v17 = vpop.f32.mrb[38].mxu1 }
 0x260   : > { %v7609_v47 = vpack.c.bf16 %v4891_v53, %v4890_v0  ;;  %v5795_v28 = vpop.f32.mrb[72].mxu0  ;;  %v5701_v11 = vpop.f32.mrb[39].mxu1 }
 0x261   : > { %v4800_v44 = vadd.f32 %v5795_v28, %v7559_v45  ;;  %v4791_v56 = vpop.f32.mrb[73].mxu0  ;;  %v5702_v51 = vadd.f32 %v5701_v11, %v5700_v17  ;;  %v4671_v25 = vadd.f32 %v5699_v2, %v4510_v57 }
 0x262   : > { %v4792_v21 = vadd.f32 %v4791_v56, %v7547_v37  ;;  %v5796_v30 = vpop.f32.mrb[74].mxu0 }
 0x263   : > { %v4803_v4 = vadd.f32 %v5796_v30, %v7563_v1  ;;  %v4794_v24 = vpop.f32.mrb[75].mxu0  ;;  %v4674_v12 = vadd.f32 %v5702_v51, %v4513_v63  ;;  %v4896_v38 = vmax.f32 %v4800_v44, 0.0 }
 0x264   : > { %v4795_v16 = vadd.f32 %v4794_v24, %v7551_v19  ;;  %v4894_v18 = vmax.f32 %v4792_v21, 0.0  ;;  %v4529_v21 = vadd.f32 %v7518_v41, %v7482_v10  ;;  %v4534_v41 = vadd.f32 %v7526_v3, %v7482_v10 }
 0x265   : > { %v4897_v46 = vmax.f32 %v4803_v4, 0.0  ;;  %v5703_v36 = vpop.f32.mrb[40].mxu1 }
 0x266   : > { %v4895_v45 = vmax.f32 %v4795_v16, 0.0  ;;  %v5704_v49 = vpop.f32.mrb[41].mxu1 }
 0x267   : > { %v7617_v20 = vpack.c.bf16 %v4897_v46, %v4896_v38  ;;  %v5705_v37 = vadd.f32 %v5704_v49, %v5703_v36  ;;  %v5706_v26 = vpop.f32.mrb[42].mxu1 }
 0x268   : > { %v7621_v6 = vpack.c.bf16 %v4895_v45, %v4894_v18  ;;  %v5799_v1 = vpop.f32.mrb[76].mxu0  ;;  %v5707_v48 = vpop.f32.mrb[43].mxu1 }
 0x269   : > { %v4816_v19 = vadd.f32 %v5799_v1, %v7583_v31  ;;  %v4807_v60 = vpop.f32.mrb[77].mxu0  ;;  %v5708_v7 = vadd.f32 %v5707_v48, %v5706_v26  ;;  %v4679_v39 = vadd.f32 %v5705_v37, %v4518_v8 }
 0x26a   : > { %v4808_v40 = vadd.f32 %v4807_v60, %v7571_v62  ;;  %v5800_v29 = vpop.f32.mrb[78].mxu0 }
 0x26b   : > { %v4819_v9 = vadd.f32 %v5800_v29, %v7587_v55  ;;  %v4810_v43 = vpop.f32.mrb[79].mxu0  ;;  %v4682_v53 = vadd.f32 %v5708_v7, %v4521_v35  ;;  %v4900_v42 = vmax.f32 %v4816_v19, 0.0 }
 0x26c   : > { %v4811_v0 = vadd.f32 %v4810_v43, %v7575_v23  ;;  %v4898_v17 = vmax.f32 %v4808_v40, 0.0 }
 0x26d   : > { %v4901_v57 = vmax.f32 %v4819_v9, 0.0  ;;  %v5709_v2 = vpop.f32.mrb[44].mxu1  ;;  %v4950_v9 = vsel %vm4945_vm1, %v7593_v58, 0 }
 0x26e   : > { %v4899_v31 = vmax.f32 %v4811_v0, 0.0  ;;  %v5710_v28 = vpop.f32.mrb[45].mxu1 }
 0x26f   : > { %v7629_v11 = vpack.c.bf16 %v4901_v57, %v4900_v42  ;;  %v5711_v62 = vadd.f32 %v5710_v28, %v5709_v2  ;;  %v5712_v44 = vpop.f32.mrb[46].mxu1 }
 0x270   : > { %v7633_v56 = vpack.c.bf16 %v4899_v31, %v4898_v17  ;;  %v5803_v55 = vpop.f32.mrb[80].mxu0  ;;  %v5713_v63 = vpop.f32.mrb[47].mxu1 }
 0x271   : > { %v4832_v51 = vadd.f32 %v5803_v55, %v4671_v25  ;;  %v4823_v23 = vpop.f32.mrb[81].mxu0  ;;  %v5714_v30 = vadd.f32 %v5713_v63, %v5712_v44  ;;  %v4687_v16 = vadd.f32 %v5711_v62, %v4526_v33  ;;  %v4542_v62 = vadd.f32 %v7545_v15, %v7482_v10 }
 0x272   : > { %v4824_v4 = vadd.f32 %v4823_v23, %v7599_v50  ;;  %v5804_v24 = vpop.f32.mrb[82].mxu0 }
 0x273   : > { %v4835_v38 = vadd.f32 %v5804_v24, %v4674_v12  ;;  %v4826_v46 = vpop.f32.mrb[83].mxu0  ;;  %v4690_v36 = vadd.f32 %v5714_v30, %v4529_v21  ;;  %v4904_v18 = vmax.f32 %v4832_v51, 0.0  ;;  %v4537_v12 = vadd.f32 %v7535_v61, %v7482_v10 }
 0x274   : > { %v4827_v34 = vadd.f32 %v4826_v46, %v7603_v13  ;;  %v4902_v8 = vmax.f32 %v4824_v4, 0.0 }
 0x275   : > { %v4905_v45 = vmax.f32 %v4835_v38, 0.0  ;;  %v5715_v49 = vpop.f32.mrb[48].mxu1 }
 0x276   : > { %v4903_v37 = vmax.f32 %v4827_v34, 0.0  ;;  %v5716_v25 = vpop.f32.mrb[49].mxu1 }
 0x277   : > { %v4928_v26 = vpack.c.bf16 %v4905_v45, %v4904_v18  ;;  %v5717_v1 = vadd.f32 %v5716_v25, %v5715_v49  ;;  %v5718_v48 = vpop.f32.mrb[50].mxu1 }
 0x278   : > { %v4927_v50 = vpack.c.bf16 %v4903_v37, %v4902_v8  ;;  %v5807_v19 = vpop.f32.mrb[84].mxu0  ;;  %v5719_v60 = vpop.f32.mrb[51].mxu1 }
 0x279   : > { %v4848_v13 = vadd.f32 %v5807_v19, %v4687_v16  ;;  %v4839_v35 = vpop.f32.mrb[85].mxu0  ;;  %v5720_v7 = vadd.f32 %v5719_v60, %v5718_v48  ;;  %v4695_v43 = vadd.f32 %v5717_v1, %v4534_v41  ;;  %v4953_v16 = vsel %vm4945_vm1, %v7589_v32, 0 }
 0x27a   : > { %v4840_v40 = vadd.f32 %v4839_v35, %v4679_v39  ;;  %v5808_v29 = vpop.f32.mrb[86].mxu0  ;;  %5817 = vmatprep.subr.msk.bf16.mxu1 %vm4945_vm1, %v4927_v50  ;;  %v4956_v32 = vsel %vm4945_vm1, %v7609_v47, 0  ;;  %v4550_v19 = vadd.f32 %v7557_v14, %v7482_v10  ;;  %v4553_v35 = vadd.f32 %v7561_v22, %v7482_v10 }
 0x27b   : > { %v4851_v3 = vadd.f32 %v5808_v29, %v4690_v36  ;;  %v4842_v0 = vpop.f32.mrb[87].mxu0  ;;  %5760 = vmatpush3.bf16.xpose.msra.mxu1 %v4950_v9  ;;  %v4698_v57 = vadd.f32 %v5720_v7, %v4537_v12  ;;  %v4908_v61 = vmax.f32 %v4848_v13, 0.0  ;;  %v4959_v47 = vsel %vm4945_vm1, %v7605_v52, 0 }
 0x27c   : > { %v4843_v42 = vadd.f32 %v4842_v0, %v4682_v53  ;;  %5818 = vmatprep.subr.msk.bf16.mxu1 %vm4945_vm1, %v4928_v26  ;;  %v4906_v31 = vmax.f32 %v4840_v40, 0.0  ;;  %v4545_v53 = vadd.f32 %v7549_v5, %v7482_v10  ;;  %v4558_v14 = vadd.f32 %v7569_v59, %v7482_v10 }
 0x27d   : > { %v4909_v2 = vmax.f32 %v4851_v3, 0.0  ;;  %v5721_v17 = vpop.f32.mrb[52].mxu1 }
 0x27e   : > { %v4907_v28 = vmax.f32 %v4843_v42, 0.0  ;;  %v5722_v39 = vpop.f32.mrb[53].mxu1 }
 0x27f   : > { %v4930_v33 = vpack.c.bf16 %v4909_v2, %v4908_v61  ;;  %v5723_v44 = vadd.f32 %v5722_v39, %v5721_v17  ;;  %v5724_v58 = vpop.f32.mrb[54].mxu1  ;;  %v4561_v17 = vadd.f32 %v7573_v27, %v7482_v10  ;;  %v4968_v10 = vsel %vm4945_vm1, %v7633_v56, 0 }
 0x280   : > { %v4929_v55 = vpack.c.bf16 %v4907_v28, %v4906_v31  ;;  %v5811_v63 = vpop.f32.mrb[88].mxu0  ;;  %v5725_v51 = vpop.f32.mrb[55].mxu1  ;;  %v4971_v27 = vsel %vm4945_vm1, %v7629_v11, 0 }
 0x281   : > { %v4855_v23 = vpop.f32.mrb[89].mxu0  ;;  %v5726_v21 = vadd.f32 %v5725_v51, %v5724_v58  ;;  %v4703_v30 = vadd.f32 %v5723_v44, %v4542_v62  ;;  %v4962_v62 = vsel %vm4945_vm1, %v7621_v6, 0  ;;  %v4941_v6 = vlaneseq }
 0x282   : > { %v4856_v4 = vadd.f32 %v4855_v23, %v4695_v43  ;;  %v5812_v24 = vpop.f32.mrb[90].mxu0  ;;  %v5933_v23 = vmov 1966171168  }
 0x283   : > { %v4858_v38 = vpop.f32.mrb[91].mxu0  ;;  %5762 = vmatpush3.bf16.xpose.msra.mxu1 %v4953_v16  ;;  %v4864_v46 = vadd.f32 %v5811_v63, %v4703_v30  ;;  %v4706_v15 = vadd.f32 %v5726_v21, %v4545_v53  ;;  %v4965_v63 = vsel %vm4945_vm1, %v7617_v20, 0  ;;  %v4942_v53 = vshrl.u32 %v4941_v6, 7 }
 0x284   : > { %v4859_v34 = vadd.f32 %v4858_v38, %v4698_v57  ;;  %5819 = vmatprep.subr.msk.bf16.mxu1 %vm4945_vm1, %v4929_v55  ;;  %v4910_v36 = vmax.f32 %v4856_v4, 0.0  ;;  %v5042_v21 = vunpack.c.l.s4 %v5933_v23  ;;  %vm5058_vm2 = vcmp.lt.s32.totalorder %v4941_v6, 256 }
 0x285   : > { %v4867_v18 = vadd.f32 %v5812_v24, %v4706_v15  ;;  %v4912_v5 = vmax.f32 %v4864_v46, 0.0  ;;  %v4943_v20 = vsub.s32 0, %v4942_v53 }
 0x286   : > { %v4911_v45 = vmax.f32 %v4859_v34, 0.0  ;;  %v5043_v4 = vunpack.c.0.s8 %v5042_v21 }
 0x287   : > { %v4913_v49 = vmax.f32 %v4867_v18, 0.0 }
 0x288   : > { %v4931_v8 = vpack.c.bf16 %v4911_v45, %v4910_v36  ;;  %v5815_v37 = vpop.f32.mrb[92].mxu0  ;;  %v5046_v46 = vsub.s32 %v5043_v4, %v4942_v53 }
 0x289   : > { %v4871_v25 = vpop.f32.mrb[93].mxu0  ;;  %v4932_v26 = vpack.c.bf16 %v4913_v49, %v4912_v5 }
 0x28a   : > { %v5816_v41 = vpop.f32.mrb[94].mxu0 }
 0x28b   : > { %v5727_v1 = vpop.f32.mrb[56].mxu1  ;;  %v4874_v48 = vpop.f32.mrb[95].mxu0  ;;  %5764 = vmatpush3.bf16.xpose.msra.mxu1 %v4956_v32 }
 0x28c   : > { %v5728_v50 = vpop.f32.mrb[57].mxu1  ;;  %5820 = vmatprep.subr.msk.bf16.mxu1 %vm4945_vm1, %v4930_v33 }
 0x28d   : > { %v5729_v12 = vadd.f32 %v5728_v50, %v5727_v1  ;;  %v5730_v60 = vpop.f32.mrb[58].mxu1 }
 0x28e   : > { %v5731_v13 = vpop.f32.mrb[59].mxu1 }
 0x28f   : > { %v5732_v7 = vadd.f32 %v5731_v13, %v5730_v60  ;;  %v4711_v40 = vadd.f32 %v5729_v12, %v4550_v19 }
 0x291   : > { %v4872_v29 = vadd.f32 %v4871_v25, %v4711_v40  ;;  %v4714_v9 = vadd.f32 %v5732_v7, %v4553_v35 }
 0x293   : > { %v5733_v43 = vpop.f32.mrb[60].mxu1  ;;  %v4875_v3 = vadd.f32 %v4874_v48, %v4714_v9  ;;  %5766 = vmatpush3.bf16.xpose.msra.mxu1 %v4959_v47  ;;  %v4914_v61 = vmax.f32 %v4872_v29, 0.0 }
 0x294   : > { %v5734_v0 = vpop.f32.mrb[61].mxu1  ;;  %5821 = vmatprep.subr.msk.bf16.mxu1 %vm4945_vm1, %v4931_v8 }
 0x295   : > { %v5735_v42 = vadd.f32 %v5734_v0, %v5733_v43  ;;  %v5736_v57 = vpop.f32.mrb[62].mxu1  ;;  %v4915_v22 = vmax.f32 %v4875_v3, 0.0 }
 0x296   : > { %v5737_v2 = vpop.f32.mrb[63].mxu1 }
 0x297   : > { %v5738_v31 = vadd.f32 %v5737_v2, %v5736_v57  ;;  %v4719_v28 = vadd.f32 %v5735_v42, %v4558_v14  ;;  %v4933_v52 = vpack.c.bf16 %v4915_v22, %v4914_v61 }
 0x299   : > { %v4880_v39 = vadd.f32 %v5815_v37, %v4719_v28  ;;  %v4722_v33 = vadd.f32 %v5738_v31, %v4561_v17 }
 0x29b   : > { %v4883_v44 = vadd.f32 %v5816_v41, %v4722_v33  ;;  %5768 = vmatpush3.bf16.xpose.msra.mxu1 %v4962_v62  ;;  %v4916_v59 = vmax.f32 %v4880_v39, 0.0 }
 0x29c   : > { %5822 = vmatprep.subr.msk.bf16.mxu1 %vm4945_vm1, %v4932_v26 }
 0x29d   : > { %v4917_v58 = vmax.f32 %v4883_v44, 0.0 }
 0x29f   : > { %v4934_v55 = vpack.c.bf16 %v4917_v58, %v4916_v59 }
 0x2a3   : > { %5770 = vmatpush3.bf16.xpose.msra.mxu1 %v4965_v63 }
 0x2a4   : > { %5823 = vmatprep.subr.msk.bf16.mxu1 %vm4945_vm1, %v4933_v52 }
 0x2a7   : > { %v4939_v51 = vpop.permute.xlu0 %4938 }
 0x2a8   : > { %v4944_v30 = vrot.slane %v4939_v51, %v4943_v20 }
 0x2ab   : > { %5772 = vmatpush3.bf16.xpose.msra.mxu1 %v4968_v10 }
 0x2ac   : > { %5824 = vmatprep.subr.msk.bf16.mxu1 %vm4945_vm1, %v4934_v55 }
 0x2b3   : > { %5774 = vmatpush3.bf16.xpose.msra.mxu1 %v4971_v27 }
 0x2ba   : > { %5776 = vmatmul.mubr.msk.bf16.vlgmr.msra.gmra.mrb[64].mxu1 %vm4945_vm1, %v7533_v54 }
 0x38d   : > { %v5031_v56 = vpop.f32.mrb[64].mxu1 }
 0x38e   : > { %v5032_v24 = vadd.f32 %v5031_v56, %v4944_v30  ;;  %v5033_v16 = vpop.f32.mrb[65].mxu1 }
 0x38f   : > { %v5034_v38 = vadd.f32 %v5033_v16, %v4944_v30  ;;  %v5035_v15 = vpop.f32.mrb[66].mxu1 }
 0x390   : > { %v5036_v11 = vpop.f32.mrb[67].mxu1 }
 0x391   : > { %v5040_v34 = vcombine.low %v5032_v24, %v5034_v38 }
 0x393   : > { %v5047_v36 = vrot.slane %v5040_v34, %v5046_v46 }
 0x395   : > { %v5054_v54 = vrot.slane %v5047_v36, %v5046_v46 }
 0x397   : > { %5060 = vst.msk [vmem:[%s251_s25] sm:$0x3] %vm5058_vm2, %v5054_v54 }
 0x398 PF: > { %s18_s23 = sadd.s32 1, %s5929_s23  }
 0x399   : > { %p15_p4 = scmp.ge.s32.totalorder %s18_s23, 4  }
 0x39b   :  { %17 = sbr.rel (!%p15_p4) target bundleno = 3 (0x3), region = 77 }

</bundles_post_ra>
